<compile_context>
chip_gen: v5e
topology: v5e:2x2
jax: 0.10.0
libtpu: 0.0.40
codegen_flags: <defaults>
</compile_context>

<pallas_src>
import numpy as np
import jax
import jax.numpy as jnp
from jax.experimental import pallas as pl
from jax.experimental.pallas import tpu as pltpu

KSIZE, STRIDE, PAD = 3, 2, 1
NUM_TAPS = KSIZE * KSIZE


# --------------------------------------------------------------------------- #
# Fused Pallas kernel: conv stack + attention + projection, all VMEM-resident
# --------------------------------------------------------------------------- #
def fused_branch_kernel(
    x_ref,                                    # [N*H*W, Cin]          bf16
    s1_ref, w1_ref, sc1_ref, b1_ref,          # layer l: S[9,N*Ml,N*M(l-1)], W[9,Cin_l,Cout_l], scale/bias [1,Cout_l]
    s2_ref, w2_ref, sc2_ref, b2_ref,
    s3_ref, w3_ref, sc3_ref, b3_ref,
    s4_ref, w4_ref, sc4_ref, b4_ref,
    wa_ref, ba_ref, wp_ref, bp_ref,           # attention [64,1], bias (SMEM), projection [64,Co], [1,Co]
    o_ref,                                    # [N*Ho*Wo, Co]         f32
):
    layers = (
        (s1_ref, w1_ref, sc1_ref, b1_ref),
        (s2_ref, w2_ref, sc2_ref, b2_ref),
        (s3_ref, w3_ref, sc3_ref, b3_ref),
        (s4_ref, w4_ref, sc4_ref, b4_ref),
    )

    x = x_ref[...]                             # [N*H*W, Cin] bf16, batch folded into rows
    feat = None

    # ---- conv3x3(s2,p1) + folded BN + ReLU stack (activations stay in VMEM) ----------- #
    for s_ref, w_ref, sc_ref, b_ref in layers:
        m_out = s_ref.shape[1]
        cout = w_ref.shape[2]
        acc = jnp.zeros((m_out, cout), jnp.float32)
        for k in range(NUM_TAPS):              # 9 kernel taps, unrolled at trace time
            # spatial gather of tap k on the MXU (zero padding == all-zero rows of S_k)
            p_k = jnp.dot(s_ref[k], x, preferred_element_type=jnp.float32)
            acc = acc + jnp.dot(p_k.astype(jnp.bfloat16), w_ref[k],
                                preferred_element_type=jnp.float32)
        # folded BatchNorm (+ conv bias) and ReLU in f32
        feat = jnp.maximum(acc * sc_ref[...] + b_ref[...], 0.0)
        x = feat.astype(jnp.bfloat16)           # bf16 operand for the next MXU stage

    # ---- attention: 1x1 conv -> sigmoid (MXU dot + EUP exp/approx-reciprocal) --------- #
    ba = ba_ref[0, 0]                           # scalar attention bias from SMEM
    logits = jnp.dot(x, wa_ref[...], preferred_element_type=jnp.float32) + ba
    attn = pl.reciprocal(1.0 + jnp.exp(-logits), approx=True)      # sigmoid, [N*M, 1]
    attended = feat * attn                                          # broadcast over channels

    # ---- 1x1 projection ---------------------------------------------------------------- #
    out = jnp.dot(attended.astype(jnp.bfloat16), wp_ref[...],
                  preferred_element_type=jnp.float32) + bp_ref[...]
    o_ref[...] = out.astype(o_ref.dtype)


# --------------------------------------------------------------------------- #
# Host-side helpers (trace-time constants; no per-layer XLA glue at runtime)
# --------------------------------------------------------------------------- #
def _selection_matrices(n, h, w):
    """Block-diagonal 0/1 matrices S[k]: [N*Ho*Wo, N*H*W]; row (b,p) selects the input pixel of
    sample b feeding output pixel p through tap k of a 3x3 / stride-2 / pad-1 conv.
    Out-of-bounds taps -> all-zero row (free zero padding)."""
    ho = (h + 2 * PAD - KSIZE) // STRIDE + 1
    wo = (w + 2 * PAD - KSIZE) // STRIDE + 1
    s1 = np.zeros((NUM_TAPS, ho * wo, h * w), np.float32)
    for oy in range(ho):
        for ox in range(wo):
            p = oy * wo + ox
            for kh in range(KSIZE):
                for kw in range(KSIZE):
                    iy = oy * STRIDE + kh - PAD
                    ix = ox * STRIDE + kw - PAD
                    if 0 <= iy < h and 0 <= ix < w:
                        s1[kh * KSIZE + kw, p, iy * w + ix] = 1.0
    s = np.zeros((NUM_TAPS, n * ho * wo, n * h * w), np.float32)
    for b in range(n):
        s[:, b * ho * wo:(b + 1) * ho * wo, b * h * w:(b + 1) * h * w] = s1
    return s, ho, wo


def _build_operands(params, n, h, w):
    """Kernel operands (after x) + matching BlockSpecs + final spatial size."""
    operands, specs = [], []

    def add(arr, smem=False):
        operands.append(arr)
        if smem:
            specs.append(pl.BlockSpec(memory_space=pltpu.MemorySpace.SMEM))
        else:
            nd = arr.ndim
            specs.append(pl.BlockSpec(tuple(arr.shape), lambda i, nd=nd: (0,) * nd))

    for wmat, scale, bias in params["convs"]:
        s_np, h, w = _selection_matrices(n, h, w)
        cin = wmat.shape[0] // NUM_TAPS
        cout = wmat.shape[1]
        add(jnp.asarray(s_np, jnp.bfloat16))                              # S_k gather matrices
        add(wmat.reshape(NUM_TAPS, cin, cout).astype(jnp.bfloat16))       # per-tap weights
        add(scale.reshape(1, cout).astype(jnp.float32))                   # folded BN scale
        add(bias.reshape(1, cout).astype(jnp.float32))                    # folded BN bias

    wa, ba = params["attn"]
    wp, bp = params["proj"]
    add(wa.astype(jnp.bfloat16))                                          # [64, 1]
    add(ba.reshape(1, 1).astype(jnp.float32), smem=True)                  # scalar -> SMEM
    add(wp.astype(jnp.bfloat16))                                          # [64, Co]
    add(bp.reshape(1, -1).astype(jnp.float32))                            # [1, Co]
    return operands, specs, (h, w)


def tiny_spatial_branch(x_nchw, params):
    n, cin, h, w = x_nchw.shape
    operands, specs, (ho, wo) = _build_operands(params, n, h, w)
    co = params["proj"][0].shape[1]
    m_in, m_out = n * h * w, n * ho * wo

    x2d = jnp.transpose(x_nchw, (0, 2, 3, 1)).reshape(m_in, cin).astype(jnp.bfloat16)
    in_specs = [pl.BlockSpec((m_in, cin), lambda i: (0, 0))] + specs

    out = pl.pallas_call(
        fused_branch_kernel,
        out_shape=jax.ShapeDtypeStruct((m_out, co), jnp.float32),
        grid=(1,),
        in_specs=in_specs,
        out_specs=pl.BlockSpec((m_out, co), lambda i: (0, 0)),
        compiler_params=pltpu.CompilerParams(dimension_semantics=("arbitrary",)),
    )(x2d, *operands)
    out = out.reshape(n, ho, wo, co)
    return jnp.transpose(out, (0, 3, 1, 2))                               # NHWC -> NCHW


# --------------------------------------------------------------------------- #
# Deterministic parameters (matches PyTorch module shapes; BN inference semantics)
# --------------------------------------------------------------------------- #
def init_params(key, input_channels=3, output_channels=32):
    chans = [input_channels, 16, 32, 48, 64]
    eps = 1e-5
    keys = jax.random.split(key, 12)
    ki = 0
    convs = []
    for i in range(4):
        cin, cout = chans[i], chans[i + 1]
        wk = jax.random.normal(keys[ki], (3, 3, cin, cout), jnp.float32) / jnp.sqrt(9.0 * cin); ki += 1
        b = jax.random.normal(keys[ki], (cout,), jnp.float32) * 0.01; ki += 1
        gamma = jnp.ones((cout,), jnp.float32)
        beta = jnp.zeros((cout,), jnp.float32)
        mean = jnp.zeros((cout,), jnp.float32)
        var = jnp.ones((cout,), jnp.float32)
        bn_scale = gamma / jnp.sqrt(var + eps)
        bn_shift = beta - mean * bn_scale
        wmat = wk.reshape(9 * cin, cout)                  # K order = (kh, kw, cin)
        convs.append((wmat, bn_scale, b * bn_scale + bn_shift))
    wa = jax.random.normal(keys[ki], (64, 1), jnp.float32) / 8.0; ki += 1
    ba = jnp.full((1,), 0.1, jnp.float32)
    wp = jax.random.normal(keys[ki], (64, output_channels), jnp.float32) / 8.0; ki += 1
    bp = jax.random.normal(keys[ki], (output_channels,), jnp.float32) * 0.01; ki += 1
    return {"convs": convs, "attn": (wa, ba), "proj": (wp, bp)}


# --------------------------------------------------------------------------- #
# Pure-JAX f32 reference (same math, no Pallas) for correctness checking
# --------------------------------------------------------------------------- #
def _im2col(x):
    n, h, w, c = x.shape
    ho = (h + 2 * PAD - KSIZE) // STRIDE + 1
    wo = (w + 2 * PAD - KSIZE) // STRIDE + 1
    xp = jnp.pad(x, ((0, 0), (PAD, PAD), (PAD, PAD), (0, 0)))
    cols = [xp[:, kh:kh + STRIDE * ho:STRIDE, kw:kw + STRIDE * wo:STRIDE, :]
            for kh in range(KSIZE) for kw in range(KSIZE)]
    return jnp.concatenate(cols, axis=-1).reshape(n * ho * wo, NUM_TAPS * c), (n, ho, wo)


def reference_forward(x_nchw, params):
    x = jnp.transpose(x_nchw, (0, 2, 3, 1))
    for wmat, scale, bias in params["convs"]:
        patches, (n, ho, wo) = _im2col(x)
        y = jnp.maximum(patches @ wmat * scale[None, :] + bias[None, :], 0.0)
        x = y.reshape(n, ho, wo, -1)
    n, ho, wo, c = x.shape
    f = x.reshape(n * ho * wo, c)
    wa, ba = params["attn"]
    wp, bp = params["proj"]
    attn = 1.0 / (1.0 + jnp.exp(-(f @ wa + ba[None, :])))
    out = (f * attn) @ wp + bp[None, :]
    return jnp.transpose(out.reshape(n, ho, wo, -1), (0, 3, 1, 2))


# --------------------------------------------------------------------------- #
if __name__ == "__main__":
    N, CIN, H, W = 2, 3, 16, 16
    key = jax.random.PRNGKey(0)
    kx, kp = jax.random.split(key)
    x = jax.random.normal(kx, (N, CIN, H, W), dtype=jnp.float32)
    params = init_params(kp, input_channels=CIN, output_channels=32)

    out = jax.block_until_ready(tiny_spatial_branch(x, params))   # [2, 32, 1, 1]
    ref = jax.block_until_ready(reference_forward(x, params))

    assert out.shape == (N, 32, H // 16, W // 16), out.shape
    # bf16 MXU operands with f32 accumulation -> slightly looser tolerance than pure f32
    assert jnp.allclose(out, ref, rtol=3e-2, atol=3e-2), float(jnp.max(jnp.abs(out - ref)))
    print("KERNEL_OK")
</pallas_src>

<mosaic_0001>
module attributes {stable_mosaic.version = 11 : i64} {
  func.func @fused_branch_kernel(%arg0: i32, %arg1: memref<512x3xbf16, #tpu.memory_space<vmem>>, %arg2: memref<9x128x512xbf16, #tpu.memory_space<vmem>>, %arg3: memref<9x3x16xbf16, #tpu.memory_space<vmem>>, %arg4: memref<1x16xf32, #tpu.memory_space<vmem>>, %arg5: memref<1x16xf32, #tpu.memory_space<vmem>>, %arg6: memref<9x32x128xbf16, #tpu.memory_space<vmem>>, %arg7: memref<9x16x32xbf16, #tpu.memory_space<vmem>>, %arg8: memref<1x32xf32, #tpu.memory_space<vmem>>, %arg9: memref<1x32xf32, #tpu.memory_space<vmem>>, %arg10: memref<9x8x32xbf16, #tpu.memory_space<vmem>>, %arg11: memref<9x32x48xbf16, #tpu.memory_space<vmem>>, %arg12: memref<1x48xf32, #tpu.memory_space<vmem>>, %arg13: memref<1x48xf32, #tpu.memory_space<vmem>>, %arg14: memref<9x2x8xbf16, #tpu.memory_space<vmem>>, %arg15: memref<9x48x64xbf16, #tpu.memory_space<vmem>>, %arg16: memref<1x64xf32, #tpu.memory_space<vmem>>, %arg17: memref<1x64xf32, #tpu.memory_space<vmem>>, %arg18: memref<64x1xbf16, #tpu.memory_space<vmem>>, %arg19: memref<1x1xf32, #tpu.memory_space<smem>>, %arg20: memref<64x32xbf16, #tpu.memory_space<vmem>>, %arg21: memref<1x32xf32, #tpu.memory_space<vmem>>, %arg22: memref<2x32xf32, #tpu.memory_space<vmem>>) attributes {dimension_semantics = [#tpu.dimension_semantics<arbitrary>], iteration_bounds = array<i64: 1>, scalar_prefetch = 0 : i64, scratch_operands = 0 : i64, tpu.core_type = #tpu.core_type<tc>, window_params = [{pipeline_mode = #tpu.pipeline_mode<synchronous>, transform_indices = @transform_0, window_bounds = array<i64: 512, 3>}, {pipeline_mode = #tpu.pipeline_mode<synchronous>, transform_indices = @transform_1, window_bounds = array<i64: 9, 128, 512>}, {pipeline_mode = #tpu.pipeline_mode<synchronous>, transform_indices = @transform_2, window_bounds = array<i64: 9, 3, 16>}, {pipeline_mode = #tpu.pipeline_mode<synchronous>, transform_indices = @transform_3, window_bounds = array<i64: 1, 16>}, {pipeline_mode = #tpu.pipeline_mode<synchronous>, transform_indices = @transform_4, window_bounds = array<i64: 1, 16>}, {pipeline_mode = #tpu.pipeline_mode<synchronous>, transform_indices = @transform_5, window_bounds = array<i64: 9, 32, 128>}, {pipeline_mode = #tpu.pipeline_mode<synchronous>, transform_indices = @transform_6, window_bounds = array<i64: 9, 16, 32>}, {pipeline_mode = #tpu.pipeline_mode<synchronous>, transform_indices = @transform_7, window_bounds = array<i64: 1, 32>}, {pipeline_mode = #tpu.pipeline_mode<synchronous>, transform_indices = @transform_8, window_bounds = array<i64: 1, 32>}, {pipeline_mode = #tpu.pipeline_mode<synchronous>, transform_indices = @transform_9, window_bounds = array<i64: 9, 8, 32>}, {pipeline_mode = #tpu.pipeline_mode<synchronous>, transform_indices = @transform_10, window_bounds = array<i64: 9, 32, 48>}, {pipeline_mode = #tpu.pipeline_mode<synchronous>, transform_indices = @transform_11, window_bounds = array<i64: 1, 48>}, {pipeline_mode = #tpu.pipeline_mode<synchronous>, transform_indices = @transform_12, window_bounds = array<i64: 1, 48>}, {pipeline_mode = #tpu.pipeline_mode<synchronous>, transform_indices = @transform_13, window_bounds = array<i64: 9, 2, 8>}, {pipeline_mode = #tpu.pipeline_mode<synchronous>, transform_indices = @transform_14, window_bounds = array<i64: 9, 48, 64>}, {pipeline_mode = #tpu.pipeline_mode<synchronous>, transform_indices = @transform_15, window_bounds = array<i64: 1, 64>}, {pipeline_mode = #tpu.pipeline_mode<synchronous>, transform_indices = @transform_16, window_bounds = array<i64: 1, 64>}, {pipeline_mode = #tpu.pipeline_mode<synchronous>, transform_indices = @transform_17, window_bounds = array<i64: 64, 1>}, {transform_indices = @transform_18, window_bounds = array<i64: 1, 1>}, {pipeline_mode = #tpu.pipeline_mode<synchronous>, transform_indices = @transform_19, window_bounds = array<i64: 64, 32>}, {pipeline_mode = #tpu.pipeline_mode<synchronous>, transform_indices = @transform_20, window_bounds = array<i64: 1, 32>}, {pipeline_mode = #tpu.pipeline_mode<synchronous>, transform_indices = @transform_21, window_bounds = array<i64: 2, 32>}]} {
    %c0 = arith.constant 0 : index
    %c0_0 = arith.constant 0 : index
    %0 = vector.load %arg1[%c0, %c0_0] : memref<512x3xbf16, #tpu.memory_space<vmem>>, vector<512x3xbf16>
    %cst = arith.constant 0.000000e+00 : f32
    %1 = vector.broadcast %cst : f32 to vector<128x16xf32>
    %c0_1 = arith.constant 0 : index
    %c0_2 = arith.constant 0 : index
    %c0_3 = arith.constant 0 : index
    %2 = vector.load %arg2[%c0_1, %c0_2, %c0_3] : memref<9x128x512xbf16, #tpu.memory_space<vmem>>, vector<1x128x512xbf16>
    %3 = vector.shape_cast %2 : vector<1x128x512xbf16> to vector<128x512xbf16>
    %cst_4 = arith.constant dense<0.000000e+00> : vector<128x3xf32>
    %4 = tpu.matmul %3, %0, %cst_4 {dimension_numbers = #tpu.dot_dimension_numbers<[1], [0], [0], [1], [0, 0, 1, 1], [], []>} : vector<128x512xbf16>, vector<512x3xbf16>, vector<128x3xf32> -> vector<128x3xf32>
    %5 = arith.truncf %4 : vector<128x3xf32> to vector<128x3xbf16>
    %c0_5 = arith.constant 0 : index
    %c0_6 = arith.constant 0 : index
    %c0_7 = arith.constant 0 : index
    %6 = vector.load %arg3[%c0_5, %c0_6, %c0_7] : memref<9x3x16xbf16, #tpu.memory_space<vmem>>, vector<1x3x16xbf16>
    %7 = vector.shape_cast %6 : vector<1x3x16xbf16> to vector<3x16xbf16>
    %cst_8 = arith.constant dense<0.000000e+00> : vector<128x16xf32>
    %8 = tpu.matmul %5, %7, %cst_8 {dimension_numbers = #tpu.dot_dimension_numbers<[1], [0], [0], [1], [0, 0, 1, 1], [], []>} : vector<128x3xbf16>, vector<3x16xbf16>, vector<128x16xf32> -> vector<128x16xf32>
    %9 = arith.addf %1, %8 : vector<128x16xf32>
    %c1 = arith.constant 1 : index
    %c0_9 = arith.constant 0 : index
    %c0_10 = arith.constant 0 : index
    %10 = vector.load %arg2[%c1, %c0_9, %c0_10] : memref<9x128x512xbf16, #tpu.memory_space<vmem>>, vector<1x128x512xbf16>
    %11 = vector.shape_cast %10 : vector<1x128x512xbf16> to vector<128x512xbf16>
    %cst_11 = arith.constant dense<0.000000e+00> : vector<128x3xf32>
    %12 = tpu.matmul %11, %0, %cst_11 {dimension_numbers = #tpu.dot_dimension_numbers<[1], [0], [0], [1], [0, 0, 1, 1], [], []>} : vector<128x512xbf16>, vector<512x3xbf16>, vector<128x3xf32> -> vector<128x3xf32>
    %13 = arith.truncf %12 : vector<128x3xf32> to vector<128x3xbf16>
    %c1_12 = arith.constant 1 : index
    %c0_13 = arith.constant 0 : index
    %c0_14 = arith.constant 0 : index
    %14 = vector.load %arg3[%c1_12, %c0_13, %c0_14] : memref<9x3x16xbf16, #tpu.memory_space<vmem>>, vector<1x3x16xbf16>
    %15 = vector.shape_cast %14 : vector<1x3x16xbf16> to vector<3x16xbf16>
    %cst_15 = arith.constant dense<0.000000e+00> : vector<128x16xf32>
    %16 = tpu.matmul %13, %15, %cst_15 {dimension_numbers = #tpu.dot_dimension_numbers<[1], [0], [0], [1], [0, 0, 1, 1], [], []>} : vector<128x3xbf16>, vector<3x16xbf16>, vector<128x16xf32> -> vector<128x16xf32>
    %17 = arith.addf %9, %16 : vector<128x16xf32>
    %c2 = arith.constant 2 : index
    %c0_16 = arith.constant 0 : index
    %c0_17 = arith.constant 0 : index
    %18 = vector.load %arg2[%c2, %c0_16, %c0_17] : memref<9x128x512xbf16, #tpu.memory_space<vmem>>, vector<1x128x512xbf16>
    %19 = vector.shape_cast %18 : vector<1x128x512xbf16> to vector<128x512xbf16>
    %cst_18 = arith.constant dense<0.000000e+00> : vector<128x3xf32>
    %20 = tpu.matmul %19, %0, %cst_18 {dimension_numbers = #tpu.dot_dimension_numbers<[1], [0], [0], [1], [0, 0, 1, 1], [], []>} : vector<128x512xbf16>, vector<512x3xbf16>, vector<128x3xf32> -> vector<128x3xf32>
    %21 = arith.truncf %20 : vector<128x3xf32> to vector<128x3xbf16>
    %c2_19 = arith.constant 2 : index
    %c0_20 = arith.constant 0 : index
    %c0_21 = arith.constant 0 : index
    %22 = vector.load %arg3[%c2_19, %c0_20, %c0_21] : memref<9x3x16xbf16, #tpu.memory_space<vmem>>, vector<1x3x16xbf16>
    %23 = vector.shape_cast %22 : vector<1x3x16xbf16> to vector<3x16xbf16>
    %cst_22 = arith.constant dense<0.000000e+00> : vector<128x16xf32>
    %24 = tpu.matmul %21, %23, %cst_22 {dimension_numbers = #tpu.dot_dimension_numbers<[1], [0], [0], [1], [0, 0, 1, 1], [], []>} : vector<128x3xbf16>, vector<3x16xbf16>, vector<128x16xf32> -> vector<128x16xf32>
    %25 = arith.addf %17, %24 : vector<128x16xf32>
    %c3 = arith.constant 3 : index
    %c0_23 = arith.constant 0 : index
    %c0_24 = arith.constant 0 : index
    %26 = vector.load %arg2[%c3, %c0_23, %c0_24] : memref<9x128x512xbf16, #tpu.memory_space<vmem>>, vector<1x128x512xbf16>
    %27 = vector.shape_cast %26 : vector<1x128x512xbf16> to vector<128x512xbf16>
    %cst_25 = arith.constant dense<0.000000e+00> : vector<128x3xf32>
    %28 = tpu.matmul %27, %0, %cst_25 {dimension_numbers = #tpu.dot_dimension_numbers<[1], [0], [0], [1], [0, 0, 1, 1], [], []>} : vector<128x512xbf16>, vector<512x3xbf16>, vector<128x3xf32> -> vector<128x3xf32>
    %29 = arith.truncf %28 : vector<128x3xf32> to vector<128x3xbf16>
    %c3_26 = arith.constant 3 : index
    %c0_27 = arith.constant 0 : index
    %c0_28 = arith.constant 0 : index
    %30 = vector.load %arg3[%c3_26, %c0_27, %c0_28] : memref<9x3x16xbf16, #tpu.memory_space<vmem>>, vector<1x3x16xbf16>
    %31 = vector.shape_cast %30 : vector<1x3x16xbf16> to vector<3x16xbf16>
    %cst_29 = arith.constant dense<0.000000e+00> : vector<128x16xf32>
    %32 = tpu.matmul %29, %31, %cst_29 {dimension_numbers = #tpu.dot_dimension_numbers<[1], [0], [0], [1], [0, 0, 1, 1], [], []>} : vector<128x3xbf16>, vector<3x16xbf16>, vector<128x16xf32> -> vector<128x16xf32>
    %33 = arith.addf %25, %32 : vector<128x16xf32>
    %c4 = arith.constant 4 : index
    %c0_30 = arith.constant 0 : index
    %c0_31 = arith.constant 0 : index
    %34 = vector.load %arg2[%c4, %c0_30, %c0_31] : memref<9x128x512xbf16, #tpu.memory_space<vmem>>, vector<1x128x512xbf16>
    %35 = vector.shape_cast %34 : vector<1x128x512xbf16> to vector<128x512xbf16>
    %cst_32 = arith.constant dense<0.000000e+00> : vector<128x3xf32>
    %36 = tpu.matmul %35, %0, %cst_32 {dimension_numbers = #tpu.dot_dimension_numbers<[1], [0], [0], [1], [0, 0, 1, 1], [], []>} : vector<128x512xbf16>, vector<512x3xbf16>, vector<128x3xf32> -> vector<128x3xf32>
    %37 = arith.truncf %36 : vector<128x3xf32> to vector<128x3xbf16>
    %c4_33 = arith.constant 4 : index
    %c0_34 = arith.constant 0 : index
    %c0_35 = arith.constant 0 : index
    %38 = vector.load %arg3[%c4_33, %c0_34, %c0_35] : memref<9x3x16xbf16, #tpu.memory_space<vmem>>, vector<1x3x16xbf16>
    %39 = vector.shape_cast %38 : vector<1x3x16xbf16> to vector<3x16xbf16>
    %cst_36 = arith.constant dense<0.000000e+00> : vector<128x16xf32>
    %40 = tpu.matmul %37, %39, %cst_36 {dimension_numbers = #tpu.dot_dimension_numbers<[1], [0], [0], [1], [0, 0, 1, 1], [], []>} : vector<128x3xbf16>, vector<3x16xbf16>, vector<128x16xf32> -> vector<128x16xf32>
    %41 = arith.addf %33, %40 : vector<128x16xf32>
    %c5 = arith.constant 5 : index
    %c0_37 = arith.constant 0 : index
    %c0_38 = arith.constant 0 : index
    %42 = vector.load %arg2[%c5, %c0_37, %c0_38] : memref<9x128x512xbf16, #tpu.memory_space<vmem>>, vector<1x128x512xbf16>
    %43 = vector.shape_cast %42 : vector<1x128x512xbf16> to vector<128x512xbf16>
    %cst_39 = arith.constant dense<0.000000e+00> : vector<128x3xf32>
    %44 = tpu.matmul %43, %0, %cst_39 {dimension_numbers = #tpu.dot_dimension_numbers<[1], [0], [0], [1], [0, 0, 1, 1], [], []>} : vector<128x512xbf16>, vector<512x3xbf16>, vector<128x3xf32> -> vector<128x3xf32>
    %45 = arith.truncf %44 : vector<128x3xf32> to vector<128x3xbf16>
    %c5_40 = arith.constant 5 : index
    %c0_41 = arith.constant 0 : index
    %c0_42 = arith.constant 0 : index
    %46 = vector.load %arg3[%c5_40, %c0_41, %c0_42] : memref<9x3x16xbf16, #tpu.memory_space<vmem>>, vector<1x3x16xbf16>
    %47 = vector.shape_cast %46 : vector<1x3x16xbf16> to vector<3x16xbf16>
    %cst_43 = arith.constant dense<0.000000e+00> : vector<128x16xf32>
    %48 = tpu.matmul %45, %47, %cst_43 {dimension_numbers = #tpu.dot_dimension_numbers<[1], [0], [0], [1], [0, 0, 1, 1], [], []>} : vector<128x3xbf16>, vector<3x16xbf16>, vector<128x16xf32> -> vector<128x16xf32>
    %49 = arith.addf %41, %48 : vector<128x16xf32>
    %c6 = arith.constant 6 : index
    %c0_44 = arith.constant 0 : index
    %c0_45 = arith.constant 0 : index
    %50 = vector.load %arg2[%c6, %c0_44, %c0_45] : memref<9x128x512xbf16, #tpu.memory_space<vmem>>, vector<1x128x512xbf16>
    %51 = vector.shape_cast %50 : vector<1x128x512xbf16> to vector<128x512xbf16>
    %cst_46 = arith.constant dense<0.000000e+00> : vector<128x3xf32>
    %52 = tpu.matmul %51, %0, %cst_46 {dimension_numbers = #tpu.dot_dimension_numbers<[1], [0], [0], [1], [0, 0, 1, 1], [], []>} : vector<128x512xbf16>, vector<512x3xbf16>, vector<128x3xf32> -> vector<128x3xf32>
    %53 = arith.truncf %52 : vector<128x3xf32> to vector<128x3xbf16>
    %c6_47 = arith.constant 6 : index
    %c0_48 = arith.constant 0 : index
    %c0_49 = arith.constant 0 : index
    %54 = vector.load %arg3[%c6_47, %c0_48, %c0_49] : memref<9x3x16xbf16, #tpu.memory_space<vmem>>, vector<1x3x16xbf16>
    %55 = vector.shape_cast %54 : vector<1x3x16xbf16> to vector<3x16xbf16>
    %cst_50 = arith.constant dense<0.000000e+00> : vector<128x16xf32>
    %56 = tpu.matmul %53, %55, %cst_50 {dimension_numbers = #tpu.dot_dimension_numbers<[1], [0], [0], [1], [0, 0, 1, 1], [], []>} : vector<128x3xbf16>, vector<3x16xbf16>, vector<128x16xf32> -> vector<128x16xf32>
    %57 = arith.addf %49, %56 : vector<128x16xf32>
    %c7 = arith.constant 7 : index
    %c0_51 = arith.constant 0 : index
    %c0_52 = arith.constant 0 : index
    %58 = vector.load %arg2[%c7, %c0_51, %c0_52] : memref<9x128x512xbf16, #tpu.memory_space<vmem>>, vector<1x128x512xbf16>
    %59 = vector.shape_cast %58 : vector<1x128x512xbf16> to vector<128x512xbf16>
    %cst_53 = arith.constant dense<0.000000e+00> : vector<128x3xf32>
    %60 = tpu.matmul %59, %0, %cst_53 {dimension_numbers = #tpu.dot_dimension_numbers<[1], [0], [0], [1], [0, 0, 1, 1], [], []>} : vector<128x512xbf16>, vector<512x3xbf16>, vector<128x3xf32> -> vector<128x3xf32>
    %61 = arith.truncf %60 : vector<128x3xf32> to vector<128x3xbf16>
    %c7_54 = arith.constant 7 : index
    %c0_55 = arith.constant 0 : index
    %c0_56 = arith.constant 0 : index
    %62 = vector.load %arg3[%c7_54, %c0_55, %c0_56] : memref<9x3x16xbf16, #tpu.memory_space<vmem>>, vector<1x3x16xbf16>
    %63 = vector.shape_cast %62 : vector<1x3x16xbf16> to vector<3x16xbf16>
    %cst_57 = arith.constant dense<0.000000e+00> : vector<128x16xf32>
    %64 = tpu.matmul %61, %63, %cst_57 {dimension_numbers = #tpu.dot_dimension_numbers<[1], [0], [0], [1], [0, 0, 1, 1], [], []>} : vector<128x3xbf16>, vector<3x16xbf16>, vector<128x16xf32> -> vector<128x16xf32>
    %65 = arith.addf %57, %64 : vector<128x16xf32>
    %c8 = arith.constant 8 : index
    %c0_58 = arith.constant 0 : index
    %c0_59 = arith.constant 0 : index
    %66 = vector.load %arg2[%c8, %c0_58, %c0_59] : memref<9x128x512xbf16, #tpu.memory_space<vmem>>, vector<1x128x512xbf16>
    %67 = vector.shape_cast %66 : vector<1x128x512xbf16> to vector<128x512xbf16>
    %cst_60 = arith.constant dense<0.000000e+00> : vector<128x3xf32>
    %68 = tpu.matmul %67, %0, %cst_60 {dimension_numbers = #tpu.dot_dimension_numbers<[1], [0], [0], [1], [0, 0, 1, 1], [], []>} : vector<128x512xbf16>, vector<512x3xbf16>, vector<128x3xf32> -> vector<128x3xf32>
    %69 = arith.truncf %68 : vector<128x3xf32> to vector<128x3xbf16>
    %c8_61 = arith.constant 8 : index
    %c0_62 = arith.constant 0 : index
    %c0_63 = arith.constant 0 : index
    %70 = vector.load %arg3[%c8_61, %c0_62, %c0_63] : memref<9x3x16xbf16, #tpu.memory_space<vmem>>, vector<1x3x16xbf16>
    %71 = vector.shape_cast %70 : vector<1x3x16xbf16> to vector<3x16xbf16>
    %cst_64 = arith.constant dense<0.000000e+00> : vector<128x16xf32>
    %72 = tpu.matmul %69, %71, %cst_64 {dimension_numbers = #tpu.dot_dimension_numbers<[1], [0], [0], [1], [0, 0, 1, 1], [], []>} : vector<128x3xbf16>, vector<3x16xbf16>, vector<128x16xf32> -> vector<128x16xf32>
    %73 = arith.addf %65, %72 : vector<128x16xf32>
    %c0_65 = arith.constant 0 : index
    %c0_66 = arith.constant 0 : index
    %74 = vector.load %arg4[%c0_65, %c0_66] : memref<1x16xf32, #tpu.memory_space<vmem>>, vector<1x16xf32>
    %75 = vector.broadcast %74 : vector<1x16xf32> to vector<128x16xf32>
    %76 = arith.mulf %73, %75 : vector<128x16xf32>
    %c0_67 = arith.constant 0 : index
    %c0_68 = arith.constant 0 : index
    %77 = vector.load %arg5[%c0_67, %c0_68] : memref<1x16xf32, #tpu.memory_space<vmem>>, vector<1x16xf32>
    %78 = vector.broadcast %77 : vector<1x16xf32> to vector<128x16xf32>
    %79 = arith.addf %76, %78 : vector<128x16xf32>
    %cst_69 = arith.constant 0.000000e+00 : f32
    %80 = vector.broadcast %cst_69 : f32 to vector<128x16xf32>
    %81 = arith.maximumf %79, %80 : vector<128x16xf32>
    %82 = arith.truncf %81 : vector<128x16xf32> to vector<128x16xbf16>
    %cst_70 = arith.constant 0.000000e+00 : f32
    %83 = vector.broadcast %cst_70 : f32 to vector<32x32xf32>
    %c0_71 = arith.constant 0 : index
    %c0_72 = arith.constant 0 : index
    %c0_73 = arith.constant 0 : index
    %84 = vector.load %arg6[%c0_71, %c0_72, %c0_73] : memref<9x32x128xbf16, #tpu.memory_space<vmem>>, vector<1x32x128xbf16>
    %85 = vector.shape_cast %84 : vector<1x32x128xbf16> to vector<32x128xbf16>
    %cst_74 = arith.constant dense<0.000000e+00> : vector<32x16xf32>
    %86 = tpu.matmul %85, %82, %cst_74 {dimension_numbers = #tpu.dot_dimension_numbers<[1], [0], [0], [1], [0, 0, 1, 1], [], []>} : vector<32x128xbf16>, vector<128x16xbf16>, vector<32x16xf32> -> vector<32x16xf32>
    %87 = arith.truncf %86 : vector<32x16xf32> to vector<32x16xbf16>
    %c0_75 = arith.constant 0 : index
    %c0_76 = arith.constant 0 : index
    %c0_77 = arith.constant 0 : index
    %88 = vector.load %arg7[%c0_75, %c0_76, %c0_77] : memref<9x16x32xbf16, #tpu.memory_space<vmem>>, vector<1x16x32xbf16>
    %89 = vector.shape_cast %88 : vector<1x16x32xbf16> to vector<16x32xbf16>
    %cst_78 = arith.constant dense<0.000000e+00> : vector<32x32xf32>
    %90 = tpu.matmul %87, %89, %cst_78 {dimension_numbers = #tpu.dot_dimension_numbers<[1], [0], [0], [1], [0, 0, 1, 1], [], []>} : vector<32x16xbf16>, vector<16x32xbf16>, vector<32x32xf32> -> vector<32x32xf32>
    %91 = arith.addf %83, %90 : vector<32x32xf32>
    %c1_79 = arith.constant 1 : index
    %c0_80 = arith.constant 0 : index
    %c0_81 = arith.constant 0 : index
    %92 = vector.load %arg6[%c1_79, %c0_80, %c0_81] : memref<9x32x128xbf16, #tpu.memory_space<vmem>>, vector<1x32x128xbf16>
    %93 = vector.shape_cast %92 : vector<1x32x128xbf16> to vector<32x128xbf16>
    %cst_82 = arith.constant dense<0.000000e+00> : vector<32x16xf32>
    %94 = tpu.matmul %93, %82, %cst_82 {dimension_numbers = #tpu.dot_dimension_numbers<[1], [0], [0], [1], [0, 0, 1, 1], [], []>} : vector<32x128xbf16>, vector<128x16xbf16>, vector<32x16xf32> -> vector<32x16xf32>
    %95 = arith.truncf %94 : vector<32x16xf32> to vector<32x16xbf16>
    %c1_83 = arith.constant 1 : index
    %c0_84 = arith.constant 0 : index
    %c0_85 = arith.constant 0 : index
    %96 = vector.load %arg7[%c1_83, %c0_84, %c0_85] : memref<9x16x32xbf16, #tpu.memory_space<vmem>>, vector<1x16x32xbf16>
    %97 = vector.shape_cast %96 : vector<1x16x32xbf16> to vector<16x32xbf16>
    %cst_86 = arith.constant dense<0.000000e+00> : vector<32x32xf32>
    %98 = tpu.matmul %95, %97, %cst_86 {dimension_numbers = #tpu.dot_dimension_numbers<[1], [0], [0], [1], [0, 0, 1, 1], [], []>} : vector<32x16xbf16>, vector<16x32xbf16>, vector<32x32xf32> -> vector<32x32xf32>
    %99 = arith.addf %91, %98 : vector<32x32xf32>
    %c2_87 = arith.constant 2 : index
    %c0_88 = arith.constant 0 : index
    %c0_89 = arith.constant 0 : index
    %100 = vector.load %arg6[%c2_87, %c0_88, %c0_89] : memref<9x32x128xbf16, #tpu.memory_space<vmem>>, vector<1x32x128xbf16>
    %101 = vector.shape_cast %100 : vector<1x32x128xbf16> to vector<32x128xbf16>
    %cst_90 = arith.constant dense<0.000000e+00> : vector<32x16xf32>
    %102 = tpu.matmul %101, %82, %cst_90 {dimension_numbers = #tpu.dot_dimension_numbers<[1], [0], [0], [1], [0, 0, 1, 1], [], []>} : vector<32x128xbf16>, vector<128x16xbf16>, vector<32x16xf32> -> vector<32x16xf32>
    %103 = arith.truncf %102 : vector<32x16xf32> to vector<32x16xbf16>
    %c2_91 = arith.constant 2 : index
    %c0_92 = arith.constant 0 : index
    %c0_93 = arith.constant 0 : index
    %104 = vector.load %arg7[%c2_91, %c0_92, %c0_93] : memref<9x16x32xbf16, #tpu.memory_space<vmem>>, vector<1x16x32xbf16>
    %105 = vector.shape_cast %104 : vector<1x16x32xbf16> to vector<16x32xbf16>
    %cst_94 = arith.constant dense<0.000000e+00> : vector<32x32xf32>
    %106 = tpu.matmul %103, %105, %cst_94 {dimension_numbers = #tpu.dot_dimension_numbers<[1], [0], [0], [1], [0, 0, 1, 1], [], []>} : vector<32x16xbf16>, vector<16x32xbf16>, vector<32x32xf32> -> vector<32x32xf32>
    %107 = arith.addf %99, %106 : vector<32x32xf32>
    %c3_95 = arith.constant 3 : index
    %c0_96 = arith.constant 0 : index
    %c0_97 = arith.constant 0 : index
    %108 = vector.load %arg6[%c3_95, %c0_96, %c0_97] : memref<9x32x128xbf16, #tpu.memory_space<vmem>>, vector<1x32x128xbf16>
    %109 = vector.shape_cast %108 : vector<1x32x128xbf16> to vector<32x128xbf16>
    %cst_98 = arith.constant dense<0.000000e+00> : vector<32x16xf32>
    %110 = tpu.matmul %109, %82, %cst_98 {dimension_numbers = #tpu.dot_dimension_numbers<[1], [0], [0], [1], [0, 0, 1, 1], [], []>} : vector<32x128xbf16>, vector<128x16xbf16>, vector<32x16xf32> -> vector<32x16xf32>
    %111 = arith.truncf %110 : vector<32x16xf32> to vector<32x16xbf16>
    %c3_99 = arith.constant 3 : index
    %c0_100 = arith.constant 0 : index
    %c0_101 = arith.constant 0 : index
    %112 = vector.load %arg7[%c3_99, %c0_100, %c0_101] : memref<9x16x32xbf16, #tpu.memory_space<vmem>>, vector<1x16x32xbf16>
    %113 = vector.shape_cast %112 : vector<1x16x32xbf16> to vector<16x32xbf16>
    %cst_102 = arith.constant dense<0.000000e+00> : vector<32x32xf32>
    %114 = tpu.matmul %111, %113, %cst_102 {dimension_numbers = #tpu.dot_dimension_numbers<[1], [0], [0], [1], [0, 0, 1, 1], [], []>} : vector<32x16xbf16>, vector<16x32xbf16>, vector<32x32xf32> -> vector<32x32xf32>
    %115 = arith.addf %107, %114 : vector<32x32xf32>
    %c4_103 = arith.constant 4 : index
    %c0_104 = arith.constant 0 : index
    %c0_105 = arith.constant 0 : index
    %116 = vector.load %arg6[%c4_103, %c0_104, %c0_105] : memref<9x32x128xbf16, #tpu.memory_space<vmem>>, vector<1x32x128xbf16>
    %117 = vector.shape_cast %116 : vector<1x32x128xbf16> to vector<32x128xbf16>
    %cst_106 = arith.constant dense<0.000000e+00> : vector<32x16xf32>
    %118 = tpu.matmul %117, %82, %cst_106 {dimension_numbers = #tpu.dot_dimension_numbers<[1], [0], [0], [1], [0, 0, 1, 1], [], []>} : vector<32x128xbf16>, vector<128x16xbf16>, vector<32x16xf32> -> vector<32x16xf32>
    %119 = arith.truncf %118 : vector<32x16xf32> to vector<32x16xbf16>
    %c4_107 = arith.constant 4 : index
    %c0_108 = arith.constant 0 : index
    %c0_109 = arith.constant 0 : index
    %120 = vector.load %arg7[%c4_107, %c0_108, %c0_109] : memref<9x16x32xbf16, #tpu.memory_space<vmem>>, vector<1x16x32xbf16>
    %121 = vector.shape_cast %120 : vector<1x16x32xbf16> to vector<16x32xbf16>
    %cst_110 = arith.constant dense<0.000000e+00> : vector<32x32xf32>
    %122 = tpu.matmul %119, %121, %cst_110 {dimension_numbers = #tpu.dot_dimension_numbers<[1], [0], [0], [1], [0, 0, 1, 1], [], []>} : vector<32x16xbf16>, vector<16x32xbf16>, vector<32x32xf32> -> vector<32x32xf32>
    %123 = arith.addf %115, %122 : vector<32x32xf32>
    %c5_111 = arith.constant 5 : index
    %c0_112 = arith.constant 0 : index
    %c0_113 = arith.constant 0 : index
    %124 = vector.load %arg6[%c5_111, %c0_112, %c0_113] : memref<9x32x128xbf16, #tpu.memory_space<vmem>>, vector<1x32x128xbf16>
    %125 = vector.shape_cast %124 : vector<1x32x128xbf16> to vector<32x128xbf16>
    %cst_114 = arith.constant dense<0.000000e+00> : vector<32x16xf32>
    %126 = tpu.matmul %125, %82, %cst_114 {dimension_numbers = #tpu.dot_dimension_numbers<[1], [0], [0], [1], [0, 0, 1, 1], [], []>} : vector<32x128xbf16>, vector<128x16xbf16>, vector<32x16xf32> -> vector<32x16xf32>
    %127 = arith.truncf %126 : vector<32x16xf32> to vector<32x16xbf16>
    %c5_115 = arith.constant 5 : index
    %c0_116 = arith.constant 0 : index
    %c0_117 = arith.constant 0 : index
    %128 = vector.load %arg7[%c5_115, %c0_116, %c0_117] : memref<9x16x32xbf16, #tpu.memory_space<vmem>>, vector<1x16x32xbf16>
    %129 = vector.shape_cast %128 : vector<1x16x32xbf16> to vector<16x32xbf16>
    %cst_118 = arith.constant dense<0.000000e+00> : vector<32x32xf32>
    %130 = tpu.matmul %127, %129, %cst_118 {dimension_numbers = #tpu.dot_dimension_numbers<[1], [0], [0], [1], [0, 0, 1, 1], [], []>} : vector<32x16xbf16>, vector<16x32xbf16>, vector<32x32xf32> -> vector<32x32xf32>
    %131 = arith.addf %123, %130 : vector<32x32xf32>
    %c6_119 = arith.constant 6 : index
    %c0_120 = arith.constant 0 : index
    %c0_121 = arith.constant 0 : index
    %132 = vector.load %arg6[%c6_119, %c0_120, %c0_121] : memref<9x32x128xbf16, #tpu.memory_space<vmem>>, vector<1x32x128xbf16>
    %133 = vector.shape_cast %132 : vector<1x32x128xbf16> to vector<32x128xbf16>
    %cst_122 = arith.constant dense<0.000000e+00> : vector<32x16xf32>
    %134 = tpu.matmul %133, %82, %cst_122 {dimension_numbers = #tpu.dot_dimension_numbers<[1], [0], [0], [1], [0, 0, 1, 1], [], []>} : vector<32x128xbf16>, vector<128x16xbf16>, vector<32x16xf32> -> vector<32x16xf32>
    %135 = arith.truncf %134 : vector<32x16xf32> to vector<32x16xbf16>
    %c6_123 = arith.constant 6 : index
    %c0_124 = arith.constant 0 : index
    %c0_125 = arith.constant 0 : index
    %136 = vector.load %arg7[%c6_123, %c0_124, %c0_125] : memref<9x16x32xbf16, #tpu.memory_space<vmem>>, vector<1x16x32xbf16>
    %137 = vector.shape_cast %136 : vector<1x16x32xbf16> to vector<16x32xbf16>
    %cst_126 = arith.constant dense<0.000000e+00> : vector<32x32xf32>
    %138 = tpu.matmul %135, %137, %cst_126 {dimension_numbers = #tpu.dot_dimension_numbers<[1], [0], [0], [1], [0, 0, 1, 1], [], []>} : vector<32x16xbf16>, vector<16x32xbf16>, vector<32x32xf32> -> vector<32x32xf32>
    %139 = arith.addf %131, %138 : vector<32x32xf32>
    %c7_127 = arith.constant 7 : index
    %c0_128 = arith.constant 0 : index
    %c0_129 = arith.constant 0 : index
    %140 = vector.load %arg6[%c7_127, %c0_128, %c0_129] : memref<9x32x128xbf16, #tpu.memory_space<vmem>>, vector<1x32x128xbf16>
    %141 = vector.shape_cast %140 : vector<1x32x128xbf16> to vector<32x128xbf16>
    %cst_130 = arith.constant dense<0.000000e+00> : vector<32x16xf32>
    %142 = tpu.matmul %141, %82, %cst_130 {dimension_numbers = #tpu.dot_dimension_numbers<[1], [0], [0], [1], [0, 0, 1, 1], [], []>} : vector<32x128xbf16>, vector<128x16xbf16>, vector<32x16xf32> -> vector<32x16xf32>
    %143 = arith.truncf %142 : vector<32x16xf32> to vector<32x16xbf16>
    %c7_131 = arith.constant 7 : index
    %c0_132 = arith.constant 0 : index
    %c0_133 = arith.constant 0 : index
    %144 = vector.load %arg7[%c7_131, %c0_132, %c0_133] : memref<9x16x32xbf16, #tpu.memory_space<vmem>>, vector<1x16x32xbf16>
    %145 = vector.shape_cast %144 : vector<1x16x32xbf16> to vector<16x32xbf16>
    %cst_134 = arith.constant dense<0.000000e+00> : vector<32x32xf32>
    %146 = tpu.matmul %143, %145, %cst_134 {dimension_numbers = #tpu.dot_dimension_numbers<[1], [0], [0], [1], [0, 0, 1, 1], [], []>} : vector<32x16xbf16>, vector<16x32xbf16>, vector<32x32xf32> -> vector<32x32xf32>
    %147 = arith.addf %139, %146 : vector<32x32xf32>
    %c8_135 = arith.constant 8 : index
    %c0_136 = arith.constant 0 : index
    %c0_137 = arith.constant 0 : index
    %148 = vector.load %arg6[%c8_135, %c0_136, %c0_137] : memref<9x32x128xbf16, #tpu.memory_space<vmem>>, vector<1x32x128xbf16>
    %149 = vector.shape_cast %148 : vector<1x32x128xbf16> to vector<32x128xbf16>
    %cst_138 = arith.constant dense<0.000000e+00> : vector<32x16xf32>
    %150 = tpu.matmul %149, %82, %cst_138 {dimension_numbers = #tpu.dot_dimension_numbers<[1], [0], [0], [1], [0, 0, 1, 1], [], []>} : vector<32x128xbf16>, vector<128x16xbf16>, vector<32x16xf32> -> vector<32x16xf32>
    %151 = arith.truncf %150 : vector<32x16xf32> to vector<32x16xbf16>
    %c8_139 = arith.constant 8 : index
    %c0_140 = arith.constant 0 : index
    %c0_141 = arith.constant 0 : index
    %152 = vector.load %arg7[%c8_139, %c0_140, %c0_141] : memref<9x16x32xbf16, #tpu.memory_space<vmem>>, vector<1x16x32xbf16>
    %153 = vector.shape_cast %152 : vector<1x16x32xbf16> to vector<16x32xbf16>
    %cst_142 = arith.constant dense<0.000000e+00> : vector<32x32xf32>
    %154 = tpu.matmul %151, %153, %cst_142 {dimension_numbers = #tpu.dot_dimension_numbers<[1], [0], [0], [1], [0, 0, 1, 1], [], []>} : vector<32x16xbf16>, vector<16x32xbf16>, vector<32x32xf32> -> vector<32x32xf32>
    %155 = arith.addf %147, %154 : vector<32x32xf32>
    %c0_143 = arith.constant 0 : index
    %c0_144 = arith.constant 0 : index
    %156 = vector.load %arg8[%c0_143, %c0_144] : memref<1x32xf32, #tpu.memory_space<vmem>>, vector<1x32xf32>
    %157 = vector.broadcast %156 : vector<1x32xf32> to vector<32x32xf32>
    %158 = arith.mulf %155, %157 : vector<32x32xf32>
    %c0_145 = arith.constant 0 : index
    %c0_146 = arith.constant 0 : index
    %159 = vector.load %arg9[%c0_145, %c0_146] : memref<1x32xf32, #tpu.memory_space<vmem>>, vector<1x32xf32>
    %160 = vector.broadcast %159 : vector<1x32xf32> to vector<32x32xf32>
    %161 = arith.addf %158, %160 : vector<32x32xf32>
    %cst_147 = arith.constant 0.000000e+00 : f32
    %162 = vector.broadcast %cst_147 : f32 to vector<32x32xf32>
    %163 = arith.maximumf %161, %162 : vector<32x32xf32>
    %164 = arith.truncf %163 : vector<32x32xf32> to vector<32x32xbf16>
    %cst_148 = arith.constant 0.000000e+00 : f32
    %165 = vector.broadcast %cst_148 : f32 to vector<8x48xf32>
    %c0_149 = arith.constant 0 : index
    %c0_150 = arith.constant 0 : index
    %c0_151 = arith.constant 0 : index
    %166 = vector.load %arg10[%c0_149, %c0_150, %c0_151] : memref<9x8x32xbf16, #tpu.memory_space<vmem>>, vector<1x8x32xbf16>
    %167 = vector.shape_cast %166 : vector<1x8x32xbf16> to vector<8x32xbf16>
    %cst_152 = arith.constant dense<0.000000e+00> : vector<8x32xf32>
    %168 = tpu.matmul %167, %164, %cst_152 {dimension_numbers = #tpu.dot_dimension_numbers<[1], [0], [0], [1], [0, 0, 1, 1], [], []>} : vector<8x32xbf16>, vector<32x32xbf16>, vector<8x32xf32> -> vector<8x32xf32>
    %169 = arith.truncf %168 : vector<8x32xf32> to vector<8x32xbf16>
    %c0_153 = arith.constant 0 : index
    %c0_154 = arith.constant 0 : index
    %c0_155 = arith.constant 0 : index
    %170 = vector.load %arg11[%c0_153, %c0_154, %c0_155] : memref<9x32x48xbf16, #tpu.memory_space<vmem>>, vector<1x32x48xbf16>
    %171 = vector.shape_cast %170 : vector<1x32x48xbf16> to vector<32x48xbf16>
    %cst_156 = arith.constant dense<0.000000e+00> : vector<8x48xf32>
    %172 = tpu.matmul %169, %171, %cst_156 {dimension_numbers = #tpu.dot_dimension_numbers<[1], [0], [0], [1], [0, 0, 1, 1], [], []>} : vector<8x32xbf16>, vector<32x48xbf16>, vector<8x48xf32> -> vector<8x48xf32>
    %173 = arith.addf %165, %172 : vector<8x48xf32>
    %c1_157 = arith.constant 1 : index
    %c0_158 = arith.constant 0 : index
    %c0_159 = arith.constant 0 : index
    %174 = vector.load %arg10[%c1_157, %c0_158, %c0_159] : memref<9x8x32xbf16, #tpu.memory_space<vmem>>, vector<1x8x32xbf16>
    %175 = vector.shape_cast %174 : vector<1x8x32xbf16> to vector<8x32xbf16>
    %cst_160 = arith.constant dense<0.000000e+00> : vector<8x32xf32>
    %176 = tpu.matmul %175, %164, %cst_160 {dimension_numbers = #tpu.dot_dimension_numbers<[1], [0], [0], [1], [0, 0, 1, 1], [], []>} : vector<8x32xbf16>, vector<32x32xbf16>, vector<8x32xf32> -> vector<8x32xf32>
    %177 = arith.truncf %176 : vector<8x32xf32> to vector<8x32xbf16>
    %c1_161 = arith.constant 1 : index
    %c0_162 = arith.constant 0 : index
    %c0_163 = arith.constant 0 : index
    %178 = vector.load %arg11[%c1_161, %c0_162, %c0_163] : memref<9x32x48xbf16, #tpu.memory_space<vmem>>, vector<1x32x48xbf16>
    %179 = vector.shape_cast %178 : vector<1x32x48xbf16> to vector<32x48xbf16>
    %cst_164 = arith.constant dense<0.000000e+00> : vector<8x48xf32>
    %180 = tpu.matmul %177, %179, %cst_164 {dimension_numbers = #tpu.dot_dimension_numbers<[1], [0], [0], [1], [0, 0, 1, 1], [], []>} : vector<8x32xbf16>, vector<32x48xbf16>, vector<8x48xf32> -> vector<8x48xf32>
    %181 = arith.addf %173, %180 : vector<8x48xf32>
    %c2_165 = arith.constant 2 : index
    %c0_166 = arith.constant 0 : index
    %c0_167 = arith.constant 0 : index
    %182 = vector.load %arg10[%c2_165, %c0_166, %c0_167] : memref<9x8x32xbf16, #tpu.memory_space<vmem>>, vector<1x8x32xbf16>
    %183 = vector.shape_cast %182 : vector<1x8x32xbf16> to vector<8x32xbf16>
    %cst_168 = arith.constant dense<0.000000e+00> : vector<8x32xf32>
    %184 = tpu.matmul %183, %164, %cst_168 {dimension_numbers = #tpu.dot_dimension_numbers<[1], [0], [0], [1], [0, 0, 1, 1], [], []>} : vector<8x32xbf16>, vector<32x32xbf16>, vector<8x32xf32> -> vector<8x32xf32>
    %185 = arith.truncf %184 : vector<8x32xf32> to vector<8x32xbf16>
    %c2_169 = arith.constant 2 : index
    %c0_170 = arith.constant 0 : index
    %c0_171 = arith.constant 0 : index
    %186 = vector.load %arg11[%c2_169, %c0_170, %c0_171] : memref<9x32x48xbf16, #tpu.memory_space<vmem>>, vector<1x32x48xbf16>
    %187 = vector.shape_cast %186 : vector<1x32x48xbf16> to vector<32x48xbf16>
    %cst_172 = arith.constant dense<0.000000e+00> : vector<8x48xf32>
    %188 = tpu.matmul %185, %187, %cst_172 {dimension_numbers = #tpu.dot_dimension_numbers<[1], [0], [0], [1], [0, 0, 1, 1], [], []>} : vector<8x32xbf16>, vector<32x48xbf16>, vector<8x48xf32> -> vector<8x48xf32>
    %189 = arith.addf %181, %188 : vector<8x48xf32>
    %c3_173 = arith.constant 3 : index
    %c0_174 = arith.constant 0 : index
    %c0_175 = arith.constant 0 : index
    %190 = vector.load %arg10[%c3_173, %c0_174, %c0_175] : memref<9x8x32xbf16, #tpu.memory_space<vmem>>, vector<1x8x32xbf16>
    %191 = vector.shape_cast %190 : vector<1x8x32xbf16> to vector<8x32xbf16>
    %cst_176 = arith.constant dense<0.000000e+00> : vector<8x32xf32>
    %192 = tpu.matmul %191, %164, %cst_176 {dimension_numbers = #tpu.dot_dimension_numbers<[1], [0], [0], [1], [0, 0, 1, 1], [], []>} : vector<8x32xbf16>, vector<32x32xbf16>, vector<8x32xf32> -> vector<8x32xf32>
    %193 = arith.truncf %192 : vector<8x32xf32> to vector<8x32xbf16>
    %c3_177 = arith.constant 3 : index
    %c0_178 = arith.constant 0 : index
    %c0_179 = arith.constant 0 : index
    %194 = vector.load %arg11[%c3_177, %c0_178, %c0_179] : memref<9x32x48xbf16, #tpu.memory_space<vmem>>, vector<1x32x48xbf16>
    %195 = vector.shape_cast %194 : vector<1x32x48xbf16> to vector<32x48xbf16>
    %cst_180 = arith.constant dense<0.000000e+00> : vector<8x48xf32>
    %196 = tpu.matmul %193, %195, %cst_180 {dimension_numbers = #tpu.dot_dimension_numbers<[1], [0], [0], [1], [0, 0, 1, 1], [], []>} : vector<8x32xbf16>, vector<32x48xbf16>, vector<8x48xf32> -> vector<8x48xf32>
    %197 = arith.addf %189, %196 : vector<8x48xf32>
    %c4_181 = arith.constant 4 : index
    %c0_182 = arith.constant 0 : index
    %c0_183 = arith.constant 0 : index
    %198 = vector.load %arg10[%c4_181, %c0_182, %c0_183] : memref<9x8x32xbf16, #tpu.memory_space<vmem>>, vector<1x8x32xbf16>
    %199 = vector.shape_cast %198 : vector<1x8x32xbf16> to vector<8x32xbf16>
    %cst_184 = arith.constant dense<0.000000e+00> : vector<8x32xf32>
    %200 = tpu.matmul %199, %164, %cst_184 {dimension_numbers = #tpu.dot_dimension_numbers<[1], [0], [0], [1], [0, 0, 1, 1], [], []>} : vector<8x32xbf16>, vector<32x32xbf16>, vector<8x32xf32> -> vector<8x32xf32>
    %201 = arith.truncf %200 : vector<8x32xf32> to vector<8x32xbf16>
    %c4_185 = arith.constant 4 : index
    %c0_186 = arith.constant 0 : index
    %c0_187 = arith.constant 0 : index
    %202 = vector.load %arg11[%c4_185, %c0_186, %c0_187] : memref<9x32x48xbf16, #tpu.memory_space<vmem>>, vector<1x32x48xbf16>
    %203 = vector.shape_cast %202 : vector<1x32x48xbf16> to vector<32x48xbf16>
    %cst_188 = arith.constant dense<0.000000e+00> : vector<8x48xf32>
    %204 = tpu.matmul %201, %203, %cst_188 {dimension_numbers = #tpu.dot_dimension_numbers<[1], [0], [0], [1], [0, 0, 1, 1], [], []>} : vector<8x32xbf16>, vector<32x48xbf16>, vector<8x48xf32> -> vector<8x48xf32>
    %205 = arith.addf %197, %204 : vector<8x48xf32>
    %c5_189 = arith.constant 5 : index
    %c0_190 = arith.constant 0 : index
    %c0_191 = arith.constant 0 : index
    %206 = vector.load %arg10[%c5_189, %c0_190, %c0_191] : memref<9x8x32xbf16, #tpu.memory_space<vmem>>, vector<1x8x32xbf16>
    %207 = vector.shape_cast %206 : vector<1x8x32xbf16> to vector<8x32xbf16>
    %cst_192 = arith.constant dense<0.000000e+00> : vector<8x32xf32>
    %208 = tpu.matmul %207, %164, %cst_192 {dimension_numbers = #tpu.dot_dimension_numbers<[1], [0], [0], [1], [0, 0, 1, 1], [], []>} : vector<8x32xbf16>, vector<32x32xbf16>, vector<8x32xf32> -> vector<8x32xf32>
    %209 = arith.truncf %208 : vector<8x32xf32> to vector<8x32xbf16>
    %c5_193 = arith.constant 5 : index
    %c0_194 = arith.constant 0 : index
    %c0_195 = arith.constant 0 : index
    %210 = vector.load %arg11[%c5_193, %c0_194, %c0_195] : memref<9x32x48xbf16, #tpu.memory_space<vmem>>, vector<1x32x48xbf16>
    %211 = vector.shape_cast %210 : vector<1x32x48xbf16> to vector<32x48xbf16>
    %cst_196 = arith.constant dense<0.000000e+00> : vector<8x48xf32>
    %212 = tpu.matmul %209, %211, %cst_196 {dimension_numbers = #tpu.dot_dimension_numbers<[1], [0], [0], [1], [0, 0, 1, 1], [], []>} : vector<8x32xbf16>, vector<32x48xbf16>, vector<8x48xf32> -> vector<8x48xf32>
    %213 = arith.addf %205, %212 : vector<8x48xf32>
    %c6_197 = arith.constant 6 : index
    %c0_198 = arith.constant 0 : index
    %c0_199 = arith.constant 0 : index
    %214 = vector.load %arg10[%c6_197, %c0_198, %c0_199] : memref<9x8x32xbf16, #tpu.memory_space<vmem>>, vector<1x8x32xbf16>
    %215 = vector.shape_cast %214 : vector<1x8x32xbf16> to vector<8x32xbf16>
    %cst_200 = arith.constant dense<0.000000e+00> : vector<8x32xf32>
    %216 = tpu.matmul %215, %164, %cst_200 {dimension_numbers = #tpu.dot_dimension_numbers<[1], [0], [0], [1], [0, 0, 1, 1], [], []>} : vector<8x32xbf16>, vector<32x32xbf16>, vector<8x32xf32> -> vector<8x32xf32>
    %217 = arith.truncf %216 : vector<8x32xf32> to vector<8x32xbf16>
    %c6_201 = arith.constant 6 : index
    %c0_202 = arith.constant 0 : index
    %c0_203 = arith.constant 0 : index
    %218 = vector.load %arg11[%c6_201, %c0_202, %c0_203] : memref<9x32x48xbf16, #tpu.memory_space<vmem>>, vector<1x32x48xbf16>
    %219 = vector.shape_cast %218 : vector<1x32x48xbf16> to vector<32x48xbf16>
    %cst_204 = arith.constant dense<0.000000e+00> : vector<8x48xf32>
    %220 = tpu.matmul %217, %219, %cst_204 {dimension_numbers = #tpu.dot_dimension_numbers<[1], [0], [0], [1], [0, 0, 1, 1], [], []>} : vector<8x32xbf16>, vector<32x48xbf16>, vector<8x48xf32> -> vector<8x48xf32>
    %221 = arith.addf %213, %220 : vector<8x48xf32>
    %c7_205 = arith.constant 7 : index
    %c0_206 = arith.constant 0 : index
    %c0_207 = arith.constant 0 : index
    %222 = vector.load %arg10[%c7_205, %c0_206, %c0_207] : memref<9x8x32xbf16, #tpu.memory_space<vmem>>, vector<1x8x32xbf16>
    %223 = vector.shape_cast %222 : vector<1x8x32xbf16> to vector<8x32xbf16>
    %cst_208 = arith.constant dense<0.000000e+00> : vector<8x32xf32>
    %224 = tpu.matmul %223, %164, %cst_208 {dimension_numbers = #tpu.dot_dimension_numbers<[1], [0], [0], [1], [0, 0, 1, 1], [], []>} : vector<8x32xbf16>, vector<32x32xbf16>, vector<8x32xf32> -> vector<8x32xf32>
    %225 = arith.truncf %224 : vector<8x32xf32> to vector<8x32xbf16>
    %c7_209 = arith.constant 7 : index
    %c0_210 = arith.constant 0 : index
    %c0_211 = arith.constant 0 : index
    %226 = vector.load %arg11[%c7_209, %c0_210, %c0_211] : memref<9x32x48xbf16, #tpu.memory_space<vmem>>, vector<1x32x48xbf16>
    %227 = vector.shape_cast %226 : vector<1x32x48xbf16> to vector<32x48xbf16>
    %cst_212 = arith.constant dense<0.000000e+00> : vector<8x48xf32>
    %228 = tpu.matmul %225, %227, %cst_212 {dimension_numbers = #tpu.dot_dimension_numbers<[1], [0], [0], [1], [0, 0, 1, 1], [], []>} : vector<8x32xbf16>, vector<32x48xbf16>, vector<8x48xf32> -> vector<8x48xf32>
    %229 = arith.addf %221, %228 : vector<8x48xf32>
    %c8_213 = arith.constant 8 : index
    %c0_214 = arith.constant 0 : index
    %c0_215 = arith.constant 0 : index
    %230 = vector.load %arg10[%c8_213, %c0_214, %c0_215] : memref<9x8x32xbf16, #tpu.memory_space<vmem>>, vector<1x8x32xbf16>
    %231 = vector.shape_cast %230 : vector<1x8x32xbf16> to vector<8x32xbf16>
    %cst_216 = arith.constant dense<0.000000e+00> : vector<8x32xf32>
    %232 = tpu.matmul %231, %164, %cst_216 {dimension_numbers = #tpu.dot_dimension_numbers<[1], [0], [0], [1], [0, 0, 1, 1], [], []>} : vector<8x32xbf16>, vector<32x32xbf16>, vector<8x32xf32> -> vector<8x32xf32>
    %233 = arith.truncf %232 : vector<8x32xf32> to vector<8x32xbf16>
    %c8_217 = arith.constant 8 : index
    %c0_218 = arith.constant 0 : index
    %c0_219 = arith.constant 0 : index
    %234 = vector.load %arg11[%c8_217, %c0_218, %c0_219] : memref<9x32x48xbf16, #tpu.memory_space<vmem>>, vector<1x32x48xbf16>
    %235 = vector.shape_cast %234 : vector<1x32x48xbf16> to vector<32x48xbf16>
    %cst_220 = arith.constant dense<0.000000e+00> : vector<8x48xf32>
    %236 = tpu.matmul %233, %235, %cst_220 {dimension_numbers = #tpu.dot_dimension_numbers<[1], [0], [0], [1], [0, 0, 1, 1], [], []>} : vector<8x32xbf16>, vector<32x48xbf16>, vector<8x48xf32> -> vector<8x48xf32>
    %237 = arith.addf %229, %236 : vector<8x48xf32>
    %c0_221 = arith.constant 0 : index
    %c0_222 = arith.constant 0 : index
    %238 = vector.load %arg12[%c0_221, %c0_222] : memref<1x48xf32, #tpu.memory_space<vmem>>, vector<1x48xf32>
    %239 = vector.broadcast %238 : vector<1x48xf32> to vector<8x48xf32>
    %240 = arith.mulf %237, %239 : vector<8x48xf32>
    %c0_223 = arith.constant 0 : index
    %c0_224 = arith.constant 0 : index
    %241 = vector.load %arg13[%c0_223, %c0_224] : memref<1x48xf32, #tpu.memory_space<vmem>>, vector<1x48xf32>
    %242 = vector.broadcast %241 : vector<1x48xf32> to vector<8x48xf32>
    %243 = arith.addf %240, %242 : vector<8x48xf32>
    %cst_225 = arith.constant 0.000000e+00 : f32
    %244 = vector.broadcast %cst_225 : f32 to vector<8x48xf32>
    %245 = arith.maximumf %243, %244 : vector<8x48xf32>
    %246 = arith.truncf %245 : vector<8x48xf32> to vector<8x48xbf16>
    %cst_226 = arith.constant 0.000000e+00 : f32
    %247 = vector.broadcast %cst_226 : f32 to vector<2x64xf32>
    %c0_227 = arith.constant 0 : index
    %c0_228 = arith.constant 0 : index
    %c0_229 = arith.constant 0 : index
    %248 = vector.load %arg14[%c0_227, %c0_228, %c0_229] : memref<9x2x8xbf16, #tpu.memory_space<vmem>>, vector<1x2x8xbf16>
    %249 = vector.shape_cast %248 : vector<1x2x8xbf16> to vector<2x8xbf16>
    %cst_230 = arith.constant dense<0.000000e+00> : vector<2x48xf32>
    %250 = tpu.matmul %249, %246, %cst_230 {dimension_numbers = #tpu.dot_dimension_numbers<[1], [0], [0], [1], [0, 0, 1, 1], [], []>} : vector<2x8xbf16>, vector<8x48xbf16>, vector<2x48xf32> -> vector<2x48xf32>
    %251 = arith.truncf %250 : vector<2x48xf32> to vector<2x48xbf16>
    %c0_231 = arith.constant 0 : index
    %c0_232 = arith.constant 0 : index
    %c0_233 = arith.constant 0 : index
    %252 = vector.load %arg15[%c0_231, %c0_232, %c0_233] : memref<9x48x64xbf16, #tpu.memory_space<vmem>>, vector<1x48x64xbf16>
    %253 = vector.shape_cast %252 : vector<1x48x64xbf16> to vector<48x64xbf16>
    %cst_234 = arith.constant dense<0.000000e+00> : vector<2x64xf32>
    %254 = tpu.matmul %251, %253, %cst_234 {dimension_numbers = #tpu.dot_dimension_numbers<[1], [0], [0], [1], [0, 0, 1, 1], [], []>} : vector<2x48xbf16>, vector<48x64xbf16>, vector<2x64xf32> -> vector<2x64xf32>
    %255 = arith.addf %247, %254 : vector<2x64xf32>
    %c1_235 = arith.constant 1 : index
    %c0_236 = arith.constant 0 : index
    %c0_237 = arith.constant 0 : index
    %256 = vector.load %arg14[%c1_235, %c0_236, %c0_237] : memref<9x2x8xbf16, #tpu.memory_space<vmem>>, vector<1x2x8xbf16>
    %257 = vector.shape_cast %256 : vector<1x2x8xbf16> to vector<2x8xbf16>
    %cst_238 = arith.constant dense<0.000000e+00> : vector<2x48xf32>
    %258 = tpu.matmul %257, %246, %cst_238 {dimension_numbers = #tpu.dot_dimension_numbers<[1], [0], [0], [1], [0, 0, 1, 1], [], []>} : vector<2x8xbf16>, vector<8x48xbf16>, vector<2x48xf32> -> vector<2x48xf32>
    %259 = arith.truncf %258 : vector<2x48xf32> to vector<2x48xbf16>
    %c1_239 = arith.constant 1 : index
    %c0_240 = arith.constant 0 : index
    %c0_241 = arith.constant 0 : index
    %260 = vector.load %arg15[%c1_239, %c0_240, %c0_241] : memref<9x48x64xbf16, #tpu.memory_space<vmem>>, vector<1x48x64xbf16>
    %261 = vector.shape_cast %260 : vector<1x48x64xbf16> to vector<48x64xbf16>
    %cst_242 = arith.constant dense<0.000000e+00> : vector<2x64xf32>
    %262 = tpu.matmul %259, %261, %cst_242 {dimension_numbers = #tpu.dot_dimension_numbers<[1], [0], [0], [1], [0, 0, 1, 1], [], []>} : vector<2x48xbf16>, vector<48x64xbf16>, vector<2x64xf32> -> vector<2x64xf32>
    %263 = arith.addf %255, %262 : vector<2x64xf32>
    %c2_243 = arith.constant 2 : index
    %c0_244 = arith.constant 0 : index
    %c0_245 = arith.constant 0 : index
    %264 = vector.load %arg14[%c2_243, %c0_244, %c0_245] : memref<9x2x8xbf16, #tpu.memory_space<vmem>>, vector<1x2x8xbf16>
    %265 = vector.shape_cast %264 : vector<1x2x8xbf16> to vector<2x8xbf16>
    %cst_246 = arith.constant dense<0.000000e+00> : vector<2x48xf32>
    %266 = tpu.matmul %265, %246, %cst_246 {dimension_numbers = #tpu.dot_dimension_numbers<[1], [0], [0], [1], [0, 0, 1, 1], [], []>} : vector<2x8xbf16>, vector<8x48xbf16>, vector<2x48xf32> -> vector<2x48xf32>
    %267 = arith.truncf %266 : vector<2x48xf32> to vector<2x48xbf16>
    %c2_247 = arith.constant 2 : index
    %c0_248 = arith.constant 0 : index
    %c0_249 = arith.constant 0 : index
    %268 = vector.load %arg15[%c2_247, %c0_248, %c0_249] : memref<9x48x64xbf16, #tpu.memory_space<vmem>>, vector<1x48x64xbf16>
    %269 = vector.shape_cast %268 : vector<1x48x64xbf16> to vector<48x64xbf16>
    %cst_250 = arith.constant dense<0.000000e+00> : vector<2x64xf32>
    %270 = tpu.matmul %267, %269, %cst_250 {dimension_numbers = #tpu.dot_dimension_numbers<[1], [0], [0], [1], [0, 0, 1, 1], [], []>} : vector<2x48xbf16>, vector<48x64xbf16>, vector<2x64xf32> -> vector<2x64xf32>
    %271 = arith.addf %263, %270 : vector<2x64xf32>
    %c3_251 = arith.constant 3 : index
    %c0_252 = arith.constant 0 : index
    %c0_253 = arith.constant 0 : index
    %272 = vector.load %arg14[%c3_251, %c0_252, %c0_253] : memref<9x2x8xbf16, #tpu.memory_space<vmem>>, vector<1x2x8xbf16>
    %273 = vector.shape_cast %272 : vector<1x2x8xbf16> to vector<2x8xbf16>
    %cst_254 = arith.constant dense<0.000000e+00> : vector<2x48xf32>
    %274 = tpu.matmul %273, %246, %cst_254 {dimension_numbers = #tpu.dot_dimension_numbers<[1], [0], [0], [1], [0, 0, 1, 1], [], []>} : vector<2x8xbf16>, vector<8x48xbf16>, vector<2x48xf32> -> vector<2x48xf32>
    %275 = arith.truncf %274 : vector<2x48xf32> to vector<2x48xbf16>
    %c3_255 = arith.constant 3 : index
    %c0_256 = arith.constant 0 : index
    %c0_257 = arith.constant 0 : index
    %276 = vector.load %arg15[%c3_255, %c0_256, %c0_257] : memref<9x48x64xbf16, #tpu.memory_space<vmem>>, vector<1x48x64xbf16>
    %277 = vector.shape_cast %276 : vector<1x48x64xbf16> to vector<48x64xbf16>
    %cst_258 = arith.constant dense<0.000000e+00> : vector<2x64xf32>
    %278 = tpu.matmul %275, %277, %cst_258 {dimension_numbers = #tpu.dot_dimension_numbers<[1], [0], [0], [1], [0, 0, 1, 1], [], []>} : vector<2x48xbf16>, vector<48x64xbf16>, vector<2x64xf32> -> vector<2x64xf32>
    %279 = arith.addf %271, %278 : vector<2x64xf32>
    %c4_259 = arith.constant 4 : index
    %c0_260 = arith.constant 0 : index
    %c0_261 = arith.constant 0 : index
    %280 = vector.load %arg14[%c4_259, %c0_260, %c0_261] : memref<9x2x8xbf16, #tpu.memory_space<vmem>>, vector<1x2x8xbf16>
    %281 = vector.shape_cast %280 : vector<1x2x8xbf16> to vector<2x8xbf16>
    %cst_262 = arith.constant dense<0.000000e+00> : vector<2x48xf32>
    %282 = tpu.matmul %281, %246, %cst_262 {dimension_numbers = #tpu.dot_dimension_numbers<[1], [0], [0], [1], [0, 0, 1, 1], [], []>} : vector<2x8xbf16>, vector<8x48xbf16>, vector<2x48xf32> -> vector<2x48xf32>
    %283 = arith.truncf %282 : vector<2x48xf32> to vector<2x48xbf16>
    %c4_263 = arith.constant 4 : index
    %c0_264 = arith.constant 0 : index
    %c0_265 = arith.constant 0 : index
    %284 = vector.load %arg15[%c4_263, %c0_264, %c0_265] : memref<9x48x64xbf16, #tpu.memory_space<vmem>>, vector<1x48x64xbf16>
    %285 = vector.shape_cast %284 : vector<1x48x64xbf16> to vector<48x64xbf16>
    %cst_266 = arith.constant dense<0.000000e+00> : vector<2x64xf32>
    %286 = tpu.matmul %283, %285, %cst_266 {dimension_numbers = #tpu.dot_dimension_numbers<[1], [0], [0], [1], [0, 0, 1, 1], [], []>} : vector<2x48xbf16>, vector<48x64xbf16>, vector<2x64xf32> -> vector<2x64xf32>
    %287 = arith.addf %279, %286 : vector<2x64xf32>
    %c5_267 = arith.constant 5 : index
    %c0_268 = arith.constant 0 : index
    %c0_269 = arith.constant 0 : index
    %288 = vector.load %arg14[%c5_267, %c0_268, %c0_269] : memref<9x2x8xbf16, #tpu.memory_space<vmem>>, vector<1x2x8xbf16>
    %289 = vector.shape_cast %288 : vector<1x2x8xbf16> to vector<2x8xbf16>
    %cst_270 = arith.constant dense<0.000000e+00> : vector<2x48xf32>
    %290 = tpu.matmul %289, %246, %cst_270 {dimension_numbers = #tpu.dot_dimension_numbers<[1], [0], [0], [1], [0, 0, 1, 1], [], []>} : vector<2x8xbf16>, vector<8x48xbf16>, vector<2x48xf32> -> vector<2x48xf32>
    %291 = arith.truncf %290 : vector<2x48xf32> to vector<2x48xbf16>
    %c5_271 = arith.constant 5 : index
    %c0_272 = arith.constant 0 : index
    %c0_273 = arith.constant 0 : index
    %292 = vector.load %arg15[%c5_271, %c0_272, %c0_273] : memref<9x48x64xbf16, #tpu.memory_space<vmem>>, vector<1x48x64xbf16>
    %293 = vector.shape_cast %292 : vector<1x48x64xbf16> to vector<48x64xbf16>
    %cst_274 = arith.constant dense<0.000000e+00> : vector<2x64xf32>
    %294 = tpu.matmul %291, %293, %cst_274 {dimension_numbers = #tpu.dot_dimension_numbers<[1], [0], [0], [1], [0, 0, 1, 1], [], []>} : vector<2x48xbf16>, vector<48x64xbf16>, vector<2x64xf32> -> vector<2x64xf32>
    %295 = arith.addf %287, %294 : vector<2x64xf32>
    %c6_275 = arith.constant 6 : index
    %c0_276 = arith.constant 0 : index
    %c0_277 = arith.constant 0 : index
    %296 = vector.load %arg14[%c6_275, %c0_276, %c0_277] : memref<9x2x8xbf16, #tpu.memory_space<vmem>>, vector<1x2x8xbf16>
    %297 = vector.shape_cast %296 : vector<1x2x8xbf16> to vector<2x8xbf16>
    %cst_278 = arith.constant dense<0.000000e+00> : vector<2x48xf32>
    %298 = tpu.matmul %297, %246, %cst_278 {dimension_numbers = #tpu.dot_dimension_numbers<[1], [0], [0], [1], [0, 0, 1, 1], [], []>} : vector<2x8xbf16>, vector<8x48xbf16>, vector<2x48xf32> -> vector<2x48xf32>
    %299 = arith.truncf %298 : vector<2x48xf32> to vector<2x48xbf16>
    %c6_279 = arith.constant 6 : index
    %c0_280 = arith.constant 0 : index
    %c0_281 = arith.constant 0 : index
    %300 = vector.load %arg15[%c6_279, %c0_280, %c0_281] : memref<9x48x64xbf16, #tpu.memory_space<vmem>>, vector<1x48x64xbf16>
    %301 = vector.shape_cast %300 : vector<1x48x64xbf16> to vector<48x64xbf16>
    %cst_282 = arith.constant dense<0.000000e+00> : vector<2x64xf32>
    %302 = tpu.matmul %299, %301, %cst_282 {dimension_numbers = #tpu.dot_dimension_numbers<[1], [0], [0], [1], [0, 0, 1, 1], [], []>} : vector<2x48xbf16>, vector<48x64xbf16>, vector<2x64xf32> -> vector<2x64xf32>
    %303 = arith.addf %295, %302 : vector<2x64xf32>
    %c7_283 = arith.constant 7 : index
    %c0_284 = arith.constant 0 : index
    %c0_285 = arith.constant 0 : index
    %304 = vector.load %arg14[%c7_283, %c0_284, %c0_285] : memref<9x2x8xbf16, #tpu.memory_space<vmem>>, vector<1x2x8xbf16>
    %305 = vector.shape_cast %304 : vector<1x2x8xbf16> to vector<2x8xbf16>
    %cst_286 = arith.constant dense<0.000000e+00> : vector<2x48xf32>
    %306 = tpu.matmul %305, %246, %cst_286 {dimension_numbers = #tpu.dot_dimension_numbers<[1], [0], [0], [1], [0, 0, 1, 1], [], []>} : vector<2x8xbf16>, vector<8x48xbf16>, vector<2x48xf32> -> vector<2x48xf32>
    %307 = arith.truncf %306 : vector<2x48xf32> to vector<2x48xbf16>
    %c7_287 = arith.constant 7 : index
    %c0_288 = arith.constant 0 : index
    %c0_289 = arith.constant 0 : index
    %308 = vector.load %arg15[%c7_287, %c0_288, %c0_289] : memref<9x48x64xbf16, #tpu.memory_space<vmem>>, vector<1x48x64xbf16>
    %309 = vector.shape_cast %308 : vector<1x48x64xbf16> to vector<48x64xbf16>
    %cst_290 = arith.constant dense<0.000000e+00> : vector<2x64xf32>
    %310 = tpu.matmul %307, %309, %cst_290 {dimension_numbers = #tpu.dot_dimension_numbers<[1], [0], [0], [1], [0, 0, 1, 1], [], []>} : vector<2x48xbf16>, vector<48x64xbf16>, vector<2x64xf32> -> vector<2x64xf32>
    %311 = arith.addf %303, %310 : vector<2x64xf32>
    %c8_291 = arith.constant 8 : index
    %c0_292 = arith.constant 0 : index
    %c0_293 = arith.constant 0 : index
    %312 = vector.load %arg14[%c8_291, %c0_292, %c0_293] : memref<9x2x8xbf16, #tpu.memory_space<vmem>>, vector<1x2x8xbf16>
    %313 = vector.shape_cast %312 : vector<1x2x8xbf16> to vector<2x8xbf16>
    %cst_294 = arith.constant dense<0.000000e+00> : vector<2x48xf32>
    %314 = tpu.matmul %313, %246, %cst_294 {dimension_numbers = #tpu.dot_dimension_numbers<[1], [0], [0], [1], [0, 0, 1, 1], [], []>} : vector<2x8xbf16>, vector<8x48xbf16>, vector<2x48xf32> -> vector<2x48xf32>
    %315 = arith.truncf %314 : vector<2x48xf32> to vector<2x48xbf16>
    %c8_295 = arith.constant 8 : index
    %c0_296 = arith.constant 0 : index
    %c0_297 = arith.constant 0 : index
    %316 = vector.load %arg15[%c8_295, %c0_296, %c0_297] : memref<9x48x64xbf16, #tpu.memory_space<vmem>>, vector<1x48x64xbf16>
    %317 = vector.shape_cast %316 : vector<1x48x64xbf16> to vector<48x64xbf16>
    %cst_298 = arith.constant dense<0.000000e+00> : vector<2x64xf32>
    %318 = tpu.matmul %315, %317, %cst_298 {dimension_numbers = #tpu.dot_dimension_numbers<[1], [0], [0], [1], [0, 0, 1, 1], [], []>} : vector<2x48xbf16>, vector<48x64xbf16>, vector<2x64xf32> -> vector<2x64xf32>
    %319 = arith.addf %311, %318 : vector<2x64xf32>
    %c0_299 = arith.constant 0 : index
    %c0_300 = arith.constant 0 : index
    %320 = vector.load %arg16[%c0_299, %c0_300] : memref<1x64xf32, #tpu.memory_space<vmem>>, vector<1x64xf32>
    %321 = vector.broadcast %320 : vector<1x64xf32> to vector<2x64xf32>
    %322 = arith.mulf %319, %321 : vector<2x64xf32>
    %c0_301 = arith.constant 0 : index
    %c0_302 = arith.constant 0 : index
    %323 = vector.load %arg17[%c0_301, %c0_302] : memref<1x64xf32, #tpu.memory_space<vmem>>, vector<1x64xf32>
    %324 = vector.broadcast %323 : vector<1x64xf32> to vector<2x64xf32>
    %325 = arith.addf %322, %324 : vector<2x64xf32>
    %cst_303 = arith.constant 0.000000e+00 : f32
    %326 = vector.broadcast %cst_303 : f32 to vector<2x64xf32>
    %327 = arith.maximumf %325, %326 : vector<2x64xf32>
    %328 = arith.truncf %327 : vector<2x64xf32> to vector<2x64xbf16>
    %c0_304 = arith.constant 0 : index
    %c0_305 = arith.constant 0 : index
    %329 = memref.load %arg19[%c0_304, %c0_305] : memref<1x1xf32, #tpu.memory_space<smem>>
    %c0_306 = arith.constant 0 : index
    %c0_307 = arith.constant 0 : index
    %330 = vector.load %arg18[%c0_306, %c0_307] : memref<64x1xbf16, #tpu.memory_space<vmem>>, vector<64x1xbf16>
    %cst_308 = arith.constant dense<0.000000e+00> : vector<2x1xf32>
    %331 = tpu.matmul %328, %330, %cst_308 {dimension_numbers = #tpu.dot_dimension_numbers<[1], [0], [0], [1], [0, 0, 1, 1], [], []>} : vector<2x64xbf16>, vector<64x1xbf16>, vector<2x1xf32> -> vector<2x1xf32>
    %332 = vector.broadcast %329 : f32 to vector<2x1xf32>
    %333 = arith.addf %331, %332 : vector<2x1xf32>
    %cst_309 = arith.constant 0.000000e+00 : f32
    %334 = vector.broadcast %cst_309 : f32 to vector<2x1xf32>
    %335 = arith.subf %334, %333 : vector<2x1xf32>
    %336 = math.exp %335 : vector<2x1xf32>
    %cst_310 = arith.constant 1.000000e+00 : f32
    %337 = vector.broadcast %cst_310 : f32 to vector<2x1xf32>
    %338 = arith.addf %337, %336 : vector<2x1xf32>
    %339 = tpu.reciprocal %338 {approx = true} : vector<2x1xf32> -> vector<2x1xf32>
    %340 = vector.broadcast %339 : vector<2x1xf32> to vector<2x64xf32>
    %341 = arith.mulf %327, %340 : vector<2x64xf32>
    %342 = arith.truncf %341 : vector<2x64xf32> to vector<2x64xbf16>
    %c0_311 = arith.constant 0 : index
    %c0_312 = arith.constant 0 : index
    %343 = vector.load %arg20[%c0_311, %c0_312] : memref<64x32xbf16, #tpu.memory_space<vmem>>, vector<64x32xbf16>
    %cst_313 = arith.constant dense<0.000000e+00> : vector<2x32xf32>
    %344 = tpu.matmul %342, %343, %cst_313 {dimension_numbers = #tpu.dot_dimension_numbers<[1], [0], [0], [1], [0, 0, 1, 1], [], []>} : vector<2x64xbf16>, vector<64x32xbf16>, vector<2x32xf32> -> vector<2x32xf32>
    %c0_314 = arith.constant 0 : index
    %c0_315 = arith.constant 0 : index
    %345 = vector.load %arg21[%c0_314, %c0_315] : memref<1x32xf32, #tpu.memory_space<vmem>>, vector<1x32xf32>
    %346 = vector.broadcast %345 : vector<1x32xf32> to vector<2x32xf32>
    %347 = arith.addf %344, %346 : vector<2x32xf32>
    %c0_316 = arith.constant 0 : index
    %c0_317 = arith.constant 0 : index
    %348 = vector.load %arg22[%c0_316, %c0_317] : memref<2x32xf32, #tpu.memory_space<vmem>>, vector<2x32xf32>
    tpu.vector_store %arg22[%c0_316, %c0_317], %347 {strides = array<i32>} : memref<2x32xf32, #tpu.memory_space<vmem>>, vector<2x32xf32>,
    return
  }
  func.func @transform_0(%arg0: i32) -> (i32, i32) {
    %c0_i32 = arith.constant 0 : i32
    %c0_i32_0 = arith.constant 0 : i32
    %c0_i32_1 = arith.constant 0 : i32
    return %c0_i32, %c0_i32_0 : i32, i32
  }
  func.func @transform_1(%arg0: i32) -> (i32, i32, i32) {
    %c0_i32 = arith.constant 0 : i32
    %c0_i32_0 = arith.constant 0 : i32
    %c0_i32_1 = arith.constant 0 : i32
    %c0_i32_2 = arith.constant 0 : i32
    return %c0_i32, %c0_i32_0, %c0_i32_1 : i32, i32, i32
  }
  func.func @transform_2(%arg0: i32) -> (i32, i32, i32) {
    %c0_i32 = arith.constant 0 : i32
    %c0_i32_0 = arith.constant 0 : i32
    %c0_i32_1 = arith.constant 0 : i32
    %c0_i32_2 = arith.constant 0 : i32
    return %c0_i32, %c0_i32_0, %c0_i32_1 : i32, i32, i32
  }
  func.func @transform_3(%arg0: i32) -> (i32, i32) {
    %c0_i32 = arith.constant 0 : i32
    %c0_i32_0 = arith.constant 0 : i32
    %c0_i32_1 = arith.constant 0 : i32
    return %c0_i32, %c0_i32_0 : i32, i32
  }
  func.func @transform_4(%arg0: i32) -> (i32, i32) {
    %c0_i32 = arith.constant 0 : i32
    %c0_i32_0 = arith.constant 0 : i32
    %c0_i32_1 = arith.constant 0 : i32
    return %c0_i32, %c0_i32_0 : i32, i32
  }
  func.func @transform_5(%arg0: i32) -> (i32, i32, i32) {
    %c0_i32 = arith.constant 0 : i32
    %c0_i32_0 = arith.constant 0 : i32
    %c0_i32_1 = arith.constant 0 : i32
    %c0_i32_2 = arith.constant 0 : i32
    return %c0_i32, %c0_i32_0, %c0_i32_1 : i32, i32, i32
  }
  func.func @transform_6(%arg0: i32) -> (i32, i32, i32) {
    %c0_i32 = arith.constant 0 : i32
    %c0_i32_0 = arith.constant 0 : i32
    %c0_i32_1 = arith.constant 0 : i32
    %c0_i32_2 = arith.constant 0 : i32
    return %c0_i32, %c0_i32_0, %c0_i32_1 : i32, i32, i32
  }
  func.func @transform_7(%arg0: i32) -> (i32, i32) {
    %c0_i32 = arith.constant 0 : i32
    %c0_i32_0 = arith.constant 0 : i32
    %c0_i32_1 = arith.constant 0 : i32
    return %c0_i32, %c0_i32_0 : i32, i32
  }
  func.func @transform_8(%arg0: i32) -> (i32, i32) {
    %c0_i32 = arith.constant 0 : i32
    %c0_i32_0 = arith.constant 0 : i32
    %c0_i32_1 = arith.constant 0 : i32
    return %c0_i32, %c0_i32_0 : i32, i32
  }
  func.func @transform_9(%arg0: i32) -> (i32, i32, i32) {
    %c0_i32 = arith.constant 0 : i32
    %c0_i32_0 = arith.constant 0 : i32
    %c0_i32_1 = arith.constant 0 : i32
    %c0_i32_2 = arith.constant 0 : i32
    return %c0_i32, %c0_i32_0, %c0_i32_1 : i32, i32, i32
  }
  func.func @transform_10(%arg0: i32) -> (i32, i32, i32) {
    %c0_i32 = arith.constant 0 : i32
    %c0_i32_0 = arith.constant 0 : i32
    %c0_i32_1 = arith.constant 0 : i32
    %c0_i32_2 = arith.constant 0 : i32
    return %c0_i32, %c0_i32_0, %c0_i32_1 : i32, i32, i32
  }
  func.func @transform_11(%arg0: i32) -> (i32, i32) {
    %c0_i32 = arith.constant 0 : i32
    %c0_i32_0 = arith.constant 0 : i32
    %c0_i32_1 = arith.constant 0 : i32
    return %c0_i32, %c0_i32_0 : i32, i32
  }
  func.func @transform_12(%arg0: i32) -> (i32, i32) {
    %c0_i32 = arith.constant 0 : i32
    %c0_i32_0 = arith.constant 0 : i32
    %c0_i32_1 = arith.constant 0 : i32
    return %c0_i32, %c0_i32_0 : i32, i32
  }
  func.func @transform_13(%arg0: i32) -> (i32, i32, i32) {
    %c0_i32 = arith.constant 0 : i32
    %c0_i32_0 = arith.constant 0 : i32
    %c0_i32_1 = arith.constant 0 : i32
    %c0_i32_2 = arith.constant 0 : i32
    return %c0_i32, %c0_i32_0, %c0_i32_1 : i32, i32, i32
  }
  func.func @transform_14(%arg0: i32) -> (i32, i32, i32) {
    %c0_i32 = arith.constant 0 : i32
    %c0_i32_0 = arith.constant 0 : i32
    %c0_i32_1 = arith.constant 0 : i32
    %c0_i32_2 = arith.constant 0 : i32
    return %c0_i32, %c0_i32_0, %c0_i32_1 : i32, i32, i32
  }
  func.func @transform_15(%arg0: i32) -> (i32, i32) {
    %c0_i32 = arith.constant 0 : i32
    %c0_i32_0 = arith.constant 0 : i32
    %c0_i32_1 = arith.constant 0 : i32
    return %c0_i32, %c0_i32_0 : i32, i32
  }
  func.func @transform_16(%arg0: i32) -> (i32, i32) {
    %c0_i32 = arith.constant 0 : i32
    %c0_i32_0 = arith.constant 0 : i32
    %c0_i32_1 = arith.constant 0 : i32
    return %c0_i32, %c0_i32_0 : i32, i32
  }
  func.func @transform_17(%arg0: i32) -> (i32, i32) {
    %c0_i32 = arith.constant 0 : i32
    %c0_i32_0 = arith.constant 0 : i32
    %c0_i32_1 = arith.constant 0 : i32
    return %c0_i32, %c0_i32_0 : i32, i32
  }
  func.func @transform_18(%arg0: i32) -> (i32, i32) {
    %c0_i32 = arith.constant 0 : i32
    %c0_i32_0 = arith.constant 0 : i32
    %c0_i32_1 = arith.constant 0 : i32
    return %c0_i32, %c0_i32_0 : i32, i32
  }
  func.func @transform_19(%arg0: i32) -> (i32, i32) {
    %c0_i32 = arith.constant 0 : i32
    %c0_i32_0 = arith.constant 0 : i32
    %c0_i32_1 = arith.constant 0 : i32
    return %c0_i32, %c0_i32_0 : i32, i32
  }
  func.func @transform_20(%arg0: i32) -> (i32, i32) {
    %c0_i32 = arith.constant 0 : i32
    %c0_i32_0 = arith.constant 0 : i32
    %c0_i32_1 = arith.constant 0 : i32
    return %c0_i32, %c0_i32_0 : i32, i32
  }
  func.func @transform_21(%arg0: i32) -> (i32, i32) {
    %c0_i32 = arith.constant 0 : i32
    %c0_i32_0 = arith.constant 0 : i32
    %c0_i32_1 = arith.constant 0 : i32
    return %c0_i32, %c0_i32_0 : i32, i32
  }
}

</mosaic_0001>

<bundles_post_ra>
// kernel: tpu_custom_call.1
= control target key start
LH: loop header
LB: loop body
LE: loop exit
PB: predicated region body
PF: predicated region fallthrough
CT: control target
= control target key end

     0   :  { %s11447_s0 = inlined_call_operand.vmem [shape: bf16[512,3], index: 0, kind: input, shape index: {}]   ;;  %s11448_s1 = inlined_call_operand.hbm [shape: bf16[9,128,512], index: 1, kind: input, shape index: {}]   ;;  %s11449_s2 = inlined_call_operand.hbm [shape: bf16[9,3,16], index: 2, kind: input, shape index: {}]   ;;  %s11450_s3 = inlined_call_operand.hbm [shape: f32[1,16], index: 3, kind: input, shape index: {}]   ;;  %s11451_s4 = inlined_call_operand.hbm [shape: f32[1,16], index: 4, kind: input, shape index: {}]   ;;  %s11452_s5 = inlined_call_operand.hbm [shape: bf16[9,32,128], index: 5, kind: input, shape index: {}]   ;;  %s11453_s6 = inlined_call_operand.hbm [shape: bf16[9,16,32], index: 6, kind: input, shape index: {}]   ;;  %s11454_s7 = inlined_call_operand.hbm [shape: f32[1,32], index: 7, kind: input, shape index: {}]   ;;  %s11455_s8 = inlined_call_operand.hbm [shape: f32[1,32], index: 8, kind: input, shape index: {}]   ;;  %s11456_s9 = inlined_call_operand.hbm [shape: bf16[9,8,32], index: 9, kind: input, shape index: {}]   ;;  %s11457_s10 = inlined_call_operand.hbm [shape: bf16[9,32,48], index: 10, kind: input, shape index: {}]   ;;  %s11458_s11 = inlined_call_operand.hbm [shape: f32[1,48], index: 11, kind: input, shape index: {}]   ;;  %s11459_s12 = inlined_call_operand.hbm [shape: f32[1,48], index: 12, kind: input, shape index: {}]   ;;  %s11460_s13 = inlined_call_operand.vmem [shape: bf16[9,2,8], index: 13, kind: input, shape index: {}]   ;;  %s11461_s14 = inlined_call_operand.hbm [shape: bf16[9,48,64], index: 14, kind: input, shape index: {}]   ;;  %s11462_s15 = inlined_call_operand.hbm [shape: f32[1,64], index: 15, kind: input, shape index: {}]   ;;  %s11463_s16 = inlined_call_operand.hbm [shape: f32[1,64], index: 16, kind: input, shape index: {}]   ;;  %s11464_s17 = inlined_call_operand.vmem [shape: bf16[64,1], index: 17, kind: input, shape index: {}]   ;;  %s11465_s18 = inlined_call_operand.<no memory space> [shape: f32[1,1], index: 18, kind: input, shape index: {}]   ;;  %s11466_s19 = inlined_call_operand.vmem [shape: bf16[64,32], index: 19, kind: input, shape index: {}]   ;;  %s11467_s20 = inlined_call_operand.hbm [shape: f32[1,32], index: 20, kind: input, shape index: {}]   ;;  %s11468_s21 = inlined_call_operand.hbm [shape: f32[2,32], index: 21, kind: output, shape index: {}]  }
   0x1   :  { %11475 = sst [smem:[#allocation60_spill]] %s11447_s0 }
   0x2   :  { %11476 = sst [smem:[#allocation61_spill]] %s11448_s1 }
   0x3   :  { %11477 = sst [smem:[#allocation62_spill]] %s11449_s2 }
   0x4   :  { %11478 = sst [smem:[#allocation63_spill]] %s11450_s3 }
   0x5   :  { %11479 = sst [smem:[#allocation64_spill]] %s11451_s4 }
   0x6   :  { %11480 = sst [smem:[#allocation65_spill]] %s11452_s5 }
   0x7   :  { %11481 = sst [smem:[#allocation66_spill]] %s11465_s18 }
   0x8   :  { %11482 = sst [smem:[#allocation67_spill]] %s11468_s21 }
   0x9   :  { %27 = vsyncpa [#allocation4], 0 }
   0xa   :  { %28 = vsyncpa [#allocation7], 0 }
   0xb   :  { %29 = vsyncpa [#allocation10], 0 }
   0xc   :  { %30 = vsyncpa [#allocation13], 0 }
   0xd   :  { %31 = vsyncpa [#allocation16], 0 }
   0xe   :  { %32 = vsyncpa [#allocation19], 0 }
   0xf   :  { %33 = vsyncpa [#allocation22], 0 }
  0x10   :  { %34 = vsyncpa [#allocation25], 0 }
  0x11   :  { %35 = vsyncpa [#allocation28], 0  ;;  %s11483_s26 = sld [smem:[#allocation62_spill]] }
  0x17   :  { %s56_s27 = sshll.u32 %s11483_s26, 4  ;;  %s57_s27 = int_to_ptr.hbm [resolvable:$true] %s56_s27 }
  0x18   :  { %36 = vsyncpa [#allocation5], 0  ;;  %s9599_s3 = smov [#allocation6]   ;;  %s11484_s4 = sld [smem:[#allocation64_spill]] }
  0x19   :  { %s58_s28 = sshll.u32 %s9599_s3, 4  ;;  %s9600_s5 = smov 32   ;;  %s59_s28 = int_to_ptr.vmem [resolvable:$true] %s58_s28 }
  0x1a   :  { %s9601_s22 = smov 2   ;;  %s9602_s23 = smov [#allocation9]  }
  0x1b   :  { %64 = dma.hbm_to_vmem [thread:$0]  %s57_s27, 288, %s59_s28, [#allocation7], %s9600_s5, %s9600_s5, %s9601_s22  }
  0x1c   :  { %s83_s1 = sshll.u32 %s9602_s23, 4  ;;  %s104_s25 = sshll.u32 %s11453_s6, 4  ;;  %s84_s1 = int_to_ptr.vmem [resolvable:$true] %s83_s1  ;;  %s105_s25 = int_to_ptr.hbm [resolvable:$true] %s104_s25 }
  0x1d   :  { %s9603_s26 = smov [#allocation12]   ;;  %s129_s29 = sshll.u32 %s11455_s8, 4  ;;  %s130_s29 = int_to_ptr.hbm [resolvable:$true] %s129_s29 }
  0x1e   :  { %s81_s30 = sshll.u32 %s11484_s4, 4  ;;  %s106_s3 = sshll.u32 %s9603_s26, 4  ;;  %s82_s30 = int_to_ptr.hbm [resolvable:$true] %s81_s30  ;;  %s107_s3 = int_to_ptr.vmem [resolvable:$true] %s106_s3 }
  0x1f   :  { %86 = dma.hbm_to_vmem [thread:$0]  %s82_s30, 16, %s84_s1, [#allocation10]  }
  0x20   :  { %s9604_s0 = smov 64   ;;  %s9605_s4 = smov 4  }
  0x21   :  { %112 = dma.hbm_to_vmem [thread:$0]  %s105_s25, 1152, %s107_s3, [#allocation13], %s9604_s0, %s9604_s0, %s9605_s4  }
  0x22   :  { %s9606_s27 = smov [#allocation15]   ;;  %s152_s6 = sshll.u32 %s11457_s10, 4  ;;  %s153_s6 = int_to_ptr.hbm [resolvable:$true] %s152_s6 }
  0x23   :  { %s131_s28 = sshll.u32 %s9606_s27, 4  ;;  %s177_s8 = sshll.u32 %s11459_s12, 4  ;;  %s132_s28 = int_to_ptr.vmem [resolvable:$true] %s131_s28  ;;  %s178_s8 = int_to_ptr.hbm [resolvable:$true] %s177_s8 }
  0x24   :  { %134 = dma.hbm_to_vmem [thread:$0]  %s130_s29, 16, %s132_s28, [#allocation16]  }
  0x25   :  { %s9607_s18 = smov [#allocation18]   ;;  %s9608_s1 = smov [#allocation21]  }
  0x26   :  { %s154_s21 = sshll.u32 %s9607_s18, 4  ;;  %s179_s24 = sshll.u32 %s9608_s1, 4  ;;  %s155_s21 = int_to_ptr.vmem [resolvable:$true] %s154_s21  ;;  %s180_s24 = int_to_ptr.vmem [resolvable:$true] %s179_s24 }
  0x27   :  { %160 = dma.hbm_to_vmem [thread:$0]  %s153_s6, 2304, %s155_s21, [#allocation19], %s9604_s0, %s9604_s0, %s9605_s4  }
  0x28   :  { %s203_s10 = sshll.u32 %s11462_s15, 4  ;;  %s11485_s12 = sld [smem:[#allocation61_spill]]  ;;  %s204_s10 = int_to_ptr.hbm [resolvable:$true] %s203_s10 }
  0x29   :  { %182 = dma.hbm_to_vmem [thread:$0]  %s178_s8, 16, %s180_s24, [#allocation22]  }
  0x2a   :  { %s9609_s27 = smov [#allocation24]   ;;  %s9610_s30 = smov [#allocation3]  }
  0x2b   :  { %s205_s28 = sshll.u32 %s9609_s27, 4  ;;  %s45_s5 = sshll.u32 %s9610_s30, 4  ;;  %s206_s28 = int_to_ptr.vmem [resolvable:$true] %s205_s28  ;;  %s46_s5 = int_to_ptr.vmem [resolvable:$true] %s45_s5 }
  0x2c   :  { %208 = dma.hbm_to_vmem [thread:$0]  %s204_s10, 16, %s206_s28, [#allocation25]  }
  0x2d   :  { %s9611_s6 = smov 256   ;;  %s9612_s22 = smov 16  }
  0x2e   :  { %s43_s29 = sshll.u32 %s11485_s12, 4  ;;  %s11486_s18 = sld [smem:[#allocation63_spill]]  ;;  %s44_s29 = int_to_ptr.hbm [resolvable:$true] %s43_s29 }
  0x2f   :  { %51 = dma.hbm_to_vmem [thread:$0]  %s44_s29, 36864, %s46_s5, [#allocation4], %s9611_s6, %s9611_s6, %s9612_s22  }
  0x30   :  { %s9613_s8 = smov [#allocation8]   ;;  %s11487_s25 = sld [smem:[#allocation65_spill]] }
  0x31   :  { %s72_s1 = sshll.u32 %s9613_s8, 4  ;;  %s9614_s10 = smov [#allocation11]   ;;  %s73_s1 = int_to_ptr.vmem [resolvable:$true] %s72_s1 }
  0x32   :  { %s93_s3 = sshll.u32 %s9614_s10, 4  ;;  %s118_s29 = sshll.u32 %s11454_s7, 4  ;;  %s94_s3 = int_to_ptr.vmem [resolvable:$true] %s93_s3  ;;  %s119_s29 = int_to_ptr.hbm [resolvable:$true] %s118_s29 }
  0x33   :  { %s139_s5 = sshll.u32 %s11456_s9, 4  ;;  %s9615_s6 = smov [#allocation14]   ;;  %s140_s5 = int_to_ptr.hbm [resolvable:$true] %s139_s5 }
  0x34   :  { %s70_s21 = sshll.u32 %s11486_s18, 4  ;;  %s120_s22 = sshll.u32 %s9615_s6, 4  ;;  %s71_s21 = int_to_ptr.hbm [resolvable:$true] %s70_s21  ;;  %s121_s22 = int_to_ptr.vmem [resolvable:$true] %s120_s22 }
  0x35   :  { %75 = dma.hbm_to_vmem [thread:$0]  %s71_s21, 16, %s73_s1, [#allocation7]  }
  0x36   :  { %s91_s26 = sshll.u32 %s11487_s25, 4  ;;  %s9616_s23 = smov [#allocation17]   ;;  %s92_s26 = int_to_ptr.hbm [resolvable:$true] %s91_s26 }
  0x37   :  { %99 = dma.hbm_to_vmem [thread:$0]  %s92_s26, 2304, %s94_s3, [#allocation10], %s9604_s0, %s9604_s0, %s9605_s4  }
  0x38   :  { %123 = dma.hbm_to_vmem [thread:$0]  %s119_s29, 16, %s121_s22, [#allocation13]  }
  0x39   :  { %s141_s15 = sshll.u32 %s9616_s23, 4  ;;  %s166_s7 = sshll.u32 %s11458_s11, 4  ;;  %s142_s15 = int_to_ptr.vmem [resolvable:$true] %s141_s15  ;;  %s167_s7 = int_to_ptr.hbm [resolvable:$true] %s166_s7 }
  0x3a   :  { %147 = dma.hbm_to_vmem [thread:$0]  %s140_s5, 576, %s142_s15, [#allocation16], %s9604_s0, %s9604_s0, %s9605_s4  }
  0x3b   :  { %s189_s9 = sshll.u32 %s11461_s14, 4  ;;  %s9617_s24 = smov [#allocation20]   ;;  %s190_s9 = int_to_ptr.hbm [resolvable:$true] %s189_s9 }
  0x3c   :  { %s168_s2 = sshll.u32 %s9617_s24, 4  ;;  %s9618_s25 = smov [#allocation23]   ;;  %s169_s2 = int_to_ptr.vmem [resolvable:$true] %s168_s2 }
  0x3d   :  { %171 = dma.hbm_to_vmem [thread:$0]  %s167_s7, 16, %s169_s2, [#allocation19]  }
  0x3e   :  { %s191_s26 = sshll.u32 %s9618_s25, 4  ;;  %s214_s11 = sshll.u32 %s11463_s16, 4  ;;  %s192_s26 = int_to_ptr.vmem [resolvable:$true] %s191_s26  ;;  %s215_s11 = int_to_ptr.hbm [resolvable:$true] %s214_s11 }
  0x3f   :  { %197 = dma.hbm_to_vmem [thread:$0]  %s190_s9, 3456, %s192_s26, [#allocation22], %s9604_s0, %s9604_s0, %s9605_s4  }
  0x40   :  { %s231_s14 = sshll.u32 %s11467_s20, 4  ;;  %s9619_s29 = smov [#allocation26]   ;;  %s232_s14 = int_to_ptr.hbm [resolvable:$true] %s231_s14 }
  0x41   :  { %s216_s28 = sshll.u32 %s9619_s29, 4  ;;  %s9620_s30 = smov [#allocation27]   ;;  %s217_s28 = int_to_ptr.vmem [resolvable:$true] %s216_s28 }
  0x42   :  { %219 = dma.hbm_to_vmem [thread:$0]  %s215_s11, 16, %s217_s28, [#allocation25]  }
  0x43   :  { %s233_s5 = sshll.u32 %s9620_s30, 4  ;;  %s234_s5 = int_to_ptr.vmem [resolvable:$true] %s233_s5 }
  0x44   :  { %236 = dma.hbm_to_vmem [thread:$0]  %s232_s14, 16, %s234_s5, [#allocation28]  }
  0x45   :  { %9579 = dma.done.wait [#allocation4], 36864  }
  0x46   :  { %9580 = vsyncadd [#allocation4], 4294930432 }
  0x47   :  { %9581 = dma.done.wait [#allocation7], 304  }
  0x48   :  { %9582 = vsyncadd [#allocation7], 4294966992 }
  0x49   :  { %9583 = dma.done.wait [#allocation10], 2320  }
  0x4a   :  { %9584 = vsyncadd [#allocation10], 4294964976 }
  0x4b   :  { %9585 = dma.done.wait [#allocation13], 1168  }
  0x4c   :  { %9586 = vsyncadd [#allocation13], 4294966128 }
  0x4d   :  { %9587 = dma.done.wait [#allocation16], 592  }
  0x4e   :  { %9588 = vsyncadd [#allocation16], 4294966704 }
  0x4f   :  { %9589 = dma.done.wait [#allocation19], 2320  }
  0x50   :  { %9590 = vsyncadd [#allocation19], 4294964976 }
  0x51   :  { %9591 = dma.done.wait [#allocation22], 3472  }
  0x52   :  { %9592 = vsyncadd [#allocation22], 4294963824 }
  0x53   :  { %9593 = dma.done.wait [#allocation25], 32  }
  0x54   :  { %9594 = vsyncadd [#allocation25], 4294967264 }
  0x55   :  { %9595 = dma.done.wait [#allocation28], 16  }
  0x56   :  { %9596 = vsyncadd [#allocation28], 4294967280  ;;  %s11488_s0 = sld [smem:[#allocation60_spill]]  ;;  %v6902_v32 = vld [vmem:[#allocation3] sm:$0xf]  ;;  %vm1379_vm0 = vcmask 1040384  }
  0x57   :  { %v8670_v33 = vld [vmem:[#allocation3 + $0xc] sm:$0xf0]  ;;  %v8668_v34 = vld [vmem:[#allocation3 + $0x4] sm:$0xf]  ;;  %v6904_v35 = vld [vmem:[#allocation3 + $0x10] sm:$0xf0] }
  0x58   :  { %v6910_v36 = vld [vmem:[#allocation3 + $0x8] sm:$0xf]  ;;  %v8671_v37 = vld [vmem:[#allocation3 + $0x14] sm:$0xf0]  ;;  %v8669_v38 = vld [vmem:[#allocation3 + $0xc] sm:$0xf]  ;;  %v6903_v40 = vor.u32 %v8670_v33, %v6902_v32  ;;  %v6907_v41 = vor.u32 %v8668_v34, %v6904_v35 }
  0x59   :  { %v6912_v39 = vld [vmem:[#allocation3 + $0x18] sm:$0xf0]  ;;  %v6911_v42 = vor.u32 %v8671_v37, %v6910_v36  ;;  %v6918_v44 = vld [vmem:[#allocation3 + $0x20] sm:$0xf]  ;;  %v8674_v45 = vld [vmem:[#allocation3 + $0x2c] sm:$0xf0] }
  0x5a   :  { %v6915_v43 = vor.u32 %v8669_v38, %v6912_v39  ;;  %v8672_v46 = vld [vmem:[#allocation3 + $0x24] sm:$0xf]  ;;  %v6920_v47 = vld [vmem:[#allocation3 + $0x30] sm:$0xf0]  ;;  %v6926_v48 = vld [vmem:[#allocation3 + $0x28] sm:$0xf]  ;;  %v6919_v52 = vor.u32 %v8674_v45, %v6918_v44 }
  0x5b   :  { %v8675_v49 = vld [vmem:[#allocation3 + $0x34] sm:$0xf0]  ;;  %v8673_v50 = vld [vmem:[#allocation3 + $0x2c] sm:$0xf]  ;;  %v6928_v51 = vld [vmem:[#allocation3 + $0x38] sm:$0xf0]  ;;  %v6923_v53 = vor.u32 %v8672_v46, %v6920_v47 }
  0x5c   :  { %v9800_v0 = vld [vmem:[%s11488_s0 + $0x38] sm:$0xff]  ;;  %v9822_v4 = vld [vmem:[%s11488_s0 + $0x30] sm:$0xff]  ;;  %v9846_v8 = vld [vmem:[%s11488_s0 + $0x28] sm:$0xff]  ;;  %v6927_v54 = vor.u32 %v8675_v49, %v6926_v48  ;;  %v6931_v55 = vor.u32 %v8673_v50, %v6928_v51  ;;  %vm1380_vm1 = vcmask 1041408   ;;  %vm1354_vm2 = vcmask 23552   ;;  %s11537_s26 = sld [smem:[#allocation66_spill]] }
  0x5d   :  { %v9805_v1 = vld [vmem:[%s11488_s0 + $0x78] sm:$0xff]  ;;  %750 = vmatpush.bf16.msra.mxu0 %v9800_v0  ;;  %v9827_v5 = vld [vmem:[%s11488_s0 + $0x70] sm:$0xff]  ;;  %v9851_v9 = vld [vmem:[%s11488_s0 + $0x68] sm:$0xff]  ;;  %vm5098_vm3 = vcmask 130048   ;;  %vm5710_vm4 = vcmask 261120   ;;  %vm6200_vm5 = vcmask 1043456  }
  0x5e   :  { %v9810_v2 = vld [vmem:[%s11488_s0 + $0xb8] sm:$0xff]  ;;  %799 = vmatpush.bf16.msra.mxu1 %v9805_v1  ;;  %v9834_v6 = vld [vmem:[%s11488_s0 + $0xb0] sm:$0xff]  ;;  %v9858_v10 = vld [vmem:[%s11488_s0 + $0xa8] sm:$0xff]  ;;  %vm6196_vm6 = vcmask 64512   ;;  %vm6268_vm7 = vcmask 392192   ;;  %vm6792_vm8 = vcmask 523264  }
  0x5f   :  { %v9815_v3 = vld [vmem:[%s11488_s0 + $0xf8] sm:$0xff]  ;;  %848 = vmatpush.bf16.msra.mxu2 %v9810_v2  ;;  %v9839_v7 = vld [vmem:[%s11488_s0 + $0xf0] sm:$0xff]  ;;  %v9863_v11 = vld [vmem:[%s11488_s0 + $0xe8] sm:$0xff]  ;;  %s9623_s11 = smov [#allocation29]   ;;  %s11538_s29 = sld [smem:[#allocation67_spill]]  ;;  %vm6873_vm9 = vcmask 254976  }
  0x60   :  { %897 = vmatpush.bf16.msra.mxu3 %v9815_v3  ;;  %v9870_v12 = vld [vmem:[%s11488_s0 + $0x20] sm:$0xff]  ;;  %v9892_v16 = vld [vmem:[%s11488_s0 + $0x18] sm:$0xff]  ;;  %v9916_v20 = vld [vmem:[%s11488_s0 + $0x10] sm:$0xff]  ;;  %s6880_s12 = sshll.u32 %s9623_s11, 4  ;;  %s6881_s12 = int_to_ptr.vmem [resolvable:$true] %s6880_s12 }
  0x61   :  { %751 = vmatpush.bf16.msra.mxu0 %v9822_v4  ;;  %v9875_v13 = vld [vmem:[%s11488_s0 + $0x60] sm:$0xff]  ;;  %v9897_v17 = vld [vmem:[%s11488_s0 + $0x58] sm:$0xff]  ;;  %v9923_v21 = vld [vmem:[%s11488_s0 + $0x50] sm:$0xff] }
  0x62   :  { %800 = vmatpush.bf16.msra.mxu1 %v9827_v5  ;;  %v9882_v14 = vld [vmem:[%s11488_s0 + $0xa0] sm:$0xff]  ;;  %v9906_v18 = vld [vmem:[%s11488_s0 + $0x98] sm:$0xff]  ;;  %v9928_v22 = vld [vmem:[%s11488_s0 + $0x90] sm:$0xff] }
  0x63   :  { %849 = vmatpush.bf16.msra.mxu2 %v9834_v6  ;;  %v9887_v15 = vld [vmem:[%s11488_s0 + $0xe0] sm:$0xff]  ;;  %v9911_v19 = vld [vmem:[%s11488_s0 + $0xd8] sm:$0xff]  ;;  %v9935_v23 = vld [vmem:[%s11488_s0 + $0xd0] sm:$0xff] }
  0x64   :  { %898 = vmatpush.bf16.msra.mxu3 %v9839_v7  ;;  %v9942_v24 = vld [vmem:[%s11488_s0 + $0x8] sm:$0xff]  ;;  %v9964_v28 = vld [vmem:[%s11488_s0] sm:$0xff]  ;;  %v8678_v57 = vld [vmem:[#allocation3 + $0x4c] sm:$0xf0] }
  0x65   :  { %752 = vmatpush.bf16.msra.mxu0 %v9846_v8  ;;  %v9947_v25 = vld [vmem:[%s11488_s0 + $0x48] sm:$0xff]  ;;  %v9969_v29 = vld [vmem:[%s11488_s0 + $0x40] sm:$0xff]  ;;  %v6936_v59 = vld [vmem:[#allocation3 + $0x50] sm:$0xf0]  ;;  %s6882_s28 = sshll.u32 %s11538_s29, 4  ;;  %s6883_s28 = int_to_ptr.hbm [resolvable:$true] %s6882_s28 }
  0x66   :  { %801 = vmatpush.bf16.msra.mxu1 %v9851_v9  ;;  %v9954_v26 = vld [vmem:[%s11488_s0 + $0x88] sm:$0xff]  ;;  %v9974_v30 = vld [vmem:[%s11488_s0 + $0x80] sm:$0xff]  ;;  %v8679_v61 = vld [vmem:[#allocation3 + $0x54] sm:$0xf0] }
  0x67   :  { %850 = vmatpush.bf16.msra.mxu2 %v9858_v10  ;;  %v9959_v27 = vld [vmem:[%s11488_s0 + $0xc8] sm:$0xff]  ;;  %v9979_v31 = vld [vmem:[%s11488_s0 + $0xc0] sm:$0xff]  ;;  %v6944_v63 = vld [vmem:[#allocation3 + $0x58] sm:$0xf0] }
  0x68   :  { %899 = vmatpush.bf16.msra.mxu3 %v9863_v11  ;;  %v6934_v56 = vld [vmem:[#allocation3 + $0x40] sm:$0xf]  ;;  %v8676_v58 = vld [vmem:[#allocation3 + $0x44] sm:$0xf]  ;;  %v6942_v60 = vld [vmem:[#allocation3 + $0x48] sm:$0xf] }
  0x69   :  { %753 = vmatpush.bf16.msra.mxu0 %v9870_v12  ;;  %v8677_v62 = vld [vmem:[#allocation3 + $0x4c] sm:$0xf]  ;;  %v6935_v32 = vor.u32 %v8678_v57, %v6934_v56  ;;  %v6939_v33 = vor.u32 %v8676_v58, %v6936_v59  ;;  %v6943_v34 = vor.u32 %v8679_v61, %v6942_v60  ;;  %v6950_v36 = vld [vmem:[#allocation3 + $0x60] sm:$0xf]  ;;  %v8682_v37 = vld [vmem:[#allocation3 + $0x6c] sm:$0xf0] }
  0x6a   :  { %802 = vmatpush.bf16.msra.mxu1 %v9875_v13  ;;  %v6947_v35 = vor.u32 %v8677_v62, %v6944_v63  ;;  %v8680_v38 = vld [vmem:[#allocation3 + $0x64] sm:$0xf]  ;;  %v6952_v39 = vld [vmem:[#allocation3 + $0x70] sm:$0xf0]  ;;  %v6974_v48 = vld [vmem:[#allocation3 + $0x88] sm:$0xf] }
  0x6b   :  { %851 = vmatpush.bf16.msra.mxu2 %v9882_v14  ;;  %v6955_v44 = vor.u32 %v8680_v38, %v6952_v39  ;;  %v8684_v46 = vld [vmem:[#allocation3 + $0x84] sm:$0xf]  ;;  %v6968_v47 = vld [vmem:[#allocation3 + $0x90] sm:$0xf0]  ;;  %v8687_v49 = vld [vmem:[#allocation3 + $0x94] sm:$0xf0] }
  0x6c   :  { %900 = vmatpush.bf16.msra.mxu3 %v9887_v15  ;;  %v8685_v50 = vld [vmem:[#allocation3 + $0x8c] sm:$0xf]  ;;  %v6984_v56 = vld [vmem:[#allocation3 + $0xb0] sm:$0xf0]  ;;  %v6990_v57 = vld [vmem:[#allocation3 + $0xa8] sm:$0xf] }
  0x6d   :  { %754 = vmatpush.bf16.msra.mxu0 %v9892_v16  ;;  %v8691_v58 = vld [vmem:[#allocation3 + $0xb4] sm:$0xf0]  ;;  %v8689_v59 = vld [vmem:[#allocation3 + $0xac] sm:$0xf]  ;;  %v6992_v60 = vld [vmem:[#allocation3 + $0xb8] sm:$0xf0] }
  0x6e   :  { %803 = vmatpush.bf16.msra.mxu1 %v9897_v17  ;;  %v6991_v63 = vor.u32 %v8691_v58, %v6990_v57  ;;  %v8693_v38 = vld [vmem:[#allocation3 + $0xcc] sm:$0xf]  ;;  %v7008_v39 = vld [vmem:[#allocation3 + $0xd8] sm:$0xf0] }
  0x6f   :  { %852 = vmatpush.bf16.msra.mxu2 %v9906_v18 }
  0x70   :  { %901 = vmatpush.bf16.msra.mxu3 %v9911_v19 }
  0x71   :  { %755 = vmatpush.bf16.msra.mxu0 %v9916_v20 }
  0x72   :  { %804 = vmatpush.bf16.msra.mxu1 %v9923_v21 }
  0x73   :  { %853 = vmatpush.bf16.msra.mxu2 %v9928_v22 }
  0x74   :  { %902 = vmatpush.bf16.msra.mxu3 %v9935_v23 }
  0x75   :  { %756 = vmatpush.bf16.msra.mxu0 %v9942_v24 }
  0x76   :  { %805 = vmatpush.bf16.msra.mxu1 %v9947_v25 }
  0x77   :  { %854 = vmatpush.bf16.msra.mxu2 %v9954_v26 }
  0x78   :  { %903 = vmatpush.bf16.msra.mxu3 %v9959_v27 }
  0x79   :  { %757 = vmatpush.bf16.msra.mxu0 %v9964_v28 }
  0x7a   :  { %806 = vmatpush.bf16.msra.mxu1 %v9969_v29 }
  0x7b   :  { %855 = vmatpush.bf16.msra.mxu2 %v9974_v30 }
  0x7c   :  { %904 = vmatpush.bf16.msra.mxu3 %v9979_v31  ;;  %758 = vmatmul.bf16.vlgmr.msra.gmra.mxu0 %v6903_v40  ;;  %v6958_v40 = vld [vmem:[#allocation3 + $0x68] sm:$0xf] }
  0x7d   :  { %1148 = vmatpush.bf16.msrb.mxu0 %v9800_v0  ;;  %807 = vmatmul.bf16.vlgmr.msra.gmra.mxu1 %v6907_v41  ;;  %v8683_v41 = vld [vmem:[#allocation3 + $0x74] sm:$0xf0] }
  0x7e   :  { %1197 = vmatpush.bf16.msrb.mxu1 %v9805_v1  ;;  %856 = vmatmul.bf16.vlgmr.msra.gmra.mxu2 %v6911_v42  ;;  %v8681_v42 = vld [vmem:[#allocation3 + $0x6c] sm:$0xf]  ;;  %v6959_v45 = vor.u32 %v8683_v41, %v6958_v40 }
  0x7f   :  { %905 = vmatmul.bf16.vlgmr.msra.gmra.mxu3 %v6915_v43  ;;  %1246 = vmatpush.bf16.msrb.mxu2 %v9810_v2  ;;  %v6951_v43 = vor.u32 %v8682_v37, %v6950_v36  ;;  %v7006_v36 = vld [vmem:[#allocation3 + $0xc8] sm:$0xf]  ;;  %v8695_v37 = vld [vmem:[#allocation3 + $0xd4] sm:$0xf0] }
  0x80   :  { %1295 = vmatpush.bf16.msrb.mxu3 %v9815_v3 }
  0x81   :  { %1149 = vmatpush.bf16.msrb.mxu0 %v9822_v4 }
  0x82   :  { %1198 = vmatpush.bf16.msrb.mxu1 %v9827_v5 }
  0x83   :  { %1247 = vmatpush.bf16.msrb.mxu2 %v9834_v6 }
  0x84   :  { %1296 = vmatpush.bf16.msrb.mxu3 %v9839_v7 }
  0x85   :  { %1150 = vmatpush.bf16.msrb.mxu0 %v9846_v8 }
  0x86   :  { %1199 = vmatpush.bf16.msrb.mxu1 %v9851_v9 }
  0x87   :  { %1248 = vmatpush.bf16.msrb.mxu2 %v9858_v10 }
  0x88   :  { %1297 = vmatpush.bf16.msrb.mxu3 %v9863_v11 }
  0x89   :  { %1151 = vmatpush.bf16.msrb.mxu0 %v9870_v12 }
  0x8a   :  { %1200 = vmatpush.bf16.msrb.mxu1 %v9875_v13 }
  0x8b   :  { %1249 = vmatpush.bf16.msrb.mxu2 %v9882_v14 }
  0x8c   :  { %1298 = vmatpush.bf16.msrb.mxu3 %v9887_v15  ;;  %763 = vmatmul.bf16.gmra.mxu0 %v6919_v52  ;;  %v6971_v52 = vor.u32 %v8684_v46, %v6968_v47  ;;  %v8697_v46 = vld [vmem:[#allocation3 + $0xec] sm:$0xf]  ;;  %v7024_v47 = vld [vmem:[#allocation3 + $0xf8] sm:$0xf0] }
  0x8d   :  { %1152 = vmatpush.bf16.msrb.mxu0 %v9892_v16  ;;  %812 = vmatmul.bf16.gmra.mxu1 %v6923_v53  ;;  %v6975_v53 = vor.u32 %v8687_v49, %v6974_v48 }
  0x8e   :  { %1201 = vmatpush.bf16.msrb.mxu1 %v9897_v17  ;;  %861 = vmatmul.bf16.gmra.mxu2 %v6927_v54  ;;  %v8690_v54 = vld [vmem:[#allocation3 + $0xac] sm:$0xf0] }
  0x8f   :  { %910 = vmatmul.bf16.gmra.mxu3 %v6931_v55  ;;  %1250 = vmatpush.bf16.msrb.mxu2 %v9906_v18  ;;  %v8688_v55 = vld [vmem:[#allocation3 + $0xa4] sm:$0xf] }
  0x90   :  { %1299 = vmatpush.bf16.msrb.mxu3 %v9911_v19  ;;  %v6987_v62 = vor.u32 %v8688_v55, %v6984_v56  ;;  %v8701_v55 = vld [vmem:[#allocation3 + $0x10c] sm:$0xf]  ;;  %v7168_v56 = vld [vmem:[#allocation3 + $0x118] sm:$0xf0] }
  0x91   :  { %1153 = vmatpush.bf16.msrb.mxu0 %v9916_v20 }
  0x92   :  { %1202 = vmatpush.bf16.msrb.mxu1 %v9923_v21 }
  0x93   :  { %1251 = vmatpush.bf16.msrb.mxu2 %v9928_v22 }
  0x94   :  { %1300 = vmatpush.bf16.msrb.mxu3 %v9935_v23 }
  0x95   :  { %1154 = vmatpush.bf16.msrb.mxu0 %v9942_v24 }
  0x96   :  { %1203 = vmatpush.bf16.msrb.mxu1 %v9947_v25 }
  0x97   :  { %1252 = vmatpush.bf16.msrb.mxu2 %v9954_v26 }
  0x98   :  { %1301 = vmatpush.bf16.msrb.mxu3 %v9959_v27 }
  0x99   :  { %1155 = vmatpush.bf16.msrb.mxu0 %v9964_v28 }
  0x9a   :  { %1204 = vmatpush.bf16.msrb.mxu1 %v9969_v29 }
  0x9b   :  { %1253 = vmatpush.bf16.msrb.mxu2 %v9974_v30 }
  0x9c   :  { %1302 = vmatpush.bf16.msrb.mxu3 %v9979_v31  ;;  %768 = vmatmul.bf16.gmra.mxu0 %v6935_v32  ;;  %v6998_v32 = vld [vmem:[#allocation3 + $0xc0] sm:$0xf] }
  0x9d   :  { %817 = vmatmul.bf16.gmra.mxu1 %v6939_v33  ;;  %v8694_v33 = vld [vmem:[#allocation3 + $0xcc] sm:$0xf0] }
  0x9e   :  { %866 = vmatmul.bf16.gmra.mxu2 %v6943_v34  ;;  %v8692_v34 = vld [vmem:[#allocation3 + $0xc4] sm:$0xf]  ;;  %v6999_v40 = vor.u32 %v8694_v33, %v6998_v32 }
  0x9f   :  { %1704 = vmatpush.bf16.msra.mxu2 %v9800_v0  ;;  %915 = vmatmul.bf16.gmra.mxu3 %v6947_v35  ;;  %v7000_v35 = vld [vmem:[#allocation3 + $0xd0] sm:$0xf0] }
  0xa0   :  { %1753 = vmatpush.bf16.msra.mxu3 %v9805_v1  ;;  %v6960_v1 = vld [vmem:[#allocation3 + $0x78] sm:$0xf0]  ;;  %v7003_v41 = vor.u32 %v8692_v34, %v7000_v35 }
  0xa3   :  { %1705 = vmatpush.bf16.msra.mxu2 %v9822_v4 }
  0xa4   :  { %1754 = vmatpush.bf16.msra.mxu3 %v9827_v5  ;;  %v6963_v5 = vor.u32 %v8681_v42, %v6960_v1  ;;  %v7007_v42 = vor.u32 %v8695_v37, %v7006_v36  ;;  %v7011_v1 = vor.u32 %v8693_v38, %v7008_v39  ;;  %v7174_v38 = vld [vmem:[#allocation3 + $0x120] sm:$0xf]  ;;  %v8706_v39 = vld [vmem:[#allocation3 + $0x12c] sm:$0xf0] }
  0xa7   :  { %1706 = vmatpush.bf16.msra.mxu2 %v9846_v8 }
  0xa8   :  { %1755 = vmatpush.bf16.msra.mxu3 %v9851_v9  ;;  %v6966_v9 = vld [vmem:[#allocation3 + $0x80] sm:$0xf] }
  0xab   :  { %1707 = vmatpush.bf16.msra.mxu2 %v9870_v12 }
  0xac   :  { %1756 = vmatpush.bf16.msra.mxu3 %v9875_v13  ;;  %773 = vmatmul.bf16.gmra.mxu0 %v6951_v43  ;;  %v8686_v13 = vld [vmem:[#allocation3 + $0x8c] sm:$0xf0]  ;;  %v7014_v43 = vld [vmem:[#allocation3 + $0xe0] sm:$0xf] }
  0xad   :  { %822 = vmatmul.bf16.gmra.mxu1 %v6955_v44  ;;  %v6967_v51 = vor.u32 %v8686_v13, %v6966_v9  ;;  %v8698_v44 = vld [vmem:[#allocation3 + $0xec] sm:$0xf0]  ;;  %v7022_v9 = vld [vmem:[#allocation3 + $0xe8] sm:$0xf]  ;;  %v8699_v13 = vld [vmem:[#allocation3 + $0xf4] sm:$0xf0] }
  0xae   :  { %871 = vmatmul.bf16.gmra.mxu2 %v6959_v45  ;;  %v8696_v45 = vld [vmem:[#allocation3 + $0xe4] sm:$0xf]  ;;  %v7015_v48 = vor.u32 %v8698_v44, %v7014_v43  ;;  %v8705_v43 = vld [vmem:[#allocation3 + $0x12c] sm:$0xf]  ;;  %v7184_v44 = vld [vmem:[#allocation3 + $0x138] sm:$0xf0] }
  0xaf   :  { %1708 = vmatpush.bf16.msra.mxu2 %v9892_v16  ;;  %920 = vmatmul.bf16.gmra.mxu3 %v6963_v5  ;;  %v7016_v5 = vld [vmem:[#allocation3 + $0xf0] sm:$0xf0] }
  0xb0   :  { %1757 = vmatpush.bf16.msra.mxu3 %v9897_v17  ;;  %v6976_v17 = vld [vmem:[#allocation3 + $0x98] sm:$0xf0]  ;;  %v7019_v49 = vor.u32 %v8696_v45, %v7016_v5  ;;  %v7175_v5 = vor.u32 %v8706_v39, %v7174_v38 }
  0xb3   :  { %1709 = vmatpush.bf16.msra.mxu2 %v9916_v20 }
  0xb4   :  { %1758 = vmatpush.bf16.msra.mxu3 %v9923_v21  ;;  %v6979_v21 = vor.u32 %v8685_v50, %v6976_v17  ;;  %v7023_v50 = vor.u32 %v8699_v13, %v7022_v9  ;;  %v7027_v17 = vor.u32 %v8697_v46, %v7024_v47 }
  0xb7   :  { %1710 = vmatpush.bf16.msra.mxu2 %v9942_v24 }
  0xb8   :  { %1759 = vmatpush.bf16.msra.mxu3 %v9947_v25  ;;  %v6982_v25 = vld [vmem:[#allocation3 + $0xa0] sm:$0xf] }
  0xb9   :  { %v6983_v61 = vor.u32 %v8690_v54, %v6982_v25  ;;  %v7166_v25 = vld [vmem:[#allocation3 + $0x108] sm:$0xf]  ;;  %v8703_v54 = vld [vmem:[#allocation3 + $0x114] sm:$0xf0] }
  0xbb   :  { %1711 = vmatpush.bf16.msra.mxu2 %v9964_v28 }
  0xbc   :  { %1760 = vmatpush.bf16.msra.mxu3 %v9969_v29  ;;  %778 = vmatmul.bf16.gmra.mxu0 %v6967_v51  ;;  %v6995_v29 = vor.u32 %v8689_v59, %v6992_v60  ;;  %v7158_v51 = vld [vmem:[#allocation3 + $0x100] sm:$0xf] }
  0xbd   :  { %827 = vmatmul.bf16.gmra.mxu1 %v6971_v52  ;;  %v8702_v52 = vld [vmem:[#allocation3 + $0x10c] sm:$0xf0] }
  0xbe   :  { %876 = vmatmul.bf16.gmra.mxu2 %v6975_v53  ;;  %v8700_v53 = vld [vmem:[#allocation3 + $0x104] sm:$0xf]  ;;  %v7159_v57 = vor.u32 %v8702_v52, %v7158_v51 }
  0xbf   :  { %925 = vmatmul.bf16.gmra.mxu3 %v6979_v21  ;;  %v7160_v21 = vld [vmem:[#allocation3 + $0x110] sm:$0xf0] }
  0xc0   :  { %v7163_v58 = vor.u32 %v8700_v53, %v7160_v21 }
  0xcc   :  { %783 = vmatmul.bf16.gmra.mxu0 %v6983_v61  ;;  %v7167_v61 = vor.u32 %v8703_v54, %v7166_v25  ;;  %v7190_v54 = vld [vmem:[#allocation3 + $0x140] sm:$0xf] }
  0xcd   :  { %832 = vmatmul.bf16.gmra.mxu1 %v6987_v62  ;;  %v7171_v62 = vor.u32 %v8701_v55, %v7168_v56  ;;  %v8710_v55 = vld [vmem:[#allocation3 + $0x14c] sm:$0xf0]  ;;  %v8708_v56 = vld [vmem:[#allocation3 + $0x144] sm:$0xf] }
  0xce   :  { %881 = vmatmul.bf16.gmra.mxu2 %v6991_v63 }
  0xcf   :  { %930 = vmatmul.bf16.gmra.mxu3 %v6995_v29 }
  0xdc   :  { %788 = vmatmul.bf16.gmra.mxu0 %v6999_v40  ;;  %v8704_v40 = vld [vmem:[#allocation3 + $0x124] sm:$0xf] }
  0xdd   :  { %837 = vmatmul.bf16.gmra.mxu1 %v7003_v41  ;;  %v7176_v41 = vld [vmem:[#allocation3 + $0x130] sm:$0xf0] }
  0xde   :  { %886 = vmatmul.bf16.gmra.mxu2 %v7007_v42  ;;  %v7182_v42 = vld [vmem:[#allocation3 + $0x128] sm:$0xf]  ;;  %v7179_v9 = vor.u32 %v8704_v40, %v7176_v41 }
  0xdf   :  { %935 = vmatmul.bf16.gmra.mxu3 %v7011_v1  ;;  %v8707_v1 = vld [vmem:[#allocation3 + $0x134] sm:$0xf0] }
  0xec   :  { %793 = vmatmul.bf16.gmra.mxu0 %v7015_v48  ;;  %v7187_v48 = vor.u32 %v8705_v43, %v7184_v44 }
  0xed   :  { %842 = vmatmul.bf16.gmra.mxu1 %v7019_v49 }
  0xee   :  { %891 = vmatmul.bf16.gmra.mxu2 %v7023_v50 }
  0xef   :  { %940 = vmatmul.bf16.gmra.mxu3 %v7027_v17 }
  0xf9   :  { %v759_v59 = vpop.f32.mrf.mxu0 }
  0xfa   :  { %v808_v60 = vpop.f32.mrf.mxu1 }
  0xfb   :  { %v809_v63 = vadd.f32 %v808_v60, %v759_v59  ;;  %v8711_v59 = vld [vmem:[#allocation3 + $0x154] sm:$0xf0]  ;;  %v8709_v60 = vld [vmem:[#allocation3 + $0x14c] sm:$0xf] }
  0xfc   :  { %1156 = vmatmul.bf16.vlgmr.msrb.gmra.mxu0 %v7159_v57  ;;  %v7192_v57 = vld [vmem:[#allocation3 + $0x150] sm:$0xf0] }
  0xfd   :  { %1205 = vmatmul.bf16.vlgmr.msrb.gmra.mxu1 %v7163_v58  ;;  %v7198_v58 = vld [vmem:[#allocation3 + $0x148] sm:$0xf] }
  0xfe   :  { %1254 = vmatmul.bf16.vlgmr.msrb.gmra.mxu2 %v7167_v61  ;;  %v7200_v61 = vld [vmem:[#allocation3 + $0x158] sm:$0xf0] }
  0xff   :  { %1303 = vmatmul.bf16.vlgmr.msrb.gmra.mxu3 %v7171_v62 }
 0x100   :  { %2195 = vmatpush.bf16.msrb.mxu3 %v9800_v0 }
 0x101   :  { %v857_v29 = vpop.f32.mrf.mxu2  ;;  %v761_v34 = vpop.f32.mrf.mxu0 }
 0x102   :  { %v906_v32 = vpop.f32.mrf.mxu3  ;;  %v858_v33 = vadd.f32 %v857_v29, %v809_v63  ;;  %v810_v35 = vpop.f32.mrf.mxu1  ;;  %v7191_v63 = vor.u32 %v8710_v55, %v7190_v54  ;;  %v7195_v29 = vor.u32 %v8708_v56, %v7192_v57 }
 0x103   :  { %v811_v36 = vadd.f32 %v810_v35, %v761_v34  ;;  %v7203_v35 = vor.u32 %v8709_v60, %v7200_v61 }
 0x104   :  { %2196 = vmatpush.bf16.msrb.mxu3 %v9822_v4  ;;  %v10039_v37 = vadd.f32 %v906_v32, %v858_v33  ;;  %v7183_v4 = vor.u32 %v8707_v1, %v7182_v42 }
 0x108   :  { %2197 = vmatpush.bf16.msrb.mxu3 %v9846_v8 }
 0x109   :  { %v859_v0 = vpop.f32.mrf.mxu2  ;;  %v764_v46 = vpop.f32.mrf.mxu0 }
 0x10a   :  { %v908_v45 = vpop.f32.mrf.mxu3  ;;  %v860_v13 = vadd.f32 %v859_v0, %v811_v36  ;;  %v813_v47 = vpop.f32.mrf.mxu1  ;;  %v7206_v0 = vld [vmem:[#allocation3 + $0x160] sm:$0xf] }
 0x10b   :  { %v814_v49 = vadd.f32 %v813_v47, %v764_v46  ;;  %v8713_v46 = vld [vmem:[#allocation3 + $0x16c] sm:$0xf]  ;;  %v7216_v47 = vld [vmem:[#allocation3 + $0x178] sm:$0xf0] }
 0x10c   :  { %2198 = vmatpush.bf16.msrb.mxu3 %v9870_v12  ;;  %v10043_v50 = vadd.f32 %v908_v45, %v860_v13  ;;  %1161 = vmatmul.bf16.gmra.mxu0 %v7175_v5  ;;  %v8714_v45 = vld [vmem:[#allocation3 + $0x16c] sm:$0xf0]  ;;  %v7208_v5 = vld [vmem:[#allocation3 + $0x170] sm:$0xf0]  ;;  %v8715_v13 = vld [vmem:[#allocation3 + $0x174] sm:$0xf0] }
 0x10d   :  { %1210 = vmatmul.bf16.gmra.mxu1 %v7179_v9  ;;  %v7214_v9 = vld [vmem:[#allocation3 + $0x168] sm:$0xf] }
 0x10e   :  { %v946_v17 = vpack.c.bf16 %v10043_v50, %v10039_v37  ;;  %1259 = vmatmul.bf16.gmra.mxu2 %v7183_v4  ;;  %v10126_v37 = vld [vmem:[%s11488_s0 + $0xb0] sm:$0xff] }
 0x10f   :  { %1308 = vmatmul.bf16.gmra.mxu3 %v7187_v48 }
 0x110   :  { %2199 = vmatpush.bf16.msrb.mxu3 %v9892_v16 }
 0x111   :  { %v862_v8 = vpop.f32.mrf.mxu2  ;;  %v766_v53 = vpop.f32.mrf.mxu0 }
 0x112   :  { %v911_v51 = vpop.f32.mrf.mxu3  ;;  %v863_v52 = vadd.f32 %v862_v8, %v814_v49  ;;  %v815_v21 = vpop.f32.mrf.mxu1  ;;  %v7207_v49 = vor.u32 %v8714_v45, %v7206_v0 }
 0x113   :  { %v816_v25 = vadd.f32 %v815_v21, %v766_v53  ;;  %v7215_v21 = vor.u32 %v8715_v13, %v7214_v9 }
 0x114   :  { %2200 = vmatpush.bf16.msrb.mxu3 %v9916_v20  ;;  %v10049_v12 = vadd.f32 %v911_v51, %v863_v52  ;;  %v7199_v20 = vor.u32 %v8711_v59, %v7198_v58 }
 0x118   :  { %2201 = vmatpush.bf16.msrb.mxu3 %v9942_v24 }
 0x119   :  { %v864_v16 = vpop.f32.mrf.mxu2  ;;  %v769_v33 = vpop.f32.mrf.mxu0 }
 0x11a   :  { %v913_v62 = vpop.f32.mrf.mxu3  ;;  %v865_v32 = vadd.f32 %v864_v16, %v816_v25  ;;  %v818_v34 = vpop.f32.mrf.mxu1  ;;  %v7219_v25 = vor.u32 %v8713_v46, %v7216_v47 }
 0x11b   :  { %v819_v36 = vadd.f32 %v818_v34, %v769_v33  ;;  %v7224_v33 = vld [vmem:[#allocation3 + $0x190] sm:$0xf0]  ;;  %v7230_v34 = vld [vmem:[#allocation3 + $0x188] sm:$0xf] }
 0x11c   :  { %2202 = vmatpush.bf16.msrb.mxu3 %v9964_v28  ;;  %v10053_v38 = vadd.f32 %v913_v62, %v865_v32  ;;  %1166 = vmatmul.bf16.gmra.mxu0 %v7191_v63  ;;  %v8712_v28 = vld [vmem:[#allocation3 + $0x164] sm:$0xf]  ;;  %v7222_v63 = vld [vmem:[#allocation3 + $0x180] sm:$0xf] }
 0x11d   :  { %1215 = vmatmul.bf16.gmra.mxu1 %v7195_v29  ;;  %v7211_v8 = vor.u32 %v8712_v28, %v7208_v5  ;;  %v8718_v29 = vld [vmem:[#allocation3 + $0x18c] sm:$0xf0]  ;;  %v8716_v32 = vld [vmem:[#allocation3 + $0x184] sm:$0xf] }
 0x11e   :  { %v947_v39 = vpack.c.bf16 %v10053_v38, %v10049_v12  ;;  %1264 = vmatmul.bf16.gmra.mxu2 %v7199_v20  ;;  %v8719_v20 = vld [vmem:[#allocation3 + $0x194] sm:$0xf0] }
 0x11f   :  { %1313 = vmatmul.bf16.gmra.mxu3 %v7203_v35  ;;  %v8717_v35 = vld [vmem:[#allocation3 + $0x18c] sm:$0xf]  ;;  %v7231_v45 = vor.u32 %v8719_v20, %v7230_v34 }
 0x121   :  { %v867_v24 = vpop.f32.mrf.mxu2  ;;  %v771_v42 = vpop.f32.mrf.mxu0 }
 0x122   :  { %v916_v40 = vpop.f32.mrf.mxu3  ;;  %v868_v41 = vadd.f32 %v867_v24, %v819_v36  ;;  %v820_v1 = vpop.f32.mrf.mxu1  ;;  %v7232_v36 = vld [vmem:[#allocation3 + $0x198] sm:$0xf0] }
 0x123   :  { %v821_v43 = vadd.f32 %v820_v1, %v771_v42  ;;  %v7227_v42 = vor.u32 %v8716_v32, %v7224_v33  ;;  %v7235_v28 = vor.u32 %v8717_v35, %v7232_v36 }
 0x124   :  { %v10057_v44 = vadd.f32 %v916_v40, %v868_v41  ;;  %v7223_v41 = vor.u32 %v8718_v29, %v7222_v63 }
 0x129   :  { %v869_v4 = vpop.f32.mrf.mxu2  ;;  %v774_v52 = vpop.f32.mrf.mxu0 }
 0x12a   :  { %v918_v48 = vpop.f32.mrf.mxu3  ;;  %v870_v51 = vadd.f32 %v869_v4, %v821_v43  ;;  %v823_v53 = vpop.f32.mrf.mxu1 }
 0x12b   :  { %v824_v54 = vadd.f32 %v823_v53, %v774_v52  ;;  %v8722_v52 = vld [vmem:[#allocation3 + $0x1ac] sm:$0xf0]  ;;  %v8720_v53 = vld [vmem:[#allocation3 + $0x1a4] sm:$0xf] }
 0x12c   :  { %v10059_v55 = vadd.f32 %v918_v48, %v870_v51  ;;  %1171 = vmatmul.bf16.gmra.mxu0 %v7207_v49  ;;  %v7238_v51 = vld [vmem:[#allocation3 + $0x1a0] sm:$0xf] }
 0x12d   :  { %1220 = vmatmul.bf16.gmra.mxu1 %v7211_v8 }
 0x12e   :  { %v948_v56 = vpack.c.bf16 %v10059_v55, %v10057_v44  ;;  %1269 = vmatmul.bf16.gmra.mxu2 %v7215_v21  ;;  %v7240_v21 = vld [vmem:[#allocation3 + $0x1b0] sm:$0xf0] }
 0x12f   :  { %1318 = vmatmul.bf16.gmra.mxu3 %v7219_v25  ;;  %v7246_v25 = vld [vmem:[#allocation3 + $0x1a8] sm:$0xf]  ;;  %v7243_v63 = vor.u32 %v8720_v53, %v7240_v21  ;;  %v8727_v53 = vld [vmem:[#allocation3 + $0x1d4] sm:$0xf0]  ;;  %v8725_v21 = vld [vmem:[#allocation3 + $0x1cc] sm:$0xf] }
 0x131   :  { %v872_v57 = vpop.f32.mrf.mxu2  ;;  %v776_v60 = vpop.f32.mrf.mxu0 }
 0x132   :  { %v921_v58 = vpop.f32.mrf.mxu3  ;;  %v873_v59 = vadd.f32 %v872_v57, %v824_v54  ;;  %v825_v61 = vpop.f32.mrf.mxu1  ;;  %v8723_v54 = vld [vmem:[#allocation3 + $0x1b4] sm:$0xf0]  ;;  %v8721_v57 = vld [vmem:[#allocation3 + $0x1ac] sm:$0xf] }
 0x133   :  { %v826_v16 = vadd.f32 %v825_v61, %v776_v60  ;;  %v7247_v34 = vor.u32 %v8723_v54, %v7246_v25  ;;  %v7264_v25 = vld [vmem:[#allocation3 + $0x1d8] sm:$0xf0] }
 0x134   :  { %v10063_v62 = vadd.f32 %v921_v58, %v873_v59  ;;  %v7248_v58 = vld [vmem:[#allocation3 + $0x1b8] sm:$0xf0] }
 0x135   :  { %v7251_v20 = vor.u32 %v8721_v57, %v7248_v58 }
 0x139   :  { %v874_v24 = vpop.f32.mrf.mxu2  ;;  %v779_v43 = vpop.f32.mrf.mxu0 }
 0x13a   :  { %v923_v40 = vpop.f32.mrf.mxu3  ;;  %v875_v1 = vadd.f32 %v874_v24, %v826_v16  ;;  %v828_v0 = vpop.f32.mrf.mxu1  ;;  %v7239_v16 = vor.u32 %v8722_v52, %v7238_v51  ;;  %v7262_v51 = vld [vmem:[#allocation3 + $0x1c8] sm:$0xf] }
 0x13b   :  { %v829_v5 = vadd.f32 %v828_v0, %v779_v43 }
 0x13c   :  { %v10065_v9 = vadd.f32 %v923_v40, %v875_v1  ;;  %1176 = vmatmul.bf16.gmra.mxu0 %v7223_v41 }
 0x13d   :  { %1225 = vmatmul.bf16.gmra.mxu1 %v7227_v42 }
 0x13e   :  { %v949_v13 = vpack.c.bf16 %v10065_v9, %v10063_v62  ;;  %1274 = vmatmul.bf16.gmra.mxu2 %v7231_v45  ;;  %v7254_v45 = vld [vmem:[#allocation3 + $0x1c0] sm:$0xf] }
 0x13f   :  { %1323 = vmatmul.bf16.gmra.mxu3 %v7235_v28  ;;  %v8726_v28 = vld [vmem:[#allocation3 + $0x1cc] sm:$0xf0] }
 0x141   :  { %v877_v46 = vpop.f32.mrf.mxu2  ;;  %v781_v48 = vpop.f32.mrf.mxu0 }
 0x142   :  { %v926_v47 = vpop.f32.mrf.mxu3  ;;  %v878_v4 = vadd.f32 %v877_v46, %v829_v5  ;;  %v830_v49 = vpop.f32.mrf.mxu1  ;;  %v1353_v5 = vld [vmem:[#allocation6 + $0x2] sm:$0x3]  ;;  %v8724_v46 = vld [vmem:[#allocation3 + $0x1c4] sm:$0xf] }
 0x143   :  { %v831_v59 = vadd.f32 %v830_v49, %v781_v48  ;;  %v954_v48 = vld [vmem:[#allocation6] sm:$0x3]  ;;  %v7256_v49 = vld [vmem:[#allocation3 + $0x1d0] sm:$0xf0] }
 0x144   :  { %v10069_v8 = vadd.f32 %v926_v47, %v878_v4  ;;  %v9621_v47 = vmov 65535  }
 0x145   :  { %v1381_v4 = vsel %vm1379_vm0, 4294967295, %v9621_v47  ;;  %v7278_v47 = vld [vmem:[#allocation3 + $0x1e8] sm:$0xf] }
 0x146   :  { %v10077_v52 = vsel %vm1380_vm1, %v1381_v4, 0  ;;  %v8731_v4 = vld [vmem:[#allocation3 + $0x1f4] sm:$0xf0] }
 0x147   :  { %v1384_v54 = vand.u32 %v10077_v52, %v1353_v5  ;;  %v1460_v57 = vand.u32 %v10077_v52, %v954_v48  ;;  %v8728_v5 = vld [vmem:[#allocation3 + $0x1e4] sm:$0xf]  ;;  %v7280_v48 = vld [vmem:[#allocation3 + $0x1f8] sm:$0xf0] }
 0x149   :  { %v879_v60 = vpop.f32.mrf.mxu2  ;;  %v784_v32 = vpop.f32.mrf.mxu0  ;;  %1393 = vmatpush.bf16.msra.mxu0 %v1384_v54  ;;  %1469 = vmatpush.bf16.msra.mxu1 %v1460_v57  ;;  %v7279_v54 = vor.u32 %v8731_v4, %v7278_v47  ;;  %v10138_v47 = vld [vmem:[%s11488_s0 + $0xa0] sm:$0xff] }
 0x14a   :  { %v928_v61 = vpop.f32.mrf.mxu3  ;;  %v880_v29 = vadd.f32 %v879_v60, %v831_v59  ;;  %v833_v33 = vpop.f32.mrf.mxu1 }
 0x14b   :  { %v834_v35 = vadd.f32 %v833_v33, %v784_v32  ;;  %v7263_v33 = vor.u32 %v8727_v53, %v7262_v51 }
 0x14c   :  { %v10071_v36 = vadd.f32 %v928_v61, %v880_v29  ;;  %1181 = vmatmul.bf16.gmra.mxu0 %v7239_v16  ;;  %v7255_v61 = vor.u32 %v8726_v28, %v7254_v45  ;;  %v7259_v16 = vor.u32 %v8724_v46, %v7256_v49  ;;  %v7270_v45 = vld [vmem:[#allocation3 + $0x1e0] sm:$0xf]  ;;  %v8730_v28 = vld [vmem:[#allocation3 + $0x1ec] sm:$0xf0]  ;;  %v7272_v46 = vld [vmem:[#allocation3 + $0x1f0] sm:$0xf0] }
 0x14d   :  { %1230 = vmatmul.bf16.gmra.mxu1 %v7243_v63  ;;  %1802 = vmatpush.bf16.msrb.mxu0 %v9810_v2  ;;  %v7275_v53 = vor.u32 %v8728_v5, %v7272_v46 }
 0x14e   :  { %v950_v24 = vpack.c.bf16 %v10071_v36, %v10069_v8  ;;  %1279 = vmatmul.bf16.gmra.mxu2 %v7247_v34  ;;  %v7267_v34 = vor.u32 %v8725_v21, %v7264_v25  ;;  %1851 = vmatpush.bf16.msrb.mxu1 %v9815_v3 }
 0x14f   :  { %1328 = vmatmul.bf16.gmra.mxu3 %v7251_v20 }
 0x151   :  { %v882_v40 = vpop.f32.mrf.mxu2  ;;  %v786_v1 = vpop.f32.mrf.mxu0  ;;  %1803 = vmatpush.bf16.msrb.mxu0 %v9834_v6 }
 0x152   :  { %v931_v41 = vpop.f32.mrf.mxu3  ;;  %v883_v42 = vadd.f32 %v882_v40, %v834_v35  ;;  %v835_v43 = vpop.f32.mrf.mxu1  ;;  %1852 = vmatpush.bf16.msrb.mxu1 %v9839_v7  ;;  %v8729_v7 = vld [vmem:[#allocation3 + $0x1ec] sm:$0xf] }
 0x153   :  { %v836_v58 = vadd.f32 %v835_v43, %v786_v1  ;;  %v7283_v57 = vor.u32 %v8729_v7, %v7280_v48 }
 0x154   :  { %v10075_v0 = vadd.f32 %v931_v41, %v883_v42 }
 0x155   :  { %1804 = vmatpush.bf16.msrb.mxu0 %v9858_v10 }
 0x156   :  { %1853 = vmatpush.bf16.msrb.mxu1 %v9863_v11  ;;  %v7271_v11 = vor.u32 %v8730_v28, %v7270_v45 }
 0x159   :  { %v884_v59 = vpop.f32.mrf.mxu2  ;;  %v789_v29 = vpop.f32.mrf.mxu0  ;;  %1805 = vmatpush.bf16.msrb.mxu0 %v9882_v14 }
 0x15a   :  { %v933_v60 = vpop.f32.mrf.mxu3  ;;  %v885_v63 = vadd.f32 %v884_v59, %v836_v58  ;;  %v838_v32 = vpop.f32.mrf.mxu1  ;;  %1854 = vmatpush.bf16.msrb.mxu1 %v9887_v15 }
 0x15b   :  { %v839_v20 = vadd.f32 %v838_v32, %v789_v29 }
 0x15c   :  { %v10083_v35 = vadd.f32 %v933_v60, %v885_v63  ;;  %1186 = vmatmul.bf16.gmra.mxu0 %v7255_v61 }
 0x15d   :  { %1235 = vmatmul.bf16.gmra.mxu1 %v7259_v16  ;;  %1806 = vmatpush.bf16.msrb.mxu0 %v9906_v18 }
 0x15e   :  { %v951_v40 = vpack.c.bf16 %v10083_v35, %v10075_v0  ;;  %1284 = vmatmul.bf16.gmra.mxu2 %v7263_v33  ;;  %1855 = vmatpush.bf16.msrb.mxu1 %v9911_v19  ;;  %v7302_v0 = vld [vmem:[#allocation3 + $0x200] sm:$0xf]  ;;  %v8734_v35 = vld [vmem:[#allocation3 + $0x20c] sm:$0xf0] }
 0x15f   :  { %1333 = vmatmul.bf16.gmra.mxu3 %v7267_v34 }
 0x161   :  { %v887_v41 = vpop.f32.mrf.mxu2  ;;  %v791_v3 = vpop.f32.mrf.mxu0  ;;  %1807 = vmatpush.bf16.msrb.mxu0 %v9928_v22 }
 0x162   :  { %v936_v42 = vpop.f32.mrf.mxu3  ;;  %v888_v1 = vadd.f32 %v887_v41, %v839_v20  ;;  %v840_v43 = vpop.f32.mrf.mxu1  ;;  %1856 = vmatpush.bf16.msrb.mxu1 %v9935_v23 }
 0x163   :  { %v841_v6 = vadd.f32 %v840_v43, %v791_v3 }
 0x164   :  { %v10091_v2 = vadd.f32 %v936_v42, %v888_v1 }
 0x165   :  { %1808 = vmatpush.bf16.msrb.mxu0 %v9954_v26 }
 0x166   :  { %1857 = vmatpush.bf16.msrb.mxu1 %v9959_v27 }
 0x169   :  { %v889_v49 = vpop.f32.mrf.mxu2  ;;  %v794_v21 = vpop.f32.mrf.mxu0  ;;  %1809 = vmatpush.bf16.msrb.mxu0 %v9974_v30  ;;  %v10120_v30 = vld [vmem:[%s11488_s0 + $0xb8] sm:$0xff] }
 0x16a   :  { %v938_v51 = vpop.f32.mrf.mxu3  ;;  %v890_v10 = vadd.f32 %v889_v49, %v841_v6  ;;  %v843_v25 = vpop.f32.mrf.mxu1  ;;  %1858 = vmatpush.bf16.msrb.mxu1 %v9979_v31  ;;  %v10148_v6 = vld [vmem:[%s11488_s0 + $0x98] sm:$0xff] }
 0x16b   :  { %v844_v58 = vadd.f32 %v843_v25, %v794_v21 }
 0x16c   :  { %v10097_v59 = vadd.f32 %v938_v51, %v890_v10  ;;  %1191 = vmatmul.bf16.gmra.mxu0 %v7271_v11  ;;  %v10155_v11 = vld [vmem:[%s11488_s0 + $0x78] sm:$0xff]  ;;  %v10167_v10 = vld [vmem:[%s11488_s0 + $0x70] sm:$0xff] }
 0x16d   :  { %1240 = vmatmul.bf16.gmra.mxu1 %v7275_v53 }
 0x16e   :  { %v952_v14 = vpack.c.bf16 %v10097_v59, %v10091_v2  ;;  %1289 = vmatmul.bf16.gmra.mxu2 %v7279_v54 }
 0x16f   :  { %1338 = vmatmul.bf16.gmra.mxu3 %v7283_v57 }
 0x171   :  { %v892_v15 = vpop.f32.mrf.mxu2  ;;  %v796_v16 = vpop.f32.mrf.mxu0 }
 0x172   :  { %v941_v60 = vpop.f32.mrf.mxu3  ;;  %v893_v61 = vadd.f32 %v892_v15, %v844_v58  ;;  %v845_v19 = vpop.f32.mrf.mxu1  ;;  %v10174_v58 = vld [vmem:[%s11488_s0 + $0x68] sm:$0xff] }
 0x173   :  { %v846_v63 = vadd.f32 %v845_v19, %v796_v16  ;;  %v10180_v16 = vld [vmem:[%s11488_s0 + $0x80] sm:$0xff] }
 0x174   :  { %v10105_v18 = vadd.f32 %v941_v60, %v893_v61 }
 0x179   :  { %v894_v29 = vpop.f32.mrf.mxu2  ;;  %v1157_v22 = vpop.f32.mrf.mxu0 }
 0x17a   :  { %v943_v23 = vpop.f32.mrf.mxu3  ;;  %v895_v32 = vadd.f32 %v894_v29, %v846_v63  ;;  %v1206_v33 = vpop.f32.mrf.mxu1  ;;  %v10190_v63 = vld [vmem:[%s11488_s0 + $0x60] sm:$0xff] }
 0x17b   :  { %v1207_v50 = vadd.f32 %v1206_v33, %v1157_v22  ;;  %v10197_v22 = vld [vmem:[%s11488_s0 + $0x58] sm:$0xff]  ;;  %v10203_v33 = vld [vmem:[%s11488_s0 + $0x50] sm:$0xff] }
 0x17c   :  { %v10109_v34 = vadd.f32 %v943_v23, %v895_v32 }
 0x17d   :  { %7292 = vmatmul.msk.bf16.vlgmr.msra.gmra.mxu1 %vm1354_vm2, %v946_v17  ;;  %v10132_v17 = vld [vmem:[%s11488_s0 + $0xa8] sm:$0xff] }
 0x17e   :  { %v953_v27 = vpack.c.bf16 %v10109_v34, %v10105_v18  ;;  %2293 = vmatpush.bf16.msra.mxu1 %v10120_v30  ;;  %v7312_v18 = vld [vmem:[#allocation3 + $0x218] sm:$0xf0] }
 0x181   :  { %v1255_v31 = vpop.f32.mrf.mxu2  ;;  %v1159_v41 = vpop.f32.mrf.mxu0 }
 0x182   :  { %v1304_v20 = vpop.f32.mrf.mxu3  ;;  %v1208_v42 = vpop.f32.mrf.mxu1  ;;  %2294 = vmatpush.bf16.msra.mxu1 %v10126_v37  ;;  %v1256_v1 = vadd.f32 %v1255_v31, %v1207_v50  ;;  %v10209_v50 = vld [vmem:[%s11488_s0 + $0x48] sm:$0xff] }
 0x183   :  { %v1209_v3 = vadd.f32 %v1208_v42, %v1159_v41 }
 0x184   :  { %v1305_v4 = vadd.f32 %v1304_v20, %v1256_v1 }
 0x186   :  { %2295 = vmatpush.bf16.msra.mxu1 %v10132_v17 }
 0x189   :  { %v1257_v43 = vpop.f32.mrf.mxu2  ;;  %v1162_v5 = vpop.f32.mrf.mxu0 }
 0x18a   :  { %v1306_v45 = vpop.f32.mrf.mxu3  ;;  %v1258_v28 = vadd.f32 %v1257_v43, %v1209_v3  ;;  %v1211_v46 = vpop.f32.mrf.mxu1  ;;  %2296 = vmatpush.bf16.msra.mxu1 %v10138_v47 }
 0x18b   :  { %v1212_v53 = vadd.f32 %v1211_v46, %v1162_v5  ;;  %v10219_v5 = vld [vmem:[%s11488_s0 + $0x40] sm:$0xff] }
 0x18c   :  { %v1307_v7 = vadd.f32 %v1306_v45, %v1258_v28 }
 0x18d   :  { %7293 = vmatmul.msk.bf16.gmra.mxu1 %vm1354_vm2, %v947_v39  ;;  %v10161_v39 = vld [vmem:[%s11488_s0 + $0x90] sm:$0xff] }
 0x18e   :  { %v1344_v48 = vpack.c.bf16 %v1307_v7, %v1305_v4  ;;  %2297 = vmatpush.bf16.msra.mxu1 %v10148_v6 }
 0x190   :  { %7284 = vmatmul.msk.bf16.vlgmr.msra.gmra.mxu0 %vm1354_vm2, %v1344_v48 }
 0x191   :  { %v1260_v49 = vpop.f32.mrf.mxu2  ;;  %2244 = vmatpush.bf16.msra.mxu0 %v10155_v11  ;;  %v1164_v12 = vpop.f32.mrf.mxu0 }
 0x192   :  { %v1309_v51 = vpop.f32.mrf.mxu3  ;;  %v1213_v38 = vpop.f32.mrf.mxu1  ;;  %2298 = vmatpush.bf16.msra.mxu1 %v10161_v39  ;;  %v1261_v21 = vadd.f32 %v1260_v49, %v1212_v53 }
 0x193   :  { %v1214_v25 = vadd.f32 %v1213_v38, %v1164_v12 }
 0x195   :  { %2245 = vmatpush.bf16.msra.mxu0 %v10167_v10 }
 0x196   :  { %2299 = vmatpush.bf16.msra.mxu1 %v9954_v26  ;;  %v1310_v26 = vadd.f32 %v1309_v51, %v1261_v21 }
 0x199   :  { %v1262_v54 = vpop.f32.mrf.mxu2  ;;  %2246 = vmatpush.bf16.msra.mxu0 %v10174_v58  ;;  %v1167_v60 = vpop.f32.mrf.mxu0 }
 0x19a   :  { %v1311_v57 = vpop.f32.mrf.mxu3  ;;  %v1263_v15 = vadd.f32 %v1262_v54, %v1214_v25  ;;  %v1216_v61 = vpop.f32.mrf.mxu1  ;;  %2300 = vmatpush.bf16.msra.mxu1 %v10180_v16 }
 0x19c   :  { %v1312_v19 = vadd.f32 %v1311_v57, %v1263_v15 }
 0x19d   :  { %7294 = vmatmul.msk.bf16.gmra.mxu1 %vm1354_vm2, %v948_v56  ;;  %2247 = vmatpush.bf16.msra.mxu0 %v10190_v63  ;;  %v1217_v56 = vadd.f32 %v1216_v61, %v1167_v60 }
 0x19e   :  { %v1345_v29 = vpack.c.bf16 %v1312_v19, %v1310_v26 }
 0x1a0   :  { %7285 = vmatmul.msk.bf16.gmra.mxu0 %vm1354_vm2, %v1345_v29 }
 0x1a1   :  { %v1265_v23 = vpop.f32.mrf.mxu2  ;;  %2248 = vmatpush.bf16.msra.mxu0 %v10197_v22  ;;  %v1169_v44 = vpop.f32.mrf.mxu0 }
 0x1a2   :  { %v1314_v32 = vpop.f32.mrf.mxu3  ;;  %v1218_v55 = vpop.f32.mrf.mxu1  ;;  %v1266_v31 = vadd.f32 %v1265_v23, %v1217_v56 }
 0x1a3   :  { %v1219_v20 = vadd.f32 %v1218_v55, %v1169_v44 }
 0x1a4   :  { %v1315_v45 = vadd.f32 %v1314_v32, %v1266_v31 }
 0x1a5   :  { %2249 = vmatpush.bf16.msra.mxu0 %v10203_v33 }
 0x1a9   :  { %v1267_v41 = vpop.f32.mrf.mxu2  ;;  %2250 = vmatpush.bf16.msra.mxu0 %v10209_v50  ;;  %v1172_v3 = vpop.f32.mrf.mxu0 }
 0x1aa   :  { %v1316_v42 = vpop.f32.mrf.mxu3  ;;  %v1268_v1 = vadd.f32 %v1267_v41, %v1219_v20  ;;  %v1221_v43 = vpop.f32.mrf.mxu1 }
 0x1ab   :  { %v1222_v51 = vadd.f32 %v1221_v43, %v1172_v3 }
 0x1ac   :  { %v1317_v28 = vadd.f32 %v1316_v42, %v1268_v1 }
 0x1ad   :  { %7295 = vmatmul.msk.bf16.gmra.mxu1 %vm1354_vm2, %v949_v13  ;;  %2251 = vmatpush.bf16.msra.mxu0 %v10219_v5 }
 0x1ae   :  { %v1346_v46 = vpack.c.bf16 %v1317_v28, %v1315_v45 }
 0x1b0   :  { %7286 = vmatmul.msk.bf16.gmra.mxu0 %vm1354_vm2, %v1346_v46 }
 0x1b1   :  { %v1270_v4 = vpop.f32.mrf.mxu2  ;;  %v1174_v48 = vpop.f32.mrf.mxu0 }
 0x1b2   :  { %v1319_v7 = vpop.f32.mrf.mxu3  ;;  %v1223_v49 = vpop.f32.mrf.mxu1  ;;  %v1271_v12 = vadd.f32 %v1270_v4, %v1222_v51 }
 0x1b3   :  { %v1224_v38 = vadd.f32 %v1223_v49, %v1174_v48 }
 0x1b4   :  { %v1320_v25 = vadd.f32 %v1319_v7, %v1271_v12 }
 0x1b9   :  { %v1272_v62 = vpop.f32.mrf.mxu2  ;;  %v1177_v53 = vpop.f32.mrf.mxu0 }
 0x1ba   :  { %v1321_v9 = vpop.f32.mrf.mxu3  ;;  %v1273_v13 = vadd.f32 %v1272_v62, %v1224_v38  ;;  %v1226_v21 = vpop.f32.mrf.mxu1  ;;  %v7303_v38 = vor.u32 %v8734_v35, %v7302_v0  ;;  %v7304_v62 = vld [vmem:[#allocation3 + $0x210] sm:$0xf0] }
 0x1bb   :  { %v1227_v19 = vadd.f32 %v1226_v21, %v1177_v53  ;;  %v7336_v35 = vld [vmem:[#allocation3 + $0x250] sm:$0xf0] }
 0x1bc   :  { %v1322_v54 = vadd.f32 %v1321_v9, %v1273_v13  ;;  %1712 = vmatmul.bf16.vlgmr.msra.gmra.mxu2 %v7303_v38  ;;  %v8737_v38 = vld [vmem:[#allocation3 + $0x22c] sm:$0xf] }
 0x1bd   :  { %7296 = vmatmul.msk.bf16.gmra.mxu1 %vm1354_vm2, %v950_v24 }
 0x1be   :  { %v1347_v57 = vpack.c.bf16 %v1322_v54, %v1320_v25 }
 0x1c0   :  { %7287 = vmatmul.msk.bf16.gmra.mxu0 %vm1354_vm2, %v1347_v57 }
 0x1c1   :  { %v1275_v15 = vpop.f32.mrf.mxu2  ;;  %v1179_v61 = vpop.f32.mrf.mxu0 }
 0x1c2   :  { %v1324_v60 = vpop.f32.mrf.mxu3  ;;  %v1228_v26 = vpop.f32.mrf.mxu1  ;;  %v1276_v29 = vadd.f32 %v1275_v15, %v1227_v19 }
 0x1c3   :  { %v1229_v23 = vadd.f32 %v1228_v26, %v1179_v61 }
 0x1c4   :  { %v1325_v20 = vadd.f32 %v1324_v60, %v1276_v29  ;;  %v7318_v29 = vld [vmem:[#allocation3 + $0x220] sm:$0xf] }
 0x1c9   :  { %v1277_v32 = vpop.f32.mrf.mxu2  ;;  %v1182_v56 = vpop.f32.mrf.mxu0 }
 0x1ca   :  { %v1326_v44 = vpop.f32.mrf.mxu3  ;;  %v1278_v55 = vadd.f32 %v1277_v32, %v1229_v23  ;;  %v1231_v31 = vpop.f32.mrf.mxu1  ;;  %v8738_v23 = vld [vmem:[#allocation3 + $0x22c] sm:$0xf0]  ;;  %v8736_v32 = vld [vmem:[#allocation3 + $0x224] sm:$0xf] }
 0x1cb   :  { %v1232_v3 = vadd.f32 %v1231_v31, %v1182_v56  ;;  %v7320_v56 = vld [vmem:[#allocation3 + $0x230] sm:$0xf0] }
 0x1cc   :  { %v1327_v41 = vadd.f32 %v1326_v44, %v1278_v55  ;;  %v7319_v55 = vor.u32 %v8738_v23, %v7318_v29  ;;  %v7323_v31 = vor.u32 %v8736_v32, %v7320_v56  ;;  %v8741_v23 = vld [vmem:[#allocation3 + $0x24c] sm:$0xf]  ;;  %v7344_v32 = vld [vmem:[#allocation3 + $0x258] sm:$0xf0] }
 0x1cd   :  { %7297 = vmatmul.msk.bf16.gmra.mxu1 %vm1354_vm2, %v951_v40  ;;  %v8732_v40 = vld [vmem:[#allocation3 + $0x204] sm:$0xf]  ;;  %v7347_v56 = vor.u32 %v8741_v23, %v7344_v32  ;;  %v7398_v32 = vld [vmem:[#allocation3 + $0x2c0] sm:$0xf] }
 0x1ce   :  { %v1348_v8 = vpack.c.bf16 %v1327_v41, %v1325_v20  ;;  %v7307_v9 = vor.u32 %v8732_v40, %v7304_v62  ;;  %1717 = vmatmul.bf16.gmra.mxu2 %v7319_v55  ;;  %v7328_v62 = vld [vmem:[#allocation3 + $0x238] sm:$0xf0]  ;;  %v8739_v55 = vld [vmem:[#allocation3 + $0x234] sm:$0xf0] }
 0x1d0   :  { %7288 = vmatmul.msk.bf16.gmra.mxu0 %vm1354_vm2, %v1348_v8  ;;  %1761 = vmatmul.bf16.vlgmr.msra.gmra.mxu3 %v7307_v9  ;;  %v7310_v9 = vld [vmem:[#allocation3 + $0x208] sm:$0xf] }
 0x1d1   :  { %v1280_v36 = vpop.f32.mrf.mxu2  ;;  %v1184_v42 = vpop.f32.mrf.mxu0 }
 0x1d2   :  { %v1329_v24 = vpop.f32.mrf.mxu3  ;;  %v1233_v1 = vpop.f32.mrf.mxu1  ;;  %v1281_v43 = vadd.f32 %v1280_v36, %v1232_v3 }
 0x1d3   :  { %v1234_v45 = vadd.f32 %v1233_v1, %v1184_v42  ;;  %v8733_v42 = vld [vmem:[#allocation3 + $0x20c] sm:$0xf] }
 0x1d4   :  { %v1330_v49 = vadd.f32 %v1329_v24, %v1281_v43  ;;  %v7315_v3 = vor.u32 %v8733_v42, %v7312_v18 }
 0x1d9   :  { %v1282_v28 = vpop.f32.mrf.mxu2  ;;  %v1187_v7 = vpop.f32.mrf.mxu0 }
 0x1da   :  { %v1331_v46 = vpop.f32.mrf.mxu3  ;;  %v1283_v4 = vadd.f32 %v1282_v28, %v1234_v45  ;;  %v1236_v48 = vpop.f32.mrf.mxu1 }
 0x1db   :  { %v1237_v54 = vadd.f32 %v1236_v48, %v1187_v7  ;;  %v7334_v7 = vld [vmem:[#allocation3 + $0x240] sm:$0xf]  ;;  %v8742_v48 = vld [vmem:[#allocation3 + $0x24c] sm:$0xf0] }
 0x1dc   :  { %v1332_v51 = vadd.f32 %v1331_v46, %v1283_v4  ;;  %v7335_v0 = vor.u32 %v8742_v48, %v7334_v7  ;;  %v8743_v7 = vld [vmem:[#allocation3 + $0x254] sm:$0xf0] }
 0x1dd   :  { %7298 = vmatmul.msk.bf16.gmra.mxu1 %vm1354_vm2, %v952_v14 }
 0x1de   :  { %v1349_v12 = vpack.c.bf16 %v1332_v51, %v1330_v49  ;;  %v8740_v49 = vld [vmem:[#allocation3 + $0x244] sm:$0xf]  ;;  %1722 = vmatmul.bf16.gmra.mxu2 %v7335_v0 }
 0x1df   :  { %v7339_v40 = vor.u32 %v8740_v49, %v7336_v35  ;;  %v10299_v49 = vld [vmem:[%s11488_s0 + $0x8] sm:$0xff] }
 0x1e0   :  { %7289 = vmatmul.msk.bf16.gmra.mxu0 %vm1354_vm2, %v1349_v12  ;;  %1766 = vmatmul.bf16.gmra.mxu3 %v7323_v31 }
 0x1e1   :  { %v1285_v13 = vpop.f32.mrf.mxu2  ;;  %v1189_v21 = vpop.f32.mrf.mxu0 }
 0x1e2   :  { %v1334_v53 = vpop.f32.mrf.mxu3  ;;  %v1238_v25 = vpop.f32.mrf.mxu1  ;;  %v1286_v57 = vadd.f32 %v1285_v13, %v1237_v54  ;;  %v8735_v13 = vld [vmem:[#allocation3 + $0x214] sm:$0xf0] }
 0x1e3   :  { %v1239_v2 = vadd.f32 %v1238_v25, %v1189_v21  ;;  %v7311_v25 = vor.u32 %v8735_v13, %v7310_v9 }
 0x1e4   :  { %v1335_v26 = vadd.f32 %v1334_v53, %v1286_v57  ;;  %v7331_v53 = vor.u32 %v8737_v38, %v7328_v62  ;;  %v7350_v57 = vld [vmem:[#allocation3 + $0x260] sm:$0xf]  ;;  %v8752_v38 = vld [vmem:[#allocation3 + $0x2a4] sm:$0xf] }
 0x1e5   :  { %v10305_v62 = vld [vmem:[%s11488_s0] sm:$0xff] }
 0x1e9   :  { %v1287_v59 = vpop.f32.mrf.mxu2  ;;  %v1192_v61 = vpop.f32.mrf.mxu0 }
 0x1ea   :  { %v1336_v14 = vpop.f32.mrf.mxu3  ;;  %v1288_v15 = vadd.f32 %v1287_v59, %v1239_v2  ;;  %v1241_v60 = vpop.f32.mrf.mxu1  ;;  %v8746_v2 = vld [vmem:[#allocation3 + $0x26c] sm:$0xf0]  ;;  %v8744_v59 = vld [vmem:[#allocation3 + $0x264] sm:$0xf] }
 0x1eb   :  { %v1242_v36 = vadd.f32 %v1241_v60, %v1192_v61 }
 0x1ec   :  { %v1337_v19 = vadd.f32 %v1336_v14, %v1288_v15  ;;  %v7351_v15 = vor.u32 %v8746_v2, %v7350_v57  ;;  %v8749_v2 = vld [vmem:[#allocation3 + $0x28c] sm:$0xf] }
 0x1ed   :  { %7299 = vmatmul.msk.bf16.gmra.mxu1 %vm1354_vm2, %v953_v27 }
 0x1ee   :  { %v1350_v44 = vpack.c.bf16 %v1337_v19, %v1335_v26  ;;  %1727 = vmatmul.bf16.gmra.mxu2 %v7351_v15  ;;  %v10261_v19 = vld [vmem:[%s11488_s0 + $0x30] sm:$0xff]  ;;  %v7358_v15 = vld [vmem:[#allocation3 + $0x268] sm:$0xf] }
 0x1f0   :  { %7290 = vmatmul.msk.bf16.gmra.mxu0 %vm1354_vm2, %v1350_v44  ;;  %1771 = vmatmul.bf16.gmra.mxu3 %v7339_v40  ;;  %v7326_v44 = vld [vmem:[#allocation3 + $0x228] sm:$0xf]  ;;  %v7382_v40 = vld [vmem:[#allocation3 + $0x2a0] sm:$0xf] }
 0x1f1   :  { %v1290_v20 = vpop.f32.mrf.mxu2  ;;  %v1194_v24 = vpop.f32.mrf.mxu0 }
 0x1f2   :  { %v1339_v41 = vpop.f32.mrf.mxu3  ;;  %v1243_v8 = vpop.f32.mrf.mxu1  ;;  %v1291_v34 = vadd.f32 %v1290_v20, %v1242_v36  ;;  %v7327_v20 = vor.u32 %v8739_v55, %v7326_v44  ;;  %v8750_v36 = vld [vmem:[#allocation3 + $0x28c] sm:$0xf0]  ;;  %v8756_v55 = vld [vmem:[#allocation3 + $0x2c4] sm:$0xf] }
 0x1f3   :  { %v1244_v27 = vadd.f32 %v1243_v8, %v1194_v24  ;;  %v7366_v8 = vld [vmem:[#allocation3 + $0x280] sm:$0xf]  ;;  %v8748_v24 = vld [vmem:[#allocation3 + $0x284] sm:$0xf]  ;;  %v8758_v44 = vld [vmem:[#allocation3 + $0x2cc] sm:$0xf0] }
 0x1f4   :  { %v1340_v46 = vadd.f32 %v1339_v41, %v1291_v34  ;;  %v7367_v18 = vor.u32 %v8750_v36, %v7366_v8  ;;  %v7368_v34 = vld [vmem:[#allocation3 + $0x290] sm:$0xf0] }
 0x1f9   :  { %v1292_v1 = vpop.f32.mrf.mxu2 }
 0x1fa   :  { %v1293_v43 = vadd.f32 %v1292_v1, %v1244_v27  ;;  %v1471_v45 = vpop.f32.mrf.mxu1  ;;  %v1341_v28 = vpop.f32.mrf.mxu3  ;;  %v7371_v27 = vor.u32 %v8748_v24, %v7368_v34  ;;  %v7392_v34 = vld [vmem:[#allocation3 + $0x2b8] sm:$0xf0] }
 0x1fc   :  { %v1342_v4 = vadd.f32 %v1341_v28, %v1293_v43  ;;  %v10291_v43 = vld [vmem:[%s11488_s0 + $0x10] sm:$0xff]  ;;  %v8745_v28 = vld [vmem:[#allocation3 + $0x26c] sm:$0xf] }
 0x1fd   :  { %1859 = vmatmul.bf16.vlgmr.msrb.gmra.mxu1 %v7315_v3 }
 0x1fe   :  { %v1351_v51 = vpack.c.bf16 %v1342_v4, %v1340_v46  ;;  %2735 = vmatpush.bf16.msrb.mxu1 %v10155_v11  ;;  %1732 = vmatmul.bf16.gmra.mxu2 %v7367_v18  ;;  %v7360_v46 = vld [vmem:[#allocation3 + $0x278] sm:$0xf0]  ;;  %v7342_v4 = vld [vmem:[#allocation3 + $0x248] sm:$0xf]  ;;  %v8753_v18 = vld [vmem:[#allocation3 + $0x2ac] sm:$0xf] }
 0x1ff   :  { %v7363_v48 = vor.u32 %v8745_v28, %v7360_v46  ;;  %v7343_v0 = vor.u32 %v8743_v7, %v7342_v4  ;;  %v7414_v7 = vld [vmem:[#allocation3 + $0x2e0] sm:$0xf] }
 0x200   :  { %7291 = vmatmul.msk.bf16.gmra.mxu0 %vm1354_vm2, %v1351_v51 }
 0x202   :  { %v1473_v12 = vpop.f32.mrf.mxu1  ;;  %2736 = vmatpush.bf16.msrb.mxu1 %v10167_v10  ;;  %v7352_v10 = vld [vmem:[#allocation3 + $0x270] sm:$0xf0] }
 0x203   :  { %v7355_v60 = vor.u32 %v8744_v59, %v7352_v10  ;;  %v7376_v59 = vld [vmem:[#allocation3 + $0x298] sm:$0xf0]  ;;  %v8747_v10 = vld [vmem:[#allocation3 + $0x274] sm:$0xf0] }
 0x205   :  { %1776 = vmatmul.bf16.gmra.mxu3 %v7355_v60  ;;  %v7379_v60 = vor.u32 %v8749_v2, %v7376_v59 }
 0x206   :  { %2737 = vmatpush.bf16.msrb.mxu1 %v10174_v58  ;;  %v10254_v58 = vld [vmem:[%s11488_s0 + $0x38] sm:$0xff] }
 0x20a   :  { %v1476_v21 = vpop.f32.mrf.mxu1  ;;  %2738 = vmatpush.bf16.msrb.mxu1 %v10190_v63 }
 0x20d   :  { %v1395_v54 = vpop.f32.mrf.mxu0  ;;  %1864 = vmatmul.bf16.gmra.mxu1 %v7331_v53  ;;  %v7384_v53 = vld [vmem:[#allocation3 + $0x2b0] sm:$0xf0] }
 0x20e   :  { %v10248_v14 = vadd.f32 %v1471_v45, %v1395_v54  ;;  %2739 = vmatpush.bf16.msrb.mxu1 %v10197_v22 }
 0x210   :  { %1810 = vmatmul.bf16.vlgmr.msrb.gmra.mxu0 %v7311_v25 }
 0x211   :  { %2686 = vmatpush.bf16.msrb.mxu0 %v10254_v58 }
 0x212   :  { %v1478_v61 = vpop.f32.mrf.mxu1  ;;  %2740 = vmatpush.bf16.msrb.mxu1 %v10203_v33  ;;  %v10270_v33 = vld [vmem:[%s11488_s0 + $0x28] sm:$0xff] }
 0x215   :  { %v1397_v26 = vpop.f32.mrf.mxu0  ;;  %2687 = vmatpush.bf16.msrb.mxu0 %v10261_v19  ;;  %1781 = vmatmul.bf16.gmra.mxu3 %v7371_v27  ;;  %v7374_v27 = vld [vmem:[#allocation3 + $0x288] sm:$0xf] }
 0x216   :  { %v10264_v29 = vadd.f32 %v1473_v12, %v1397_v26  ;;  %2741 = vmatpush.bf16.msrb.mxu1 %v10209_v50  ;;  %v10277_v50 = vld [vmem:[%s11488_s0 + $0x20] sm:$0xff]  ;;  %v8754_v12 = vld [vmem:[#allocation3 + $0x2ac] sm:$0xf0]  ;;  %v7359_v26 = vor.u32 %v8747_v10, %v7358_v15 }
 0x217   :  { %v7383_v13 = vor.u32 %v8754_v12, %v7382_v40  ;;  %v7416_v40 = vld [vmem:[#allocation3 + $0x2f0] sm:$0xf0] }
 0x219   :  { %2688 = vmatpush.bf16.msrb.mxu0 %v10270_v33  ;;  %1737 = vmatmul.bf16.gmra.mxu2 %v7383_v13 }
 0x21a   :  { %v1481_v31 = vpop.f32.mrf.mxu1  ;;  %2742 = vmatpush.bf16.msrb.mxu1 %v10219_v5  ;;  %v10285_v5 = vld [vmem:[%s11488_s0 + $0x18] sm:$0xff] }
 0x21d   :  { %v1400_v41 = vpop.f32.mrf.mxu0  ;;  %1869 = vmatmul.bf16.gmra.mxu1 %v7347_v56  ;;  %2689 = vmatpush.bf16.msrb.mxu0 %v10277_v50 }
 0x21e   :  { %v10280_v42 = vadd.f32 %v1476_v21, %v1400_v41  ;;  %v7387_v21 = vor.u32 %v8752_v38, %v7384_v53  ;;  %v8757_v53 = vld [vmem:[#allocation3 + $0x2cc] sm:$0xf] }
 0x220   :  { %1815 = vmatmul.bf16.gmra.mxu0 %v7327_v20  ;;  %v7400_v20 = vld [vmem:[#allocation3 + $0x2d0] sm:$0xf0] }
 0x221   :  { %2690 = vmatpush.bf16.msrb.mxu0 %v10285_v5  ;;  %v7403_v41 = vor.u32 %v8756_v55, %v7400_v20  ;;  %v8761_v55 = vld [vmem:[#allocation3 + $0x2ec] sm:$0xf]  ;;  %v10340_v20 = vld [vmem:[%s11488_s0 + $0xf0] sm:$0xff] }
 0x222   :  { %v1483_v1 = vpop.f32.mrf.mxu1 }
 0x225   :  { %v1402_v3 = vpop.f32.mrf.mxu0  ;;  %2691 = vmatpush.bf16.msrb.mxu0 %v10291_v43  ;;  %1786 = vmatmul.bf16.gmra.mxu3 %v7387_v21  ;;  %v7408_v21 = vld [vmem:[#allocation3 + $0x2d8] sm:$0xf0] }
 0x226   :  { %v10294_v45 = vadd.f32 %v1478_v61, %v1402_v3  ;;  %v7395_v3 = vor.u32 %v8753_v18, %v7392_v34  ;;  %v7411_v2 = vor.u32 %v8757_v53, %v7408_v21  ;;  %v10370_v53 = vld [vmem:[%s11488_s0 + $0xd0] sm:$0xff]  ;;  %v7422_v21 = vld [vmem:[#allocation3 + $0x2e8] sm:$0xf] }
 0x229   :  { %2692 = vmatpush.bf16.msrb.mxu0 %v10299_v49 }
 0x22a   :  { %v1486_v51 = vpop.f32.mrf.mxu1 }
 0x22d   :  { %v1405_v35 = vpop.f32.mrf.mxu0  ;;  %1874 = vmatmul.bf16.gmra.mxu1 %v7363_v48  ;;  %2693 = vmatpush.bf16.msrb.mxu0 %v10305_v62  ;;  %v8762_v48 = vld [vmem:[#allocation3 + $0x2ec] sm:$0xf0] }
 0x22e   :  { %v10308_v9 = vadd.f32 %v1481_v31, %v1405_v35  ;;  %v7399_v31 = vor.u32 %v8758_v44, %v7398_v32  ;;  %v7415_v35 = vor.u32 %v8762_v48, %v7414_v7  ;;  %v10332_v32 = vld [vmem:[%s11488_s0 + $0xf8] sm:$0xff]  ;;  %v10354_v7 = vld [vmem:[%s11488_s0 + $0xe0] sm:$0xff] }
 0x230   :  { %1820 = vmatmul.bf16.gmra.mxu0 %v7343_v0  ;;  %1742 = vmatmul.bf16.gmra.mxu2 %v7399_v31  ;;  %v7424_v31 = vld [vmem:[#allocation3 + $0x2f8] sm:$0xf0] }
 0x231   :  { %v7427_v18 = vor.u32 %v8761_v55, %v7424_v31 }
 0x232   :  { %v1488_v25 = vpop.f32.mrf.mxu1 }
 0x235   :  { %v1407_v54 = vpop.f32.mrf.mxu0  ;;  %1791 = vmatmul.bf16.gmra.mxu3 %v7403_v41  ;;  %v7406_v41 = vld [vmem:[#allocation3 + $0x2c8] sm:$0xf] }
 0x236   :  { %v10310_v57 = vadd.f32 %v1483_v1, %v1407_v54  ;;  %v8751_v1 = vld [vmem:[#allocation3 + $0x294] sm:$0xf0] }
 0x237   :  { %v7375_v46 = vor.u32 %v8751_v1, %v7374_v27  ;;  %v8755_v54 = vld [vmem:[#allocation3 + $0x2b4] sm:$0xf0]  ;;  %v10346_v1 = vld [vmem:[%s11488_s0 + $0xe8] sm:$0xff] }
 0x23a   :  { %v1491_v61 = vpop.f32.mrf.mxu1 }
 0x23d   :  { %v1410_v23 = vpop.f32.mrf.mxu0  ;;  %1879 = vmatmul.bf16.gmra.mxu1 %v7379_v60 }
 0x23e   :  { %v10312_v56 = vadd.f32 %v1486_v51, %v1410_v23  ;;  %v8760_v51 = vld [vmem:[#allocation3 + $0x2e4] sm:$0xf] }
 0x23f   :  { %v7419_v12 = vor.u32 %v8760_v51, %v7416_v40  ;;  %v1713_v27 = vpop.f32.mrf.mxu2  ;;  %v10362_v51 = vld [vmem:[%s11488_s0 + $0xd8] sm:$0xff] }
 0x240   :  { %1825 = vmatmul.bf16.gmra.mxu0 %v7359_v26  ;;  %1747 = vmatmul.bf16.gmra.mxu2 %v7415_v35 }
 0x242   :  { %v10314_v8 = vpop.f32.mrf.mxu1 }
 0x243   :  { %11489 = vst [vmem:[#allocation40_spill] sm:$0xff] %v10314_v8 }
 0x245   :  { %v1412_v36 = vpop.f32.mrf.mxu0  ;;  %1796 = vmatmul.bf16.gmra.mxu3 %v7419_v12 }
 0x246   :  { %v10316_v24 = vadd.f32 %v1488_v25, %v1412_v36  ;;  %v7390_v25 = vld [vmem:[#allocation3 + $0x2a8] sm:$0xf]  ;;  %v8759_v36 = vld [vmem:[#allocation3 + $0x2d4] sm:$0xf0] }
 0x247   :  { %v7391_v15 = vor.u32 %v8755_v54, %v7390_v25  ;;  %v1715_v35 = vpop.f32.mrf.mxu2  ;;  %v8763_v25 = vld [vmem:[#allocation3 + $0x2f4] sm:$0xf0] }
 0x24a   :  { %v1496_v28 = vpop.f32.mrf.mxu1 }
 0x24d   :  { %v1415_v4 = vpop.f32.mrf.mxu0  ;;  %1884 = vmatmul.bf16.gmra.mxu1 %v7395_v3 }
 0x24e   :  { %v10318_v0 = vadd.f32 %v1491_v61, %v1415_v4  ;;  %v1909_v61 = vld [vmem:[#allocation6 + $0x4] sm:$0x3] }
 0x24f   :  { %v1935_v26 = vand.u32 %v1909_v61, %v10077_v52 }
 0x250   :  { %1830 = vmatmul.bf16.gmra.mxu0 %v7375_v46 }
 0x251   :  { %1944 = vmatpush.bf16.msrb.mxu2 %v1935_v26  ;;  %v1718_v61 = vpop.f32.mrf.mxu2  ;;  %v10384_v26 = vld [vmem:[%s11488_s0 + $0xc0] sm:$0xff] }
 0x252   :  { %v10320_v38 = vpop.f32.mrf.mxu1  ;;  %11498 = vst [vmem:[#allocation49_spill] sm:$0xff] %v10384_v26 }
 0x253   :  { %11490 = vst [vmem:[#allocation41_spill] sm:$0xff] %v10320_v38  ;;  %v1762_v3 = vpop.f32.mrf.mxu3 }
 0x255   :  { %v10322_v13 = vpop.f32.mrf.mxu0  ;;  %2342 = vmatpush.bf16.msra.mxu2 %v10332_v32 }
 0x256   :  { %11491 = vst [vmem:[#allocation42_spill] sm:$0xff] %v10322_v13 }
 0x259   :  { %2343 = vmatpush.bf16.msra.mxu2 %v10340_v20 }
 0x25a   :  { %v1501_v59 = vpop.f32.mrf.mxu1 }
 0x25b   :  { %v1764_v12 = vpop.f32.mrf.mxu3 }
 0x25c   :  { %v1765_v8 = vadd.f32 %v1764_v12, %v1715_v35 }
 0x25d   :  { %v1420_v10 = vpop.f32.mrf.mxu0  ;;  %1889 = vmatmul.bf16.gmra.mxu1 %v7411_v2  ;;  %2344 = vmatpush.bf16.msra.mxu2 %v10346_v1  ;;  %v10376_v2 = vld [vmem:[%s11488_s0 + $0xc8] sm:$0xff] }
 0x25e   :  { %v10324_v60 = vadd.f32 %v1496_v28, %v1420_v10  ;;  %v7407_v28 = vor.u32 %v8759_v36, %v7406_v41  ;;  %11496 = vst [vmem:[#allocation47_spill] sm:$0xff] %v10376_v2  ;;  %v1720_v36 = vpop.f32.mrf.mxu2 }
 0x260   :  { %1835 = vmatmul.bf16.gmra.mxu0 %v7391_v15 }
 0x261   :  { %2345 = vmatpush.bf16.msra.mxu2 %v10354_v7 }
 0x262   :  { %v10327_v23 = vpop.f32.mrf.mxu1 }
 0x263   :  { %11492 = vst [vmem:[#allocation43_spill] sm:$0xff] %v10327_v23  ;;  %v1767_v55 = vpop.f32.mrf.mxu3 }
 0x265   :  { %v10335_v44 = vpop.f32.mrf.mxu0  ;;  %2346 = vmatpush.bf16.msra.mxu2 %v10362_v51 }
 0x266   :  { %11493 = vst [vmem:[#allocation44_spill] sm:$0xff] %v10335_v44 }
 0x269   :  { %2347 = vmatpush.bf16.msra.mxu2 %v10370_v53 }
 0x26a   :  { %v1506_v34 = vpop.f32.mrf.mxu1 }
 0x26d   :  { %v1425_v46 = vpop.f32.mrf.mxu0  ;;  %1894 = vmatmul.bf16.gmra.mxu1 %v7427_v18  ;;  %2348 = vmatpush.bf16.msra.mxu2 %v10376_v2  ;;  %v1769_v18 = vpop.f32.mrf.mxu3  ;;  %v1768_v2 = vadd.f32 %v1767_v55, %v1718_v61 }
 0x26e   :  { %v10349_v4 = vadd.f32 %v1501_v59, %v1425_v46  ;;  %v7423_v59 = vor.u32 %v8763_v25, %v7422_v21  ;;  %v1763_v21 = vadd.f32 %v1762_v3, %v1713_v27  ;;  %v1723_v25 = vpop.f32.mrf.mxu2  ;;  %v1770_v3 = vadd.f32 %v1769_v18, %v1720_v36 }
 0x270   :  { %1840 = vmatmul.bf16.gmra.mxu0 %v7407_v28 }
 0x271   :  { %2349 = vmatpush.bf16.msra.mxu2 %v10384_v26 }
 0x272   :  { %v10357_v48 = vpop.f32.mrf.mxu1 }
 0x273   :  { %11494 = vst [vmem:[#allocation45_spill] sm:$0xff] %v10357_v48 }
 0x275   :  { %v10365_v40 = vpop.f32.mrf.mxu0 }
 0x276   :  { %11495 = vst [vmem:[#allocation46_spill] sm:$0xff] %v10365_v40 }
 0x27a   :  { %v1860_v54 = vpop.f32.mrf.mxu1 }
 0x27d   :  { %v1430_v15 = vpop.f32.mrf.mxu0 }
 0x27e   :  { %v10379_v10 = vadd.f32 %v1506_v34, %v1430_v15  ;;  %v1772_v15 = vpop.f32.mrf.mxu3 }
 0x280   :  { %11497 = vst [vmem:[#allocation48_spill] sm:$0xff] %v10379_v10  ;;  %1845 = vmatmul.bf16.gmra.mxu0 %v7423_v59  ;;  %v1725_v59 = vpop.f32.mrf.mxu2 }
 0x282   :  { %v1862_v31 = vpop.f32.mrf.mxu1 }
 0x285   :  { %v10387_v41 = vpop.f32.mrf.mxu0 }
 0x286   :  { %11499 = vst [vmem:[#allocation50_spill] sm:$0xff] %v10387_v41  ;;  %v1774_v26 = vpop.f32.mrf.mxu3 }
 0x28a   :  { %v1865_v28 = vpop.f32.mrf.mxu1 }
 0x28d   :  { %v1811_v46 = vpop.f32.mrf.mxu0 }
 0x28e   :  { %v1812_v13 = vadd.f32 %v1811_v46, %v1763_v21 }
 0x290   :  { %v1861_v44 = vadd.f32 %v1860_v54, %v1812_v13  ;;  %v1777_v13 = vpop.f32.mrf.mxu3 }
 0x292   :  { %v1867_v34 = vpop.f32.mrf.mxu1 }
 0x295   :  { %v1813_v48 = vpop.f32.mrf.mxu0 }
 0x296   :  { %v1814_v38 = vadd.f32 %v1813_v48, %v1765_v8 }
 0x298   :  { %v1863_v23 = vadd.f32 %v1862_v31, %v1814_v38  ;;  %v1728_v38 = vpop.f32.mrf.mxu2  ;;  %v10400_v31 = vld [vmem:[%s11488_s0 + $0x88] sm:$0xff] }
 0x29a   :  { %v1900_v40 = vpack.c.bf16 %v1863_v23, %v1861_v44  ;;  %v1870_v10 = vpop.f32.mrf.mxu1 }
 0x29c   :  { %7428 = vmatmul.msk.bf16.vlgmr.msrb.gmra.mxu2 %vm1354_vm2, %v1900_v40 }
 0x29d   :  { %v1816_v41 = vpop.f32.mrf.mxu0  ;;  %2784 = vmatpush.bf16.msrb.mxu2 %v10120_v30 }
 0x29e   :  { %v1817_v35 = vadd.f32 %v1816_v41, %v1768_v2  ;;  %v1779_v2 = vpop.f32.mrf.mxu3 }
 0x2a0   :  { %v1866_v23 = vadd.f32 %v1865_v28, %v1817_v35  ;;  %v1730_v54 = vpop.f32.mrf.mxu2 }
 0x2a1   :  { %2785 = vmatpush.bf16.msrb.mxu2 %v10126_v37  ;;  %v1773_v37 = vadd.f32 %v1772_v15, %v1723_v25 }
 0x2a2   :  { %v1872_v27 = vpop.f32.mrf.mxu1 }
 0x2a5   :  { %v1818_v12 = vpop.f32.mrf.mxu0  ;;  %2786 = vmatpush.bf16.msrb.mxu2 %v10132_v17  ;;  %v1775_v17 = vadd.f32 %v1774_v26, %v1725_v59  ;;  %v1778_v26 = vadd.f32 %v1777_v13, %v1728_v38 }
 0x2a6   :  { %v1819_v8 = vadd.f32 %v1818_v12, %v1770_v3  ;;  %v1782_v46 = vpop.f32.mrf.mxu3 }
 0x2a8   :  { %v1868_v44 = vadd.f32 %v1867_v34, %v1819_v8  ;;  %v1733_v28 = vpop.f32.mrf.mxu2  ;;  %v1780_v34 = vadd.f32 %v1779_v2, %v1730_v54 }
 0x2a9   :  { %2787 = vmatpush.bf16.msrb.mxu2 %v10138_v47 }
 0x2aa   :  { %v1901_v48 = vpack.c.bf16 %v1868_v44, %v1866_v23  ;;  %v1875_v40 = vpop.f32.mrf.mxu1 }
 0x2ac   :  { %7429 = vmatmul.msk.bf16.gmra.mxu2 %vm1354_vm2, %v1901_v48  ;;  %v1783_v48 = vadd.f32 %v1782_v46, %v1733_v28 }
 0x2ad   :  { %v1821_v30 = vpop.f32.mrf.mxu0  ;;  %2788 = vmatpush.bf16.msrb.mxu2 %v10148_v6 }
 0x2ae   :  { %v1822_v61 = vadd.f32 %v1821_v30, %v1773_v37  ;;  %v1784_v3 = vpop.f32.mrf.mxu3 }
 0x2b0   :  { %v1871_v36 = vadd.f32 %v1870_v10, %v1822_v61  ;;  %v1735_v15 = vpop.f32.mrf.mxu2 }
 0x2b1   :  { %2789 = vmatpush.bf16.msrb.mxu2 %v10161_v39  ;;  %v1785_v30 = vadd.f32 %v1784_v3, %v1735_v15  ;;  %v7438_v3 = vld [vmem:[#allocation3 + $0x300] sm:$0xf] }
 0x2b2   :  { %v1877_v41 = vpop.f32.mrf.mxu1 }
 0x2b5   :  { %v1823_v55 = vpop.f32.mrf.mxu0  ;;  %2790 = vmatpush.bf16.msrb.mxu2 %v10400_v31 }
 0x2b6   :  { %v1824_v47 = vadd.f32 %v1823_v55, %v1775_v17  ;;  %v1787_v44 = vpop.f32.mrf.mxu3 }
 0x2b8   :  { %v1873_v18 = vadd.f32 %v1872_v27, %v1824_v47  ;;  %v1738_v23 = vpop.f32.mrf.mxu2 }
 0x2b9   :  { %2791 = vmatpush.bf16.msrb.mxu2 %v10180_v16 }
 0x2ba   :  { %v1902_v6 = vpack.c.bf16 %v1873_v18, %v1871_v36  ;;  %v1880_v21 = vpop.f32.mrf.mxu1  ;;  %v1788_v36 = vadd.f32 %v1787_v44, %v1738_v23  ;;  %v7446_v23 = vld [vmem:[#allocation3 + $0x308] sm:$0xf]  ;;  %v8767_v44 = vld [vmem:[#allocation3 + $0x314] sm:$0xf0] }
 0x2bc   :  { %7430 = vmatmul.msk.bf16.gmra.mxu2 %vm1354_vm2, %v1902_v6 }
 0x2bd   :  { %v1826_v39 = vpop.f32.mrf.mxu0 }
 0x2be   :  { %v1827_v25 = vadd.f32 %v1826_v39, %v1778_v26  ;;  %v1789_v55 = vpop.f32.mrf.mxu3 }
 0x2c0   :  { %v1876_v12 = vadd.f32 %v1875_v40, %v1827_v25  ;;  %v1740_v61 = vpop.f32.mrf.mxu2 }
 0x2c1   :  { %v1790_v39 = vadd.f32 %v1789_v55, %v1740_v61 }
 0x2c2   :  { %v1882_v27 = vpop.f32.mrf.mxu1 }
 0x2c5   :  { %v1828_v59 = vpop.f32.mrf.mxu0 }
 0x2c6   :  { %v1829_v35 = vadd.f32 %v1828_v59, %v1780_v34  ;;  %v1792_v6 = vpop.f32.mrf.mxu3 }
 0x2c8   :  { %v1878_v8 = vadd.f32 %v1877_v41, %v1829_v35  ;;  %v1743_v18 = vpop.f32.mrf.mxu2  ;;  %v8766_v35 = vld [vmem:[#allocation3 + $0x30c] sm:$0xf0] }
 0x2ca   :  { %v1903_v10 = vpack.c.bf16 %v1878_v8, %v1876_v12  ;;  %v1885_v13 = vpop.f32.mrf.mxu1  ;;  %v8764_v12 = vld [vmem:[#allocation3 + $0x304] sm:$0xf] }
 0x2cc   :  { %7431 = vmatmul.msk.bf16.gmra.mxu2 %vm1354_vm2, %v1903_v10 }
 0x2cd   :  { %v1831_v16 = vpop.f32.mrf.mxu0 }
 0x2ce   :  { %v1832_v37 = vadd.f32 %v1831_v16, %v1783_v48  ;;  %v1794_v8 = vpop.f32.mrf.mxu3  ;;  %v7440_v16 = vld [vmem:[#allocation3 + $0x310] sm:$0xf0] }
 0x2cf   :  { %v7443_v48 = vor.u32 %v8764_v12, %v7440_v16  ;;  %v8774_v16 = vld [vmem:[#allocation3 + $0x34c] sm:$0xf0] }
 0x2d0   :  { %v1881_v2 = vadd.f32 %v1880_v21, %v1832_v37  ;;  %v1745_v21 = vpop.f32.mrf.mxu2  ;;  %v1793_v37 = vadd.f32 %v1792_v6, %v1743_v18  ;;  %v7454_v6 = vld [vmem:[#allocation3 + $0x320] sm:$0xf] }
 0x2d1   :  { %2252 = vmatmul.bf16.vlgmr.msra.gmra.mxu0 %v7443_v48  ;;  %v7472_v48 = vld [vmem:[#allocation3 + $0x350] sm:$0xf0] }
 0x2d2   :  { %v1887_v41 = vpop.f32.mrf.mxu1 }
 0x2d5   :  { %v1833_v38 = vpop.f32.mrf.mxu0 }
 0x2d6   :  { %v1834_v54 = vadd.f32 %v1833_v38, %v1785_v30  ;;  %v7447_v30 = vor.u32 %v8767_v44, %v7446_v23  ;;  %v1797_v55 = vpop.f32.mrf.mxu3  ;;  %v8772_v44 = vld [vmem:[#allocation3 + $0x344] sm:$0xf] }
 0x2d8   :  { %v1883_v17 = vadd.f32 %v1882_v27, %v1834_v54  ;;  %v7439_v27 = vor.u32 %v8766_v35, %v7438_v3  ;;  %2301 = vmatmul.bf16.vlgmr.msra.gmra.mxu1 %v7447_v30  ;;  %v1748_v61 = vpop.f32.mrf.mxu2  ;;  %v8771_v3 = vld [vmem:[#allocation3 + $0x334] sm:$0xf0]  ;;  %v8765_v30 = vld [vmem:[#allocation3 + $0x30c] sm:$0xf] }
 0x2d9   :  { %3177 = vmatpush.bf16.msra.mxu1 %v10254_v58  ;;  %v8770_v58 = vld [vmem:[#allocation3 + $0x32c] sm:$0xf0] }
 0x2da   :  { %v1904_v47 = vpack.c.bf16 %v1883_v17, %v1881_v2  ;;  %v1890_v15 = vpop.f32.mrf.mxu1  ;;  %2203 = vmatmul.bf16.vlgmr.msrb.gmra.mxu3 %v7439_v27 }
 0x2dc   :  { %7432 = vmatmul.msk.bf16.gmra.mxu2 %vm1354_vm2, %v1904_v47 }
 0x2dd   :  { %v1836_v40 = vpop.f32.mrf.mxu0  ;;  %3178 = vmatpush.bf16.msra.mxu1 %v10261_v19  ;;  %v8768_v19 = vld [vmem:[#allocation3 + $0x324] sm:$0xf] }
 0x2de   :  { %v1837_v26 = vadd.f32 %v1836_v40, %v1788_v36 }
 0x2e0   :  { %v1886_v34 = vadd.f32 %v1885_v13, %v1837_v26  ;;  %v1795_v13 = vadd.f32 %v1794_v8, %v1745_v21  ;;  %v1798_v26 = vadd.f32 %v1797_v55, %v1748_v61  ;;  %v7462_v21 = vld [vmem:[#allocation3 + $0x328] sm:$0xf] }
 0x2e1   :  { %3179 = vmatpush.bf16.msra.mxu1 %v10270_v33 }
 0x2e2   :  { %v1892_v38 = vpop.f32.mrf.mxu1 }
 0x2e5   :  { %v1838_v28 = vpop.f32.mrf.mxu0  ;;  %3180 = vmatpush.bf16.msra.mxu1 %v10277_v50  ;;  %v7463_v50 = vor.u32 %v8771_v3, %v7462_v21  ;;  %v7504_v21 = vld [vmem:[#allocation3 + $0x390] sm:$0xf0] }
 0x2e6   :  { %v1839_v46 = vadd.f32 %v1838_v28, %v1790_v39  ;;  %v7455_v39 = vor.u32 %v8770_v58, %v7454_v6  ;;  %v7456_v28 = vld [vmem:[#allocation3 + $0x330] sm:$0xf0]  ;;  %v7464_v6 = vld [vmem:[#allocation3 + $0x338] sm:$0xf0]  ;;  %v8779_v58 = vld [vmem:[#allocation3 + $0x374] sm:$0xf0] }
 0x2e8   :  { %v1888_v25 = vadd.f32 %v1887_v41, %v1839_v46  ;;  %v1750_v46 = vpop.f32.mrf.mxu2  ;;  %2306 = vmatmul.bf16.gmra.mxu1 %v7463_v50  ;;  %v8783_v50 = vld [vmem:[#allocation3 + $0x394] sm:$0xf0] }
 0x2e9   :  { %3181 = vmatpush.bf16.msra.mxu1 %v10285_v5  ;;  %v7470_v5 = vld [vmem:[#allocation3 + $0x340] sm:$0xf] }
 0x2ea   :  { %v1905_v59 = vpack.c.bf16 %v1888_v25, %v1886_v34  ;;  %v1895_v36 = vpop.f32.mrf.mxu1  ;;  %2208 = vmatmul.bf16.gmra.mxu3 %v7455_v39  ;;  %v1799_v34 = vpop.f32.mrf.mxu3  ;;  %v7459_v25 = vor.u32 %v8768_v19, %v7456_v28  ;;  %v7471_v23 = vor.u32 %v8774_v16, %v7470_v5  ;;  %v10460_v5 = vld [vmem:[%s11488_s0 + $0x40] sm:$0xff] }
 0x2eb   :  { %v1800_v33 = vadd.f32 %v1799_v34, %v1750_v46  ;;  %v7502_v46 = vld [vmem:[#allocation3 + $0x380] sm:$0xf]  ;;  %v8782_v34 = vld [vmem:[#allocation3 + $0x38c] sm:$0xf0] }
 0x2ec   :  { %7433 = vmatmul.msk.bf16.gmra.mxu2 %vm1354_vm2, %v1905_v59  ;;  %2257 = vmatmul.bf16.gmra.mxu0 %v7459_v25  ;;  %v7503_v25 = vor.u32 %v8782_v34, %v7502_v46  ;;  %v7518_v16 = vld [vmem:[#allocation3 + $0x3a0] sm:$0xf] }
 0x2ed   :  { %v1841_v10 = vpop.f32.mrf.mxu0  ;;  %3182 = vmatpush.bf16.msra.mxu1 %v10291_v43  ;;  %v7475_v43 = vor.u32 %v8772_v44, %v7472_v48 }
 0x2ee   :  { %v1842_v54 = vadd.f32 %v1841_v10, %v1793_v37  ;;  %v7448_v37 = vld [vmem:[#allocation3 + $0x318] sm:$0xf0] }
 0x2f0   :  { %v1891_v47 = vadd.f32 %v1890_v15, %v1842_v54 }
 0x2f1   :  { %3183 = vmatpush.bf16.msra.mxu1 %v10299_v49  ;;  %v7486_v49 = vld [vmem:[#allocation3 + $0x360] sm:$0xf] }
 0x2f2   :  { %v1897_v12 = vpop.f32.mrf.mxu1 }
 0x2f5   :  { %v1843_v2 = vpop.f32.mrf.mxu0  ;;  %3184 = vmatpush.bf16.msra.mxu1 %v10305_v62 }
 0x2f6   :  { %v1844_v17 = vadd.f32 %v1843_v2, %v1795_v13  ;;  %v8775_v13 = vld [vmem:[#allocation3 + $0x354] sm:$0xf0]  ;;  %v7451_v2 = vor.u32 %v8765_v30, %v7448_v37  ;;  %v7520_v30 = vld [vmem:[#allocation3 + $0x3b0] sm:$0xf0] }
 0x2f8   :  { %v1893_v40 = vadd.f32 %v1892_v38, %v1844_v17  ;;  %v7478_v38 = vld [vmem:[#allocation3 + $0x348] sm:$0xf]  ;;  %v8778_v17 = vld [vmem:[#allocation3 + $0x36c] sm:$0xf0] }
 0x2f9   :  { %v7479_v54 = vor.u32 %v8775_v13, %v7478_v38  ;;  %v7487_v61 = vor.u32 %v8778_v17, %v7486_v49  ;;  %v8777_v38 = vld [vmem:[#allocation3 + $0x36c] sm:$0xf]  ;;  %v7496_v13 = vld [vmem:[#allocation3 + $0x378] sm:$0xf0] }
 0x2fa   :  { %v1906_v41 = vpack.c.bf16 %v1893_v40, %v1891_v47  ;;  %2213 = vmatmul.bf16.gmra.mxu3 %v7471_v23  ;;  %v8776_v47 = vld [vmem:[#allocation3 + $0x364] sm:$0xf]  ;;  %v7488_v40 = vld [vmem:[#allocation3 + $0x370] sm:$0xf0]  ;;  %v8786_v23 = vld [vmem:[#allocation3 + $0x3ac] sm:$0xf0] }
 0x2fb   :  { %2311 = vmatmul.bf16.gmra.mxu1 %v7479_v54  ;;  %v7519_v44 = vor.u32 %v8786_v23, %v7518_v16  ;;  %v7526_v54 = vld [vmem:[#allocation3 + $0x3a8] sm:$0xf] }
 0x2fc   :  { %7434 = vmatmul.msk.bf16.gmra.mxu2 %vm1354_vm2, %v1906_v41  ;;  %2262 = vmatmul.bf16.gmra.mxu0 %v7475_v43  ;;  %v7491_v41 = vor.u32 %v8776_v47, %v7488_v40  ;;  %v7534_v47 = vld [vmem:[#allocation3 + $0x3c0] sm:$0xf] }
 0x2fd   :  { %v1846_v18 = vpop.f32.mrf.mxu0 }
 0x2fe   :  { %v1847_v15 = vadd.f32 %v1846_v18, %v1798_v26  ;;  %v8769_v18 = vld [vmem:[#allocation3 + $0x32c] sm:$0xf] }
 0x2ff   :  { %v7467_v28 = vor.u32 %v8769_v18, %v7464_v6  ;;  %v8788_v6 = vld [vmem:[#allocation3 + $0x3c4] sm:$0xf] }
 0x300   :  { %v1896_v8 = vadd.f32 %v1895_v36, %v1847_v15  ;;  %v10425_v36 = vld [vmem:[%s11488_s0 + $0x70] sm:$0xff] }
 0x305   :  { %v1848_v59 = vpop.f32.mrf.mxu0 }
 0x306   :  { %v1849_v35 = vadd.f32 %v1848_v59, %v1800_v33  ;;  %v8780_v59 = vld [vmem:[#allocation3 + $0x384] sm:$0xf] }
 0x307   :  { %v7507_v3 = vor.u32 %v8780_v59, %v7504_v21  ;;  %v7550_v59 = vld [vmem:[#allocation3 + $0x3e0] sm:$0xf] }
 0x308   :  { %v1898_v10 = vadd.f32 %v1897_v12, %v1849_v35  ;;  %v7480_v35 = vld [vmem:[#allocation3 + $0x358] sm:$0xf0] }
 0x30a   :  { %v1907_v27 = vpack.c.bf16 %v1898_v10, %v1896_v8  ;;  %2218 = vmatmul.bf16.gmra.mxu3 %v7487_v61 }
 0x30c   :  { %7435 = vmatmul.msk.bf16.gmra.mxu2 %vm1354_vm2, %v1907_v27  ;;  %2267 = vmatmul.bf16.gmra.mxu0 %v7491_v41 }
 0x31a   :  { %2223 = vmatmul.bf16.gmra.mxu3 %v7503_v25 }
 0x31c   :  { %2350 = vmatmul.bf16.vlgmr.msra.gmra.mxu2 %v7451_v2  ;;  %2272 = vmatmul.bf16.gmra.mxu0 %v7507_v3  ;;  %v8787_v2 = vld [vmem:[#allocation3 + $0x3b4] sm:$0xf0] }
 0x31d   :  { %3226 = vmatpush.bf16.msra.mxu2 %v10155_v11  ;;  %v7494_v11 = vld [vmem:[#allocation3 + $0x368] sm:$0xf]  ;;  %v7527_v49 = vor.u32 %v8787_v2, %v7526_v54 }
 0x31e   :  { %v7495_v39 = vor.u32 %v8779_v58, %v7494_v11  ;;  %v7536_v11 = vld [vmem:[#allocation3 + $0x3d0] sm:$0xf0] }
 0x31f   :  { %v1946_v62 = vpop.f32.mrf.mxu2  ;;  %v7539_v58 = vor.u32 %v8788_v6, %v7536_v11  ;;  %v11503_v6 = vld [vmem:[#allocation47_spill] sm:$0xff]  ;;  %v11504_v11 = vld [vmem:[#allocation49_spill] sm:$0xff] }
 0x320   :  { %v10420_v55 = vadd.f32 %v1946_v62, %v10248_v14  ;;  %v10431_v14 = vld [vmem:[%s11488_s0 + $0x68] sm:$0xff]  ;;  %2316 = vmatmul.bf16.gmra.mxu1 %v7495_v39  ;;  %v7499_v62 = vor.u32 %v8777_v38, %v7496_v13  ;;  %v7544_v38 = vld [vmem:[#allocation3 + $0x3d8] sm:$0xf0] }
 0x321   :  { %3227 = vmatpush.bf16.msra.mxu2 %v10425_v36  ;;  %v8781_v39 = vld [vmem:[#allocation3 + $0x38c] sm:$0xf] }
 0x325   :  { %3228 = vmatpush.bf16.msra.mxu2 %v10431_v14 }
 0x327   :  { %v1948_v26 = vpop.f32.mrf.mxu2 }
 0x328   :  { %v10435_v19 = vadd.f32 %v1948_v26, %v10264_v29  ;;  %v10445_v29 = vld [vmem:[%s11488_s0 + $0x50] sm:$0xff]  ;;  %v7512_v26 = vld [vmem:[#allocation3 + $0x398] sm:$0xf0] }
 0x329   :  { %3229 = vmatpush.bf16.msra.mxu2 %v10190_v63  ;;  %v8773_v63 = vld [vmem:[#allocation3 + $0x34c] sm:$0xf] }
 0x32a   :  { %v7483_v27 = vor.u32 %v8773_v63, %v7480_v35  ;;  %2228 = vmatmul.bf16.gmra.mxu3 %v7519_v44  ;;  %v8792_v35 = vld [vmem:[#allocation3 + $0x3e4] sm:$0xf] }
 0x32c   :  { %2355 = vmatmul.bf16.gmra.mxu2 %v7467_v28  ;;  %v7542_v28 = vld [vmem:[#allocation3 + $0x3c8] sm:$0xf] }
 0x32d   :  { %3230 = vmatpush.bf16.msra.mxu2 %v10197_v22  ;;  %v7510_v22 = vld [vmem:[#allocation3 + $0x388] sm:$0xf] }
 0x32e   :  { %v7511_v12 = vor.u32 %v8783_v50, %v7510_v22  ;;  %v7552_v22 = vld [vmem:[#allocation3 + $0x3f0] sm:$0xf0] }
 0x32f   :  { %v1951_v33 = vpop.f32.mrf.mxu2  ;;  %v7555_v50 = vor.u32 %v8792_v35, %v7552_v22 }
 0x330   :  { %v10440_v15 = vadd.f32 %v1951_v33, %v10280_v42  ;;  %v10451_v42 = vld [vmem:[%s11488_s0 + $0x48] sm:$0xff]  ;;  %2321 = vmatmul.bf16.gmra.mxu1 %v7511_v12  ;;  %v7515_v33 = vor.u32 %v8781_v39, %v7512_v26 }
 0x331   :  { %3231 = vmatpush.bf16.msra.mxu2 %v10445_v29  ;;  %v8785_v12 = vld [vmem:[#allocation3 + $0x3ac] sm:$0xf] }
 0x332   :  { %v11505_v39 = vld [vmem:[#allocation48_spill] sm:$0xff] }
 0x335   :  { %3232 = vmatpush.bf16.msra.mxu2 %v10451_v42 }
 0x337   :  { %v1953_v8 = vpop.f32.mrf.mxu2 }
 0x338   :  { %v10455_v10 = vadd.f32 %v1953_v8, %v10294_v45  ;;  %v8784_v45 = vld [vmem:[#allocation3 + $0x3a4] sm:$0xf]  ;;  %v7528_v8 = vld [vmem:[#allocation3 + $0x3b8] sm:$0xf0] }
 0x339   :  { %3233 = vmatpush.bf16.msra.mxu2 %v10460_v5  ;;  %v7523_v37 = vor.u32 %v8784_v45, %v7520_v30  ;;  %v7531_v44 = vor.u32 %v8785_v12, %v7528_v8 }
 0x33b   :  { %2277 = vmatmul.bf16.gmra.mxu0 %v7523_v37  ;;  %v8789_v37 = vld [vmem:[#allocation3 + $0x3cc] sm:$0xf] }
 0x33c   :  { %2360 = vmatmul.bf16.gmra.mxu2 %v7483_v27  ;;  %v7558_v27 = vld [vmem:[#allocation3 + $0x3e8] sm:$0xf]  ;;  %v7547_v54 = vor.u32 %v8789_v37, %v7544_v38  ;;  %v10514_v37 = vld [vmem:[%s11488_s0 + $0xb0] sm:$0xff] }
 0x33f   :  { %v1956_v48 = vpop.f32.mrf.mxu2 }
 0x340   :  { %v10464_v43 = vadd.f32 %v1956_v48, %v10308_v9  ;;  %2326 = vmatmul.bf16.gmra.mxu1 %v7527_v49  ;;  %v8790_v9 = vld [vmem:[#allocation3 + $0x3cc] sm:$0xf0]  ;;  %v2400_v48 = vld [vmem:[#allocation6 + $0x6] sm:$0x3] }
 0x341   :  { %v7535_v40 = vor.u32 %v8790_v9, %v7534_v47  ;;  %v2426_v45 = vand.u32 %v2400_v48, %v10077_v52  ;;  %v8793_v47 = vld [vmem:[#allocation3 + $0x3ec] sm:$0xf]  ;;  %v7560_v9 = vld [vmem:[#allocation3 + $0x3f8] sm:$0xf0] }
 0x343   :  { %2233 = vmatmul.bf16.gmra.mxu3 %v7535_v40 }
 0x344   :  { %2435 = vmatpush.bf16.msra.mxu3 %v2426_v45 }
 0x347   :  { %v1958_v17 = vpop.f32.mrf.mxu2 }
 0x348   :  { %v10467_v61 = vadd.f32 %v1958_v17, %v10310_v57  ;;  %v8791_v57 = vld [vmem:[#allocation3 + $0x3d4] sm:$0xf0]  ;;  %2833 = vmatpush.bf16.msrb.mxu3 %v10332_v32 }
 0x349   :  { %v7543_v46 = vor.u32 %v8791_v57, %v7542_v28 }
 0x34b   :  { %2282 = vmatmul.bf16.gmra.mxu0 %v7539_v58 }
 0x34c   :  { %2365 = vmatmul.bf16.gmra.mxu2 %v7499_v62  ;;  %2834 = vmatpush.bf16.msrb.mxu3 %v10340_v20 }
 0x34e   :  { %v2253_v2 = vpop.f32.mrf.mxu0 }
 0x34f   :  { %v1961_v41 = vpop.f32.mrf.mxu2 }
 0x350   :  { %v10470_v18 = vadd.f32 %v1961_v41, %v10312_v56  ;;  %2331 = vmatmul.bf16.gmra.mxu1 %v7543_v46  ;;  %v8794_v56 = vld [vmem:[#allocation3 + $0x3ec] sm:$0xf0]  ;;  %2835 = vmatpush.bf16.msrb.mxu3 %v10346_v1  ;;  %v7563_v41 = vor.u32 %v8793_v47, %v7560_v9 }
 0x351   :  { %v7551_v21 = vor.u32 %v8794_v56, %v7550_v59 }
 0x353   :  { %2238 = vmatmul.bf16.gmra.mxu3 %v7551_v21 }
 0x354   :  { %2836 = vmatpush.bf16.msrb.mxu3 %v10354_v7 }
 0x355   :  { %v2302_v17 = vpop.f32.mrf.mxu1 }
 0x356   :  { %v2255_v32 = vpop.f32.mrf.mxu0 }
 0x357   :  { %v1963_v34 = vpop.f32.mrf.mxu2 }
 0x358   :  { %v10473_v25 = vadd.f32 %v1963_v34, %v10316_v24  ;;  %v8795_v24 = vld [vmem:[#allocation3 + $0x3f4] sm:$0xf0]  ;;  %2837 = vmatpush.bf16.msrb.mxu3 %v10362_v51 }
 0x359   :  { %v7559_v16 = vor.u32 %v8795_v24, %v7558_v27 }
 0x35b   :  { %2287 = vmatmul.bf16.gmra.mxu0 %v7555_v50 }
 0x35c   :  { %2370 = vmatmul.bf16.gmra.mxu2 %v7515_v33  ;;  %2838 = vmatpush.bf16.msrb.mxu3 %v10370_v53 }
 0x35d   :  { %v2204_v49 = vpop.f32.mrf.mxu3  ;;  %v2304_v1 = vpop.f32.mrf.mxu1 }
 0x35e   :  { %v2254_v33 = vadd.f32 %v2253_v2, %v2204_v49 }
 0x35f   :  { %v1966_v3 = vpop.f32.mrf.mxu2 }
 0x360   :  { %v10476_v63 = vadd.f32 %v1966_v3, %v10318_v0  ;;  %2336 = vmatmul.bf16.gmra.mxu1 %v7559_v16  ;;  %2839 = vmatpush.bf16.msrb.mxu3 %v11503_v6  ;;  %v2303_v3 = vadd.f32 %v2302_v17, %v2254_v33  ;;  %v10520_v17 = vld [vmem:[%s11488_s0 + $0xa8] sm:$0xff]  ;;  %v10533_v6 = vld [vmem:[%s11488_s0 + $0x98] sm:$0xff] }
 0x364   :  { %2840 = vmatpush.bf16.msrb.mxu3 %v11504_v11 }
 0x365   :  { %v2206_v20 = vpop.f32.mrf.mxu3  ;;  %v2307_v26 = vpop.f32.mrf.mxu1 }
 0x366   :  { %v2256_v21 = vadd.f32 %v2255_v32, %v2206_v20 }
 0x367   :  { %v10478_v23 = vpop.f32.mrf.mxu2 }
 0x368   :  { %11500 = vst [vmem:[#allocation51_spill] sm:$0xff] %v10478_v23  ;;  %v2305_v22 = vadd.f32 %v2304_v1, %v2256_v21  ;;  %v10526_v1 = vld [vmem:[%s11488_s0 + $0xa0] sm:$0xff] }
 0x369   :  { %v2258_v7 = vpop.f32.mrf.mxu0 }
 0x36c   :  { %2375 = vmatmul.bf16.gmra.mxu2 %v7531_v44  ;;  %v10508_v44 = vld [vmem:[%s11488_s0 + $0xb8] sm:$0xff] }
 0x36d   :  { %v2309_v46 = vpop.f32.mrf.mxu1 }
 0x36f   :  { %v1971_v0 = vpop.f32.mrf.mxu2 }
 0x370   :  { %v10482_v30 = vadd.f32 %v1971_v0, %v10324_v60 }
 0x371   :  { %v2260_v28 = vpop.f32.mrf.mxu0 }
 0x377   :  { %v10486_v13 = vpop.f32.mrf.mxu2 }
 0x378   :  { %11501 = vst [vmem:[#allocation52_spill] sm:$0xff] %v10486_v13  ;;  %v2312_v35 = vpop.f32.mrf.mxu1 }
 0x379   :  { %v2263_v59 = vpop.f32.mrf.mxu0 }
 0x37c   :  { %2380 = vmatmul.bf16.gmra.mxu2 %v7547_v54 }
 0x37f   :  { %v1976_v62 = vpop.f32.mrf.mxu2 }
 0x380   :  { %v10491_v60 = vadd.f32 %v1976_v62, %v10349_v4  ;;  %v2209_v4 = vpop.f32.mrf.mxu3  ;;  %v2314_v45 = vpop.f32.mrf.mxu1 }
 0x381   :  { %v2265_v24 = vpop.f32.mrf.mxu0  ;;  %v2259_v0 = vadd.f32 %v2258_v7, %v2209_v4 }
 0x383   :  { %v2308_v54 = vadd.f32 %v2307_v26, %v2259_v0 }
 0x387   :  { %v10495_v40 = vpop.f32.mrf.mxu2 }
 0x388   :  { %11502 = vst [vmem:[#allocation53_spill] sm:$0xff] %v10495_v40  ;;  %v2211_v57 = vpop.f32.mrf.mxu3 }
 0x389   :  { %v2261_v38 = vadd.f32 %v2260_v28, %v2211_v57  ;;  %v2268_v2 = vpop.f32.mrf.mxu0 }
 0x38b   :  { %v2310_v62 = vadd.f32 %v2309_v46, %v2261_v38 }
 0x38c   :  { %2385 = vmatmul.bf16.gmra.mxu2 %v7563_v41 }
 0x38f   :  { %v1981_v58 = vpop.f32.mrf.mxu2 }
 0x390   :  { %v10500_v51 = vadd.f32 %v1981_v58, %v11505_v39  ;;  %v2214_v56 = vpop.f32.mrf.mxu3  ;;  %v10539_v39 = vld [vmem:[%s11488_s0 + $0x90] sm:$0xff] }
 0x391   :  { %v2270_v7 = vpop.f32.mrf.mxu0  ;;  %v2264_v58 = vadd.f32 %v2263_v59, %v2214_v56  ;;  %v10546_v59 = vld [vmem:[%s11488_s0 + $0x80] sm:$0xff] }
 0x393   :  { %v2313_v57 = vadd.f32 %v2312_v35, %v2264_v58 }
 0x397   :  { %v10502_v53 = vpop.f32.mrf.mxu2 }
 0x398   :  { %11506 = vst [vmem:[#allocation47_spill] sm:$0xff] %v10502_v53  ;;  %v2216_v16 = vpop.f32.mrf.mxu3 }
 0x399   :  { %v2266_v26 = vadd.f32 %v2265_v24, %v2216_v16 }
 0x39b   :  { %v2315_v46 = vadd.f32 %v2314_v45, %v2266_v26 }
 0x39d   :  { %v2317_v9 = vpop.f32.mrf.mxu1 }
 0x39f   :  { %v2351_v34 = vpop.f32.mrf.mxu2 }
 0x3a0   :  { %v2352_v12 = vadd.f32 %v2351_v34, %v2303_v3  ;;  %v2219_v49 = vpop.f32.mrf.mxu3  ;;  %v2273_v3 = vpop.f32.mrf.mxu0 }
 0x3a5   :  { %v2319_v28 = vpop.f32.mrf.mxu1 }
 0x3a7   :  { %v2353_v50 = vpop.f32.mrf.mxu2 }
 0x3a8   :  { %v2354_v8 = vadd.f32 %v2353_v50, %v2305_v22  ;;  %v2221_v4 = vpop.f32.mrf.mxu3 }
 0x3aa   :  { %v2391_v27 = vpack.c.bf16 %v2354_v8, %v2352_v12  ;;  %v2269_v12 = vadd.f32 %v2268_v2, %v2219_v49  ;;  %v2275_v8 = vpop.f32.mrf.mxu0 }
 0x3ac   :  { %7564 = vmatmul.msk.bf16.vlgmr.msra.gmra.mxu3 %vm1354_vm2, %v2391_v27  ;;  %v2318_v24 = vadd.f32 %v2317_v9, %v2269_v12 }
 0x3ad   :  { %3275 = vmatpush.bf16.msra.mxu3 %v10508_v44  ;;  %v2322_v50 = vpop.f32.mrf.mxu1 }
 0x3af   :  { %v2356_v48 = vpop.f32.mrf.mxu2 }
 0x3b0   :  { %v2357_v20 = vadd.f32 %v2356_v48, %v2308_v54  ;;  %v2224_v22 = vpop.f32.mrf.mxu3 }
 0x3b1   :  { %3276 = vmatpush.bf16.msra.mxu3 %v10514_v37 }
 0x3b5   :  { %3277 = vmatpush.bf16.msra.mxu3 %v10520_v17  ;;  %v2324_v45 = vpop.f32.mrf.mxu1 }
 0x3b7   :  { %v2358_v32 = vpop.f32.mrf.mxu2 }
 0x3b8   :  { %v2359_v47 = vadd.f32 %v2358_v32, %v2310_v62  ;;  %v2226_v27 = vpop.f32.mrf.mxu3  ;;  %v2278_v62 = vpop.f32.mrf.mxu0 }
 0x3b9   :  { %3278 = vmatpush.bf16.msra.mxu3 %v10526_v1 }
 0x3ba   :  { %v2392_v41 = vpack.c.bf16 %v2359_v47, %v2357_v20  ;;  %v2274_v47 = vadd.f32 %v2273_v3, %v2224_v22 }
 0x3bc   :  { %7565 = vmatmul.msk.bf16.gmra.mxu3 %vm1354_vm2, %v2392_v41  ;;  %v2323_v58 = vadd.f32 %v2322_v50, %v2274_v47 }
 0x3bd   :  { %3279 = vmatpush.bf16.msra.mxu3 %v10533_v6  ;;  %v2327_v41 = vpop.f32.mrf.mxu1 }
 0x3bf   :  { %v2361_v11 = vpop.f32.mrf.mxu2 }
 0x3c0   :  { %v2362_v33 = vadd.f32 %v2361_v11, %v2313_v57  ;;  %v2229_v32 = vpop.f32.mrf.mxu3  ;;  %v2276_v11 = vadd.f32 %v2275_v8, %v2226_v27  ;;  %v2280_v49 = vpop.f32.mrf.mxu0 }
 0x3c1   :  { %3280 = vmatpush.bf16.msra.mxu3 %v10539_v39 }
 0x3c2   :  { %v2325_v2 = vadd.f32 %v2324_v45, %v2276_v11  ;;  %v7574_v45 = vld [vmem:[#allocation3 + $0x400] sm:$0xf] }
 0x3c5   :  { %3281 = vmatpush.bf16.msra.mxu3 %v10400_v31  ;;  %v2271_v31 = vadd.f32 %v2270_v7, %v2221_v4  ;;  %v2329_v57 = vpop.f32.mrf.mxu1 }
 0x3c7   :  { %v2363_v34 = vpop.f32.mrf.mxu2  ;;  %v2320_v16 = vadd.f32 %v2319_v28, %v2271_v31 }
 0x3c8   :  { %v2364_v21 = vadd.f32 %v2363_v34, %v2315_v46  ;;  %v2231_v4 = vpop.f32.mrf.mxu3  ;;  %v2279_v34 = vadd.f32 %v2278_v62, %v2229_v32  ;;  %v7576_v62 = vld [vmem:[#allocation3 + $0x410] sm:$0xf0] }
 0x3c9   :  { %3282 = vmatpush.bf16.msra.mxu3 %v10546_v59 }
 0x3ca   :  { %v2393_v56 = vpack.c.bf16 %v2364_v21, %v2362_v33  ;;  %v2283_v33 = vpop.f32.mrf.mxu0 }
 0x3cc   :  { %7566 = vmatmul.msk.bf16.gmra.mxu3 %vm1354_vm2, %v2393_v56  ;;  %v2281_v56 = vadd.f32 %v2280_v49, %v2231_v4 }
 0x3cd   :  { %v2332_v3 = vpop.f32.mrf.mxu1 }
 0x3ce   :  { %v2330_v22 = vadd.f32 %v2329_v57, %v2281_v56  ;;  %v10575_v56 = vld [vmem:[%s11488_s0 + $0x20] sm:$0xff] }
 0x3cf   :  { %v2366_v35 = vpop.f32.mrf.mxu2 }
 0x3d0   :  { %v2367_v0 = vadd.f32 %v2366_v35, %v2318_v24  ;;  %v2234_v21 = vpop.f32.mrf.mxu3  ;;  %v2328_v35 = vadd.f32 %v2327_v41, %v2279_v34 }
 0x3d1   :  { %v2284_v11 = vadd.f32 %v2283_v33, %v2234_v21  ;;  %v10568_v33 = vld [vmem:[%s11488_s0 + $0x28] sm:$0xff] }
 0x3d2   :  { %v2285_v27 = vpop.f32.mrf.mxu0 }
 0x3d3   :  { %v2333_v49 = vadd.f32 %v2332_v3, %v2284_v11 }
 0x3d5   :  { %v2334_v47 = vpop.f32.mrf.mxu1 }
 0x3d7   :  { %v2368_v48 = vpop.f32.mrf.mxu2 }
 0x3d8   :  { %v2369_v38 = vadd.f32 %v2368_v48, %v2320_v16  ;;  %v2236_v24 = vpop.f32.mrf.mxu3  ;;  %v7582_v16 = vld [vmem:[#allocation3 + $0x408] sm:$0xf]  ;;  %v8799_v48 = vld [vmem:[#allocation3 + $0x414] sm:$0xf0] }
 0x3da   :  { %v2394_v54 = vpack.c.bf16 %v2369_v38, %v2367_v0  ;;  %v7583_v0 = vor.u32 %v8799_v48, %v7582_v16  ;;  %v8798_v38 = vld [vmem:[#allocation3 + $0x40c] sm:$0xf0]  ;;  %v8800_v16 = vld [vmem:[#allocation3 + $0x424] sm:$0xf] }
 0x3db   :  { %v7575_v32 = vor.u32 %v8798_v38, %v7574_v45  ;;  %v7592_v45 = vld [vmem:[#allocation3 + $0x430] sm:$0xf0] }
 0x3dc   :  { %7567 = vmatmul.msk.bf16.gmra.mxu3 %vm1354_vm2, %v2394_v54  ;;  %v8796_v54 = vld [vmem:[#allocation3 + $0x404] sm:$0xf]  ;;  %2792 = vmatmul.bf16.vlgmr.msrb.gmra.mxu2 %v7583_v0  ;;  %v10581_v0 = vld [vmem:[%s11488_s0 + $0x18] sm:$0xff] }
 0x3dd   :  { %2694 = vmatmul.bf16.vlgmr.msrb.gmra.mxu0 %v7575_v32  ;;  %v2337_v34 = vpop.f32.mrf.mxu1 }
 0x3df   :  { %v2371_v20 = vpop.f32.mrf.mxu2 }
 0x3e0   :  { %v2372_v9 = vadd.f32 %v2371_v20, %v2323_v58  ;;  %v7579_v20 = vor.u32 %v8796_v54, %v7576_v62  ;;  %v10556_v58 = vld [vmem:[%s11488_s0 + $0x38] sm:$0xff]  ;;  %v2239_v4 = vpop.f32.mrf.mxu3  ;;  %v7595_v54 = vor.u32 %v8800_v16, %v7592_v45 }
 0x3e1   :  { %3668 = vmatpush.bf16.msrb.mxu2 %v10556_v58  ;;  %v8811_v16 = vld [vmem:[#allocation3 + $0x474] sm:$0xf0] }
 0x3e2   :  { %2743 = vmatmul.bf16.vlgmr.msrb.gmra.mxu1 %v7579_v20  ;;  %v10587_v20 = vld [vmem:[%s11488_s0 + $0x10] sm:$0xff] }
 0x3e5   :  { %v2339_v62 = vpop.f32.mrf.mxu1 }
 0x3e7   :  { %v2373_v7 = vpop.f32.mrf.mxu2 }
 0x3e8   :  { %v2374_v26 = vadd.f32 %v2373_v7, %v2325_v2  ;;  %v2286_v2 = vadd.f32 %v2285_v27, %v2236_v24  ;;  %v2288_v7 = vpop.f32.mrf.mxu0  ;;  %v2241_v3 = vpop.f32.mrf.mxu3  ;;  %v7590_v27 = vld [vmem:[#allocation3 + $0x420] sm:$0xf]  ;;  %v8802_v24 = vld [vmem:[#allocation3 + $0x42c] sm:$0xf0] }
 0x3e9   :  { %v7591_v48 = vor.u32 %v8802_v24, %v7590_v27  ;;  %v7630_v24 = vld [vmem:[#allocation3 + $0x468] sm:$0xf] }
 0x3ea   :  { %v2395_v28 = vpack.c.bf16 %v2374_v26, %v2372_v9  ;;  %v10562_v9 = vld [vmem:[%s11488_s0 + $0x30] sm:$0xff]  ;;  %v2335_v26 = vadd.f32 %v2334_v47, %v2286_v2  ;;  %v7631_v45 = vor.u32 %v8811_v16, %v7630_v24 }
 0x3eb   :  { %3669 = vmatpush.bf16.msrb.mxu2 %v10562_v9 }
 0x3ec   :  { %7568 = vmatmul.msk.bf16.gmra.mxu3 %vm1354_vm2, %v2395_v28 }
 0x3ed   :  { %2699 = vmatmul.bf16.gmra.mxu0 %v7591_v48 }
 0x3ef   :  { %v2376_v46 = vpop.f32.mrf.mxu2  ;;  %3670 = vmatpush.bf16.msrb.mxu2 %v10568_v33 }
 0x3f0   :  { %v2377_v50 = vadd.f32 %v2376_v46, %v2328_v35  ;;  %v2290_v35 = vpop.f32.mrf.mxu0 }
 0x3f1   :  { %v2291_v38 = vadd.f32 %v2290_v35, %v2241_v3  ;;  %v7608_v3 = vld [vmem:[#allocation3 + $0x450] sm:$0xf0] }
 0x3f2   :  { %2748 = vmatmul.bf16.gmra.mxu1 %v7595_v54  ;;  %v8810_v54 = vld [vmem:[#allocation3 + $0x46c] sm:$0xf0] }
 0x3f3   :  { %3671 = vmatpush.bf16.msrb.mxu2 %v10575_v56  ;;  %v2340_v47 = vadd.f32 %v2339_v62, %v2291_v38  ;;  %v7622_v38 = vld [vmem:[#allocation3 + $0x460] sm:$0xf]  ;;  %v8808_v62 = vld [vmem:[#allocation3 + $0x464] sm:$0xf] }
 0x3f7   :  { %v2378_v12 = vpop.f32.mrf.mxu2  ;;  %3672 = vmatpush.bf16.msrb.mxu2 %v10581_v0 }
 0x3f8   :  { %v2379_v31 = vadd.f32 %v2378_v12, %v2330_v22  ;;  %v7598_v12 = vld [vmem:[#allocation3 + $0x428] sm:$0xf] }
 0x3fa   :  { %v2396_v8 = vpack.c.bf16 %v2379_v31, %v2377_v50  ;;  %v8803_v50 = vld [vmem:[#allocation3 + $0x434] sm:$0xf0]  ;;  %v2289_v31 = vadd.f32 %v2288_v7, %v2239_v4  ;;  %v10600_v4 = vld [vmem:[%s11488_s0] sm:$0xff] }
 0x3fb   :  { %3673 = vmatpush.bf16.msrb.mxu2 %v10587_v20 }
 0x3fc   :  { %7569 = vmatmul.msk.bf16.gmra.mxu3 %vm1354_vm2, %v2396_v8  ;;  %v7599_v8 = vor.u32 %v8803_v50, %v7598_v12  ;;  %v2338_v32 = vadd.f32 %v2337_v34, %v2289_v31  ;;  %v8806_v34 = vld [vmem:[#allocation3 + $0x44c] sm:$0xf0]  ;;  %v8797_v12 = vld [vmem:[#allocation3 + $0x40c] sm:$0xf]  ;;  %v7584_v50 = vld [vmem:[#allocation3 + $0x418] sm:$0xf0] }
 0x3fd   :  { %v7587_v31 = vor.u32 %v8797_v12, %v7584_v50  ;;  %v7640_v12 = vld [vmem:[#allocation3 + $0x490] sm:$0xf0] }
 0x3fe   :  { %2797 = vmatmul.bf16.gmra.mxu2 %v7599_v8  ;;  %v10606_v8 = vld [vmem:[%s11488_s0 + $0x78] sm:$0xff] }
 0x3ff   :  { %v2381_v41 = vpop.f32.mrf.mxu2 }
 0x400   :  { %v2382_v57 = vadd.f32 %v2381_v41, %v2333_v49  ;;  %v10593_v49 = vld [vmem:[%s11488_s0 + $0x8] sm:$0xff] }
 0x401   :  { %3674 = vmatpush.bf16.msrb.mxu2 %v10593_v49 }
 0x405   :  { %3675 = vmatpush.bf16.msrb.mxu2 %v10600_v4 }
 0x407   :  { %v2383_v28 = vpop.f32.mrf.mxu2 }
 0x408   :  { %v2384_v46 = vadd.f32 %v2383_v28, %v2335_v26  ;;  %v7614_v26 = vld [vmem:[#allocation3 + $0x448] sm:$0xf]  ;;  %v8807_v28 = vld [vmem:[#allocation3 + $0x454] sm:$0xf0] }
 0x40a   :  { %v2397_v21 = vpack.c.bf16 %v2384_v46, %v2382_v57  ;;  %v7615_v57 = vor.u32 %v8807_v28, %v7614_v26  ;;  %v7606_v46 = vld [vmem:[#allocation3 + $0x440] sm:$0xf] }
 0x40b   :  { %v7607_v35 = vor.u32 %v8806_v34, %v7606_v46  ;;  %v10620_v28 = vld [vmem:[%s11488_s0 + $0x60] sm:$0xff] }
 0x40c   :  { %7570 = vmatmul.msk.bf16.gmra.mxu3 %vm1354_vm2, %v2397_v21  ;;  %v8804_v21 = vld [vmem:[#allocation3 + $0x444] sm:$0xf] }
 0x40d   :  { %2704 = vmatmul.bf16.gmra.mxu0 %v7607_v35  ;;  %v8814_v35 = vld [vmem:[#allocation3 + $0x48c] sm:$0xf0] }
 0x40e   :  { %2802 = vmatmul.bf16.gmra.mxu2 %v7615_v57  ;;  %v7646_v57 = vld [vmem:[#allocation3 + $0x488] sm:$0xf] }
 0x40f   :  { %v2386_v22 = vpop.f32.mrf.mxu2 }
 0x410   :  { %v2387_v11 = vadd.f32 %v2386_v22, %v2338_v32  ;;  %v7611_v22 = vor.u32 %v8804_v21, %v7608_v3  ;;  %v7623_v32 = vor.u32 %v8810_v54, %v7622_v38  ;;  %v7638_v21 = vld [vmem:[#allocation3 + $0x480] sm:$0xf]  ;;  %v8812_v3 = vld [vmem:[#allocation3 + $0x484] sm:$0xf]  ;;  %v7662_v38 = vld [vmem:[#allocation3 + $0x4a8] sm:$0xf] }
 0x411   :  { %v7643_v50 = vor.u32 %v8812_v3, %v7640_v12  ;;  %v8819_v54 = vld [vmem:[#allocation3 + $0x4b4] sm:$0xf0]  ;;  %v8822_v3 = vld [vmem:[#allocation3 + $0x4cc] sm:$0xf0] }
 0x412   :  { %2753 = vmatmul.bf16.gmra.mxu1 %v7611_v22  ;;  %v7639_v22 = vor.u32 %v8814_v35, %v7638_v21  ;;  %v7670_v35 = vld [vmem:[#allocation3 + $0x4c0] sm:$0xf] }
 0x413   :  { %v7671_v12 = vor.u32 %v8822_v3, %v7670_v35  ;;  %v10668_v35 = vld [vmem:[%s11488_s0 + $0xf0] sm:$0xff]  ;;  %v8821_v3 = vld [vmem:[#allocation3 + $0x4cc] sm:$0xf] }
 0x417   :  { %v2388_v41 = vpop.f32.mrf.mxu2 }
 0x418   :  { %v2389_v2 = vadd.f32 %v2388_v41, %v2340_v47  ;;  %v7624_v47 = vld [vmem:[#allocation3 + $0x470] sm:$0xf0] }
 0x419   :  { %v7627_v41 = vor.u32 %v8808_v62, %v7624_v47  ;;  %v7663_v62 = vor.u32 %v8819_v54, %v7662_v38  ;;  %v8818_v47 = vld [vmem:[#allocation3 + $0x4ac] sm:$0xf0]  ;;  %v7694_v38 = vld [vmem:[#allocation3 + $0x4e8] sm:$0xf]  ;;  %v8827_v54 = vld [vmem:[#allocation3 + $0x4f4] sm:$0xf0] }
 0x41a   :  { %v2398_v7 = vpack.c.bf16 %v2389_v2, %v2387_v11  ;;  %v8801_v11 = vld [vmem:[#allocation3 + $0x42c] sm:$0xf]  ;;  %v7600_v2 = vld [vmem:[#allocation3 + $0x438] sm:$0xf0] }
 0x41b   :  { %v7603_v26 = vor.u32 %v8801_v11, %v7600_v2 }
 0x41c   :  { %7571 = vmatmul.msk.bf16.gmra.mxu3 %vm1354_vm2, %v2398_v7 }
 0x41d   :  { %2709 = vmatmul.bf16.gmra.mxu0 %v7623_v32  ;;  %v7654_v32 = vld [vmem:[#allocation3 + $0x4a0] sm:$0xf] }
 0x41e   :  { %2807 = vmatmul.bf16.gmra.mxu2 %v7631_v45  ;;  %v7655_v11 = vor.u32 %v8818_v47, %v7654_v32  ;;  %v7695_v32 = vor.u32 %v8827_v54, %v7694_v38  ;;  %v7686_v47 = vld [vmem:[#allocation3 + $0x4e0] sm:$0xf]  ;;  %v10691_v38 = vld [vmem:[%s11488_s0 + $0xd8] sm:$0xff] }
 0x422   :  { %2758 = vmatmul.bf16.gmra.mxu1 %v7627_v41  ;;  %v8816_v41 = vld [vmem:[#allocation3 + $0x4a4] sm:$0xf] }
 0x42c   :  { %2841 = vmatmul.bf16.vlgmr.msrb.gmra.mxu3 %v7587_v31  ;;  %v8805_v31 = vld [vmem:[#allocation3 + $0x44c] sm:$0xf] }
 0x42d   :  { %3717 = vmatpush.bf16.msrb.mxu3 %v10606_v8  ;;  %2714 = vmatmul.bf16.gmra.mxu0 %v7639_v22  ;;  %v8820_v22 = vld [vmem:[#allocation3 + $0x4c4] sm:$0xf] }
 0x42f   :  { %v2437_v27 = vpop.f32.mrf.mxu3 }
 0x430   :  { %v10610_v48 = vadd.f32 %v2437_v27, %v10420_v55  ;;  %v7616_v27 = vld [vmem:[#allocation3 + $0x458] sm:$0xf0] }
 0x431   :  { %3718 = vmatpush.bf16.msrb.mxu3 %v10425_v36  ;;  %v10626_v36 = vld [vmem:[%s11488_s0 + $0x58] sm:$0xff]  ;;  %v7619_v16 = vor.u32 %v8805_v31, %v7616_v27 }
 0x432   :  { %2763 = vmatmul.bf16.gmra.mxu1 %v7643_v50  ;;  %v7672_v50 = vld [vmem:[#allocation3 + $0x4d0] sm:$0xf0]  ;;  %v7648_v27 = vld [vmem:[#allocation3 + $0x498] sm:$0xf0] }
 0x433   :  { %v7675_v31 = vor.u32 %v8820_v22, %v7672_v50  ;;  %v7680_v22 = vld [vmem:[#allocation3 + $0x4d8] sm:$0xf0] }
 0x435   :  { %3719 = vmatpush.bf16.msrb.mxu3 %v10431_v14 }
 0x437   :  { %v2439_v7 = vpop.f32.mrf.mxu3 }
 0x438   :  { %v10615_v55 = vadd.f32 %v2439_v7, %v10435_v19  ;;  %v8815_v19 = vld [vmem:[#allocation3 + $0x494] sm:$0xf0]  ;;  %v7632_v7 = vld [vmem:[#allocation3 + $0x478] sm:$0xf0] }
 0x439   :  { %3720 = vmatpush.bf16.msrb.mxu3 %v10620_v28  ;;  %v7647_v34 = vor.u32 %v8815_v19, %v7646_v57  ;;  %v7678_v57 = vld [vmem:[#allocation3 + $0x4c8] sm:$0xf]  ;;  %v8823_v19 = vld [vmem:[#allocation3 + $0x4d4] sm:$0xf0] }
 0x43a   :  { %v7679_v21 = vor.u32 %v8823_v19, %v7678_v57 }
 0x43b   :  { %2812 = vmatmul.bf16.gmra.mxu2 %v7647_v34 }
 0x43c   :  { %2846 = vmatmul.bf16.gmra.mxu3 %v7603_v26 }
 0x43d   :  { %3721 = vmatpush.bf16.msrb.mxu3 %v10626_v36  ;;  %2719 = vmatmul.bf16.gmra.mxu0 %v7655_v11  ;;  %v8824_v11 = vld [vmem:[#allocation3 + $0x4e4] sm:$0xf] }
 0x43f   :  { %v2442_v14 = vpop.f32.mrf.mxu3 }
 0x440   :  { %v10630_v46 = vadd.f32 %v2442_v14, %v10440_v15 }
 0x441   :  { %3722 = vmatpush.bf16.msrb.mxu3 %v10445_v29 }
 0x445   :  { %3723 = vmatpush.bf16.msrb.mxu3 %v10451_v42  ;;  %v7656_v42 = vld [vmem:[#allocation3 + $0x4b0] sm:$0xf0] }
 0x446   :  { %v7659_v2 = vor.u32 %v8816_v41, %v7656_v42  ;;  %v8826_v41 = vld [vmem:[#allocation3 + $0x4ec] sm:$0xf0] }
 0x447   :  { %v2444_v24 = vpop.f32.mrf.mxu3  ;;  %v7687_v42 = vor.u32 %v8826_v41, %v7686_v47  ;;  %v10697_v47 = vld [vmem:[%s11488_s0 + $0xd0] sm:$0xff]  ;;  %v8825_v41 = vld [vmem:[#allocation3 + $0x4ec] sm:$0xf] }
 0x448   :  { %v10635_v15 = vadd.f32 %v2444_v24, %v10455_v10  ;;  %2768 = vmatmul.bf16.gmra.mxu1 %v7659_v2  ;;  %v8809_v10 = vld [vmem:[#allocation3 + $0x46c] sm:$0xf]  ;;  %v7688_v2 = vld [vmem:[#allocation3 + $0x4f0] sm:$0xf0]  ;;  %11509 = vst [vmem:[#allocation54_spill] sm:$0xff] %v10697_v47 }
 0x449   :  { %3724 = vmatpush.bf16.msrb.mxu3 %v10460_v5  ;;  %v7635_v14 = vor.u32 %v8809_v10, %v7632_v7  ;;  %v7691_v10 = vor.u32 %v8824_v11, %v7688_v2  ;;  %v7664_v7 = vld [vmem:[#allocation3 + $0x4b8] sm:$0xf0] }
 0x44a   :  { %v7696_v11 = vld [vmem:[#allocation3 + $0x4f8] sm:$0xf0] }
 0x44b   :  { %2817 = vmatmul.bf16.gmra.mxu2 %v7663_v62  ;;  %v7699_v2 = vor.u32 %v8825_v41, %v7696_v11 }
 0x44c   :  { %2851 = vmatmul.bf16.gmra.mxu3 %v7619_v16 }
 0x44d   :  { %2724 = vmatmul.bf16.gmra.mxu0 %v7671_v12 }
 0x44f   :  { %v2447_v45 = vpop.f32.mrf.mxu3 }
 0x450   :  { %v10639_v29 = vadd.f32 %v2447_v45, %v10464_v43 }
 0x457   :  { %v2449_v5 = vpop.f32.mrf.mxu3 }
 0x458   :  { %v10642_v26 = vadd.f32 %v2449_v5, %v10467_v61  ;;  %2773 = vmatmul.bf16.gmra.mxu1 %v7675_v31  ;;  %v8813_v61 = vld [vmem:[#allocation3 + $0x48c] sm:$0xf] }
 0x459   :  { %v7651_v45 = vor.u32 %v8813_v61, %v7648_v27  ;;  %v10676_v31 = vld [vmem:[%s11488_s0 + $0xe8] sm:$0xff]  ;;  %v10682_v27 = vld [vmem:[%s11488_s0 + $0xe0] sm:$0xff] }
 0x45a   :  { %v2695_v50 = vpop.f32.mrf.mxu0 }
 0x45b   :  { %2822 = vmatmul.bf16.gmra.mxu2 %v7679_v21  ;;  %v10662_v21 = vld [vmem:[%s11488_s0 + $0xf8] sm:$0xff] }
 0x45c   :  { %2856 = vmatmul.bf16.gmra.mxu3 %v7635_v14 }
 0x45d   :  { %2729 = vmatmul.bf16.gmra.mxu0 %v7687_v42 }
 0x45f   :  { %v2452_v43 = vpop.f32.mrf.mxu3  ;;  %v2744_v61 = vpop.f32.mrf.mxu1 }
 0x460   :  { %v10645_v34 = vadd.f32 %v2452_v43, %v10470_v18  ;;  %v2891_v43 = vld [vmem:[#allocation6 + $0x8] sm:$0x3]  ;;  %v2745_v11 = vadd.f32 %v2744_v61, %v2695_v50 }
 0x462   :  { %v2697_v54 = vpop.f32.mrf.mxu0 }
 0x467   :  { %v2454_v24 = vpop.f32.mrf.mxu3 }
 0x468   :  { %v10648_v16 = vadd.f32 %v2454_v24, %v10473_v25  ;;  %2778 = vmatmul.bf16.gmra.mxu1 %v7691_v10  ;;  %v8817_v25 = vld [vmem:[#allocation3 + $0x4ac] sm:$0xf]  ;;  %v2793_v24 = vpop.f32.mrf.mxu2 }
 0x469   :  { %v7667_v14 = vor.u32 %v8817_v25, %v7664_v7  ;;  %v10705_v10 = vld [vmem:[%s11488_s0 + $0xc8] sm:$0xff]  ;;  %v10711_v7 = vld [vmem:[%s11488_s0 + $0xc0] sm:$0xff] }
 0x46a   :  { %11511 = vst [vmem:[#allocation56_spill] sm:$0xff] %v10705_v10  ;;  %v2700_v25 = vpop.f32.mrf.mxu0 }
 0x46b   :  { %2827 = vmatmul.bf16.gmra.mxu2 %v7695_v32  ;;  %v2746_v32 = vpop.f32.mrf.mxu1  ;;  %11512 = vst [vmem:[#allocation57_spill] sm:$0xff] %v10711_v7 }
 0x46c   :  { %2861 = vmatmul.bf16.gmra.mxu3 %v7651_v45  ;;  %v2747_v23 = vadd.f32 %v2746_v32, %v2697_v54 }
 0x46f   :  { %v2457_v18 = vpop.f32.mrf.mxu3 }
 0x470   :  { %v10651_v62 = vadd.f32 %v2457_v18, %v10476_v63  ;;  %v2917_v63 = vand.u32 %v2891_v43, %v10077_v52  ;;  %v2795_v42 = vpop.f32.mrf.mxu2 }
 0x471   :  { %v2796_v13 = vadd.f32 %v2795_v42, %v2747_v23 }
 0x472   :  { %2926 = vmatpush.bf16.msra.mxu0 %v2917_v63 }
 0x476   :  { %3324 = vmatpush.bf16.msrb.mxu0 %v10662_v21 }
 0x477   :  { %v10653_v5 = vpop.f32.mrf.mxu3 }
 0x478   :  { %11507 = vst [vmem:[#allocation49_spill] sm:$0xff] %v10653_v5 }
 0x47a   :  { %3325 = vmatpush.bf16.msrb.mxu0 %v10668_v35 }
 0x47c   :  { %2866 = vmatmul.bf16.gmra.mxu3 %v7667_v14  ;;  %v2749_v14 = vpop.f32.mrf.mxu1 }
 0x47e   :  { %3326 = vmatpush.bf16.msrb.mxu0 %v10676_v31 }
 0x47f   :  { %v2462_v57 = vpop.f32.mrf.mxu3 }
 0x480   :  { %v10657_v19 = vadd.f32 %v2462_v57, %v10482_v30  ;;  %v7683_v30 = vor.u32 %v8821_v3, %v7680_v22  ;;  %v2702_v3 = vpop.f32.mrf.mxu0 }
 0x481   :  { %v2798_v57 = vpop.f32.mrf.mxu2 }
 0x482   :  { %3327 = vmatpush.bf16.msrb.mxu0 %v10682_v27 }
 0x486   :  { %3328 = vmatpush.bf16.msrb.mxu0 %v10691_v38 }
 0x487   :  { %v10671_v12 = vpop.f32.mrf.mxu3 }
 0x488   :  { %11508 = vst [vmem:[#allocation48_spill] sm:$0xff] %v10671_v12  ;;  %v2794_v12 = vadd.f32 %v2793_v24, %v2745_v11 }
 0x48a   :  { %3329 = vmatpush.bf16.msrb.mxu0 %v10697_v47  ;;  %v2750_v47 = vadd.f32 %v2749_v14, %v2700_v25 }
 0x48c   :  { %2871 = vmatmul.bf16.gmra.mxu3 %v7683_v30  ;;  %v2751_v30 = vpop.f32.mrf.mxu1  ;;  %v2799_v61 = vadd.f32 %v2798_v57, %v2750_v47 }
 0x48d   :  { %v2752_v50 = vadd.f32 %v2751_v30, %v2702_v3 }
 0x48e   :  { %3330 = vmatpush.bf16.msrb.mxu0 %v10705_v10 }
 0x48f   :  { %v2467_v45 = vpop.f32.mrf.mxu3 }
 0x490   :  { %v10686_v18 = vadd.f32 %v2467_v45, %v10491_v60  ;;  %v2800_v45 = vpop.f32.mrf.mxu2 }
 0x491   :  { %v2801_v23 = vadd.f32 %v2800_v45, %v2752_v50 }
 0x492   :  { %3331 = vmatpush.bf16.msrb.mxu0 %v10711_v7 }
 0x494   :  { %v2754_v5 = vpop.f32.mrf.mxu1 }
 0x497   :  { %v10700_v60 = vpop.f32.mrf.mxu3 }
 0x498   :  { %11510 = vst [vmem:[#allocation55_spill] sm:$0xff] %v10700_v60  ;;  %v2803_v53 = vpop.f32.mrf.mxu2 }
 0x49c   :  { %2876 = vmatmul.bf16.gmra.mxu3 %v7699_v2  ;;  %v2705_v2 = vpop.f32.mrf.mxu0 }
 0x49d   :  { %v2755_v47 = vadd.f32 %v2754_v5, %v2705_v2 }
 0x49f   :  { %v2472_v43 = vpop.f32.mrf.mxu3  ;;  %v2804_v25 = vadd.f32 %v2803_v53, %v2755_v47 }
 0x4a0   :  { %v10715_v63 = vadd.f32 %v2472_v43, %v10500_v51  ;;  %v2756_v43 = vpop.f32.mrf.mxu1 }
 0x4a2   :  { %11513 = vst [vmem:[#allocation58_spill] sm:$0xff] %v10715_v63  ;;  %v2805_v63 = vpop.f32.mrf.mxu2 }
 0x4a4   :  { %v2707_v51 = vpop.f32.mrf.mxu0 }
 0x4a7   :  { %v10717_v22 = vpop.f32.mrf.mxu3 }
 0x4a8   :  { %11514 = vst [vmem:[#allocation59_spill] sm:$0xff] %v10717_v22  ;;  %v2759_v54 = vpop.f32.mrf.mxu1 }
 0x4aa   :  { %v2808_v32 = vpop.f32.mrf.mxu2 }
 0x4ac   :  { %v2710_v24 = vpop.f32.mrf.mxu0 }
 0x4ad   :  { %v2760_v30 = vadd.f32 %v2759_v54, %v2710_v24 }
 0x4af   :  { %v2842_v41 = vpop.f32.mrf.mxu3  ;;  %v2809_v2 = vadd.f32 %v2808_v32, %v2760_v30 }
 0x4b0   :  { %v2843_v40 = vadd.f32 %v2842_v41, %v2794_v12  ;;  %v2761_v42 = vpop.f32.mrf.mxu1 }
 0x4b7   :  { %v2844_v60 = vpop.f32.mrf.mxu3 }
 0x4b8   :  { %v2845_v7 = vadd.f32 %v2844_v60, %v2796_v13 }
 0x4ba   :  { %v2882_v10 = vpack.c.bf16 %v2845_v7, %v2843_v40  ;;  %v10730_v7 = vld [vmem:[%s11488_s0 + $0x88] sm:$0xff] }
 0x4bc   :  { %7700 = vmatmul.msk.bf16.vlgmr.msra.gmra.mxu0 %vm1354_vm2, %v2882_v10  ;;  %v2757_v10 = vadd.f32 %v2756_v43, %v2707_v51 }
 0x4bd   :  { %3766 = vmatpush.bf16.msra.mxu0 %v10508_v44  ;;  %v2712_v44 = vpop.f32.mrf.mxu0 }
 0x4be   :  { %v2762_v45 = vadd.f32 %v2761_v42, %v2712_v44 }
 0x4bf   :  { %v2847_v22 = vpop.f32.mrf.mxu3 }
 0x4c0   :  { %v2848_v40 = vadd.f32 %v2847_v22, %v2799_v61  ;;  %v2764_v22 = vpop.f32.mrf.mxu1 }
 0x4c1   :  { %3767 = vmatpush.bf16.msra.mxu0 %v10514_v37 }
 0x4c5   :  { %3768 = vmatpush.bf16.msra.mxu0 %v10520_v17  ;;  %v2810_v17 = vpop.f32.mrf.mxu2  ;;  %v2715_v3 = vpop.f32.mrf.mxu0 }
 0x4c6   :  { %v2811_v51 = vadd.f32 %v2810_v17, %v2762_v45  ;;  %v7712_v45 = vld [vmem:[#allocation3 + $0x510] sm:$0xf0] }
 0x4c7   :  { %v2849_v13 = vpop.f32.mrf.mxu3 }
 0x4c8   :  { %v2850_v12 = vadd.f32 %v2849_v13, %v2801_v23  ;;  %v2766_v11 = vpop.f32.mrf.mxu1 }
 0x4c9   :  { %3769 = vmatpush.bf16.msra.mxu0 %v10526_v1  ;;  %v2806_v1 = vadd.f32 %v2805_v63, %v2757_v10 }
 0x4ca   :  { %v2883_v60 = vpack.c.bf16 %v2850_v12, %v2848_v40  ;;  %v2765_v12 = vadd.f32 %v2764_v22, %v2715_v3 }
 0x4cc   :  { %7701 = vmatmul.msk.bf16.gmra.mxu0 %vm1354_vm2, %v2883_v60 }
 0x4cd   :  { %3770 = vmatpush.bf16.msra.mxu0 %v10533_v6  ;;  %v2717_v41 = vpop.f32.mrf.mxu0 }
 0x4cf   :  { %v2852_v37 = vpop.f32.mrf.mxu3 }
 0x4d0   :  { %v2853_v57 = vadd.f32 %v2852_v37, %v2804_v25  ;;  %v2767_v37 = vadd.f32 %v2766_v11, %v2717_v41 }
 0x4d1   :  { %3771 = vmatpush.bf16.msra.mxu0 %v10539_v39  ;;  %v2813_v39 = vpop.f32.mrf.mxu2 }
 0x4d2   :  { %v2814_v47 = vadd.f32 %v2813_v39, %v2765_v12  ;;  %v8828_v39 = vld [vmem:[#allocation3 + $0x504] sm:$0xf] }
 0x4d5   :  { %3772 = vmatpush.bf16.msra.mxu0 %v10730_v7  ;;  %v2720_v13 = vpop.f32.mrf.mxu0 }
 0x4d7   :  { %v2854_v14 = vpop.f32.mrf.mxu3 }
 0x4d8   :  { %v2855_v6 = vadd.f32 %v2854_v14, %v2806_v1 }
 0x4d9   :  { %3773 = vmatpush.bf16.msra.mxu0 %v10546_v59  ;;  %v2815_v63 = vpop.f32.mrf.mxu2  ;;  %v2769_v59 = vpop.f32.mrf.mxu1 }
 0x4da   :  { %v2884_v5 = vpack.c.bf16 %v2855_v6, %v2853_v57  ;;  %v2816_v24 = vadd.f32 %v2815_v63, %v2767_v37  ;;  %v2770_v14 = vadd.f32 %v2769_v59, %v2720_v13  ;;  %v7710_v13 = vld [vmem:[#allocation3 + $0x500] sm:$0xf]  ;;  %v8830_v59 = vld [vmem:[#allocation3 + $0x50c] sm:$0xf0] }
 0x4dc   :  { %7702 = vmatmul.msk.bf16.gmra.mxu0 %vm1354_vm2, %v2884_v5 }
 0x4dd   :  { %v2722_v54 = vpop.f32.mrf.mxu0 }
 0x4df   :  { %v2857_v53 = vpop.f32.mrf.mxu3 }
 0x4e0   :  { %v2858_v50 = vadd.f32 %v2857_v53, %v2809_v2  ;;  %v7715_v2 = vor.u32 %v8828_v39, %v7712_v45 }
 0x4e1   :  { %v2818_v60 = vpop.f32.mrf.mxu2  ;;  %v2771_v42 = vpop.f32.mrf.mxu1 }
 0x4e2   :  { %v2772_v5 = vadd.f32 %v2771_v42, %v2722_v54  ;;  %v2819_v53 = vadd.f32 %v2818_v60, %v2770_v14  ;;  %3234 = vmatmul.bf16.vlgmr.msra.gmra.mxu2 %v7715_v2 }
 0x4e5   :  { %v2725_v57 = vpop.f32.mrf.mxu0 }
 0x4e7   :  { %v2859_v43 = vpop.f32.mrf.mxu3 }
 0x4e8   :  { %v2860_v61 = vadd.f32 %v2859_v43, %v2811_v51  ;;  %v7718_v51 = vld [vmem:[#allocation3 + $0x508] sm:$0xf]  ;;  %v8831_v43 = vld [vmem:[#allocation3 + $0x514] sm:$0xf0] }
 0x4e9   :  { %v2820_v25 = vpop.f32.mrf.mxu2  ;;  %v2774_v6 = vpop.f32.mrf.mxu1 }
 0x4ea   :  { %v2885_v23 = vpack.c.bf16 %v2860_v61, %v2858_v50  ;;  %v2821_v22 = vadd.f32 %v2820_v25, %v2772_v5  ;;  %v7719_v61 = vor.u32 %v8831_v43, %v7718_v51  ;;  %v2775_v37 = vadd.f32 %v2774_v6, %v2725_v57  ;;  %v7734_v5 = vld [vmem:[#allocation3 + $0x528] sm:$0xf]  ;;  %v7726_v6 = vld [vmem:[#allocation3 + $0x520] sm:$0xf]  ;;  %v8836_v43 = vld [vmem:[#allocation3 + $0x544] sm:$0xf] }
 0x4ec   :  { %7703 = vmatmul.msk.bf16.gmra.mxu0 %vm1354_vm2, %v2885_v23  ;;  %3283 = vmatmul.bf16.vlgmr.msra.gmra.mxu3 %v7719_v61 }
 0x4ed   :  { %v2727_v50 = vpop.f32.mrf.mxu0  ;;  %4159 = vmatpush.bf16.msra.mxu3 %v10556_v58 }
 0x4ef   :  { %v2862_v40 = vpop.f32.mrf.mxu3 }
 0x4f0   :  { %v2863_v32 = vadd.f32 %v2862_v40, %v2814_v47  ;;  %v7711_v40 = vor.u32 %v8830_v59, %v7710_v13  ;;  %v8839_v13 = vld [vmem:[#allocation3 + $0x554] sm:$0xf0] }
 0x4f1   :  { %v2823_v3 = vpop.f32.mrf.mxu2  ;;  %v2776_v23 = vpop.f32.mrf.mxu1  ;;  %4160 = vmatpush.bf16.msra.mxu3 %v10562_v9 }
 0x4f2   :  { %3185 = vmatmul.bf16.vlgmr.msra.gmra.mxu1 %v7711_v40  ;;  %v2777_v47 = vadd.f32 %v2776_v23, %v2727_v50 }
 0x4f5   :  { %v2730_v54 = vpop.f32.mrf.mxu0  ;;  %4161 = vmatpush.bf16.msra.mxu3 %v10568_v33  ;;  %v8834_v33 = vld [vmem:[#allocation3 + $0x52c] sm:$0xf0] }
 0x4f7   :  { %v2864_v44 = vpop.f32.mrf.mxu3 }
 0x4f8   :  { %v2865_v10 = vadd.f32 %v2864_v44, %v2816_v24  ;;  %v2824_v24 = vadd.f32 %v2823_v3, %v2775_v37  ;;  %v7727_v3 = vor.u32 %v8834_v33, %v7726_v6  ;;  %v7720_v37 = vld [vmem:[#allocation3 + $0x518] sm:$0xf0]  ;;  %v7776_v6 = vld [vmem:[#allocation3 + $0x590] sm:$0xf0] }
 0x4f9   :  { %v2825_v12 = vpop.f32.mrf.mxu2  ;;  %v2779_v44 = vpop.f32.mrf.mxu1  ;;  %4162 = vmatpush.bf16.msra.mxu3 %v10575_v56 }
 0x4fa   :  { %v2886_v17 = vpack.c.bf16 %v2865_v10, %v2863_v32  ;;  %v2826_v42 = vadd.f32 %v2825_v12, %v2777_v47  ;;  %v8832_v10 = vld [vmem:[#allocation3 + $0x524] sm:$0xf]  ;;  %v2780_v45 = vadd.f32 %v2779_v44, %v2730_v54  ;;  %v8838_v12 = vld [vmem:[#allocation3 + $0x54c] sm:$0xf0] }
 0x4fb   :  { %v8840_v47 = vld [vmem:[#allocation3 + $0x564] sm:$0xf] }
 0x4fc   :  { %7704 = vmatmul.msk.bf16.gmra.mxu0 %vm1354_vm2, %v2886_v17  ;;  %v7728_v17 = vld [vmem:[#allocation3 + $0x530] sm:$0xf0] }
 0x4fd   :  { %v7731_v14 = vor.u32 %v8832_v10, %v7728_v17  ;;  %4163 = vmatpush.bf16.msra.mxu3 %v10581_v0  ;;  %v7750_v0 = vld [vmem:[#allocation3 + $0x548] sm:$0xf]  ;;  %v8843_v10 = vld [vmem:[#allocation3 + $0x574] sm:$0xf0] }
 0x4fe   :  { %v7751_v40 = vor.u32 %v8839_v13, %v7750_v0  ;;  %v7798_v13 = vld [vmem:[#allocation3 + $0x5a8] sm:$0xf] }
 0x4ff   :  { %v2867_v1 = vpop.f32.mrf.mxu3  ;;  %3239 = vmatmul.bf16.gmra.mxu2 %v7731_v14 }
 0x500   :  { %v2868_v41 = vadd.f32 %v2867_v1, %v2819_v53  ;;  %v8835_v53 = vld [vmem:[#allocation3 + $0x534] sm:$0xf0] }
 0x501   :  { %v2828_v58 = vpop.f32.mrf.mxu2  ;;  %v7735_v9 = vor.u32 %v8835_v53, %v7734_v5  ;;  %4164 = vmatpush.bf16.msra.mxu3 %v10587_v20  ;;  %v7742_v20 = vld [vmem:[#allocation3 + $0x540] sm:$0xf]  ;;  %v10755_v5 = vld [vmem:[%s11488_s0 + $0x70] sm:$0xff]  ;;  %v8833_v53 = vld [vmem:[#allocation3 + $0x52c] sm:$0xf] }
 0x502   :  { %3190 = vmatmul.bf16.gmra.mxu1 %v7727_v3 }
 0x503   :  { %3288 = vmatmul.bf16.gmra.mxu3 %v7735_v9  ;;  %v10764_v9 = vld [vmem:[%s11488_s0 + $0x68] sm:$0xff] }
 0x505   :  { %4165 = vmatpush.bf16.msra.mxu3 %v10593_v49  ;;  %v7743_v49 = vor.u32 %v8838_v12, %v7742_v20  ;;  %v7790_v12 = vld [vmem:[#allocation3 + $0x5a0] sm:$0xf] }
 0x507   :  { %v2869_v30 = vpop.f32.mrf.mxu3 }
 0x508   :  { %v2870_v11 = vadd.f32 %v2869_v30, %v2821_v22  ;;  %v2732_v22 = vpop.f32.mrf.mxu0  ;;  %v2781_v30 = vpop.f32.mrf.mxu1 }
 0x509   :  { %v2830_v56 = vpop.f32.mrf.mxu2  ;;  %4166 = vmatpush.bf16.msra.mxu3 %v10600_v4 }
 0x50a   :  { %v2887_v63 = vpack.c.bf16 %v2870_v11, %v2868_v41  ;;  %v2782_v41 = vadd.f32 %v2781_v30, %v2732_v22  ;;  %v2829_v11 = vadd.f32 %v2828_v58, %v2780_v45  ;;  %v7782_v30 = vld [vmem:[#allocation3 + $0x588] sm:$0xf] }
 0x50c   :  { %7705 = vmatmul.msk.bf16.gmra.mxu0 %vm1354_vm2, %v2887_v63  ;;  %v2831_v2 = vadd.f32 %v2830_v56, %v2782_v41  ;;  %v7744_v63 = vld [vmem:[#allocation3 + $0x550] sm:$0xf0]  ;;  %v7774_v41 = vld [vmem:[#allocation3 + $0x580] sm:$0xf]  ;;  %v8846_v56 = vld [vmem:[#allocation3 + $0x58c] sm:$0xf0] }
 0x50d   :  { %v7747_v23 = vor.u32 %v8836_v43, %v7744_v63  ;;  %v7752_v43 = vld [vmem:[#allocation3 + $0x558] sm:$0xf0]  ;;  %v10784_v63 = vld [vmem:[%s11488_s0 + $0x48] sm:$0xff] }
 0x50f   :  { %v2872_v60 = vpop.f32.mrf.mxu3  ;;  %3244 = vmatmul.bf16.gmra.mxu2 %v7747_v23 }
 0x510   :  { %v2873_v25 = vadd.f32 %v2872_v60, %v2824_v24  ;;  %v8829_v60 = vld [vmem:[#allocation3 + $0x50c] sm:$0xf]  ;;  %v7760_v24 = vld [vmem:[#allocation3 + $0x570] sm:$0xf0] }
 0x511   :  { %v7723_v54 = vor.u32 %v8829_v60, %v7720_v37  ;;  %v7763_v44 = vor.u32 %v8840_v47, %v7760_v24  ;;  %v8841_v24 = vld [vmem:[#allocation3 + $0x56c] sm:$0xf] }
 0x512   :  { %3195 = vmatmul.bf16.gmra.mxu1 %v7743_v49  ;;  %v8850_v49 = vld [vmem:[#allocation3 + $0x5ac] sm:$0xf0] }
 0x513   :  { %3293 = vmatmul.bf16.gmra.mxu3 %v7751_v40  ;;  %v7791_v60 = vor.u32 %v8850_v49, %v7790_v12  ;;  %v8853_v49 = vld [vmem:[#allocation3 + $0x5cc] sm:$0xf] }
 0x517   :  { %v2874_v32 = vpop.f32.mrf.mxu3 }
 0x518   :  { %v2875_v1 = vadd.f32 %v2874_v32, %v2826_v42  ;;  %v7766_v32 = vld [vmem:[#allocation3 + $0x568] sm:$0xf] }
 0x519   :  { %v7767_v17 = vor.u32 %v8843_v10, %v7766_v32 }
 0x51a   :  { %v2888_v57 = vpack.c.bf16 %v2875_v1, %v2873_v25  ;;  %v7758_v25 = vld [vmem:[#allocation3 + $0x560] sm:$0xf]  ;;  %v8842_v1 = vld [vmem:[#allocation3 + $0x56c] sm:$0xf0] }
 0x51b   :  { %v7759_v14 = vor.u32 %v8842_v1, %v7758_v25  ;;  %v8855_v25 = vld [vmem:[#allocation3 + $0x5d4] sm:$0xf0] }
 0x51c   :  { %7706 = vmatmul.msk.bf16.gmra.mxu0 %vm1354_vm2, %v2888_v57  ;;  %v7736_v57 = vld [vmem:[#allocation3 + $0x538] sm:$0xf0] }
 0x51d   :  { %v7739_v33 = vor.u32 %v8833_v53, %v7736_v57  ;;  %v8854_v53 = vld [vmem:[#allocation3 + $0x5cc] sm:$0xf0] }
 0x51f   :  { %v2877_v39 = vpop.f32.mrf.mxu3  ;;  %3249 = vmatmul.bf16.gmra.mxu2 %v7763_v44  ;;  %v8852_v44 = vld [vmem:[#allocation3 + $0x5c4] sm:$0xf] }
 0x520   :  { %v2878_v50 = vadd.f32 %v2877_v39, %v2829_v11  ;;  %v8847_v39 = vld [vmem:[#allocation3 + $0x594] sm:$0xf0]  ;;  %v7775_v11 = vor.u32 %v8846_v56, %v7774_v41 }
 0x521   :  { %v7783_v45 = vor.u32 %v8847_v39, %v7782_v30  ;;  %v8859_v41 = vld [vmem:[#allocation3 + $0x5f4] sm:$0xf0] }
 0x522   :  { %3200 = vmatmul.bf16.gmra.mxu1 %v7759_v14 }
 0x523   :  { %3298 = vmatmul.bf16.gmra.mxu3 %v7767_v17  ;;  %v7814_v17 = vld [vmem:[#allocation3 + $0x5c8] sm:$0xf] }
 0x524   :  { %v7815_v14 = vor.u32 %v8855_v25, %v7814_v17 }
 0x527   :  { %v2879_v51 = vpop.f32.mrf.mxu3 }
 0x528   :  { %v2880_v61 = vadd.f32 %v2879_v51, %v2831_v2  ;;  %v10775_v51 = vld [vmem:[%s11488_s0 + $0x50] sm:$0xff] }
 0x52a   :  { %v2889_v59 = vpack.c.bf16 %v2880_v61, %v2878_v50  ;;  %v7792_v50 = vld [vmem:[#allocation3 + $0x5b0] sm:$0xf0] }
 0x52c   :  { %7707 = vmatmul.msk.bf16.gmra.mxu0 %vm1354_vm2, %v2889_v59  ;;  %v8851_v59 = vld [vmem:[#allocation3 + $0x5b4] sm:$0xf0] }
 0x52d   :  { %v7799_v20 = vor.u32 %v8851_v59, %v7798_v13 }
 0x532   :  { %3205 = vmatmul.bf16.gmra.mxu1 %v7775_v11 }
 0x533   :  { %3303 = vmatmul.bf16.gmra.mxu3 %v7783_v45  ;;  %v7830_v45 = vld [vmem:[#allocation3 + $0x5e8] sm:$0xf] }
 0x534   :  { %v7831_v11 = vor.u32 %v8859_v41, %v7830_v45 }
 0x539   :  { %v2928_v42 = vpop.f32.mrf.mxu0 }
 0x53a   :  { %v10749_v4 = vadd.f32 %v2928_v42, %v10610_v48  ;;  %v7808_v42 = vld [vmem:[#allocation3 + $0x5d0] sm:$0xf0] }
 0x53b   :  { %v7811_v10 = vor.u32 %v8852_v44, %v7808_v42  ;;  %v11516_v44 = vld [vmem:[#allocation56_spill] sm:$0xff] }
 0x53c   :  { %3332 = vmatmul.bf16.vlgmr.msrb.gmra.mxu0 %v7723_v54  ;;  %v7768_v54 = vld [vmem:[#allocation3 + $0x578] sm:$0xf0] }
 0x53d   :  { %4208 = vmatpush.bf16.msrb.mxu0 %v10606_v8  ;;  %v8844_v8 = vld [vmem:[#allocation3 + $0x584] sm:$0xf]  ;;  %v7771_v32 = vor.u32 %v8841_v24, %v7768_v54 }
 0x53e   :  { %v7779_v3 = vor.u32 %v8844_v8, %v7776_v6  ;;  %v8845_v6 = vld [vmem:[#allocation3 + $0x58c] sm:$0xf] }
 0x540   :  { %3254 = vmatmul.bf16.gmra.mxu2 %v7779_v3  ;;  %v8856_v3 = vld [vmem:[#allocation3 + $0x5e4] sm:$0xf] }
 0x541   :  { %v2930_v58 = vpop.f32.mrf.mxu0  ;;  %4209 = vmatpush.bf16.msrb.mxu0 %v10755_v5 }
 0x542   :  { %v10759_v48 = vadd.f32 %v2930_v58, %v10615_v55  ;;  %3210 = vmatmul.bf16.gmra.mxu1 %v7791_v60  ;;  %v7806_v58 = vld [vmem:[#allocation3 + $0x5c0] sm:$0xf]  ;;  %v7816_v60 = vld [vmem:[#allocation3 + $0x5d8] sm:$0xf0] }
 0x543   :  { %3308 = vmatmul.bf16.gmra.mxu3 %v7799_v20 }
 0x545   :  { %4210 = vmatpush.bf16.msrb.mxu0 %v10764_v9 }
 0x549   :  { %v2933_v22 = vpop.f32.mrf.mxu0  ;;  %4211 = vmatpush.bf16.msrb.mxu0 %v10620_v28 }
 0x54a   :  { %v10769_v55 = vadd.f32 %v2933_v22, %v10630_v46  ;;  %v8837_v46 = vld [vmem:[#allocation3 + $0x54c] sm:$0xf]  ;;  %v7824_v22 = vld [vmem:[#allocation3 + $0x5f0] sm:$0xf0] }
 0x54b   :  { %v7755_v61 = vor.u32 %v8837_v46, %v7752_v43  ;;  %v7827_v39 = vor.u32 %v8856_v3, %v7824_v22  ;;  %v8858_v46 = vld [vmem:[#allocation3 + $0x5ec] sm:$0xf0] }
 0x54c   :  { %3337 = vmatmul.bf16.gmra.mxu0 %v7739_v33  ;;  %v7784_v33 = vld [vmem:[#allocation3 + $0x598] sm:$0xf0] }
 0x54d   :  { %4212 = vmatpush.bf16.msrb.mxu0 %v10626_v36  ;;  %v8848_v36 = vld [vmem:[#allocation3 + $0x5a4] sm:$0xf]  ;;  %v7787_v30 = vor.u32 %v8845_v6, %v7784_v33 }
 0x54e   :  { %v7795_v23 = vor.u32 %v8848_v36, %v7792_v50  ;;  %v3382_v36 = vld [vmem:[#allocation6 + $0xa] sm:$0x3] }
 0x54f   :  { %v3408_v50 = vand.u32 %v3382_v36, %v10077_v52 }
 0x550   :  { %3259 = vmatmul.bf16.gmra.mxu2 %v7795_v23  ;;  %v7800_v23 = vld [vmem:[#allocation3 + $0x5b8] sm:$0xf0] }
 0x551   :  { %v2935_v2 = vpop.f32.mrf.mxu0  ;;  %4213 = vmatpush.bf16.msrb.mxu0 %v10775_v51  ;;  %3417 = vmatpush.bf16.msrb.mxu1 %v3408_v50 }
 0x552   :  { %v10779_v28 = vadd.f32 %v2935_v2, %v10635_v15  ;;  %v10790_v15 = vld [vmem:[%s11488_s0 + $0x40] sm:$0xff] }
 0x553   :  { %3313 = vmatmul.bf16.gmra.mxu3 %v7815_v14  ;;  %v7822_v2 = vld [vmem:[#allocation3 + $0x5e0] sm:$0xf] }
 0x555   :  { %4214 = vmatpush.bf16.msrb.mxu0 %v10784_v63  ;;  %3815 = vmatpush.bf16.msra.mxu1 %v10662_v21 }
 0x559   :  { %v2938_v0 = vpop.f32.mrf.mxu0  ;;  %4215 = vmatpush.bf16.msrb.mxu0 %v10790_v15  ;;  %3816 = vmatpush.bf16.msra.mxu1 %v10668_v35  ;;  %v11515_v35 = vld [vmem:[#allocation54_spill] sm:$0xff] }
 0x55a   :  { %v10794_v40 = vadd.f32 %v2938_v0, %v10639_v29 }
 0x55c   :  { %3342 = vmatmul.bf16.gmra.mxu0 %v7755_v61  ;;  %v8849_v61 = vld [vmem:[#allocation3 + $0x5ac] sm:$0xf] }
 0x55d   :  { %3817 = vmatpush.bf16.msra.mxu1 %v10676_v31 }
 0x560   :  { %3264 = vmatmul.bf16.gmra.mxu2 %v7811_v10  ;;  %v8857_v10 = vld [vmem:[#allocation3 + $0x5ec] sm:$0xf] }
 0x561   :  { %v2940_v37 = vpop.f32.mrf.mxu0  ;;  %3818 = vmatpush.bf16.msra.mxu1 %v10682_v27 }
 0x562   :  { %v10797_v47 = vadd.f32 %v2940_v37, %v10642_v26  ;;  %v7807_v26 = vor.u32 %v8854_v53, %v7806_v58  ;;  %v7819_v37 = vor.u32 %v8853_v49, %v7816_v60 }
 0x563   :  { %3318 = vmatmul.bf16.gmra.mxu3 %v7831_v11 }
 0x564   :  { %3215 = vmatmul.bf16.gmra.mxu1 %v7807_v26 }
 0x565   :  { %v3235_v12 = vpop.f32.mrf.mxu2  ;;  %3819 = vmatpush.bf16.msra.mxu1 %v10691_v38  ;;  %v7832_v38 = vld [vmem:[#allocation3 + $0x5f8] sm:$0xf0] }
 0x566   :  { %v7835_v25 = vor.u32 %v8857_v10, %v7832_v38  ;;  %v10863_v38 = vld [vmem:[%s11488_s0 + $0x98] sm:$0xff] }
 0x569   :  { %v2943_v29 = vpop.f32.mrf.mxu0  ;;  %3820 = vmatpush.bf16.msra.mxu1 %v11515_v35 }
 0x56a   :  { %v10800_v1 = vadd.f32 %v2943_v29, %v10645_v34 }
 0x56c   :  { %3347 = vmatmul.bf16.gmra.mxu0 %v7771_v32  ;;  %v11517_v32 = vld [vmem:[#allocation57_spill] sm:$0xff] }
 0x56d   :  { %v3237_v54 = vpop.f32.mrf.mxu2  ;;  %3821 = vmatpush.bf16.msra.mxu1 %v11516_v44 }
 0x56f   :  { %v3186_v20 = vpop.f32.mrf.mxu1  ;;  %v3284_v21 = vpop.f32.mrf.mxu3 }
 0x570   :  { %3269 = vmatmul.bf16.gmra.mxu2 %v7827_v39  ;;  %v3236_v22 = vadd.f32 %v3235_v12, %v3186_v20  ;;  %v10844_v12 = vld [vmem:[%s11488_s0 + $0xb0] sm:$0xff] }
 0x571   :  { %v2945_v57 = vpop.f32.mrf.mxu0  ;;  %3822 = vmatpush.bf16.msra.mxu1 %v11517_v32  ;;  %v10856_v32 = vld [vmem:[%s11488_s0 + $0xa0] sm:$0xff] }
 0x572   :  { %v10803_v8 = vadd.f32 %v2945_v57, %v10648_v16  ;;  %v7823_v16 = vor.u32 %v8858_v46, %v7822_v2  ;;  %v3285_v45 = vadd.f32 %v3284_v21, %v3236_v22 }
 0x574   :  { %3220 = vmatmul.bf16.gmra.mxu1 %v7823_v16 }
 0x577   :  { %v3188_v31 = vpop.f32.mrf.mxu1  ;;  %v3286_v27 = vpop.f32.mrf.mxu3 }
 0x579   :  { %v2948_v34 = vpop.f32.mrf.mxu0 }
 0x57a   :  { %v10806_v56 = vadd.f32 %v2948_v34, %v10651_v62  ;;  %v7803_v62 = vor.u32 %v8849_v61, %v7800_v23  ;;  %v3238_v34 = vadd.f32 %v3237_v54, %v3188_v31  ;;  %v10838_v23 = vld [vmem:[%s11488_s0 + $0xb8] sm:$0xff] }
 0x57c   :  { %3352 = vmatmul.bf16.gmra.mxu0 %v7787_v30  ;;  %v3287_v11 = vadd.f32 %v3286_v27, %v3238_v34 }
 0x57f   :  { %v3191_v29 = vpop.f32.mrf.mxu1 }
 0x581   :  { %v10808_v43 = vpop.f32.mrf.mxu0 }
 0x582   :  { %v3240_v17 = vpop.f32.mrf.mxu2 }
 0x583   :  { %v3241_v20 = vadd.f32 %v3240_v17, %v3191_v29 }
 0x586   :  { %v3289_v53 = vpop.f32.mrf.mxu3 }
 0x587   :  { %v3193_v26 = vpop.f32.mrf.mxu1  ;;  %v3290_v60 = vadd.f32 %v3289_v53, %v3241_v20 }
 0x589   :  { %v2953_v0 = vpop.f32.mrf.mxu0 }
 0x58a   :  { %v10813_v13 = vadd.f32 %v2953_v0, %v10657_v19  ;;  %v3242_v6 = vpop.f32.mrf.mxu2 }
 0x58b   :  { %v3243_v49 = vadd.f32 %v3242_v6, %v3193_v26 }
 0x58c   :  { %3357 = vmatmul.bf16.gmra.mxu0 %v7803_v62 }
 0x58e   :  { %v3291_v33 = vpop.f32.mrf.mxu3 }
 0x58f   :  { %v3196_v30 = vpop.f32.mrf.mxu1  ;;  %v3292_v35 = vadd.f32 %v3291_v33, %v3243_v49 }
 0x591   :  { %v10817_v59 = vpop.f32.mrf.mxu0 }
 0x592   :  { %v3245_v39 = vpop.f32.mrf.mxu2 }
 0x596   :  { %v3294_v41 = vpop.f32.mrf.mxu3 }
 0x597   :  { %v3198_v50 = vpop.f32.mrf.mxu1 }
 0x599   :  { %v2958_v24 = vpop.f32.mrf.mxu0 }
 0x59a   :  { %v10822_v19 = vadd.f32 %v2958_v24, %v10686_v18  ;;  %v11518_v18 = vld [vmem:[#allocation58_spill] sm:$0xff]  ;;  %v3247_v61 = vpop.f32.mrf.mxu2  ;;  %v10850_v24 = vld [vmem:[%s11488_s0 + $0xa8] sm:$0xff] }
 0x59b   :  { %v3248_v53 = vadd.f32 %v3247_v61, %v3198_v50 }
 0x59c   :  { %3362 = vmatmul.bf16.gmra.mxu0 %v7819_v37 }
 0x59e   :  { %v3296_v0 = vpop.f32.mrf.mxu3 }
 0x59f   :  { %v3201_v21 = vpop.f32.mrf.mxu1  ;;  %v3297_v33 = vadd.f32 %v3296_v0, %v3248_v53 }
 0x5a1   :  { %v10826_v42 = vpop.f32.mrf.mxu0 }
 0x5a2   :  { %v3250_v37 = vpop.f32.mrf.mxu2 }
 0x5a6   :  { %v3299_v27 = vpop.f32.mrf.mxu3 }
 0x5a7   :  { %v3203_v29 = vpop.f32.mrf.mxu1 }
 0x5a9   :  { %v2963_v14 = vpop.f32.mrf.mxu0 }
 0x5aa   :  { %v10830_v58 = vadd.f32 %v2963_v14, %v11518_v18  ;;  %v3246_v14 = vadd.f32 %v3245_v39, %v3196_v30  ;;  %v10869_v18 = vld [vmem:[%s11488_s0 + $0x90] sm:$0xff]  ;;  %v10876_v30 = vld [vmem:[%s11488_s0 + $0x80] sm:$0xff] }
 0x5ac   :  { %3367 = vmatmul.bf16.gmra.mxu0 %v7835_v25  ;;  %v3252_v25 = vpop.f32.mrf.mxu2  ;;  %v3295_v6 = vadd.f32 %v3294_v41, %v3246_v14 }
 0x5ae   :  { %v3301_v26 = vpop.f32.mrf.mxu3 }
 0x5b1   :  { %v10832_v57 = vpop.f32.mrf.mxu0 }
 0x5b9   :  { %v3333_v3 = vpop.f32.mrf.mxu0 }
 0x5ba   :  { %v3334_v46 = vadd.f32 %v3333_v3, %v3285_v45  ;;  %v3206_v45 = vpop.f32.mrf.mxu1 }
 0x5c1   :  { %v3335_v2 = vpop.f32.mrf.mxu0 }
 0x5c2   :  { %v3336_v16 = vadd.f32 %v3335_v2, %v3287_v11  ;;  %v3304_v2 = vpop.f32.mrf.mxu3 }
 0x5c3   :  { %v3255_v11 = vpop.f32.mrf.mxu2 }
 0x5c4   :  { %v3373_v36 = vpack.c.bf16 %v3336_v16, %v3334_v46  ;;  %v3251_v46 = vadd.f32 %v3250_v37, %v3201_v21  ;;  %v3208_v16 = vpop.f32.mrf.mxu1 }
 0x5c6   :  { %7836 = vmatmul.msk.bf16.vlgmr.msrb.gmra.mxu1 %vm1354_vm2, %v3373_v36  ;;  %v3300_v50 = vadd.f32 %v3299_v27, %v3251_v46 }
 0x5c7   :  { %4257 = vmatpush.bf16.msrb.mxu1 %v10838_v23 }
 0x5c9   :  { %v3338_v62 = vpop.f32.mrf.mxu0 }
 0x5ca   :  { %v3339_v54 = vadd.f32 %v3338_v62, %v3290_v60  ;;  %v3306_v0 = vpop.f32.mrf.mxu3 }
 0x5cb   :  { %4258 = vmatpush.bf16.msrb.mxu1 %v10844_v12  ;;  %v3257_v36 = vpop.f32.mrf.mxu2 }
 0x5cf   :  { %4259 = vmatpush.bf16.msrb.mxu1 %v10850_v24 }
 0x5d1   :  { %v3340_v31 = vpop.f32.mrf.mxu0 }
 0x5d2   :  { %v3341_v44 = vadd.f32 %v3340_v31, %v3292_v35  ;;  %v3211_v35 = vpop.f32.mrf.mxu1 }
 0x5d3   :  { %4260 = vmatpush.bf16.msrb.mxu1 %v10856_v32  ;;  %v3260_v31 = vpop.f32.mrf.mxu2 }
 0x5d4   :  { %v3374_v10 = vpack.c.bf16 %v3341_v44, %v3339_v54  ;;  %v3256_v44 = vadd.f32 %v3255_v11, %v3206_v45 }
 0x5d6   :  { %7837 = vmatmul.msk.bf16.gmra.mxu1 %vm1354_vm2, %v3374_v10  ;;  %v3309_v10 = vpop.f32.mrf.mxu3  ;;  %v3305_v14 = vadd.f32 %v3304_v2, %v3256_v44  ;;  %v7846_v2 = vld [vmem:[#allocation3 + $0x600] sm:$0xf] }
 0x5d7   :  { %4261 = vmatpush.bf16.msrb.mxu1 %v10863_v38 }
 0x5d9   :  { %v3343_v17 = vpop.f32.mrf.mxu0 }
 0x5da   :  { %v3344_v22 = vadd.f32 %v3343_v17, %v3295_v6  ;;  %v3258_v17 = vadd.f32 %v3257_v36, %v3208_v16  ;;  %v3213_v37 = vpop.f32.mrf.mxu1  ;;  %v8860_v16 = vld [vmem:[#allocation3 + $0x604] sm:$0xf] }
 0x5db   :  { %4262 = vmatpush.bf16.msrb.mxu1 %v10869_v18 }
 0x5dc   :  { %v3307_v21 = vadd.f32 %v3306_v0, %v3258_v17 }
 0x5de   :  { %v3311_v6 = vpop.f32.mrf.mxu3 }
 0x5df   :  { %4263 = vmatpush.bf16.msrb.mxu1 %v10730_v7  ;;  %v3253_v7 = vadd.f32 %v3252_v25, %v3203_v29  ;;  %v3262_v25 = vpop.f32.mrf.mxu2 }
 0x5e1   :  { %v3345_v3 = vpop.f32.mrf.mxu0  ;;  %v3302_v61 = vadd.f32 %v3301_v26, %v3253_v7  ;;  %v8862_v7 = vld [vmem:[#allocation3 + $0x60c] sm:$0xf0] }
 0x5e2   :  { %v3346_v34 = vadd.f32 %v3345_v3, %v3297_v33  ;;  %v3261_v3 = vadd.f32 %v3260_v31, %v3211_v35  ;;  %v7854_v35 = vld [vmem:[#allocation3 + $0x608] sm:$0xf]  ;;  %v8863_v31 = vld [vmem:[#allocation3 + $0x614] sm:$0xf0] }
 0x5e3   :  { %4264 = vmatpush.bf16.msrb.mxu1 %v10876_v30 }
 0x5e4   :  { %v3375_v39 = vpack.c.bf16 %v3346_v34, %v3344_v22  ;;  %v3216_v22 = vpop.f32.mrf.mxu1 }
 0x5e6   :  { %7838 = vmatmul.msk.bf16.gmra.mxu1 %vm1354_vm2, %v3375_v39  ;;  %v3263_v39 = vadd.f32 %v3262_v25, %v3213_v37  ;;  %v3314_v45 = vpop.f32.mrf.mxu3  ;;  %v9152_v25 = vld [vmem:[%s11488_s0 + $0x30] sm:$0xff] }
 0x5e7   :  { %v3265_v34 = vpop.f32.mrf.mxu2 }
 0x5e8   :  { %v3312_v11 = vadd.f32 %v3311_v6, %v3263_v39  ;;  %v3266_v17 = vadd.f32 %v3265_v34, %v3216_v22  ;;  %v7862_v6 = vld [vmem:[#allocation3 + $0x620] sm:$0xf] }
 0x5e9   :  { %v3348_v41 = vpop.f32.mrf.mxu0 }
 0x5ea   :  { %v3349_v20 = vadd.f32 %v3348_v41, %v3300_v50  ;;  %v3310_v41 = vadd.f32 %v3309_v10, %v3261_v3  ;;  %v3315_v37 = vadd.f32 %v3314_v45, %v3266_v17  ;;  %v8864_v3 = vld [vmem:[#allocation3 + $0x624] sm:$0xf]  ;;  %v9153_v45 = vld [vmem:[%s11488_s0 + $0x28] sm:$0xff]  ;;  %v7878_v17 = vld [vmem:[#allocation3 + $0x640] sm:$0xf] }
 0x5ee   :  { %v3316_v44 = vpop.f32.mrf.mxu3 }
 0x5f1   :  { %v3350_v62 = vpop.f32.mrf.mxu0 }
 0x5f2   :  { %v3351_v49 = vadd.f32 %v3350_v62, %v3302_v61  ;;  %v7847_v61 = vor.u32 %v8862_v7, %v7846_v2  ;;  %v7848_v62 = vld [vmem:[#allocation3 + $0x610] sm:$0xf0]  ;;  %v9154_v7 = vld [vmem:[%s11488_s0 + $0x20] sm:$0xff] }
 0x5f3   :  { %v7851_v0 = vor.u32 %v8860_v16, %v7848_v62  ;;  %v8867_v62 = vld [vmem:[#allocation3 + $0x634] sm:$0xf0] }
 0x5f4   :  { %v3376_v60 = vpack.c.bf16 %v3351_v49, %v3349_v20  ;;  %v3218_v49 = vpop.f32.mrf.mxu1  ;;  %3676 = vmatmul.bf16.vlgmr.msrb.gmra.mxu2 %v7847_v61  ;;  %v7870_v61 = vld [vmem:[#allocation3 + $0x628] sm:$0xf] }
 0x5f5   :  { %3725 = vmatmul.bf16.vlgmr.msrb.gmra.mxu3 %v7851_v0 }
 0x5f6   :  { %7839 = vmatmul.msk.bf16.gmra.mxu1 %vm1354_vm2, %v3376_v60  ;;  %v3267_v60 = vpop.f32.mrf.mxu2 }
 0x5f9   :  { %v3353_v54 = vpop.f32.mrf.mxu0 }
 0x5fa   :  { %v3354_v27 = vadd.f32 %v3353_v54, %v3305_v14  ;;  %v7855_v54 = vor.u32 %v8863_v31, %v7854_v35  ;;  %v9151_v14 = vld [vmem:[%s11488_s0 + $0x38] sm:$0xff] }
 0x5fc   :  { %3774 = vmatmul.bf16.vlgmr.msra.gmra.mxu0 %v7855_v54  ;;  %v9156_v54 = vld [vmem:[%s11488_s0 + $0x10] sm:$0xff] }
 0x5fd   :  { %4650 = vmatpush.bf16.msra.mxu0 %v9151_v14  ;;  %v8870_v14 = vld [vmem:[#allocation3 + $0x64c] sm:$0xf0] }
 0x601   :  { %v3355_v29 = vpop.f32.mrf.mxu0  ;;  %4651 = vmatpush.bf16.msra.mxu0 %v9152_v25  ;;  %v7879_v25 = vor.u32 %v8870_v14, %v7878_v17 }
 0x602   :  { %v3356_v53 = vadd.f32 %v3355_v29, %v3307_v21  ;;  %v3268_v21 = vadd.f32 %v3267_v60, %v3218_v49  ;;  %v3221_v29 = vpop.f32.mrf.mxu1  ;;  %v9155_v49 = vld [vmem:[%s11488_s0 + $0x18] sm:$0xff] }
 0x604   :  { %v3377_v26 = vpack.c.bf16 %v3356_v53, %v3354_v27  ;;  %v3270_v27 = vpop.f32.mrf.mxu2  ;;  %v3317_v53 = vadd.f32 %v3316_v44, %v3268_v21  ;;  %v8868_v21 = vld [vmem:[#allocation3 + $0x644] sm:$0xf] }
 0x605   :  { %4652 = vmatpush.bf16.msra.mxu0 %v9153_v45  ;;  %v3271_v0 = vadd.f32 %v3270_v27, %v3221_v29  ;;  %v7880_v27 = vld [vmem:[#allocation3 + $0x650] sm:$0xf0]  ;;  %v7894_v45 = vld [vmem:[#allocation3 + $0x660] sm:$0xf] }
 0x606   :  { %7840 = vmatmul.msk.bf16.gmra.mxu1 %vm1354_vm2, %v3377_v26 }
 0x609   :  { %v3358_v33 = vpop.f32.mrf.mxu0  ;;  %4653 = vmatpush.bf16.msra.mxu0 %v9154_v7 }
 0x60a   :  { %v3359_v36 = vadd.f32 %v3358_v33, %v3310_v41  ;;  %v8866_v33 = vld [vmem:[#allocation3 + $0x62c] sm:$0xf0]  ;;  %v7864_v41 = vld [vmem:[#allocation3 + $0x630] sm:$0xf0]  ;;  %v3223_v16 = vpop.f32.mrf.mxu1 }
 0x60b   :  { %v7863_v39 = vor.u32 %v8866_v33, %v7862_v6  ;;  %v9158_v33 = vld [vmem:[%s11488_s0] sm:$0xff] }
 0x60d   :  { %3681 = vmatmul.bf16.gmra.mxu2 %v7863_v39  ;;  %4654 = vmatpush.bf16.msra.mxu0 %v9155_v49  ;;  %v8861_v39 = vld [vmem:[#allocation3 + $0x60c] sm:$0xf] }
 0x611   :  { %v3360_v46 = vpop.f32.mrf.mxu0  ;;  %4655 = vmatpush.bf16.msra.mxu0 %v9156_v54  ;;  %v7910_v54 = vld [vmem:[#allocation3 + $0x680] sm:$0xf] }
 0x612   :  { %v3361_v50 = vadd.f32 %v3360_v46, %v3312_v11  ;;  %v3319_v11 = vpop.f32.mrf.mxu3  ;;  %v7867_v46 = vor.u32 %v8864_v3, %v7864_v41  ;;  %v7886_v3 = vld [vmem:[#allocation3 + $0x648] sm:$0xf]  ;;  %v7856_v41 = vld [vmem:[#allocation3 + $0x618] sm:$0xf0] }
 0x613   :  { %v3320_v31 = vadd.f32 %v3319_v11, %v3271_v0  ;;  %v8874_v11 = vld [vmem:[#allocation3 + $0x66c] sm:$0xf0]  ;;  %v7902_v0 = vld [vmem:[#allocation3 + $0x668] sm:$0xf] }
 0x614   :  { %v3378_v20 = vpack.c.bf16 %v3361_v50, %v3359_v36  ;;  %3730 = vmatmul.bf16.gmra.mxu3 %v7867_v46  ;;  %v3272_v36 = vpop.f32.mrf.mxu2  ;;  %v8872_v46 = vld [vmem:[#allocation3 + $0x664] sm:$0xf]  ;;  %v7895_v7 = vor.u32 %v8874_v11, %v7894_v45  ;;  %v7928_v45 = vld [vmem:[#allocation3 + $0x6b0] sm:$0xf0] }
 0x615   :  { %v3273_v60 = vadd.f32 %v3272_v36, %v3223_v16  ;;  %v7896_v16 = vld [vmem:[#allocation3 + $0x670] sm:$0xf0] }
 0x616   :  { %7841 = vmatmul.msk.bf16.gmra.mxu1 %vm1354_vm2, %v3378_v20  ;;  %v7871_v20 = vor.u32 %v8867_v62, %v7870_v61  ;;  %v9159_v62 = vld [vmem:[%s11488_s0 + $0x78] sm:$0xff] }
 0x618   :  { %3779 = vmatmul.bf16.gmra.mxu0 %v7871_v20  ;;  %v8875_v20 = vld [vmem:[#allocation3 + $0x674] sm:$0xf0] }
 0x619   :  { %v3363_v10 = vpop.f32.mrf.mxu0  ;;  %v7903_v49 = vor.u32 %v8875_v20, %v7902_v0  ;;  %v8886_v0 = vld [vmem:[#allocation3 + $0x6cc] sm:$0xf0]  ;;  %v8884_v20 = vld [vmem:[#allocation3 + $0x6c4] sm:$0xf] }
 0x61a   :  { %v3364_v22 = vadd.f32 %v3363_v10, %v3315_v37  ;;  %v3321_v35 = vpop.f32.mrf.mxu3 }
 0x61b   :  { %v3322_v44 = vadd.f32 %v3321_v35, %v3273_v60 }
 0x61d   :  { %3686 = vmatmul.bf16.gmra.mxu2 %v7879_v25  ;;  %v7918_v25 = vld [vmem:[#allocation3 + $0x688] sm:$0xf] }
 0x621   :  { %v3365_v26 = vpop.f32.mrf.mxu0 }
 0x622   :  { %v3366_v34 = vadd.f32 %v3365_v26, %v3317_v53  ;;  %v9157_v53 = vld [vmem:[%s11488_s0 + $0x8] sm:$0xff]  ;;  %v7883_v26 = vor.u32 %v8868_v21, %v7880_v27  ;;  %v7912_v21 = vld [vmem:[#allocation3 + $0x690] sm:$0xf0]  ;;  %v8879_v27 = vld [vmem:[#allocation3 + $0x694] sm:$0xf0] }
 0x623   :  { %4656 = vmatpush.bf16.msra.mxu0 %v9157_v53  ;;  %v7919_v53 = vor.u32 %v8879_v27, %v7918_v25 }
 0x624   :  { %v3379_v2 = vpack.c.bf16 %v3366_v34, %v3364_v22  ;;  %3735 = vmatmul.bf16.gmra.mxu3 %v7883_v26  ;;  %v8871_v22 = vld [vmem:[#allocation3 + $0x654] sm:$0xf0] }
 0x625   :  { %v7887_v34 = vor.u32 %v8871_v22, %v7886_v3  ;;  %v7926_v3 = vld [vmem:[#allocation3 + $0x6a0] sm:$0xf]  ;;  %v8882_v22 = vld [vmem:[#allocation3 + $0x6ac] sm:$0xf0] }
 0x626   :  { %7842 = vmatmul.msk.bf16.gmra.mxu1 %vm1354_vm2, %v3379_v2  ;;  %v7859_v2 = vor.u32 %v8861_v39, %v7856_v41  ;;  %v7927_v41 = vor.u32 %v8882_v22, %v7926_v3  ;;  %v3873_v22 = vld [vmem:[#allocation6 + $0xc] sm:$0x3] }
 0x627   :  { %4657 = vmatpush.bf16.msra.mxu0 %v9158_v33  ;;  %v7888_v33 = vld [vmem:[#allocation3 + $0x658] sm:$0xf0] }
 0x628   :  { %3784 = vmatmul.bf16.gmra.mxu0 %v7887_v34  ;;  %v8880_v34 = vld [vmem:[#allocation3 + $0x6a4] sm:$0xf] }
 0x629   :  { %v3368_v50 = vpop.f32.mrf.mxu0 }
 0x62a   :  { %v3369_v37 = vadd.f32 %v3368_v50, %v3320_v31  ;;  %v7899_v50 = vor.u32 %v8872_v46, %v7896_v16  ;;  %v7872_v31 = vld [vmem:[#allocation3 + $0x638] sm:$0xf0]  ;;  %v7931_v46 = vor.u32 %v8880_v34, %v7928_v45  ;;  %v3899_v34 = vand.u32 %v3873_v22, %v10077_v52 }
 0x62c   :  { %3908 = vmatpush.bf16.msra.mxu2 %v3899_v34 }
 0x62d   :  { %3691 = vmatmul.bf16.gmra.mxu2 %v7895_v7 }
 0x631   :  { %v3370_v10 = vpop.f32.mrf.mxu0 }
 0x632   :  { %v3371_v29 = vadd.f32 %v3370_v10, %v3322_v44  ;;  %v8878_v44 = vld [vmem:[#allocation3 + $0x68c] sm:$0xf0]  ;;  %v8876_v10 = vld [vmem:[#allocation3 + $0x684] sm:$0xf] }
 0x633   :  { %v7911_v14 = vor.u32 %v8878_v44, %v7910_v54  ;;  %v7950_v54 = vld [vmem:[#allocation3 + $0x6c8] sm:$0xf] }
 0x634   :  { %v3380_v6 = vpack.c.bf16 %v3371_v29, %v3369_v37  ;;  %3740 = vmatmul.bf16.gmra.mxu3 %v7899_v50  ;;  %v7915_v29 = vor.u32 %v8876_v10, %v7912_v21  ;;  %v7904_v50 = vld [vmem:[#allocation3 + $0x678] sm:$0xf0] }
 0x635   :  { %v7920_v21 = vld [vmem:[#allocation3 + $0x698] sm:$0xf0] }
 0x636   :  { %7843 = vmatmul.msk.bf16.gmra.mxu1 %vm1354_vm2, %v3380_v6 }
 0x638   :  { %3789 = vmatmul.bf16.gmra.mxu0 %v7903_v49 }
 0x63d   :  { %3696 = vmatmul.bf16.gmra.mxu2 %v7911_v14  ;;  %v8877_v14 = vld [vmem:[#allocation3 + $0x68c] sm:$0xf] }
 0x643   :  { %v3419_v36 = vpop.f32.mrf.mxu1 }
 0x644   :  { %v10910_v61 = vadd.f32 %v3419_v36, %v10749_v4  ;;  %v8865_v4 = vld [vmem:[#allocation3 + $0x62c] sm:$0xf]  ;;  %3745 = vmatmul.bf16.gmra.mxu3 %v7915_v29  ;;  %v8890_v29 = vld [vmem:[#allocation3 + $0x6ec] sm:$0xf0] }
 0x645   :  { %v7875_v17 = vor.u32 %v8865_v4, %v7872_v31  ;;  %v8873_v36 = vld [vmem:[#allocation3 + $0x66c] sm:$0xf] }
 0x646   :  { %3823 = vmatmul.bf16.vlgmr.msra.gmra.mxu1 %v7859_v2  ;;  %v8883_v2 = vld [vmem:[#allocation3 + $0x6b4] sm:$0xf0] }
 0x647   :  { %4699 = vmatpush.bf16.msra.mxu1 %v9159_v62  ;;  %v7942_v62 = vld [vmem:[#allocation3 + $0x6c0] sm:$0xf] }
 0x648   :  { %3794 = vmatmul.bf16.gmra.mxu0 %v7919_v53  ;;  %v7943_v49 = vor.u32 %v8886_v0, %v7942_v62  ;;  %v7952_v62 = vld [vmem:[#allocation3 + $0x6d8] sm:$0xf0] }
 0x649   :  { %v10985_v0 = vld [vmem:[%s11488_s0 + $0xd8] sm:$0xff] }
 0x64b   :  { %v3421_v60 = vpop.f32.mrf.mxu1  ;;  %4700 = vmatpush.bf16.msra.mxu1 %v10755_v5  ;;  %v9160_v5 = vld [vmem:[%s11488_s0 + $0x60] sm:$0xff] }
 0x64c   :  { %v10917_v35 = vadd.f32 %v3421_v60, %v10759_v48 }
 0x64d   :  { %3701 = vmatmul.bf16.gmra.mxu2 %v7927_v41  ;;  %v7936_v41 = vld [vmem:[#allocation3 + $0x6b8] sm:$0xf0] }
 0x64f   :  { %4701 = vmatpush.bf16.msra.mxu1 %v10764_v9  ;;  %v9161_v9 = vld [vmem:[%s11488_s0 + $0x58] sm:$0xff] }
 0x653   :  { %v3424_v37 = vpop.f32.mrf.mxu1  ;;  %4702 = vmatpush.bf16.msra.mxu1 %v9160_v5  ;;  %v8888_v5 = vld [vmem:[#allocation3 + $0x6e4] sm:$0xf] }
 0x654   :  { %v10924_v48 = vadd.f32 %v3424_v37, %v10769_v55  ;;  %v8869_v55 = vld [vmem:[#allocation3 + $0x64c] sm:$0xf]  ;;  %3750 = vmatmul.bf16.gmra.mxu3 %v7931_v46  ;;  %v7958_v37 = vld [vmem:[#allocation3 + $0x6e0] sm:$0xf] }
 0x655   :  { %v7891_v39 = vor.u32 %v8869_v55, %v7888_v33  ;;  %v7959_v25 = vor.u32 %v8890_v29, %v7958_v37  ;;  %v7966_v55 = vld [vmem:[#allocation3 + $0x6e8] sm:$0xf] }
 0x656   :  { %3828 = vmatmul.bf16.gmra.mxu1 %v7875_v17 }
 0x657   :  { %4703 = vmatpush.bf16.msra.mxu1 %v9161_v9  ;;  %v7923_v9 = vor.u32 %v8877_v14, %v7920_v21  ;;  %v8889_v14 = vld [vmem:[#allocation3 + $0x6ec] sm:$0xf]  ;;  %v7968_v21 = vld [vmem:[#allocation3 + $0x6f8] sm:$0xf0] }
 0x65b   :  { %v3426_v26 = vpop.f32.mrf.mxu1  ;;  %4704 = vmatpush.bf16.msra.mxu1 %v10775_v51 }
 0x65c   :  { %v10931_v6 = vadd.f32 %v3426_v26, %v10779_v28  ;;  %v7934_v28 = vld [vmem:[#allocation3 + $0x6a8] sm:$0xf] }
 0x65d   :  { %v7935_v7 = vor.u32 %v8883_v2, %v7934_v28  ;;  %3706 = vmatmul.bf16.gmra.mxu2 %v7943_v49  ;;  %v10965_v28 = vld [vmem:[%s11488_s0 + $0xf0] sm:$0xff]  ;;  %v10971_v2 = vld [vmem:[%s11488_s0 + $0xe8] sm:$0xff] }
 0x65f   :  { %4705 = vmatpush.bf16.msra.mxu1 %v10784_v63  ;;  %3799 = vmatmul.bf16.gmra.mxu0 %v7935_v7 }
 0x663   :  { %v3429_v11 = vpop.f32.mrf.mxu1  ;;  %4706 = vmatpush.bf16.msra.mxu1 %v10790_v15  ;;  %v7907_v15 = vor.u32 %v8873_v36, %v7904_v50  ;;  %v8885_v50 = vld [vmem:[#allocation3 + $0x6cc] sm:$0xf] }
 0x664   :  { %v10936_v51 = vadd.f32 %v3429_v11, %v10794_v40  ;;  %v7944_v40 = vld [vmem:[#allocation3 + $0x6d0] sm:$0xf0] }
 0x665   :  { %v7947_v4 = vor.u32 %v8884_v20, %v7944_v40 }
 0x666   :  { %3833 = vmatmul.bf16.gmra.mxu1 %v7891_v39  ;;  %v8881_v39 = vld [vmem:[#allocation3 + $0x6ac] sm:$0xf] }
 0x667   :  { %3755 = vmatmul.bf16.gmra.mxu3 %v7947_v4  ;;  %v7939_v45 = vor.u32 %v8881_v39, %v7936_v41 }
 0x66b   :  { %v3431_v63 = vpop.f32.mrf.mxu1 }
 0x66c   :  { %v10939_v16 = vadd.f32 %v3431_v63, %v10797_v47  ;;  %v8887_v47 = vld [vmem:[#allocation3 + $0x6d4] sm:$0xf0] }
 0x66d   :  { %v7951_v44 = vor.u32 %v8887_v47, %v7950_v54  ;;  %3711 = vmatmul.bf16.gmra.mxu2 %v7959_v25  ;;  %v11000_v47 = vld [vmem:[%s11488_s0 + $0xc8] sm:$0xff] }
 0x66f   :  { %3804 = vmatmul.bf16.gmra.mxu0 %v7951_v44 }
 0x673   :  { %v3434_v60 = vpop.f32.mrf.mxu1 }
 0x674   :  { %v10942_v31 = vadd.f32 %v3434_v60, %v10800_v1  ;;  %v7960_v1 = vld [vmem:[#allocation3 + $0x6f0] sm:$0xf0] }
 0x675   :  { %v7963_v53 = vor.u32 %v8888_v5, %v7960_v1  ;;  %v10994_v60 = vld [vmem:[%s11488_s0 + $0xd0] sm:$0xff]  ;;  %v7971_v5 = vor.u32 %v8889_v14, %v7968_v21 }
 0x676   :  { %3838 = vmatmul.bf16.gmra.mxu1 %v7907_v15  ;;  %v7955_v15 = vor.u32 %v8885_v50, %v7952_v62 }
 0x677   :  { %3760 = vmatmul.bf16.gmra.mxu3 %v7963_v53  ;;  %v3677_v63 = vpop.f32.mrf.mxu2 }
 0x678   :  { %v3726_v36 = vpop.f32.mrf.mxu3 }
 0x679   :  { %v3775_v20 = vpop.f32.mrf.mxu0  ;;  %v3727_v22 = vadd.f32 %v3726_v36, %v3677_v63 }
 0x67b   :  { %v3436_v10 = vpop.f32.mrf.mxu1 }
 0x67c   :  { %v10945_v17 = vadd.f32 %v3436_v10, %v10803_v8  ;;  %v8891_v8 = vld [vmem:[#allocation3 + $0x6f4] sm:$0xf0]  ;;  %v11008_v10 = vld [vmem:[%s11488_s0 + $0xc0] sm:$0xff] }
 0x67d   :  { %v7967_v33 = vor.u32 %v8891_v8, %v7966_v55 }
 0x67f   :  { %3809 = vmatmul.bf16.gmra.mxu0 %v7967_v33  ;;  %v3679_v4 = vpop.f32.mrf.mxu2 }
 0x680   :  { %v3728_v54 = vpop.f32.mrf.mxu3 }
 0x681   :  { %v3729_v41 = vadd.f32 %v3728_v54, %v3679_v4 }
 0x683   :  { %v3439_v27 = vpop.f32.mrf.mxu1 }
 0x684   :  { %v10948_v26 = vadd.f32 %v3439_v27, %v10806_v56  ;;  %v10956_v56 = vld [vmem:[%s11488_s0 + $0xf8] sm:$0xff] }
 0x685   :  { %4306 = vmatpush.bf16.msrb.mxu2 %v10956_v56 }
 0x686   :  { %3843 = vmatmul.bf16.gmra.mxu1 %v7923_v9 }
 0x689   :  { %4307 = vmatpush.bf16.msrb.mxu2 %v10965_v28 }
 0x68b   :  { %v10950_v3 = vpop.f32.mrf.mxu1 }
 0x68c   :  { %11519 = vst [vmem:[#allocation54_spill] sm:$0xff] %v10950_v3 }
 0x68d   :  { %4308 = vmatpush.bf16.msrb.mxu2 %v10971_v2 }
 0x690   :  { %v3682_v37 = vpop.f32.mrf.mxu2 }
 0x693   :  { %v3444_v11 = vpop.f32.mrf.mxu1 }
 0x694   :  { %v10960_v46 = vadd.f32 %v3444_v11, %v10813_v13  ;;  %v10979_v13 = vld [vmem:[%s11488_s0 + $0xe0] sm:$0xff] }
 0x695   :  { %4309 = vmatpush.bf16.msrb.mxu2 %v10979_v13 }
 0x696   :  { %3848 = vmatmul.bf16.gmra.mxu1 %v7939_v45  ;;  %v3776_v45 = vadd.f32 %v3775_v20, %v3727_v22 }
 0x697   :  { %v3731_v29 = vpop.f32.mrf.mxu3 }
 0x698   :  { %v3684_v27 = vpop.f32.mrf.mxu2  ;;  %v3732_v3 = vadd.f32 %v3731_v29, %v3682_v37 }
 0x699   :  { %4310 = vmatpush.bf16.msrb.mxu2 %v10985_v0 }
 0x69b   :  { %v10974_v7 = vpop.f32.mrf.mxu1 }
 0x69d   :  { %4311 = vmatpush.bf16.msrb.mxu2 %v10994_v60 }
 0x69f   :  { %v3733_v55 = vpop.f32.mrf.mxu3 }
 0x6a0   :  { %v3687_v34 = vpop.f32.mrf.mxu2  ;;  %v3734_v63 = vadd.f32 %v3733_v55, %v3684_v27  ;;  %v9170_v27 = vld [vmem:[%s11488_s0 + $0x88] sm:$0xff] }
 0x6a1   :  { %4312 = vmatpush.bf16.msrb.mxu2 %v11000_v47 }
 0x6a3   :  { %v3449_v49 = vpop.f32.mrf.mxu1 }
 0x6a4   :  { %v10989_v40 = vadd.f32 %v3449_v49, %v10822_v19  ;;  %v3777_v19 = vpop.f32.mrf.mxu0 }
 0x6a5   :  { %4313 = vmatpush.bf16.msrb.mxu2 %v11008_v10  ;;  %v3778_v50 = vadd.f32 %v3777_v19, %v3729_v41 }
 0x6a6   :  { %3853 = vmatmul.bf16.gmra.mxu1 %v7955_v15 }
 0x6a7   :  { %v3736_v39 = vpop.f32.mrf.mxu3 }
 0x6a8   :  { %v3689_v14 = vpop.f32.mrf.mxu2 }
 0x6ab   :  { %v11003_v44 = vpop.f32.mrf.mxu1 }
 0x6ac   :  { %v3780_v1 = vpop.f32.mrf.mxu0 }
 0x6ad   :  { %v3781_v36 = vadd.f32 %v3780_v1, %v3732_v3  ;;  %v3737_v3 = vadd.f32 %v3736_v39, %v3687_v34 }
 0x6af   :  { %v3738_v21 = vpop.f32.mrf.mxu3 }
 0x6b0   :  { %v3692_v20 = vpop.f32.mrf.mxu2  ;;  %v3739_v29 = vadd.f32 %v3738_v21, %v3689_v14 }
 0x6b3   :  { %v3454_v9 = vpop.f32.mrf.mxu1 }
 0x6b4   :  { %v11012_v25 = vadd.f32 %v3454_v9, %v10830_v58  ;;  %v3782_v8 = vpop.f32.mrf.mxu0 }
 0x6b5   :  { %v3783_v54 = vadd.f32 %v3782_v8, %v3734_v63 }
 0x6b6   :  { %3858 = vmatmul.bf16.gmra.mxu1 %v7971_v5 }
 0x6b7   :  { %v3741_v4 = vpop.f32.mrf.mxu3 }
 0x6b8   :  { %v3742_v39 = vadd.f32 %v3741_v4, %v3692_v20 }
 0x6bb   :  { %v11014_v53 = vpop.f32.mrf.mxu1 }
 0x6bc   :  { %v3785_v11 = vpop.f32.mrf.mxu0 }
 0x6bd   :  { %v3786_v1 = vadd.f32 %v3785_v11, %v3737_v3 }
 0x6bf   :  { %v3743_v37 = vpop.f32.mrf.mxu3 }
 0x6c3   :  { %v3824_v33 = vpop.f32.mrf.mxu1 }
 0x6c4   :  { %v3825_v15 = vadd.f32 %v3824_v33, %v3776_v45  ;;  %v3787_v9 = vpop.f32.mrf.mxu0 }
 0x6cb   :  { %v3826_v62 = vpop.f32.mrf.mxu1 }
 0x6cc   :  { %v3827_v49 = vadd.f32 %v3826_v62, %v3778_v50  ;;  %v3790_v41 = vpop.f32.mrf.mxu0 }
 0x6cd   :  { %v3791_v14 = vadd.f32 %v3790_v41, %v3742_v39 }
 0x6ce   :  { %v3864_v58 = vpack.c.bf16 %v3827_v49, %v3825_v15 }
 0x6d0   :  { %7972 = vmatmul.msk.bf16.vlgmr.msra.gmra.mxu2 %vm1354_vm2, %v3864_v58 }
 0x6d1   :  { %4748 = vmatpush.bf16.msra.mxu2 %v10838_v23  ;;  %v3694_v23 = vpop.f32.mrf.mxu2 }
 0x6d2   :  { %v3744_v11 = vadd.f32 %v3743_v37, %v3694_v23 }
 0x6d3   :  { %v3829_v5 = vpop.f32.mrf.mxu1 }
 0x6d4   :  { %v3830_v33 = vadd.f32 %v3829_v5, %v3781_v36 }
 0x6d5   :  { %4749 = vmatpush.bf16.msra.mxu2 %v10844_v12 }
 0x6d9   :  { %4750 = vmatpush.bf16.msra.mxu2 %v10850_v24  ;;  %v3792_v24 = vpop.f32.mrf.mxu0  ;;  %v3697_v62 = vpop.f32.mrf.mxu2 }
 0x6da   :  { %v3793_v21 = vadd.f32 %v3792_v24, %v3744_v11 }
 0x6db   :  { %v3831_v19 = vpop.f32.mrf.mxu1 }
 0x6dc   :  { %v3832_v22 = vadd.f32 %v3831_v19, %v3783_v54 }
 0x6dd   :  { %4751 = vmatpush.bf16.msra.mxu2 %v10856_v32  ;;  %v3788_v32 = vadd.f32 %v3787_v9, %v3739_v29 }
 0x6de   :  { %v3865_v45 = vpack.c.bf16 %v3832_v22, %v3830_v33 }
 0x6e0   :  { %7973 = vmatmul.msk.bf16.gmra.mxu2 %vm1354_vm2, %v3865_v45 }
 0x6e1   :  { %4752 = vmatpush.bf16.msra.mxu2 %v10863_v38  ;;  %v3746_v38 = vpop.f32.mrf.mxu3  ;;  %v3699_v49 = vpop.f32.mrf.mxu2 }
 0x6e2   :  { %v3747_v22 = vadd.f32 %v3746_v38, %v3697_v62 }
 0x6e3   :  { %v3834_v12 = vpop.f32.mrf.mxu1 }
 0x6e4   :  { %v3835_v8 = vadd.f32 %v3834_v12, %v3786_v1 }
 0x6e5   :  { %4753 = vmatpush.bf16.msra.mxu2 %v10869_v18  ;;  %v3795_v18 = vpop.f32.mrf.mxu0 }
 0x6e6   :  { %v3796_v3 = vadd.f32 %v3795_v18, %v3747_v22 }
 0x6e9   :  { %4754 = vmatpush.bf16.msra.mxu2 %v9170_v27  ;;  %v3748_v58 = vpop.f32.mrf.mxu3  ;;  %v3702_v19 = vpop.f32.mrf.mxu2 }
 0x6ea   :  { %v3749_v12 = vadd.f32 %v3748_v58, %v3699_v49 }
 0x6eb   :  { %v3836_v55 = vpop.f32.mrf.mxu1 }
 0x6ec   :  { %v3837_v50 = vadd.f32 %v3836_v55, %v3788_v32 }
 0x6ed   :  { %4755 = vmatpush.bf16.msra.mxu2 %v10876_v30  ;;  %v3797_v9 = vpop.f32.mrf.mxu0 }
 0x6ee   :  { %v3866_v15 = vpack.c.bf16 %v3837_v50, %v3835_v8  ;;  %v3798_v20 = vadd.f32 %v3797_v9, %v3749_v12 }
 0x6f0   :  { %7974 = vmatmul.msk.bf16.gmra.mxu2 %vm1354_vm2, %v3866_v15 }
 0x6f1   :  { %v3751_v30 = vpop.f32.mrf.mxu3  ;;  %v3704_v4 = vpop.f32.mrf.mxu2 }
 0x6f2   :  { %v3752_v32 = vadd.f32 %v3751_v30, %v3702_v19 }
 0x6f3   :  { %v3839_v34 = vpop.f32.mrf.mxu1 }
 0x6f4   :  { %v3840_v63 = vadd.f32 %v3839_v34, %v3791_v14  ;;  %v7982_v14 = vld [vmem:[#allocation3 + $0x700] sm:$0xf] }
 0x6f5   :  { %v3800_v45 = vpop.f32.mrf.mxu0 }
 0x6f6   :  { %v3801_v15 = vadd.f32 %v3800_v45, %v3752_v32  ;;  %v8898_v32 = vld [vmem:[#allocation3 + $0x72c] sm:$0xf0] }
 0x6f9   :  { %v3753_v37 = vpop.f32.mrf.mxu3  ;;  %v3707_v55 = vpop.f32.mrf.mxu2 }
 0x6fa   :  { %v3754_v50 = vadd.f32 %v3753_v37, %v3704_v4 }
 0x6fb   :  { %v3841_v5 = vpop.f32.mrf.mxu1 }
 0x6fc   :  { %v3842_v36 = vadd.f32 %v3841_v5, %v3793_v21  ;;  %v8894_v21 = vld [vmem:[#allocation3 + $0x70c] sm:$0xf0]  ;;  %v8892_v5 = vld [vmem:[#allocation3 + $0x704] sm:$0xf] }
 0x6fd   :  { %v3802_v1 = vpop.f32.mrf.mxu0  ;;  %v7983_v9 = vor.u32 %v8894_v21, %v7982_v14  ;;  %v8899_v14 = vld [vmem:[#allocation3 + $0x734] sm:$0xf0] }
 0x6fe   :  { %v3867_v54 = vpack.c.bf16 %v3842_v36, %v3840_v63  ;;  %v3803_v38 = vadd.f32 %v3802_v1, %v3754_v50  ;;  %v7984_v63 = vld [vmem:[#allocation3 + $0x710] sm:$0xf0]  ;;  %v7990_v36 = vld [vmem:[#allocation3 + $0x708] sm:$0xf] }
 0x6ff   :  { %v7987_v19 = vor.u32 %v8892_v5, %v7984_v63  ;;  %4167 = vmatmul.bf16.vlgmr.msra.gmra.mxu3 %v7983_v9 }
 0x700   :  { %7975 = vmatmul.msk.bf16.gmra.mxu2 %vm1354_vm2, %v3867_v54  ;;  %v8895_v54 = vld [vmem:[#allocation3 + $0x714] sm:$0xf0] }
 0x701   :  { %v3756_v8 = vpop.f32.mrf.mxu3  ;;  %v3709_v49 = vpop.f32.mrf.mxu2  ;;  %v7991_v30 = vor.u32 %v8895_v54, %v7990_v36  ;;  %4216 = vmatmul.bf16.vlgmr.msrb.gmra.mxu0 %v7987_v19  ;;  %v8014_v19 = vld [vmem:[#allocation3 + $0x740] sm:$0xf] }
 0x702   :  { %v3757_v45 = vadd.f32 %v3756_v8, %v3707_v55 }
 0x703   :  { %v3844_v33 = vpop.f32.mrf.mxu1  ;;  %4265 = vmatmul.bf16.vlgmr.msrb.gmra.mxu1 %v7991_v30  ;;  %v8902_v30 = vld [vmem:[#allocation3 + $0x74c] sm:$0xf0] }
 0x704   :  { %v3845_v41 = vadd.f32 %v3844_v33, %v3796_v3 }
 0x705   :  { %v3805_v62 = vpop.f32.mrf.mxu0 }
 0x706   :  { %v3806_v3 = vadd.f32 %v3805_v62, %v3757_v45  ;;  %v8000_v62 = vld [vmem:[#allocation3 + $0x730] sm:$0xf0] }
 0x707   :  { %v8016_v45 = vld [vmem:[#allocation3 + $0x750] sm:$0xf0] }
 0x709   :  { %v3758_v58 = vpop.f32.mrf.mxu3 }
 0x70a   :  { %v3759_v12 = vadd.f32 %v3758_v58, %v3709_v49  ;;  %v8006_v58 = vld [vmem:[#allocation3 + $0x728] sm:$0xf] }
 0x70b   :  { %v3846_v23 = vpop.f32.mrf.mxu1  ;;  %v8007_v5 = vor.u32 %v8899_v14, %v8006_v58  ;;  %v8046_v58 = vld [vmem:[#allocation3 + $0x780] sm:$0xf] }
 0x70c   :  { %v3847_v29 = vadd.f32 %v3846_v23, %v3798_v20  ;;  %v3712_v20 = vpop.f32.mrf.mxu2 }
 0x70d   :  { %v3807_v33 = vpop.f32.mrf.mxu0 }
 0x70e   :  { %v3868_v24 = vpack.c.bf16 %v3847_v29, %v3845_v41  ;;  %v3808_v23 = vadd.f32 %v3807_v33, %v3759_v12  ;;  %v8015_v33 = vor.u32 %v8902_v30, %v8014_v19  ;;  %v8024_v19 = vld [vmem:[#allocation3 + $0x758] sm:$0xf0]  ;;  %v8054_v30 = vld [vmem:[#allocation3 + $0x788] sm:$0xf] }
 0x710   :  { %7976 = vmatmul.msk.bf16.gmra.mxu2 %vm1354_vm2, %v3868_v24 }
 0x711   :  { %v3761_v4 = vpop.f32.mrf.mxu3 }
 0x712   :  { %v3762_v8 = vadd.f32 %v3761_v4, %v3712_v20  ;;  %v7992_v20 = vld [vmem:[#allocation3 + $0x718] sm:$0xf0]  ;;  %v8022_v4 = vld [vmem:[#allocation3 + $0x748] sm:$0xf] }
 0x713   :  { %v3849_v27 = vpop.f32.mrf.mxu1  ;;  %4270 = vmatmul.bf16.gmra.mxu1 %v8007_v5 }
 0x714   :  { %v3850_v18 = vadd.f32 %v3849_v27, %v3801_v15  ;;  %v7998_v27 = vld [vmem:[#allocation3 + $0x720] sm:$0xf]  ;;  %v3714_v50 = vpop.f32.mrf.mxu2 }
 0x715   :  { %v3810_v24 = vpop.f32.mrf.mxu0  ;;  %v7999_v15 = vor.u32 %v8898_v32, %v7998_v27 }
 0x716   :  { %v3811_v49 = vadd.f32 %v3810_v24, %v3762_v8  ;;  %v8906_v24 = vld [vmem:[#allocation3 + $0x76c] sm:$0xf0]  ;;  %v8008_v8 = vld [vmem:[#allocation3 + $0x738] sm:$0xf0] }
 0x717   :  { %4172 = vmatmul.bf16.gmra.mxu3 %v7999_v15  ;;  %v8032_v15 = vld [vmem:[#allocation3 + $0x770] sm:$0xf0] }
 0x71b   :  { %v3851_v34 = vpop.f32.mrf.mxu1 }
 0x71c   :  { %v3852_v39 = vadd.f32 %v3851_v34, %v3803_v38  ;;  %v3763_v38 = vpop.f32.mrf.mxu3  ;;  %v8896_v34 = vld [vmem:[#allocation3 + $0x724] sm:$0xf] }
 0x71e   :  { %v3869_v11 = vpack.c.bf16 %v3852_v39, %v3850_v18  ;;  %v8003_v18 = vor.u32 %v8896_v34, %v8000_v62  ;;  %v3764_v39 = vadd.f32 %v3763_v38, %v3714_v50  ;;  %v8904_v50 = vld [vmem:[#allocation3 + $0x764] sm:$0xf]  ;;  %v8038_v34 = vld [vmem:[#allocation3 + $0x768] sm:$0xf]  ;;  %v8907_v62 = vld [vmem:[#allocation3 + $0x774] sm:$0xf0] }
 0x71f   :  { %v8035_v38 = vor.u32 %v8904_v50, %v8032_v15 }
 0x720   :  { %7977 = vmatmul.msk.bf16.gmra.mxu2 %vm1354_vm2, %v3869_v11  ;;  %v3812_v11 = vpop.f32.mrf.mxu0  ;;  %4221 = vmatmul.bf16.gmra.mxu0 %v8003_v18  ;;  %v8039_v18 = vor.u32 %v8907_v62, %v8038_v34 }
 0x721   :  { %v3813_v21 = vadd.f32 %v3812_v11, %v3764_v39 }
 0x723   :  { %v3854_v22 = vpop.f32.mrf.mxu1 }
 0x724   :  { %v3855_v41 = vadd.f32 %v3854_v22, %v3806_v3  ;;  %v8900_v22 = vld [vmem:[#allocation3 + $0x744] sm:$0xf]  ;;  %v8893_v3 = vld [vmem:[#allocation3 + $0x70c] sm:$0xf] }
 0x725   :  { %v8019_v12 = vor.u32 %v8900_v22, %v8016_v45 }
 0x727   :  { %4177 = vmatmul.bf16.gmra.mxu3 %v8015_v33 }
 0x72b   :  { %v3856_v37 = vpop.f32.mrf.mxu1 }
 0x72c   :  { %v3857_v29 = vadd.f32 %v3856_v37, %v3808_v23  ;;  %v8903_v23 = vld [vmem:[#allocation3 + $0x754] sm:$0xf0] }
 0x72d   :  { %v8023_v37 = vor.u32 %v8903_v23, %v8022_v4 }
 0x72e   :  { %v3870_v1 = vpack.c.bf16 %v3857_v29, %v3855_v41  ;;  %v7995_v41 = vor.u32 %v8893_v3, %v7992_v20  ;;  %v8030_v29 = vld [vmem:[#allocation3 + $0x760] sm:$0xf] }
 0x72f   :  { %4275 = vmatmul.bf16.gmra.mxu1 %v8023_v37  ;;  %v8062_v3 = vld [vmem:[#allocation3 + $0x7a0] sm:$0xf]  ;;  %v8912_v37 = vld [vmem:[#allocation3 + $0x7a4] sm:$0xf] }
 0x730   :  { %7978 = vmatmul.msk.bf16.gmra.mxu2 %vm1354_vm2, %v3870_v1  ;;  %4226 = vmatmul.bf16.gmra.mxu0 %v8019_v12  ;;  %v8031_v1 = vor.u32 %v8906_v24, %v8030_v29  ;;  %v8905_v24 = vld [vmem:[#allocation3 + $0x76c] sm:$0xf] }
 0x733   :  { %v3859_v55 = vpop.f32.mrf.mxu1 }
 0x734   :  { %v3860_v63 = vadd.f32 %v3859_v55, %v3811_v49  ;;  %v8897_v55 = vld [vmem:[#allocation3 + $0x72c] sm:$0xf] }
 0x735   :  { %v8011_v49 = vor.u32 %v8897_v55, %v8008_v8  ;;  %v8078_v8 = vld [vmem:[#allocation3 + $0x7c0] sm:$0xf] }
 0x737   :  { %4182 = vmatmul.bf16.gmra.mxu3 %v8031_v1  ;;  %v8040_v1 = vld [vmem:[#allocation3 + $0x778] sm:$0xf0] }
 0x738   :  { %v8043_v55 = vor.u32 %v8905_v24, %v8040_v1  ;;  %v4364_v24 = vld [vmem:[#allocation6 + $0xe] sm:$0x3] }
 0x739   :  { %v4390_v1 = vand.u32 %v4364_v24, %v10077_v52 }
 0x73b   :  { %v3861_v9 = vpop.f32.mrf.mxu1  ;;  %4399 = vmatpush.bf16.msrb.mxu3 %v4390_v1 }
 0x73c   :  { %v3862_v36 = vadd.f32 %v3861_v9, %v3813_v21  ;;  %v8908_v9 = vld [vmem:[#allocation3 + $0x784] sm:$0xf] }
 0x73e   :  { %v3871_v54 = vpack.c.bf16 %v3862_v36, %v3860_v63  ;;  %v8048_v63 = vld [vmem:[#allocation3 + $0x790] sm:$0xf0] }
 0x73f   :  { %4280 = vmatmul.bf16.gmra.mxu1 %v8039_v18  ;;  %v8051_v36 = vor.u32 %v8908_v9, %v8048_v63  ;;  %4797 = vmatpush.bf16.msra.mxu3 %v10956_v56 }
 0x740   :  { %7979 = vmatmul.msk.bf16.gmra.mxu2 %vm1354_vm2, %v3871_v54  ;;  %4231 = vmatmul.bf16.gmra.mxu0 %v8035_v38  ;;  %v8901_v54 = vld [vmem:[#allocation3 + $0x74c] sm:$0xf] }
 0x741   :  { %v8027_v12 = vor.u32 %v8901_v54, %v8024_v19  ;;  %v8094_v19 = vld [vmem:[#allocation3 + $0x7e0] sm:$0xf] }
 0x743   :  { %4798 = vmatpush.bf16.msra.mxu3 %v10965_v28 }
 0x747   :  { %4799 = vmatpush.bf16.msra.mxu3 %v10971_v2 }
 0x74b   :  { %4800 = vmatpush.bf16.msra.mxu3 %v10979_v13 }
 0x74f   :  { %4801 = vmatpush.bf16.msra.mxu3 %v10985_v0 }
 0x750   :  { %4314 = vmatmul.bf16.vlgmr.msrb.gmra.mxu2 %v7995_v41  ;;  %4236 = vmatmul.bf16.gmra.mxu0 %v8051_v36  ;;  %v8064_v41 = vld [vmem:[#allocation3 + $0x7b0] sm:$0xf0] }
 0x751   :  { %v8067_v29 = vor.u32 %v8912_v37, %v8064_v41 }
 0x753   :  { %v3910_v27 = vpop.f32.mrf.mxu2  ;;  %4802 = vmatpush.bf16.msra.mxu3 %v10994_v60 }
 0x754   :  { %v11035_v32 = vadd.f32 %v3910_v27, %v10910_v61  ;;  %v8910_v61 = vld [vmem:[#allocation3 + $0x78c] sm:$0xf0]  ;;  %v8070_v27 = vld [vmem:[#allocation3 + $0x7a8] sm:$0xf] }
 0x755   :  { %v8047_v14 = vor.u32 %v8910_v61, %v8046_v58  ;;  %v8909_v61 = vld [vmem:[#allocation3 + $0x78c] sm:$0xf] }
 0x757   :  { %4187 = vmatmul.bf16.gmra.mxu3 %v8047_v14  ;;  %v8056_v14 = vld [vmem:[#allocation3 + $0x798] sm:$0xf0] }
 0x758   :  { %v8059_v54 = vor.u32 %v8909_v61, %v8056_v14  ;;  %4803 = vmatpush.bf16.msra.mxu3 %v11000_v47 }
 0x75b   :  { %v3912_v39 = vpop.f32.mrf.mxu2 }
 0x75c   :  { %v11038_v11 = vadd.f32 %v3912_v39, %v10917_v35  ;;  %v8911_v35 = vld [vmem:[#allocation3 + $0x794] sm:$0xf0]  ;;  %v8916_v39 = vld [vmem:[#allocation3 + $0x7c4] sm:$0xf]  ;;  %4804 = vmatpush.bf16.msra.mxu3 %v11008_v10 }
 0x75d   :  { %v8055_v33 = vor.u32 %v8911_v35, %v8054_v30 }
 0x75f   :  { %4285 = vmatmul.bf16.gmra.mxu1 %v8055_v33 }
 0x760   :  { %4319 = vmatmul.bf16.gmra.mxu2 %v8011_v49  ;;  %4241 = vmatmul.bf16.gmra.mxu0 %v8067_v29  ;;  %v8080_v49 = vld [vmem:[#allocation3 + $0x7d0] sm:$0xf0] }
 0x761   :  { %v8083_v58 = vor.u32 %v8916_v39, %v8080_v49  ;;  %v8921_v39 = vld [vmem:[#allocation3 + $0x7ec] sm:$0xf]  ;;  %v8104_v49 = vld [vmem:[#allocation3 + $0x7f8] sm:$0xf0] }
 0x762   :  { %v8107_v61 = vor.u32 %v8921_v39, %v8104_v49 }
 0x763   :  { %v3915_v21 = vpop.f32.mrf.mxu2 }
 0x764   :  { %v11041_v5 = vadd.f32 %v3915_v21, %v10924_v48  ;;  %v8914_v48 = vld [vmem:[#allocation3 + $0x7ac] sm:$0xf0]  ;;  %v8086_v21 = vld [vmem:[#allocation3 + $0x7c8] sm:$0xf] }
 0x765   :  { %v8063_v20 = vor.u32 %v8914_v48, %v8062_v3  ;;  %v8913_v48 = vld [vmem:[#allocation3 + $0x7ac] sm:$0xf] }
 0x767   :  { %4192 = vmatmul.bf16.gmra.mxu3 %v8063_v20  ;;  %v8072_v20 = vld [vmem:[#allocation3 + $0x7b8] sm:$0xf0] }
 0x768   :  { %v8075_v29 = vor.u32 %v8913_v48, %v8072_v20 }
 0x76b   :  { %v3917_v22 = vpop.f32.mrf.mxu2 }
 0x76c   :  { %v11044_v45 = vadd.f32 %v3917_v22, %v10931_v6  ;;  %v8915_v6 = vld [vmem:[#allocation3 + $0x7b4] sm:$0xf0]  ;;  %v8920_v22 = vld [vmem:[#allocation3 + $0x7e4] sm:$0xf] }
 0x76d   :  { %v8071_v50 = vor.u32 %v8915_v6, %v8070_v27  ;;  %v8917_v6 = vld [vmem:[#allocation3 + $0x7cc] sm:$0xf] }
 0x76f   :  { %4290 = vmatmul.bf16.gmra.mxu1 %v8071_v50  ;;  %v8088_v50 = vld [vmem:[#allocation3 + $0x7d8] sm:$0xf0] }
 0x770   :  { %4324 = vmatmul.bf16.gmra.mxu2 %v8027_v12  ;;  %4246 = vmatmul.bf16.gmra.mxu0 %v8083_v58  ;;  %v8096_v12 = vld [vmem:[#allocation3 + $0x7f0] sm:$0xf0] }
 0x771   :  { %v8099_v3 = vor.u32 %v8920_v22, %v8096_v12 }
 0x773   :  { %v3920_v4 = vpop.f32.mrf.mxu2 }
 0x774   :  { %v11047_v23 = vadd.f32 %v3920_v4, %v10936_v51  ;;  %v8918_v51 = vld [vmem:[#allocation3 + $0x7cc] sm:$0xf0]  ;;  %v8102_v4 = vld [vmem:[#allocation3 + $0x7e8] sm:$0xf] }
 0x775   :  { %v8079_v34 = vor.u32 %v8918_v51, %v8078_v8 }
 0x777   :  { %4197 = vmatmul.bf16.gmra.mxu3 %v8079_v34 }
 0x77b   :  { %v3922_v15 = vpop.f32.mrf.mxu2 }
 0x77c   :  { %v11050_v38 = vadd.f32 %v3922_v15, %v10939_v16  ;;  %v8919_v16 = vld [vmem:[#allocation3 + $0x7d4] sm:$0xf0] }
 0x77d   :  { %v8087_v9 = vor.u32 %v8919_v16, %v8086_v21 }
 0x77e   :  { %v4217_v8 = vpop.f32.mrf.mxu0 }
 0x77f   :  { %4295 = vmatmul.bf16.gmra.mxu1 %v8087_v9 }
 0x780   :  { %4329 = vmatmul.bf16.gmra.mxu2 %v8043_v55  ;;  %4251 = vmatmul.bf16.gmra.mxu0 %v8099_v3  ;;  %v8091_v55 = vor.u32 %v8917_v6, %v8088_v50  ;;  %v4266_v34 = vpop.f32.mrf.mxu1 }
 0x782   :  { %v4168_v51 = vpop.f32.mrf.mxu3 }
 0x783   :  { %v3925_v62 = vpop.f32.mrf.mxu2 }
 0x784   :  { %v11053_v18 = vadd.f32 %v3925_v62, %v10942_v31  ;;  %v8922_v31 = vld [vmem:[#allocation3 + $0x7ec] sm:$0xf0] }
 0x785   :  { %v8095_v30 = vor.u32 %v8922_v31, %v8094_v19  ;;  %v4218_v19 = vadd.f32 %v4217_v8, %v4168_v51 }
 0x786   :  { %v4219_v56 = vpop.f32.mrf.mxu0 }
 0x787   :  { %4202 = vmatmul.bf16.gmra.mxu3 %v8095_v30 }
 0x788   :  { %v4268_v2 = vpop.f32.mrf.mxu1 }
 0x78a   :  { %v4170_v28 = vpop.f32.mrf.mxu3 }
 0x78b   :  { %v3927_v63 = vpop.f32.mrf.mxu2  ;;  %v4220_v47 = vadd.f32 %v4219_v56, %v4170_v28 }
 0x78c   :  { %v11056_v36 = vadd.f32 %v3927_v63, %v10945_v17  ;;  %v8923_v17 = vld [vmem:[#allocation3 + $0x7f4] sm:$0xf0] }
 0x78d   :  { %v8103_v37 = vor.u32 %v8923_v17, %v8102_v4  ;;  %v4269_v12 = vadd.f32 %v4268_v2, %v4220_v47 }
 0x78f   :  { %4300 = vmatmul.bf16.gmra.mxu1 %v8103_v37 }
 0x790   :  { %4334 = vmatmul.bf16.gmra.mxu2 %v8059_v54  ;;  %v4271_v21 = vpop.f32.mrf.mxu1 }
 0x793   :  { %v3930_v35 = vpop.f32.mrf.mxu2 }
 0x794   :  { %v11059_v33 = vadd.f32 %v3930_v35, %v10948_v26  ;;  %v4267_v35 = vadd.f32 %v4266_v34, %v4218_v19 }
 0x798   :  { %v4273_v63 = vpop.f32.mrf.mxu1 }
 0x79b   :  { %v11061_v41 = vpop.f32.mrf.mxu2 }
 0x79d   :  { %v4222_v13 = vpop.f32.mrf.mxu0 }
 0x7a0   :  { %4339 = vmatmul.bf16.gmra.mxu2 %v8075_v29 }
 0x7a3   :  { %v3935_v26 = vpop.f32.mrf.mxu2 }
 0x7a4   :  { %v11065_v27 = vadd.f32 %v3935_v26, %v10960_v46 }
 0x7a5   :  { %v4224_v16 = vpop.f32.mrf.mxu0 }
 0x7ab   :  { %v11069_v15 = vpop.f32.mrf.mxu2 }
 0x7ac   :  { %v4276_v22 = vpop.f32.mrf.mxu1 }
 0x7ad   :  { %v4227_v31 = vpop.f32.mrf.mxu0 }
 0x7b0   :  { %4344 = vmatmul.bf16.gmra.mxu2 %v8091_v55 }
 0x7b3   :  { %v3940_v62 = vpop.f32.mrf.mxu2 }
 0x7b4   :  { %v11074_v46 = vadd.f32 %v3940_v62, %v10989_v40  ;;  %v4173_v40 = vpop.f32.mrf.mxu3  ;;  %v4278_v37 = vpop.f32.mrf.mxu1 }
 0x7b5   :  { %v4223_v29 = vadd.f32 %v4222_v13, %v4173_v40 }
 0x7b7   :  { %v4272_v1 = vadd.f32 %v4271_v21, %v4223_v29 }
 0x7bb   :  { %v11078_v58 = vpop.f32.mrf.mxu2 }
 0x7bc   :  { %v4175_v9 = vpop.f32.mrf.mxu3  ;;  %v4281_v34 = vpop.f32.mrf.mxu1 }
 0x7bd   :  { %v4225_v24 = vadd.f32 %v4224_v16, %v4175_v9 }
 0x7bf   :  { %v4274_v50 = vadd.f32 %v4273_v63, %v4225_v24 }
 0x7c0   :  { %4349 = vmatmul.bf16.gmra.mxu2 %v8107_v61 }
 0x7c3   :  { %v3945_v14 = vpop.f32.mrf.mxu2 }
 0x7c4   :  { %v11083_v0 = vadd.f32 %v3945_v14, %v11012_v25  ;;  %v4178_v30 = vpop.f32.mrf.mxu3  ;;  %v4229_v25 = vpop.f32.mrf.mxu0 }
 0x7c5   :  { %v4228_v49 = vadd.f32 %v4227_v31, %v4178_v30  ;;  %v4283_v61 = vpop.f32.mrf.mxu1 }
 0x7c7   :  { %v4277_v14 = vadd.f32 %v4276_v22, %v4228_v49 }
 0x7cb   :  { %v11085_v60 = vpop.f32.mrf.mxu2 }
 0x7cc   :  { %v4180_v4 = vpop.f32.mrf.mxu3  ;;  %v4232_v26 = vpop.f32.mrf.mxu0 }
 0x7cd   :  { %v4230_v2 = vadd.f32 %v4229_v25, %v4180_v4 }
 0x7cf   :  { %v4279_v13 = vadd.f32 %v4278_v37, %v4230_v2 }
 0x7d3   :  { %v4315_v54 = vpop.f32.mrf.mxu2 }
 0x7d4   :  { %v4316_v3 = vadd.f32 %v4315_v54, %v4267_v35  ;;  %v4183_v6 = vpop.f32.mrf.mxu3  ;;  %v4234_v56 = vpop.f32.mrf.mxu0 }
 0x7d5   :  { %v4233_v35 = vadd.f32 %v4232_v26, %v4183_v6 }
 0x7db   :  { %v4317_v10 = vpop.f32.mrf.mxu2 }
 0x7dc   :  { %v4318_v48 = vadd.f32 %v4317_v10, %v4269_v12  ;;  %v4185_v39 = vpop.f32.mrf.mxu3  ;;  %v4237_v9 = vpop.f32.mrf.mxu0 }
 0x7dd   :  { %v4286_v19 = vpop.f32.mrf.mxu1  ;;  %v4235_v12 = vadd.f32 %v4234_v56, %v4185_v39 }
 0x7de   :  { %v4355_v20 = vpack.c.bf16 %v4318_v48, %v4316_v3  ;;  %v4282_v48 = vadd.f32 %v4281_v34, %v4233_v35  ;;  %v8126_v35 = vld [vmem:[#allocation3 + $0x808] sm:$0xf] }
 0x7df   :  { %v4284_v31 = vadd.f32 %v4283_v61, %v4235_v12  ;;  %v8927_v12 = vld [vmem:[#allocation3 + $0x814] sm:$0xf0] }
 0x7e0   :  { %8108 = vmatmul.msk.bf16.vlgmr.msrb.gmra.mxu3 %vm1354_vm2, %v4355_v20 }
 0x7e3   :  { %v4320_v17 = vpop.f32.mrf.mxu2 }
 0x7e4   :  { %v4321_v8 = vadd.f32 %v4320_v17, %v4272_v1  ;;  %v4188_v63 = vpop.f32.mrf.mxu3  ;;  %v4239_v10 = vpop.f32.mrf.mxu0 }
 0x7e5   :  { %v4288_v20 = vpop.f32.mrf.mxu1  ;;  %v4238_v24 = vadd.f32 %v4237_v9, %v4188_v63 }
 0x7eb   :  { %v4322_v55 = vpop.f32.mrf.mxu2 }
 0x7ec   :  { %v4323_v51 = vadd.f32 %v4322_v55, %v4274_v50  ;;  %v4190_v3 = vpop.f32.mrf.mxu3  ;;  %v4242_v17 = vpop.f32.mrf.mxu0  ;;  %v4287_v55 = vadd.f32 %v4286_v19, %v4238_v24 }
 0x7ed   :  { %v4291_v1 = vpop.f32.mrf.mxu1  ;;  %v4240_v50 = vadd.f32 %v4239_v10, %v4190_v3  ;;  %v8118_v10 = vld [vmem:[#allocation3 + $0x800] sm:$0xf]  ;;  %v8127_v3 = vor.u32 %v8927_v12, %v8126_v35 }
 0x7ee   :  { %v4356_v62 = vpack.c.bf16 %v4323_v51, %v4321_v8 }
 0x7ef   :  { %v4289_v26 = vadd.f32 %v4288_v20, %v4240_v50  ;;  %4756 = vmatmul.bf16.vlgmr.msra.gmra.mxu2 %v8127_v3  ;;  %v8158_v3 = vld [vmem:[#allocation3 + $0x848] sm:$0xf] }
 0x7f0   :  { %8109 = vmatmul.msk.bf16.gmra.mxu3 %vm1354_vm2, %v4356_v62 }
 0x7f3   :  { %v4325_v28 = vpop.f32.mrf.mxu2 }
 0x7f4   :  { %v4326_v21 = vadd.f32 %v4325_v28, %v4277_v14  ;;  %v4193_v37 = vpop.f32.mrf.mxu3  ;;  %v4244_v6 = vpop.f32.mrf.mxu0 }
 0x7f5   :  { %v4293_v28 = vpop.f32.mrf.mxu1  ;;  %v4243_v49 = vadd.f32 %v4242_v17, %v4193_v37 }
 0x7fb   :  { %v4327_v40 = vpop.f32.mrf.mxu2 }
 0x7fc   :  { %v4328_v16 = vadd.f32 %v4327_v40, %v4279_v13  ;;  %v4195_v51 = vpop.f32.mrf.mxu3  ;;  %v4247_v2 = vpop.f32.mrf.mxu0  ;;  %v4292_v13 = vadd.f32 %v4291_v1, %v4243_v49 }
 0x7fd   :  { %v4245_v14 = vadd.f32 %v4244_v6, %v4195_v51  ;;  %v4296_v40 = vpop.f32.mrf.mxu1 }
 0x7fe   :  { %v4357_v54 = vpack.c.bf16 %v4328_v16, %v4326_v21 }
 0x7ff   :  { %v4294_v21 = vadd.f32 %v4293_v28, %v4245_v14  ;;  %v8142_v28 = vld [vmem:[#allocation3 + $0x828] sm:$0xf]  ;;  %v8930_v14 = vld [vmem:[#allocation3 + $0x82c] sm:$0xf0] }
 0x800   :  { %8110 = vmatmul.msk.bf16.gmra.mxu3 %vm1354_vm2, %v4357_v54 }
 0x803   :  { %v4330_v47 = vpop.f32.mrf.mxu2 }
 0x804   :  { %v4331_v22 = vadd.f32 %v4330_v47, %v4282_v48  ;;  %v4198_v61 = vpop.f32.mrf.mxu3  ;;  %v4249_v19 = vpop.f32.mrf.mxu0  ;;  %v8926_v48 = vld [vmem:[#allocation3 + $0x80c] sm:$0xf0] }
 0x805   :  { %v8119_v20 = vor.u32 %v8926_v48, %v8118_v10  ;;  %v4248_v17 = vadd.f32 %v4247_v2, %v4198_v61  ;;  %v8134_v61 = vld [vmem:[#allocation3 + $0x820] sm:$0xf]  ;;  %v8935_v48 = vld [vmem:[#allocation3 + $0x854] sm:$0xf0] }
 0x807   :  { %4658 = vmatmul.bf16.vlgmr.msra.gmra.mxu0 %v8119_v20  ;;  %v8934_v20 = vld [vmem:[#allocation3 + $0x84c] sm:$0xf0] }
 0x80b   :  { %v4332_v30 = vpop.f32.mrf.mxu2 }
 0x80c   :  { %v4333_v25 = vadd.f32 %v4332_v30, %v4284_v31  ;;  %v4200_v47 = vpop.f32.mrf.mxu3  ;;  %v8924_v31 = vld [vmem:[#allocation3 + $0x804] sm:$0xf]  ;;  %v8120_v30 = vld [vmem:[#allocation3 + $0x810] sm:$0xf0]  ;;  %v4252_v24 = vpop.f32.mrf.mxu0 }
 0x80d   :  { %v4250_v37 = vadd.f32 %v4249_v19, %v4200_v47 }
 0x80e   :  { %v4358_v4 = vpack.c.bf16 %v4333_v25, %v4331_v22  ;;  %v8123_v22 = vor.u32 %v8924_v31, %v8120_v30  ;;  %v4298_v25 = vpop.f32.mrf.mxu1  ;;  %v8159_v31 = vor.u32 %v8935_v48, %v8158_v3  ;;  %v8150_v30 = vld [vmem:[#allocation3 + $0x840] sm:$0xf] }
 0x80f   :  { %v4299_v50 = vadd.f32 %v4298_v25, %v4250_v37  ;;  %v8151_v25 = vor.u32 %v8934_v20, %v8150_v30  ;;  %v8925_v37 = vld [vmem:[#allocation3 + $0x80c] sm:$0xf]  ;;  %v8947_v30 = vld [vmem:[#allocation3 + $0x8b4] sm:$0xf0] }
 0x810   :  { %8111 = vmatmul.msk.bf16.gmra.mxu3 %vm1354_vm2, %v4358_v4  ;;  %4707 = vmatmul.bf16.vlgmr.msra.gmra.mxu1 %v8123_v22  ;;  %v8932_v22 = vld [vmem:[#allocation3 + $0x844] sm:$0xf] }
 0x813   :  { %v4335_v29 = vpop.f32.mrf.mxu2 }
 0x814   :  { %v4336_v34 = vadd.f32 %v4335_v29, %v4287_v55  ;;  %v4297_v29 = vadd.f32 %v4296_v40, %v4248_v17  ;;  %v4203_v1 = vpop.f32.mrf.mxu3  ;;  %v8135_v40 = vor.u32 %v8930_v14, %v8134_v61 }
 0x815   :  { %v4253_v49 = vadd.f32 %v4252_v24, %v4203_v1 }
 0x817   :  { %4663 = vmatmul.bf16.gmra.mxu0 %v8135_v40  ;;  %v8943_v40 = vld [vmem:[#allocation3 + $0x894] sm:$0xf0] }
 0x81b   :  { %v4337_v8 = vpop.f32.mrf.mxu2 }
 0x81c   :  { %v4338_v62 = vadd.f32 %v4337_v8, %v4289_v26  ;;  %v4301_v8 = vpop.f32.mrf.mxu1 }
 0x81e   :  { %v4359_v56 = vpack.c.bf16 %v4338_v62, %v4336_v34  ;;  %v4254_v34 = vpop.f32.mrf.mxu0  ;;  %v4205_v62 = vpop.f32.mrf.mxu3 }
 0x820   :  { %8112 = vmatmul.msk.bf16.gmra.mxu3 %vm1354_vm2, %v4359_v56 }
 0x823   :  { %v4340_v39 = vpop.f32.mrf.mxu2 }
 0x824   :  { %v4341_v9 = vadd.f32 %v4340_v39, %v4292_v13  ;;  %v8931_v39 = vld [vmem:[#allocation3 + $0x834] sm:$0xf0]  ;;  %v8928_v13 = vld [vmem:[#allocation3 + $0x824] sm:$0xf] }
 0x825   :  { %v8143_v2 = vor.u32 %v8931_v39, %v8142_v28  ;;  %v8929_v39 = vld [vmem:[#allocation3 + $0x82c] sm:$0xf] }
 0x827   :  { %4761 = vmatmul.bf16.gmra.mxu2 %v8143_v2  ;;  %4668 = vmatmul.bf16.gmra.mxu0 %v8151_v25  ;;  %v8198_v25 = vld [vmem:[#allocation3 + $0x8a0] sm:$0xf] }
 0x82b   :  { %v4342_v16 = vpop.f32.mrf.mxu2 }
 0x82c   :  { %v4343_v63 = vadd.f32 %v4342_v16, %v4294_v21  ;;  %v8136_v21 = vld [vmem:[#allocation3 + $0x830] sm:$0xf0]  ;;  %v4255_v16 = vadd.f32 %v4254_v34, %v4205_v62  ;;  %v8936_v34 = vld [vmem:[#allocation3 + $0x864] sm:$0xf] }
 0x82e   :  { %v4360_v54 = vpack.c.bf16 %v4343_v63, %v4341_v9  ;;  %v8139_v9 = vor.u32 %v8928_v13, %v8136_v21  ;;  %v4303_v63 = vpop.f32.mrf.mxu1  ;;  %v8190_v13 = vld [vmem:[#allocation3 + $0x888] sm:$0xf] }
 0x82f   :  { %v4304_v19 = vadd.f32 %v4303_v63, %v4255_v16  ;;  %v8191_v16 = vor.u32 %v8943_v40, %v8190_v13  ;;  %v8942_v63 = vld [vmem:[#allocation3 + $0x88c] sm:$0xf0] }
 0x830   :  { %8113 = vmatmul.msk.bf16.gmra.mxu3 %vm1354_vm2, %v4360_v54  ;;  %v4302_v54 = vadd.f32 %v4301_v8, %v4253_v49  ;;  %4712 = vmatmul.bf16.gmra.mxu1 %v8139_v9  ;;  %v8166_v8 = vld [vmem:[#allocation3 + $0x860] sm:$0xf]  ;;  %v8144_v49 = vld [vmem:[#allocation3 + $0x838] sm:$0xf0] }
 0x831   :  { %v8147_v14 = vor.u32 %v8929_v39, %v8144_v49  ;;  %v8182_v9 = vld [vmem:[#allocation3 + $0x880] sm:$0xf]  ;;  %v8948_v39 = vld [vmem:[#allocation3 + $0x8c4] sm:$0xf] }
 0x833   :  { %v4345_v4 = vpop.f32.mrf.mxu2 }
 0x834   :  { %v4346_v26 = vadd.f32 %v4345_v4, %v4297_v29  ;;  %v8152_v4 = vld [vmem:[#allocation3 + $0x850] sm:$0xf0]  ;;  %v8128_v29 = vld [vmem:[#allocation3 + $0x818] sm:$0xf0] }
 0x835   :  { %v8155_v17 = vor.u32 %v8932_v22, %v8152_v4  ;;  %v8131_v24 = vor.u32 %v8925_v37, %v8128_v29  ;;  %v8946_v4 = vld [vmem:[#allocation3 + $0x8ac] sm:$0xf0]  ;;  %v8200_v29 = vld [vmem:[#allocation3 + $0x8b0] sm:$0xf0] }
 0x836   :  { %v8199_v37 = vor.u32 %v8946_v4, %v8198_v25 }
 0x837   :  { %4766 = vmatmul.bf16.gmra.mxu2 %v8159_v31  ;;  %v8206_v31 = vld [vmem:[#allocation3 + $0x8a8] sm:$0xf] }
 0x838   :  { %v8207_v22 = vor.u32 %v8947_v30, %v8206_v31 }
 0x83b   :  { %v4347_v55 = vpop.f32.mrf.mxu2 }
 0x83c   :  { %v4348_v6 = vadd.f32 %v4347_v55, %v4299_v50  ;;  %v8174_v50 = vld [vmem:[#allocation3 + $0x868] sm:$0xf]  ;;  %v8939_v55 = vld [vmem:[#allocation3 + $0x874] sm:$0xf0] }
 0x83e   :  { %v4361_v51 = vpack.c.bf16 %v4348_v6, %v4346_v26  ;;  %v8175_v6 = vor.u32 %v8939_v55, %v8174_v50 }
 0x840   :  { %8114 = vmatmul.msk.bf16.gmra.mxu3 %vm1354_vm2, %v4361_v51  ;;  %4717 = vmatmul.bf16.gmra.mxu1 %v8155_v17  ;;  %v8938_v51 = vld [vmem:[#allocation3 + $0x86c] sm:$0xf0]  ;;  %v8944_v17 = vld [vmem:[#allocation3 + $0x8a4] sm:$0xf] }
 0x841   :  { %v8167_v62 = vor.u32 %v8938_v51, %v8166_v8  ;;  %v8222_v8 = vld [vmem:[#allocation3 + $0x8c8] sm:$0xf]  ;;  %v8951_v51 = vld [vmem:[#allocation3 + $0x8d4] sm:$0xf0] }
 0x843   :  { %v4350_v56 = vpop.f32.mrf.mxu2  ;;  %4673 = vmatmul.bf16.gmra.mxu0 %v8167_v62  ;;  %v8223_v62 = vor.u32 %v8951_v51, %v8222_v8  ;;  %v8953_v51 = vld [vmem:[#allocation3 + $0x8ec] sm:$0xf] }
 0x844   :  { %v4351_v35 = vadd.f32 %v4350_v56, %v4302_v54  ;;  %v8168_v56 = vld [vmem:[#allocation3 + $0x870] sm:$0xf0]  ;;  %v8940_v54 = vld [vmem:[#allocation3 + $0x884] sm:$0xf] }
 0x845   :  { %v8171_v28 = vor.u32 %v8936_v34, %v8168_v56  ;;  %v8214_v56 = vld [vmem:[#allocation3 + $0x8c0] sm:$0xf] }
 0x847   :  { %4771 = vmatmul.bf16.gmra.mxu2 %v8175_v6 }
 0x84b   :  { %v4352_v47 = vpop.f32.mrf.mxu2 }
 0x84c   :  { %v4353_v12 = vadd.f32 %v4352_v47, %v4304_v19  ;;  %v8183_v19 = vor.u32 %v8942_v63, %v8182_v9  ;;  %v8184_v47 = vld [vmem:[#allocation3 + $0x890] sm:$0xf0]  ;;  %v8238_v9 = vld [vmem:[#allocation3 + $0x8e8] sm:$0xf]  ;;  %v8955_v63 = vld [vmem:[#allocation3 + $0x8f4] sm:$0xf0] }
 0x84e   :  { %v4362_v10 = vpack.c.bf16 %v4353_v12, %v4351_v35  ;;  %v8187_v35 = vor.u32 %v8940_v54, %v8184_v47  ;;  %v8160_v12 = vld [vmem:[#allocation3 + $0x858] sm:$0xf0]  ;;  %v8230_v47 = vld [vmem:[#allocation3 + $0x8e0] sm:$0xf] }
 0x850   :  { %8115 = vmatmul.msk.bf16.gmra.mxu3 %vm1354_vm2, %v4362_v10  ;;  %4722 = vmatmul.bf16.gmra.mxu1 %v8171_v28  ;;  %v8950_v28 = vld [vmem:[#allocation3 + $0x8cc] sm:$0xf0] }
 0x851   :  { %v8215_v49 = vor.u32 %v8950_v28, %v8214_v56 }
 0x853   :  { %4678 = vmatmul.bf16.gmra.mxu0 %v8183_v19  ;;  %v8239_v19 = vor.u32 %v8955_v63, %v8238_v9 }
 0x857   :  { %4776 = vmatmul.bf16.gmra.mxu2 %v8191_v16 }
 0x860   :  { %4805 = vmatmul.bf16.vlgmr.msra.gmra.mxu3 %v8131_v24  ;;  %4727 = vmatmul.bf16.gmra.mxu1 %v8187_v35  ;;  %v8203_v24 = vor.u32 %v8944_v17, %v8200_v29  ;;  %v8954_v35 = vld [vmem:[#allocation3 + $0x8ec] sm:$0xf0]  ;;  %v8949_v17 = vld [vmem:[#allocation3 + $0x8cc] sm:$0xf] }
 0x863   :  { %v4401_v1 = vpop.f32.mrf.mxu3  ;;  %4683 = vmatmul.bf16.gmra.mxu0 %v8199_v37  ;;  %v8224_v37 = vld [vmem:[#allocation3 + $0x8d8] sm:$0xf0] }
 0x864   :  { %v11096_v26 = vadd.f32 %v4401_v1, %v11035_v32  ;;  %v8176_v1 = vld [vmem:[#allocation3 + $0x878] sm:$0xf0] }
 0x867   :  { %4781 = vmatmul.bf16.gmra.mxu2 %v8207_v22  ;;  %v4855_v22 = vld [vmem:[#allocation6 + $0x10] sm:$0x3] }
 0x86b   :  { %v4403_v2 = vpop.f32.mrf.mxu3 }
 0x86c   :  { %v11099_v61 = vadd.f32 %v4403_v2, %v11038_v11  ;;  %v8933_v11 = vld [vmem:[#allocation3 + $0x84c] sm:$0xf]  ;;  %v8216_v2 = vld [vmem:[#allocation3 + $0x8d0] sm:$0xf0] }
 0x86d   :  { %v8163_v48 = vor.u32 %v8933_v11, %v8160_v12  ;;  %v8952_v11 = vld [vmem:[#allocation3 + $0x8e4] sm:$0xf]  ;;  %v8231_v12 = vor.u32 %v8954_v35, %v8230_v47 }
 0x870   :  { %4810 = vmatmul.bf16.gmra.mxu3 %v8147_v14  ;;  %4732 = vmatmul.bf16.gmra.mxu1 %v8203_v24  ;;  %v8219_v14 = vor.u32 %v8948_v39, %v8216_v2  ;;  %v8227_v24 = vor.u32 %v8949_v17, %v8224_v37 }
 0x873   :  { %v4406_v32 = vpop.f32.mrf.mxu3  ;;  %4688 = vmatmul.bf16.gmra.mxu0 %v8215_v49 }
 0x874   :  { %v11102_v21 = vadd.f32 %v4406_v32, %v11041_v5  ;;  %v8192_v32 = vld [vmem:[#allocation3 + $0x898] sm:$0xf0] }
 0x877   :  { %4786 = vmatmul.bf16.gmra.mxu2 %v8223_v62  ;;  %v8240_v62 = vld [vmem:[#allocation3 + $0x8f8] sm:$0xf0] }
 0x878   :  { %v8243_v28 = vor.u32 %v8953_v51, %v8240_v62 }
 0x87b   :  { %v4408_v10 = vpop.f32.mrf.mxu3 }
 0x87c   :  { %v11105_v3 = vadd.f32 %v4408_v10, %v11044_v45  ;;  %v8937_v45 = vld [vmem:[#allocation3 + $0x86c] sm:$0xf]  ;;  %v8232_v10 = vld [vmem:[#allocation3 + $0x8f0] sm:$0xf0] }
 0x87d   :  { %v8179_v6 = vor.u32 %v8937_v45, %v8176_v1 }
 0x880   :  { %4815 = vmatmul.bf16.gmra.mxu3 %v8163_v48  ;;  %4737 = vmatmul.bf16.gmra.mxu1 %v8219_v14  ;;  %v8235_v48 = vor.u32 %v8952_v11, %v8232_v10 }
 0x883   :  { %v4411_v5 = vpop.f32.mrf.mxu3  ;;  %4693 = vmatmul.bf16.gmra.mxu0 %v8231_v12 }
 0x884   :  { %v11108_v20 = vadd.f32 %v4411_v5, %v11047_v23  ;;  %v8208_v5 = vld [vmem:[#allocation3 + $0x8b8] sm:$0xf0]  ;;  %v4659_v45 = vpop.f32.mrf.mxu0 }
 0x887   :  { %4791 = vmatmul.bf16.gmra.mxu2 %v8239_v19 }
 0x88b   :  { %v4413_v50 = vpop.f32.mrf.mxu3 }
 0x88c   :  { %v11111_v55 = vadd.f32 %v4413_v50, %v11050_v38  ;;  %v8941_v38 = vld [vmem:[#allocation3 + $0x88c] sm:$0xf]  ;;  %v4757_v50 = vpop.f32.mrf.mxu2  ;;  %v4661_v8 = vpop.f32.mrf.mxu0 }
 0x88d   :  { %v8195_v16 = vor.u32 %v8941_v38, %v8192_v32  ;;  %v4708_v1 = vpop.f32.mrf.mxu1 }
 0x88e   :  { %v4709_v9 = vadd.f32 %v4708_v1, %v4659_v45 }
 0x890   :  { %4820 = vmatmul.bf16.gmra.mxu3 %v8179_v6  ;;  %4742 = vmatmul.bf16.gmra.mxu1 %v8235_v48  ;;  %v4758_v35 = vadd.f32 %v4757_v50, %v4709_v9 }
 0x893   :  { %v4416_v23 = vpop.f32.mrf.mxu3 }
 0x894   :  { %v11114_v34 = vadd.f32 %v4416_v23, %v11053_v18  ;;  %v4664_v39 = vpop.f32.mrf.mxu0 }
 0x89b   :  { %v4418_v13 = vpop.f32.mrf.mxu3 }
 0x89c   :  { %v11117_v40 = vadd.f32 %v4418_v13, %v11056_v36  ;;  %v8945_v36 = vld [vmem:[#allocation3 + $0x8ac] sm:$0xf]  ;;  %v4666_v32 = vpop.f32.mrf.mxu0 }
 0x89d   :  { %v8211_v30 = vor.u32 %v8945_v36, %v8208_v5 }
 0x8a0   :  { %4825 = vmatmul.bf16.gmra.mxu3 %v8195_v16 }
 0x8a3   :  { %v4421_v18 = vpop.f32.mrf.mxu3 }
 0x8a4   :  { %v11120_v54 = vadd.f32 %v4421_v18, %v11059_v33  ;;  %v4881_v33 = vand.u32 %v4855_v22, %v10077_v52  ;;  %v4710_v52 = vpop.f32.mrf.mxu1  ;;  %v4669_v63 = vpop.f32.mrf.mxu0 }
 0x8a5   :  { %v4711_v47 = vadd.f32 %v4710_v52, %v4661_v8 }
 0x8a6   :  { %4890 = vmatpush.bf16.msrb.mxu0 %v4881_v33 }
 0x8ab   :  { %v11122_v31 = vpop.f32.mrf.mxu3 }
 0x8ad   :  { %v4713_v49 = vpop.f32.mrf.mxu1 }
 0x8b0   :  { %4830 = vmatmul.bf16.gmra.mxu3 %v8211_v30 }
 0x8b3   :  { %v4426_v25 = vpop.f32.mrf.mxu3 }
 0x8b4   :  { %v11126_v4 = vadd.f32 %v4426_v25, %v11065_v27  ;;  %v4759_v27 = vpop.f32.mrf.mxu2  ;;  %v4714_v25 = vadd.f32 %v4713_v49, %v4664_v39 }
 0x8b5   :  { %v4760_v12 = vadd.f32 %v4759_v27, %v4711_v47 }
 0x8bb   :  { %v11128_v29 = vpop.f32.mrf.mxu3 }
 0x8bc   :  { %v4762_v38 = vpop.f32.mrf.mxu2 }
 0x8bd   :  { %v4763_v37 = vadd.f32 %v4762_v38, %v4714_v25 }
 0x8c0   :  { %4835 = vmatmul.bf16.gmra.mxu3 %v8227_v24 }
 0x8c3   :  { %v4431_v6 = vpop.f32.mrf.mxu3 }
 0x8c4   :  { %v11131_v23 = vadd.f32 %v4431_v6, %v11074_v46  ;;  %v4715_v46 = vpop.f32.mrf.mxu1  ;;  %v4764_v16 = vpop.f32.mrf.mxu2 }
 0x8c5   :  { %v4716_v17 = vadd.f32 %v4715_v46, %v4666_v32 }
 0x8c7   :  { %v4765_v1 = vadd.f32 %v4764_v16, %v4716_v17 }
 0x8cb   :  { %v11133_v56 = vpop.f32.mrf.mxu3 }
 0x8cc   :  { %v4718_v19 = vpop.f32.mrf.mxu1  ;;  %v4767_v11 = vpop.f32.mrf.mxu2 }
 0x8d0   :  { %4840 = vmatmul.bf16.gmra.mxu3 %v8243_v28 }
 0x8d3   :  { %v4436_v2 = vpop.f32.mrf.mxu3 }
 0x8d4   :  { %v11136_v14 = vadd.f32 %v4436_v2, %v11083_v0  ;;  %v4671_v0 = vpop.f32.mrf.mxu0  ;;  %v4720_v30 = vpop.f32.mrf.mxu1  ;;  %v4719_v2 = vadd.f32 %v4718_v19, %v4669_v63 }
 0x8d5   :  { %v4769_v33 = vpop.f32.mrf.mxu2 }
 0x8d6   :  { %v4768_v47 = vadd.f32 %v4767_v11, %v4719_v2 }
 0x8db   :  { %v11138_v13 = vpop.f32.mrf.mxu3 }
 0x8dc   :  { %v4674_v24 = vpop.f32.mrf.mxu0  ;;  %v4723_v45 = vpop.f32.mrf.mxu1 }
 0x8dd   :  { %v4772_v52 = vpop.f32.mrf.mxu2 }
 0x8e3   :  { %v4806_v18 = vpop.f32.mrf.mxu3 }
 0x8e4   :  { %v4807_v48 = vadd.f32 %v4806_v18, %v4758_v35  ;;  %v4676_v62 = vpop.f32.mrf.mxu0  ;;  %v4725_v28 = vpop.f32.mrf.mxu1  ;;  %v4721_v18 = vadd.f32 %v4720_v30, %v4671_v0 }
 0x8e5   :  { %v4774_v9 = vpop.f32.mrf.mxu2 }
 0x8e6   :  { %v4770_v39 = vadd.f32 %v4769_v33, %v4721_v18 }
 0x8eb   :  { %v4808_v10 = vpop.f32.mrf.mxu3 }
 0x8ec   :  { %v4809_v36 = vadd.f32 %v4808_v10, %v4760_v12  ;;  %v4679_v46 = vpop.f32.mrf.mxu0  ;;  %v4728_v16 = vpop.f32.mrf.mxu1 }
 0x8ed   :  { %v4777_v12 = vpop.f32.mrf.mxu2 }
 0x8ee   :  { %v4846_v5 = vpack.c.bf16 %v4809_v36, %v4807_v48  ;;  %v4724_v48 = vadd.f32 %v4723_v45, %v4674_v24  ;;  %v4726_v36 = vadd.f32 %v4725_v28, %v4676_v62 }
 0x8f0   :  { %8244 = vmatmul.msk.bf16.vlgmr.msrb.gmra.mxu0 %vm1354_vm2, %v4846_v5  ;;  %v4773_v25 = vadd.f32 %v4772_v52, %v4724_v48  ;;  %v4775_v63 = vadd.f32 %v4774_v9, %v4726_v36 }
 0x8f3   :  { %v4811_v22 = vpop.f32.mrf.mxu3 }
 0x8f4   :  { %v4812_v50 = vadd.f32 %v4811_v22, %v4763_v37  ;;  %v4681_v5 = vpop.f32.mrf.mxu0  ;;  %v4730_v22 = vpop.f32.mrf.mxu1 }
 0x8f5   :  { %v4779_v0 = vpop.f32.mrf.mxu2 }
 0x8fb   :  { %v4813_v6 = vpop.f32.mrf.mxu3 }
 0x8fc   :  { %v4814_v8 = vadd.f32 %v4813_v6, %v4765_v1  ;;  %v4684_v17 = vpop.f32.mrf.mxu0  ;;  %v4733_v37 = vpop.f32.mrf.mxu1  ;;  %v4729_v6 = vadd.f32 %v4728_v16, %v4679_v46 }
 0x8fe   :  { %v4847_v51 = vpack.c.bf16 %v4814_v8, %v4812_v50  ;;  %v4782_v50 = vpop.f32.mrf.mxu2  ;;  %v4731_v8 = vadd.f32 %v4730_v22, %v4681_v5 }
 0x900   :  { %8245 = vmatmul.msk.bf16.gmra.mxu0 %vm1354_vm2, %v4847_v51  ;;  %v4778_v51 = vadd.f32 %v4777_v12, %v4729_v6  ;;  %v4780_v24 = vadd.f32 %v4779_v0, %v4731_v8 }
 0x903   :  { %v4816_v27 = vpop.f32.mrf.mxu3 }
 0x904   :  { %v4817_v38 = vadd.f32 %v4816_v27, %v4768_v47  ;;  %v4686_v45 = vpop.f32.mrf.mxu0  ;;  %v4735_v27 = vpop.f32.mrf.mxu1  ;;  %v4734_v47 = vadd.f32 %v4733_v37, %v4684_v17 }
 0x906   :  { %v4784_v18 = vpop.f32.mrf.mxu2 }
 0x90b   :  { %v4818_v49 = vpop.f32.mrf.mxu3 }
 0x90c   :  { %v4819_v32 = vadd.f32 %v4818_v49, %v4770_v39  ;;  %v4689_v39 = vpop.f32.mrf.mxu0  ;;  %v4738_v49 = vpop.f32.mrf.mxu1 }
 0x90e   :  { %v4848_v35 = vpack.c.bf16 %v4819_v32, %v4817_v38  ;;  %v4736_v38 = vadd.f32 %v4735_v27, %v4686_v45  ;;  %v4783_v32 = vadd.f32 %v4782_v50, %v4734_v47  ;;  %v4787_v46 = vpop.f32.mrf.mxu2 }
 0x910   :  { %8246 = vmatmul.msk.bf16.gmra.mxu0 %vm1354_vm2, %v4848_v35  ;;  %v4785_v16 = vadd.f32 %v4784_v18, %v4736_v38  ;;  %v11149_v38 = vld [vmem:[#allocation8] ss:$0 sm:$0xff] }
 0x913   :  { %v4821_v10 = vpop.f32.mrf.mxu3 }
 0x914   :  { %v4822_v11 = vadd.f32 %v4821_v10, %v4773_v25  ;;  %v4691_v36 = vpop.f32.mrf.mxu0  ;;  %v4740_v5 = vpop.f32.mrf.mxu1 }
 0x916   :  { %v4789_v22 = vpop.f32.mrf.mxu2 }
 0x91b   :  { %v4823_v19 = vpop.f32.mrf.mxu3 }
 0x91c   :  { %v4824_v30 = vadd.f32 %v4823_v19, %v4775_v63  ;;  %v4739_v63 = vadd.f32 %v4738_v49, %v4689_v39  ;;  %v4741_v19 = vadd.f32 %v4740_v5, %v4691_v36 }
 0x91e   :  { %v4849_v33 = vpack.c.bf16 %v4824_v30, %v4822_v11  ;;  %v4788_v0 = vadd.f32 %v4787_v46, %v4739_v63  ;;  %v4694_v11 = vpop.f32.mrf.mxu0  ;;  %v4743_v30 = vpop.f32.mrf.mxu1  ;;  %v11152_v46 = vld [vmem:[#allocation9] ss:$0 sm:$0xff] }
 0x91f   :  { %v4792_v6 = vpop.f32.mrf.mxu2  ;;  %v4744_v45 = vadd.f32 %v4743_v30, %v4694_v11 }
 0x920   :  { %8247 = vmatmul.msk.bf16.gmra.mxu0 %vm1354_vm2, %v4849_v33  ;;  %v4790_v33 = vadd.f32 %v4789_v22, %v4741_v19 }
 0x923   :  { %v4826_v1 = vpop.f32.mrf.mxu3 }
 0x924   :  { %v4827_v52 = vadd.f32 %v4826_v1, %v4778_v51 }
 0x926   :  { %v4696_v8 = vpop.f32.mrf.mxu0  ;;  %v4745_v51 = vpop.f32.mrf.mxu1 }
 0x927   :  { %v4794_v27 = vpop.f32.mrf.mxu2 }
 0x92b   :  { %v4828_v62 = vpop.f32.mrf.mxu3 }
 0x92c   :  { %v4829_v28 = vadd.f32 %v4828_v62, %v4780_v24  ;;  %v4746_v62 = vadd.f32 %v4745_v51, %v4696_v8 }
 0x92e   :  { %v4850_v2 = vpack.c.bf16 %v4829_v28, %v4827_v52  ;;  %v4793_v52 = vadd.f32 %v4792_v6, %v4744_v45  ;;  %v4795_v28 = vadd.f32 %v4794_v27, %v4746_v62 }
 0x930   :  { %8248 = vmatmul.msk.bf16.gmra.mxu0 %vm1354_vm2, %v4850_v2 }
 0x933   :  { %v4831_v9 = vpop.f32.mrf.mxu3 }
 0x934   :  { %v4832_v12 = vadd.f32 %v4831_v9, %v4783_v32 }
 0x93b   :  { %v4833_v35 = vpop.f32.mrf.mxu3 }
 0x93c   :  { %v4834_v10 = vadd.f32 %v4833_v35, %v4785_v16 }
 0x93e   :  { %v4851_v48 = vpack.c.bf16 %v4834_v10, %v4832_v12 }
 0x940   :  { %8249 = vmatmul.msk.bf16.gmra.mxu0 %vm1354_vm2, %v4851_v48 }
 0x943   :  { %v4836_v25 = vpop.f32.mrf.mxu3 }
 0x944   :  { %v4837_v37 = vadd.f32 %v4836_v25, %v4788_v0 }
 0x94b   :  { %v4838_v17 = vpop.f32.mrf.mxu3 }
 0x94c   :  { %v4839_v1 = vadd.f32 %v4838_v17, %v4790_v33 }
 0x94e   :  { %v4852_v50 = vpack.c.bf16 %v4839_v1, %v4837_v37 }
 0x950   :  { %8250 = vmatmul.msk.bf16.gmra.mxu0 %vm1354_vm2, %v4852_v50 }
 0x953   :  { %v4841_v24 = vpop.f32.mrf.mxu3 }
 0x954   :  { %v4842_v18 = vadd.f32 %v4841_v24, %v4793_v52 }
 0x95b   :  { %v4843_v2 = vpop.f32.mrf.mxu3 }
 0x95c   :  { %v4844_v9 = vadd.f32 %v4843_v2, %v4795_v28 }
 0x95e   :  { %v4853_v47 = vpack.c.bf16 %v4844_v9, %v4842_v18 }
 0x960   :  { %8251 = vmatmul.msk.bf16.gmra.mxu0 %vm1354_vm2, %v4853_v47 }
 0x96d   :  { %v4892_v39 = vpop.f32.mrf.mxu0 }
 0x96e   :  { %v4932_v49 = vadd.f32 %v4892_v39, %v11096_v26 }
 0x970   :  { %v4952_v32 = vmul.f32 %v11149_v38, %v4932_v49 }
 0x972   :  { %v4972_v12 = vadd.f32 %v11152_v46, %v4952_v32 }
 0x974   :  { %v4988_v36 = vmax.f32 %v4972_v12, 0.0 }
 0x975   :  { %v4894_v16 = vpop.f32.mrf.mxu0 }
 0x976   :  { %v4933_v35 = vadd.f32 %v4894_v16, %v11099_v61 }
 0x978   :  { %v4953_v10 = vmul.f32 %v11149_v38, %v4933_v35 }
 0x97a   :  { %v4973_v48 = vadd.f32 %v11152_v46, %v4953_v10 }
 0x97c   :  { %v4989_v5 = vmax.f32 %v4973_v48, 0.0 }
 0x97d   :  { %v4897_v22 = vpop.f32.mrf.mxu0 }
 0x97e   :  { %v11158_v25 = vpack.c.bf16 %v4989_v5, %v4988_v36  ;;  %v4934_v26 = vadd.f32 %v4897_v22, %v11102_v21  ;;  %v11520_v36 = vld [vmem:[#allocation46_spill] sm:$0xff]  ;;  %v11521_v5 = vld [vmem:[#allocation43_spill] sm:$0xff] }
 0x980   :  { %v4954_v63 = vmul.f32 %v11149_v38, %v4934_v26  ;;  %v11522_v26 = vld [vmem:[#allocation53_spill] sm:$0xff] }
 0x982   :  { %v4974_v61 = vadd.f32 %v11152_v46, %v4954_v63 }
 0x984   :  { %v4990_v33 = vmax.f32 %v4974_v61, 0.0 }
 0x985   :  { %v4899_v19 = vpop.f32.mrf.mxu0 }
 0x986   :  { %v4935_v0 = vadd.f32 %v4899_v19, %v11105_v3  ;;  %v11523_v19 = vld [vmem:[#allocation44_spill] sm:$0xff] }
 0x988   :  { %v4955_v11 = vmul.f32 %v11149_v38, %v4935_v0  ;;  %v11524_v0 = vld [vmem:[#allocation41_spill] sm:$0xff] }
 0x989   :  { %v1499_v61 = vadd.f32 %v11524_v0, %v11523_v19 }
 0x98a   :  { %v4975_v30 = vadd.f32 %v11152_v46, %v4955_v11  ;;  %v11525_v11 = vld [vmem:[#allocation50_spill] sm:$0xff] }
 0x98c   :  { %v4991_v17 = vmax.f32 %v4975_v30, 0.0  ;;  %v11526_v30 = vld [vmem:[#allocation45_spill] sm:$0xff] }
 0x98d   :  { %v4902_v37 = vpop.f32.mrf.mxu0 }
 0x98e   :  { %v11166_v1 = vpack.c.bf16 %v4991_v17, %v4990_v33  ;;  %v4936_v6 = vadd.f32 %v4902_v37, %v11108_v20  ;;  %v1509_v33 = vadd.f32 %v11526_v30, %v11525_v11  ;;  %v11527_v17 = vld [vmem:[#allocation55_spill] sm:$0xff] }
 0x990   :  { %v4956_v21 = vmul.f32 %v11149_v38, %v4936_v6  ;;  %v11528_v6 = vld [vmem:[#allocation52_spill] sm:$0xff] }
 0x992   :  { %v4976_v3 = vadd.f32 %v11152_v46, %v4956_v21  ;;  %v11529_v21 = vld [vmem:[#allocation47_spill] sm:$0xff] }
 0x994   :  { %v4992_v45 = vmax.f32 %v4976_v3, 0.0  ;;  %v11530_v3 = vld [vmem:[#allocation42_spill] sm:$0xff] }
 0x995   :  { %v4904_v50 = vpop.f32.mrf.mxu0 }
 0x996   :  { %v4937_v8 = vadd.f32 %v4904_v50, %v11111_v55  ;;  %v2001_v50 = vadd.f32 %v11529_v21, %v1509_v33 }
 0x998   :  { %v4957_v51 = vmul.f32 %v11149_v38, %v4937_v8 }
 0x99a   :  { %v4977_v24 = vadd.f32 %v11152_v46, %v4957_v51  ;;  %v11531_v51 = vld [vmem:[#allocation40_spill] sm:$0xff] }
 0x99c   :  { %v4993_v62 = vmax.f32 %v4977_v24, 0.0  ;;  %v1494_v24 = vadd.f32 %v11531_v51, %v11530_v3 }
 0x99d   :  { %v4907_v27 = vpop.f32.mrf.mxu0 }
 0x99e   :  { %v11174_v52 = vpack.c.bf16 %v4993_v62, %v4992_v45  ;;  %v4938_v28 = vadd.f32 %v4907_v27, %v11114_v34  ;;  %v11532_v45 = vld [vmem:[#allocation48_spill] sm:$0xff]  ;;  %v11533_v27 = vld [vmem:[#allocation59_spill] sm:$0xff] }
 0x9a0   :  { %v4958_v20 = vmul.f32 %v11149_v38, %v4938_v28  ;;  %v2492_v28 = vadd.f32 %v11533_v27, %v2001_v50  ;;  %v8956_v27 = vld [vmem:[#allocation11] sm:$0xff] }
 0x9a2   :  { %v4978_v55 = vadd.f32 %v11152_v46, %v4958_v20 }
 0x9a4   :  { %v4994_v39 = vmax.f32 %v4978_v55, 0.0 }
 0x9a5   :  { %v4909_v2 = vpop.f32.mrf.mxu0 }
 0x9a6   :  { %v4939_v18 = vadd.f32 %v4909_v2, %v11117_v40  ;;  %v1504_v40 = vadd.f32 %v11521_v5, %v11520_v36  ;;  %v11534_v2 = vld [vmem:[#allocation51_spill] sm:$0xff] }
 0x9a8   :  { %v4959_v9 = vmul.f32 %v11149_v38, %v4939_v18  ;;  %v1999_v63 = vadd.f32 %v11522_v26, %v1504_v40  ;;  %v1995_v18 = vadd.f32 %v11534_v2, %v1494_v24  ;;  %v8960_v2 = vld [vmem:[#allocation11 + $0x18] sm:$0xff] }
 0x9aa   :  { %v4979_v47 = vadd.f32 %v11152_v46, %v4959_v9  ;;  %v2490_v37 = vadd.f32 %v11527_v17, %v1999_v63 }
 0x9ac   :  { %v4995_v49 = vmax.f32 %v4979_v47, 0.0  ;;  %v2981_v8 = vadd.f32 %v10826_v42, %v2490_v37  ;;  %v2983_v47 = vadd.f32 %v10832_v57, %v2492_v28  ;;  %v11536_v57 = vld [vmem:[#allocation54_spill] sm:$0xff]  ;;  %v8959_v28 = vld [vmem:[#allocation11 + $0x10] sm:$0xff] }
 0x9ad   :  { %v4912_v32 = vpop.f32.mrf.mxu0 }
 0x9ae   :  { %v11182_v16 = vpack.c.bf16 %v4995_v49, %v4994_v39  ;;  %v4940_v35 = vadd.f32 %v4912_v32, %v11120_v54  ;;  %v1997_v54 = vadd.f32 %v11528_v6, %v1499_v61  ;;  %v3472_v20 = vadd.f32 %v11003_v44, %v2981_v8  ;;  %v11535_v49 = vld [vmem:[#allocation49_spill] sm:$0xff] }
 0x9af   :  { %v2486_v42 = vadd.f32 %v11535_v49, %v1995_v18  ;;  %v3474_v36 = vadd.f32 %v11014_v53, %v2983_v47  ;;  %v8967_v18 = vld [vmem:[#allocation12 + $0x18] sm:$0xff]  ;;  %v8961_v47 = vld [vmem:[#allocation12 + $0x8] sm:$0xff] }
 0x9b0   :  { %v2488_v62 = vadd.f32 %v11532_v45, %v1997_v54  ;;  %v3963_v39 = vadd.f32 %v11078_v58, %v3472_v20  ;;  %v8957_v20 = vld [vmem:[#allocation11 + $0x8] sm:$0xff]  ;;  %5112 = vmatpush.bf16.msrb.mxu3 %v8961_v47 }
 0x9b1   :  { %v2977_v44 = vadd.f32 %v10808_v43, %v2486_v42 }
 0x9b2   :  { %v2979_v9 = vadd.f32 %v10817_v59, %v2488_v62  ;;  %v4454_v5 = vadd.f32 %v11133_v56, %v3963_v39  ;;  %v3965_v59 = vadd.f32 %v11085_v60, %v3474_v36  ;;  %v8964_v39 = vld [vmem:[#allocation12 + $0x10] sm:$0xff] }
 0x9b3   :  { %v3468_v19 = vadd.f32 %v11536_v57, %v2977_v44 }
 0x9b4   :  { %v3470_v32 = vadd.f32 %v10974_v7, %v2979_v9  ;;  %v4456_v0 = vadd.f32 %v11138_v13, %v3965_v59  ;;  %v8963_v9 = vld [vmem:[#allocation11 + $0x28] sm:$0xff]  ;;  %5215 = vmatpush.bf16.msra.mxu3 %v8964_v39 }
 0x9b5   :  { %v4914_v12 = vpop.f32.mrf.mxu0  ;;  %v3959_v56 = vadd.f32 %v11061_v41, %v3468_v19 }
 0x9b6   :  { %v3961_v26 = vadd.f32 %v11069_v15, %v3470_v32 }
 0x9b7   :  { %v4450_v60 = vadd.f32 %v11122_v31, %v3959_v56 }
 0x9b8   :  { %v4452_v58 = vadd.f32 %v11128_v29, %v3961_v26 }
 0x9bd   :  { %v4917_v34 = vpop.f32.mrf.mxu0 }
 0x9c5   :  { %v4919_v10 = vpop.f32.mrf.mxu0 }
 0x9c6   :  { %v4943_v61 = vadd.f32 %v4919_v10, %v4452_v58 }
 0x9cd   :  { %v4922_v48 = vpop.f32.mrf.mxu0 }
 0x9ce   :  { %v4944_v7 = vadd.f32 %v4922_v48, %v11131_v23  ;;  %v4941_v23 = vadd.f32 %v4914_v12, %v4450_v60  ;;  %v4963_v48 = vmul.f32 %v11149_v38, %v4943_v61  ;;  %v4960_v12 = vmul.f32 %v11149_v38, %v4940_v35  ;;  %v8969_v60 = vld [vmem:[#allocation11 + $0x48] sm:$0xff] }
 0x9d0   :  { %v4964_v11 = vmul.f32 %v11149_v38, %v4944_v7  ;;  %v4980_v51 = vadd.f32 %v11152_v46, %v4960_v12 }
 0x9d2   :  { %v4984_v33 = vadd.f32 %v11152_v46, %v4964_v11  ;;  %v4996_v45 = vmax.f32 %v4980_v51, 0.0  ;;  %v8975_v51 = vld [vmem:[#allocation11 + $0x68] sm:$0xff] }
 0x9d4   :  { %v5000_v21 = vmax.f32 %v4984_v33, 0.0 }
 0x9d5   :  { %v4924_v22 = vpop.f32.mrf.mxu0 }
 0x9d6   :  { %v4945_v63 = vadd.f32 %v4924_v22, %v4454_v5  ;;  %v4942_v22 = vadd.f32 %v4917_v34, %v11126_v4  ;;  %v4961_v4 = vmul.f32 %v11149_v38, %v4941_v23  ;;  %v4983_v34 = vadd.f32 %v11152_v46, %v4963_v48 }
 0x9d8   :  { %v4965_v43 = vmul.f32 %v11149_v38, %v4945_v63  ;;  %v4962_v30 = vmul.f32 %v11149_v38, %v4942_v22  ;;  %v4981_v50 = vadd.f32 %v11152_v46, %v4961_v4  ;;  %v4999_v8 = vmax.f32 %v4983_v34, 0.0  ;;  %v8974_v4 = vld [vmem:[#allocation11 + $0x60] sm:$0xff] }
 0x9da   :  { %v4985_v41 = vadd.f32 %v11152_v46, %v4965_v43  ;;  %v4982_v54 = vadd.f32 %v11152_v46, %v4962_v30 }
 0x9dc   :  { %v5001_v37 = vmax.f32 %v4985_v41, 0.0  ;;  %v4998_v24 = vmax.f32 %v4982_v54, 0.0 }
 0x9dd   :  { %v4927_v55 = vpop.f32.mrf.mxu0 }
 0x9de   :  { %v4946_v40 = vadd.f32 %v4927_v55, %v11136_v14  ;;  %v11240_v3 = vpack.c.bf16 %v5001_v37, %v5000_v21  ;;  %v11246_v35 = vpack.c.bf16 %v4999_v8, %v4998_v24  ;;  %v8962_v55 = vld [vmem:[#allocation11 + $0x20] sm:$0xff]  ;;  %v8970_v21 = vld [vmem:[#allocation12 + $0x20] sm:$0xff] }
 0x9e0   :  { %v4966_v53 = vmul.f32 %v11149_v38, %v4946_v40 }
 0x9e2   :  { %v4986_v29 = vadd.f32 %v11152_v46, %v4966_v53 }
 0x9e4   :  { %v5002_v31 = vmax.f32 %v4986_v29, 0.0 }
 0x9e5   :  { %v4929_v14 = vpop.f32.mrf.mxu0 }
 0x9e6   :  { %v4947_v15 = vadd.f32 %v4929_v14, %v4456_v0  ;;  %v8965_v0 = vld [vmem:[#allocation11 + $0x30] sm:$0xff]  ;;  %v8966_v14 = vld [vmem:[#allocation11 + $0x38] sm:$0xff] }
 0x9e8   :  { %v4967_v13 = vmul.f32 %v11149_v38, %v4947_v15  ;;  %v4997_v38 = vmax.f32 %v4981_v50, 0.0  ;;  %v8968_v15 = vld [vmem:[#allocation11 + $0x40] sm:$0xff] }
 0x9ea   :  { %v4987_v10 = vadd.f32 %v11152_v46, %v4967_v13  ;;  %v11251_v62 = vpack.c.bf16 %v4997_v38, %v4996_v45  ;;  %v8958_v46 = vld [vmem:[#allocation12] sm:$0xff]  ;;  %v8980_v45 = vld [vmem:[#allocation11 + $0x80] sm:$0xff] }
 0x9ec   :  { %v5003_v17 = vmax.f32 %v4987_v10, 0.0 }
 0x9ee   :  { %v11232_v6 = vpack.c.bf16 %v5003_v17, %v5002_v31 }
 0x9f0   :  { %5028 = vmatpush.bf16.msrb.mxu1 %v11232_v6  ;;  %5068 = vmatpush.bf16.msrb.mxu2 %v11232_v6 }
 0x9f1   :  { %5476 = vmatpush.bf16.msra.mxu0 %v11232_v6 }
 0x9f4   :  { %5029 = vmatpush.bf16.msrb.mxu1 %v11240_v3  ;;  %5069 = vmatpush.bf16.msrb.mxu2 %v11240_v3 }
 0x9f5   :  { %5477 = vmatpush.bf16.msra.mxu0 %v11240_v3 }
 0x9f8   :  { %5030 = vmatpush.bf16.msrb.mxu1 %v11246_v35  ;;  %5070 = vmatpush.bf16.msrb.mxu2 %v11246_v35 }
 0x9f9   :  { %5478 = vmatpush.bf16.msra.mxu0 %v11246_v35 }
 0x9fc   :  { %5031 = vmatpush.bf16.msrb.mxu1 %v11251_v62  ;;  %5071 = vmatpush.bf16.msrb.mxu2 %v11251_v62 }
 0x9fd   :  { %5479 = vmatpush.bf16.msra.mxu0 %v11251_v62 }
 0xa00   :  { %5032 = vmatpush.bf16.msrb.mxu1 %v11182_v16  ;;  %5072 = vmatpush.bf16.msrb.mxu2 %v11182_v16 }
 0xa01   :  { %5480 = vmatpush.bf16.msra.mxu0 %v11182_v16 }
 0xa04   :  { %5033 = vmatpush.bf16.msrb.mxu1 %v11174_v52  ;;  %5073 = vmatpush.bf16.msrb.mxu2 %v11174_v52 }
 0xa05   :  { %5481 = vmatpush.bf16.msra.mxu0 %v11174_v52 }
 0xa08   :  { %5034 = vmatpush.bf16.msrb.mxu1 %v11166_v1  ;;  %5074 = vmatpush.bf16.msrb.mxu2 %v11166_v1 }
 0xa09   :  { %5482 = vmatpush.bf16.msra.mxu0 %v11166_v1 }
 0xa0c   :  { %5035 = vmatpush.bf16.msrb.mxu1 %v11158_v25  ;;  %5075 = vmatpush.bf16.msrb.mxu2 %v11158_v25 }
 0xa0d   :  { %5483 = vmatpush.bf16.msra.mxu0 %v11158_v25 }
 0xa0f   :  { %5036 = vmatmul.bf16.vlgmr.msrb.gmra.mxu1 %v8956_v27  ;;  %5076 = vmatmul.bf16.vlgmr.msrb.gmra.mxu2 %v8959_v28  ;;  %v8981_v28 = vld [vmem:[#allocation11 + $0x88] sm:$0xff] }
 0xa10   :  { %5172 = vmatpush.bf16.msra.mxu2 %v11232_v6  ;;  %5143 = vmatpush.bf16.msra.mxu1 %v8958_v46 }
 0xa11   :  { %5628 = vmatpush.bf16.msrb.mxu0 %v11232_v6 }
 0xa12   :  { %5484 = vmatmul.bf16.vlgmr.msra.gmra.mxu0 %v8974_v4 }
 0xa14   :  { %5248 = vmatpush.bf16.msrb.mxu1 %v11232_v6  ;;  %5173 = vmatpush.bf16.msra.mxu2 %v11240_v3 }
 0xa15   :  { %5629 = vmatpush.bf16.msrb.mxu0 %v11240_v3 }
 0xa18   :  { %5249 = vmatpush.bf16.msrb.mxu1 %v11240_v3  ;;  %5174 = vmatpush.bf16.msra.mxu2 %v11246_v35 }
 0xa19   :  { %5630 = vmatpush.bf16.msrb.mxu0 %v11246_v35 }
 0xa1c   :  { %5250 = vmatpush.bf16.msrb.mxu1 %v11246_v35  ;;  %5175 = vmatpush.bf16.msra.mxu2 %v11251_v62 }
 0xa1d   :  { %5631 = vmatpush.bf16.msrb.mxu0 %v11251_v62 }
 0xa1f   :  { %5041 = vmatmul.bf16.gmra.mxu1 %v8957_v20  ;;  %5081 = vmatmul.bf16.gmra.mxu2 %v8960_v2  ;;  %v8977_v2 = vld [vmem:[#allocation11 + $0x70] sm:$0xff] }
 0xa20   :  { %5251 = vmatpush.bf16.msrb.mxu1 %v11251_v62  ;;  %5176 = vmatpush.bf16.msra.mxu2 %v11182_v16 }
 0xa21   :  { %5632 = vmatpush.bf16.msrb.mxu0 %v11182_v16 }
 0xa22   :  { %5489 = vmatmul.bf16.gmra.mxu0 %v8975_v51 }
 0xa24   :  { %5252 = vmatpush.bf16.msrb.mxu1 %v11182_v16  ;;  %5177 = vmatpush.bf16.msra.mxu2 %v11174_v52 }
 0xa25   :  { %5633 = vmatpush.bf16.msrb.mxu0 %v11174_v52 }
 0xa28   :  { %5253 = vmatpush.bf16.msrb.mxu1 %v11174_v52  ;;  %5178 = vmatpush.bf16.msra.mxu2 %v11166_v1 }
 0xa29   :  { %5634 = vmatpush.bf16.msrb.mxu0 %v11166_v1 }
 0xa2c   :  { %5254 = vmatpush.bf16.msrb.mxu1 %v11166_v1  ;;  %5179 = vmatpush.bf16.msra.mxu2 %v11158_v25 }
 0xa2d   :  { %5635 = vmatpush.bf16.msrb.mxu0 %v11158_v25 }
 0xa2f   :  { %5180 = vmatmul.bf16.vlgmr.msra.gmra.mxu2 %v8962_v55  ;;  %v8976_v55 = vld [vmem:[#allocation12 + $0x30] sm:$0xff] }
 0xa30   :  { %5291 = vmatpush.bf16.msrb.mxu2 %v8967_v18  ;;  %5255 = vmatpush.bf16.msrb.mxu1 %v11158_v25 }
 0xa32   :  { %5636 = vmatmul.bf16.vlgmr.msrb.gmra.mxu0 %v8980_v45 }
 0xa34   :  { %5400 = vmatpush.bf16.msra.mxu2 %v11232_v6 }
 0xa38   :  { %5401 = vmatpush.bf16.msra.mxu2 %v11240_v3 }
 0xa3c   :  { %5402 = vmatpush.bf16.msra.mxu2 %v11246_v35 }
 0xa3f   :  { %5185 = vmatmul.bf16.gmra.mxu2 %v8963_v9 }
 0xa40   :  { %5403 = vmatpush.bf16.msra.mxu2 %v11251_v62 }
 0xa42   :  { %5641 = vmatmul.bf16.gmra.mxu0 %v8981_v28 }
 0xa44   :  { %5404 = vmatpush.bf16.msra.mxu2 %v11182_v16 }
 0xa48   :  { %5405 = vmatpush.bf16.msra.mxu2 %v11174_v52 }
 0xa4c   :  { %5406 = vmatpush.bf16.msra.mxu2 %v11166_v1 }
 0xa50   :  { %5407 = vmatpush.bf16.msra.mxu2 %v11158_v25 }
 0xa8c   :  { %v5037_v49 = vpop.f32.mrf.mxu1 }
 0xa8f   :  { %v5485_v18 = vpop.f32.mrf.mxu0 }
 0xa92   :  { %v5077_v42 = vpop.f32.mrf.mxu2 }
 0xa94   :  { %v5039_v32 = vpop.f32.mrf.mxu1 }
 0xa95   :  { %v5047_v36 = vpack.c.bf16 %v5039_v32, %v5037_v49 }
 0xa97   :  { %8278 = vmatmul.msk.bf16.vlgmr.msra.gmra.mxu1 %vm5098_vm3, %v5047_v36  ;;  %v5487_v39 = vpop.f32.mrf.mxu0 }
 0xa98   :  { %5367 = vmatpush.bf16.msra.mxu1 %v8970_v21  ;;  %v5495_v49 = vpack.c.bf16 %v5487_v39, %v5485_v18 }
 0xa9a   :  { %v5079_v5 = vpop.f32.mrf.mxu2 }
 0xa9b   :  { %v5087_v40 = vpack.c.bf16 %v5079_v5, %v5077_v42  ;;  %v8973_v42 = vld [vmem:[#allocation12 + $0x28] sm:$0xff] }
 0xa9c   :  { %v5042_v44 = vpop.f32.mrf.mxu1 }
 0xa9d   :  { %8272 = vmatmul.msk.bf16.vlgmr.msrb.gmra.mxu3 %vm5098_vm3, %v5087_v40 }
 0xa9e   :  { %5324 = vmatpush.bf16.msrb.mxu3 %v11232_v6 }
 0xa9f   :  { %v5490_v36 = vpop.f32.mrf.mxu0 }
 0xaa2   :  { %5325 = vmatpush.bf16.msrb.mxu3 %v11240_v3  ;;  %v5082_v26 = vpop.f32.mrf.mxu2 }
 0xaa4   :  { %v5044_v59 = vpop.f32.mrf.mxu1 }
 0xaa5   :  { %v5048_v63 = vpack.c.bf16 %v5044_v59, %v5042_v44 }
 0xaa6   :  { %5326 = vmatpush.bf16.msrb.mxu3 %v11246_v35 }
 0xaa7   :  { %8279 = vmatmul.msk.bf16.gmra.mxu1 %vm5098_vm3, %v5048_v63  ;;  %v5492_v44 = vpop.f32.mrf.mxu0 }
 0xaaa   :  { %5327 = vmatpush.bf16.msrb.mxu3 %v11251_v62  ;;  %v5084_v57 = vpop.f32.mrf.mxu2 }
 0xaab   :  { %v5088_v19 = vpack.c.bf16 %v5084_v57, %v5082_v26  ;;  %v5496_v26 = vpack.c.bf16 %v5492_v44, %v5490_v36  ;;  %v8982_v57 = vld [vmem:[#allocation12 + $0x40] sm:$0xff] }
 0xaad   :  { %8273 = vmatmul.msk.bf16.gmra.mxu3 %vm5098_vm3, %v5088_v19 }
 0xaae   :  { %5328 = vmatpush.bf16.msrb.mxu3 %v11182_v16 }
 0xaaf   :  { %v5637_v63 = vpop.f32.mrf.mxu0 }
 0xab2   :  { %5329 = vmatpush.bf16.msrb.mxu3 %v11174_v52  ;;  %v5181_v58 = vpop.f32.mrf.mxu2 }
 0xab6   :  { %5330 = vmatpush.bf16.msrb.mxu3 %v11166_v1 }
 0xab7   :  { %5256 = vmatmul.bf16.vlgmr.msrb.gmra.mxu1 %v8965_v0 }
 0xab8   :  { %5519 = vmatpush.bf16.msrb.mxu1 %v8976_v55 }
 0xaba   :  { %5331 = vmatpush.bf16.msrb.mxu3 %v11158_v25  ;;  %v5183_v7 = vpop.f32.mrf.mxu2 }
 0xabb   :  { %v5191_v53 = vpack.c.bf16 %v5183_v7, %v5181_v58  ;;  %v5639_v58 = vpop.f32.mrf.mxu0 }
 0xabc   :  { %v5647_v0 = vpack.c.bf16 %v5639_v58, %v5637_v63  ;;  %v9065_v58 = vld [vmem:[#allocation15] ss:$0 sm:$0xff] }
 0xabd   :  { %8292 = vmatmul.msk.bf16.vlgmr.msra.gmra.mxu3 %vm5098_vm3, %v5191_v53 }
 0xabe   :  { %5443 = vmatpush.bf16.msra.mxu3 %v8973_v42 }
 0xac2   :  { %v5186_v56 = vpop.f32.mrf.mxu2 }
 0xac7   :  { %5261 = vmatmul.bf16.gmra.mxu1 %v8966_v14 }
 0xaca   :  { %v5188_v61 = vpop.f32.mrf.mxu2 }
 0xacb   :  { %v5192_v43 = vpack.c.bf16 %v5188_v61, %v5186_v56  ;;  %v8979_v56 = vld [vmem:[#allocation12 + $0x38] sm:$0xff] }
 0xacd   :  { %8293 = vmatmul.msk.bf16.gmra.mxu3 %vm5098_vm3, %v5192_v43  ;;  %v5642_v43 = vpop.f32.mrf.mxu0 }
 0xadd   :  { %5332 = vmatmul.bf16.vlgmr.msrb.gmra.mxu3 %v8968_v15 }
 0xade   :  { %5595 = vmatpush.bf16.msrb.mxu3 %v8979_v56 }
 0xaed   :  { %5337 = vmatmul.bf16.gmra.mxu3 %v8969_v60 }
 0xb14   :  { %v5145_v22 = vpop.f32.mrf.mxu1 }
 0xb1c   :  { %v11314_v11 = vpop.f32.mrf.mxu1 }
 0xb20   :  { %v5114_v29 = vpop.f32.mrf.mxu3 }
 0xb21   :  { %v5146_v13 = vadd.f32 %v5145_v22, %v5114_v29  ;;  %v5644_v22 = vpop.f32.mrf.mxu0 }
 0xb22   :  { %v5648_v29 = vpack.c.bf16 %v5644_v22, %v5642_v43 }
 0xb24   :  { %v5150_v23 = vpop.f32.mrf.mxu1 }
 0xb28   :  { %v11316_v48 = vpop.f32.mrf.mxu3 }
 0xb2c   :  { %v11318_v41 = vpop.f32.mrf.mxu1 }
 0xb30   :  { %v5119_v10 = vpop.f32.mrf.mxu3 }
 0xb31   :  { %v5151_v30 = vadd.f32 %v5150_v23, %v5119_v10 }
 0xb34   :  { %v5257_v33 = vpop.f32.mrf.mxu1 }
 0xb38   :  { %v11320_v31 = vpop.f32.mrf.mxu3 }
 0xb3c   :  { %v5259_v17 = vpop.f32.mrf.mxu1 }
 0xb3d   :  { %v5267_v34 = vpack.c.bf16 %v5259_v17, %v5257_v33 }
 0xb3f   :  { %8306 = vmatmul.msk.bf16.vlgmr.msrb.gmra.mxu2 %vm5098_vm3, %v5267_v34 }
 0xb40   :  { %5552 = vmatpush.bf16.msrb.mxu2 %v11232_v6  ;;  %v5217_v37 = vpop.f32.mrf.mxu3 }
 0xb41   :  { %v5227_v12 = vadd.f32 %v5217_v37, %v5146_v13 }
 0xb44   :  { %5553 = vmatpush.bf16.msrb.mxu2 %v11240_v3  ;;  %v5262_v54 = vpop.f32.mrf.mxu1 }
 0xb48   :  { %5554 = vmatpush.bf16.msrb.mxu2 %v11246_v35  ;;  %v11326_v50 = vpop.f32.mrf.mxu3  ;;  %v8971_v35 = vld [vmem:[#allocation11 + $0x50] sm:$0xff] }
 0xb4c   :  { %5555 = vmatpush.bf16.msrb.mxu2 %v11251_v62  ;;  %v5264_v8 = vpop.f32.mrf.mxu1 }
 0xb4d   :  { %v5268_v24 = vpack.c.bf16 %v5264_v8, %v5262_v54 }
 0xb4f   :  { %8307 = vmatmul.msk.bf16.gmra.mxu2 %vm5098_vm3, %v5268_v24 }
 0xb50   :  { %5556 = vmatpush.bf16.msrb.mxu2 %v11182_v16  ;;  %v5222_v6 = vpop.f32.mrf.mxu3  ;;  %v8972_v16 = vld [vmem:[#allocation11 + $0x58] sm:$0xff] }
 0xb51   :  { %v5229_v38 = vadd.f32 %v5222_v6, %v5151_v30 }
 0xb54   :  { %5557 = vmatpush.bf16.msrb.mxu2 %v11174_v52 }
 0xb58   :  { %5558 = vmatpush.bf16.msrb.mxu2 %v11166_v1  ;;  %v11333_v3 = vpop.f32.mrf.mxu3 }
 0xb5c   :  { %5559 = vmatpush.bf16.msrb.mxu2 %v11158_v25  ;;  %v8978_v25 = vld [vmem:[#allocation11 + $0x78] sm:$0xff] }
 0xb5f   :  { %5408 = vmatmul.bf16.vlgmr.msra.gmra.mxu2 %v8971_v35 }
 0xb60   :  { %v5333_v62 = vpop.f32.mrf.mxu3 }
 0xb68   :  { %v5335_v46 = vpop.f32.mrf.mxu3 }
 0xb69   :  { %v5343_v27 = vpack.c.bf16 %v5335_v46, %v5333_v62 }
 0xb6b   :  { %8320 = vmatmul.msk.bf16.vlgmr.msra.gmra.mxu1 %vm5098_vm3, %v5343_v27  ;;  %v5148_v27 = vadd.f32 %v11314_v11, %v11316_v48 }
 0xb6c   :  { %5671 = vmatpush.bf16.msra.mxu1 %v8982_v57 }
 0xb6d   :  { %v5228_v28 = vadd.f32 %v11326_v50, %v5148_v27 }
 0xb6f   :  { %5413 = vmatmul.bf16.gmra.mxu2 %v8972_v16 }
 0xb70   :  { %v5338_v52 = vpop.f32.mrf.mxu3 }
 0xb78   :  { %v5340_v20 = vpop.f32.mrf.mxu3 }
 0xb79   :  { %v5344_v1 = vpack.c.bf16 %v5340_v20, %v5338_v52 }
 0xb7b   :  { %8321 = vmatmul.msk.bf16.gmra.mxu1 %vm5098_vm3, %v5344_v1  ;;  %v5153_v1 = vadd.f32 %v11318_v41, %v11320_v31  ;;  %v9064_v41 = vld [vmem:[#allocation14] ss:$0 sm:$0xff] }
 0xb7d   :  { %v5230_v18 = vadd.f32 %v11333_v3, %v5153_v1  ;;  %v6078_v1 = vld [vmem:[#allocation17 + $0x1c] sm:$0xf] }
 0xb7f   :  { %5560 = vmatmul.bf16.vlgmr.msrb.gmra.mxu2 %v8977_v2 }
 0xb8b   :  { %8348 = vmatmul.msk.bf16.vlgmr.msrb.gmra.mxu1 %vm5098_vm3, %v5495_v49 }
 0xb8f   :  { %5565 = vmatmul.bf16.gmra.mxu2 %v8978_v25 }
 0xb9b   :  { %8349 = vmatmul.msk.bf16.gmra.mxu1 %vm5098_vm3, %v5496_v26 }
 0xbab   :  { %8376 = vmatmul.msk.bf16.vlgmr.msra.gmra.mxu1 %vm5098_vm3, %v5647_v0 }
 0xbbb   :  { %8377 = vmatmul.msk.bf16.gmra.mxu1 %vm5098_vm3, %v5648_v29 }
 0xbc2   :  { %v5293_v9 = vpop.f32.mrf.mxu2 }
 0xbc3   :  { %v5303_v47 = vadd.f32 %v5293_v9, %v5227_v12 }
 0xbca   :  { %v5295_v32 = vpop.f32.mrf.mxu2 }
 0xbcb   :  { %v5304_v20 = vadd.f32 %v5295_v32, %v5228_v28  ;;  %v5866_v28 = vld [vmem:[#allocation17 + $0xc] sm:$0xf] }
 0xbd2   :  { %v5298_v5 = vpop.f32.mrf.mxu2 }
 0xbd3   :  { %v5305_v40 = vadd.f32 %v5298_v5, %v5229_v38 }
 0xbda   :  { %v5300_v59 = vpop.f32.mrf.mxu2 }
 0xbdb   :  { %v5306_v9 = vadd.f32 %v5300_v59, %v5230_v18  ;;  %v8989_v18 = vld [vmem:[#allocation18 + $0x30] sm:$0xff] }
 0xbe2   :  { %v5409_v19 = vpop.f32.mrf.mxu2 }
 0xbe8   :  { %v5369_v7 = vpop.f32.mrf.mxu1 }
 0xbe9   :  { %v5379_v53 = vadd.f32 %v5369_v7, %v5303_v47 }
 0xbea   :  { %v5411_v14 = vpop.f32.mrf.mxu2 }
 0xbeb   :  { %v5419_v61 = vpack.c.bf16 %v5411_v14, %v5409_v19 }
 0xbed   :  { %8334 = vmatmul.msk.bf16.vlgmr.msra.gmra.mxu3 %vm5098_vm3, %v5419_v61 }
 0xbf0   :  { %v5371_v15 = vpop.f32.mrf.mxu1 }
 0xbf1   :  { %v5380_v2 = vadd.f32 %v5371_v15, %v5304_v20  ;;  %v5972_v20 = vld [vmem:[#allocation17 + $0x14] sm:$0xf] }
 0xbf2   :  { %v5414_v60 = vpop.f32.mrf.mxu2 }
 0xbf8   :  { %v5374_v13 = vpop.f32.mrf.mxu1 }
 0xbf9   :  { %v5381_v23 = vadd.f32 %v5374_v13, %v5305_v40 }
 0xbfa   :  { %v5416_v10 = vpop.f32.mrf.mxu2 }
 0xbfb   :  { %v5420_v30 = vpack.c.bf16 %v5416_v10, %v5414_v60  ;;  %v8986_v10 = vld [vmem:[#allocation18 + $0x18] sm:$0xff] }
 0xbfd   :  { %8335 = vmatmul.msk.bf16.gmra.mxu3 %vm5098_vm3, %v5420_v30 }
 0xc00   :  { %v5376_v54 = vpop.f32.mrf.mxu1 }
 0xc01   :  { %v5382_v36 = vadd.f32 %v5376_v54, %v5306_v9  ;;  %v8983_v54 = vld [vmem:[#allocation18] sm:$0xff] }
 0xc02   :  { %v5561_v33 = vpop.f32.mrf.mxu2 }
 0xc08   :  { %v5521_v21 = vpop.f32.mrf.mxu1 }
 0xc0a   :  { %v5563_v17 = vpop.f32.mrf.mxu2 }
 0xc0b   :  { %v5571_v4 = vpack.c.bf16 %v5563_v17, %v5561_v33  ;;  %v5733_v33 = vld [vmem:[#allocation17 + $0x4] sm:$0xf]  ;;  %v5709_v17 = vld [vmem:[#allocation17] sm:$0xf] }
 0xc0d   :  { %8362 = vmatmul.msk.bf16.vlgmr.msrb.gmra.mxu3 %vm5098_vm3, %v5571_v4  ;;  %v5813_v4 = vld [vmem:[#allocation17 + $0x8] sm:$0xf] }
 0xc10   :  { %v5523_v8 = vpop.f32.mrf.mxu1 }
 0xc12   :  { %v5566_v34 = vpop.f32.mrf.mxu2 }
 0xc18   :  { %v5526_v6 = vpop.f32.mrf.mxu1 }
 0xc1a   :  { %v5568_v37 = vpop.f32.mrf.mxu2 }
 0xc1b   :  { %v5572_v12 = vpack.c.bf16 %v5568_v37, %v5566_v34  ;;  %v8985_v34 = vld [vmem:[#allocation18 + $0x10] sm:$0xff]  ;;  %v5919_v37 = vld [vmem:[#allocation17 + $0x10] sm:$0xf] }
 0xc1d   :  { %8363 = vmatmul.msk.bf16.gmra.mxu3 %vm5098_vm3, %v5572_v12  ;;  %v8984_v12 = vld [vmem:[#allocation18 + $0x8] sm:$0xff] }
 0xc20   :  { %v5528_v35 = vpop.f32.mrf.mxu1 }
 0xc28   :  { %v5673_v62 = vpop.f32.mrf.mxu1 }
 0xc30   :  { %v5675_v16 = vpop.f32.mrf.mxu1 }
 0xc38   :  { %v5678_v42 = vpop.f32.mrf.mxu1 }
 0xc40   :  { %v5680_v59 = vpop.f32.mrf.mxu1 }
 0xc70   :  { %v5445_v51 = vpop.f32.mrf.mxu3 }
 0xc71   :  { %v5455_v47 = vadd.f32 %v5445_v51, %v5379_v53 }
 0xc73   :  { %v5531_v5 = vadd.f32 %v5521_v21, %v5455_v47  ;;  %v8988_v21 = vld [vmem:[#allocation18 + $0x28] sm:$0xff] }
 0xc74   :  { %5857 = vmatpush.bf16.msrb.mxu1 %v8988_v21  ;;  %v9004_v21 = vld [vmem:[#allocation23 + $0x18] sm:$0xff] }
 0xc78   :  { %v5447_v24 = vpop.f32.mrf.mxu3 }
 0xc79   :  { %v5456_v55 = vadd.f32 %v5447_v24, %v5380_v2  ;;  %v8990_v2 = vld [vmem:[#allocation18 + $0x38] sm:$0xff] }
 0xc7b   :  { %v5532_v11 = vadd.f32 %v5523_v8, %v5456_v55  ;;  %v8987_v8 = vld [vmem:[#allocation18 + $0x20] sm:$0xff] }
 0xc7c   :  { %5858 = vmatpush.bf16.msrb.mxu1 %v8987_v8  ;;  %v8991_v55 = vld [vmem:[#allocation18 + $0x40] sm:$0xff] }
 0xc80   :  { %v5450_v38 = vpop.f32.mrf.mxu3 }
 0xc81   :  { %v5457_v25 = vadd.f32 %v5450_v38, %v5381_v23 }
 0xc83   :  { %v5533_v39 = vadd.f32 %v5526_v6, %v5457_v25  ;;  %v8992_v25 = vld [vmem:[#allocation18 + $0x48] sm:$0xff] }
 0xc84   :  { %5963 = vmatpush.bf16.msra.mxu1 %v8992_v25 }
 0xc88   :  { %v5452_v45 = vpop.f32.mrf.mxu3  ;;  %5964 = vmatpush.bf16.msra.mxu1 %v8991_v55  ;;  %v8469_v55 = vld [vmem:[%s11460_s13 + $0x1] sm:$0x1] }
 0xc89   :  { %v5458_v50 = vadd.f32 %v5452_v45, %v5382_v36  ;;  %v8996_v36 = vld [vmem:[#allocation18 + $0x68] sm:$0xff] }
 0xc8b   :  { %v5534_v26 = vadd.f32 %v5528_v35, %v5458_v50  ;;  %v8995_v50 = vld [vmem:[#allocation18 + $0x60] sm:$0xff] }
 0xc90   :  { %v5597_v46 = vpop.f32.mrf.mxu3 }
 0xc91   :  { %v5607_v32 = vadd.f32 %v5597_v46, %v5531_v5  ;;  %v8993_v5 = vld [vmem:[#allocation18 + $0x50] sm:$0xff] }
 0xc93   :  { %v5683_v57 = vadd.f32 %v5673_v62, %v5607_v32  ;;  %v6025_v62 = vld [vmem:[#allocation17 + $0x18] sm:$0xf] }
 0xc95   :  { %v5691_v53 = vmul.f32 %v9064_v41, %v5683_v57 }
 0xc97   :  { %v5699_v15 = vadd.f32 %v9065_v58, %v5691_v53 }
 0xc98   :  { %v5599_v52 = vpop.f32.mrf.mxu3 }
 0xc99   :  { %v5608_v40 = vadd.f32 %v5599_v52, %v5532_v11  ;;  %v5703_v23 = vmax.f32 %v5699_v15, 0.0  ;;  %v6131_v52 = vld [vmem:[#allocation17 + $0x20] sm:$0xf] }
 0xc9b   :  { %v5684_v31 = vadd.f32 %v5675_v16, %v5608_v40 }
 0xc9d   :  { %v5692_v0 = vmul.f32 %v9064_v41, %v5684_v31 }
 0xc9f   :  { %v5700_v61 = vadd.f32 %v9065_v58, %v5692_v0 }
 0xca0   :  { %v5602_v49 = vpop.f32.mrf.mxu3 }
 0xca1   :  { %v5609_v48 = vadd.f32 %v5602_v49, %v5533_v39  ;;  %v5704_v29 = vmax.f32 %v5700_v61, 0.0  ;;  %v8994_v49 = vld [vmem:[#allocation18 + $0x58] sm:$0xff] }
 0xca3   :  { %v5685_v44 = vadd.f32 %v5678_v42, %v5609_v48  ;;  %v5707_v30 = vpack.c.bf16 %v5704_v29, %v5703_v23 }
 0xca5   :  { %v5693_v3 = vmul.f32 %v9064_v41, %v5685_v44 }
 0xca7   :  { %v5701_v56 = vadd.f32 %v9065_v58, %v5693_v3  ;;  %v9000_v3 = vld [vmem:[#allocation18 + $0x88] sm:$0xff] }
 0xca8   :  { %v5604_v63 = vpop.f32.mrf.mxu3 }
 0xca9   :  { %v5610_v19 = vadd.f32 %v5604_v63, %v5534_v26  ;;  %v5705_v60 = vmax.f32 %v5701_v56, 0.0  ;;  %v8997_v56 = vld [vmem:[#allocation18 + $0x70] sm:$0xff] }
 0xcab   :  { %v5686_v7 = vadd.f32 %v5680_v59, %v5610_v19  ;;  %v8998_v59 = vld [vmem:[#allocation18 + $0x78] sm:$0xff] }
 0xcad   :  { %v5694_v14 = vmul.f32 %v9064_v41, %v5686_v7 }
 0xcaf   :  { %v5702_v43 = vadd.f32 %v9065_v58, %v5694_v14  ;;  %v8999_v58 = vld [vmem:[#allocation18 + $0x80] sm:$0xff] }
 0xcb1   :  { %v5706_v22 = vmax.f32 %v5702_v43, 0.0 }
 0xcb3   :  { %v5708_v13 = vpack.c.bf16 %v5706_v22, %v5705_v60 }
 0xcb5   :  { %5720 = vmatpush.bf16.msra.mxu2 %v5708_v13  ;;  %5743 = vmatpush.bf16.msra.mxu3 %v5708_v13 }
 0xcb6   :  { %5823 = vmatpush.bf16.msra.mxu0 %v5708_v13 }
 0xcb9   :  { %5721 = vmatpush.bf16.msra.mxu2 %v5707_v30  ;;  %5744 = vmatpush.bf16.msra.mxu3 %v5707_v30 }
 0xcba   :  { %5824 = vmatpush.bf16.msra.mxu0 %v5707_v30 }
 0xcbc   :  { %8379 = vmatmul.msk.bf16.vlgmr.msra.gmra.mxu3 %vm5710_vm4, %v5733_v33  ;;  %8378 = vmatmul.msk.bf16.vlgmr.msra.gmra.mxu2 %vm5710_vm4, %v5709_v17 }
 0xcbd   :  { %5777 = vmatpush.bf16.msrb.mxu2 %v8986_v10  ;;  %8398 = vmatmul.msk.bf16.vlgmr.msra.gmra.mxu0 %vm5710_vm4, %v5813_v4 }
 0xcbe   :  { %5929 = vmatpush.bf16.msrb.mxu0 %v5708_v13  ;;  %5805 = vmatpush.bf16.msrb.mxu3 %v8984_v12 }
 0xcc1   :  { %5778 = vmatpush.bf16.msrb.mxu2 %v8985_v34 }
 0xcc2   :  { %5930 = vmatpush.bf16.msrb.mxu0 %v5707_v30  ;;  %5806 = vmatpush.bf16.msrb.mxu3 %v8983_v54  ;;  %v9005_v54 = vld [vmem:[#allocation23 + $0x20] sm:$0xff] }
 0xcc5   :  { %5876 = vmatpush.bf16.msra.mxu2 %v5708_v13 }
 0xcc6   :  { %6035 = vmatpush.bf16.msra.mxu0 %v5708_v13  ;;  %5910 = vmatpush.bf16.msra.mxu3 %v8990_v2 }
 0xcc9   :  { %5877 = vmatpush.bf16.msra.mxu2 %v5707_v30 }
 0xcca   :  { %6036 = vmatpush.bf16.msra.mxu0 %v5707_v30  ;;  %5911 = vmatpush.bf16.msra.mxu3 %v8989_v18  ;;  %v6195_v18 = vld [vmem:[%s11460_s13] sm:$0x1] }
 0xccd   :  { %8418 = vmatmul.msk.bf16.vlgmr.msrb.gmra.mxu0 %vm5710_vm4, %v5919_v37  ;;  %v9006_v37 = vld [vmem:[#allocation23 + $0x28] sm:$0xff] }
 0xcce   :  { %6141 = vmatpush.bf16.msrb.mxu0 %v5708_v13 }
 0xcd2   :  { %6142 = vmatpush.bf16.msrb.mxu0 %v5707_v30 }
 0xcdd   :  { %8438 = vmatmul.msk.bf16.vlgmr.msra.gmra.mxu0 %vm5710_vm4, %v6025_v62 }
 0xcde   :  { %6277 = vmatpush.bf16.msra.mxu0 %v9006_v37  ;;  %v9016_v37 = vld [vmem:[#allocation23 + $0x78] sm:$0xff] }
 0xce2   :  { %6278 = vmatpush.bf16.msra.mxu0 %v9005_v54 }
 0xce6   :  { %6279 = vmatpush.bf16.msra.mxu0 %v9004_v21 }
 0xced   :  { %8458 = vmatmul.msk.bf16.vlgmr.msrb.gmra.mxu0 %vm5710_vm4, %v6131_v52 }
 0xd3a   :  { %v5826_v51 = vpop.f32.mrf.mxu0 }
 0xd3b   :  { %v5830_v24 = vpack.c.bf16 %v5826_v51, %v5826_v51 }
 0xd3d   :  { %8407 = vmatmul.msk.bf16.vlgmr.msrb.gmra.mxu1 %vm5710_vm4, %v5830_v24 }
 0xd3e   :  { %6069 = vmatpush.bf16.msrb.mxu1 %v8996_v36  ;;  %v9009_v36 = vld [vmem:[#allocation23 + $0x40] sm:$0xff] }
 0xd3f   :  { %v5746_v6 = vpop.f32.mrf.mxu3  ;;  %v5723_v38 = vpop.f32.mrf.mxu2 }
 0xd40   :  { %v5750_v35 = vpack.c.bf16 %v5746_v6, %v5746_v6  ;;  %v5727_v45 = vpack.c.bf16 %v5723_v38, %v5723_v38 }
 0xd42   :  { %8388 = vmatmul.msk.bf16.vlgmr.msrb.gmra.mxu2 %vm5710_vm4, %v5750_v35  ;;  %8397 = vmatmul.msk.bf16.vlgmr.msrb.gmra.mxu3 %vm5710_vm4, %v5727_v45  ;;  %v5828_v46 = vpop.f32.mrf.mxu0 }
 0xd43   :  { %5982 = vmatpush.bf16.msrb.mxu2 %v5708_v13  ;;  %6016 = vmatpush.bf16.msrb.mxu3 %v8994_v49  ;;  %v9066_v46 = vld [vmem:[#allocation20] ss:$0 sm:$0xff]  ;;  %v9002_v49 = vld [vmem:[#allocation23 + $0x8] sm:$0xff] }
 0xd44   :  { %6070 = vmatpush.bf16.msrb.mxu1 %v8995_v50 }
 0xd47   :  { %5983 = vmatpush.bf16.msrb.mxu2 %v5707_v30  ;;  %v5748_v27 = vpop.f32.mrf.mxu3  ;;  %v5725_v16 = vpop.f32.mrf.mxu2  ;;  %6017 = vmatpush.bf16.msrb.mxu3 %v8993_v5  ;;  %v8557_v5 = vld [vmem:[%s11460_s13 + $0x6] sm:$0x1] }
 0xd48   :  { %v9067_v16 = vld [vmem:[#allocation21] ss:$0 sm:$0xff] }
 0xd4a   :  { %v5932_v9 = vpop.f32.mrf.mxu0 }
 0xd4b   :  { %v5936_v47 = vpack.c.bf16 %v5932_v9, %v5932_v9  ;;  %v8497_v9 = vld [vmem:[%s11460_s13 + $0x2] sm:$0x1] }
 0xd4d   :  { %8427 = vmatmul.msk.bf16.vlgmr.msra.gmra.mxu1 %vm5710_vm4, %v5936_v47  ;;  %v8527_v47 = vld [vmem:[%s11460_s13 + $0x4] sm:$0x1] }
 0xd4e   :  { %6175 = vmatpush.bf16.msra.mxu1 %v9000_v3 }
 0xd52   :  { %8408 = vmatmul.msk.bf16.vlgmr.msra.gmra.mxu2 %vm5710_vm4, %v5866_v28  ;;  %v5934_v42 = vpop.f32.mrf.mxu0  ;;  %6176 = vmatpush.bf16.msra.mxu1 %v8999_v58  ;;  %v8572_v58 = vld [vmem:[%s11460_s13 + $0x7] sm:$0x1] }
 0xd53   :  { %6088 = vmatpush.bf16.msra.mxu2 %v5708_v13  ;;  %v9001_v42 = vld [vmem:[#allocation23] sm:$0xff] }
 0xd57   :  { %6089 = vmatpush.bf16.msra.mxu2 %v5707_v30 }
 0xd5a   :  { %v6038_v44 = vpop.f32.mrf.mxu0 }
 0xd5b   :  { %v6042_v26 = vpack.c.bf16 %v6038_v44, %v6038_v44 }
 0xd5d   :  { %8447 = vmatmul.msk.bf16.vlgmr.msrb.gmra.mxu1 %vm5710_vm4, %v6042_v26  ;;  %v8587_v26 = vld [vmem:[%s11460_s13 + $0x8] sm:$0x1] }
 0xd62   :  { %8428 = vmatmul.msk.bf16.vlgmr.msrb.gmra.mxu2 %vm5710_vm4, %v5972_v20  ;;  %v6040_v57 = vpop.f32.mrf.mxu0 }
 0xd6a   :  { %v6144_v7 = vpop.f32.mrf.mxu0 }
 0xd6b   :  { %v6148_v53 = vpack.c.bf16 %v6144_v7, %v6144_v7  ;;  %v9014_v7 = vld [vmem:[#allocation23 + $0x68] sm:$0xff] }
 0xd6d   :  { %8467 = vmatmul.msk.bf16.vlgmr.msra.gmra.mxu1 %vm5710_vm4, %v6148_v53  ;;  %v9013_v53 = vld [vmem:[#allocation23 + $0x60] sm:$0xff] }
 0xd72   :  { %8448 = vmatmul.msk.bf16.vlgmr.msra.gmra.mxu2 %vm5710_vm4, %v6078_v1  ;;  %v6146_v61 = vpop.f32.mrf.mxu0 }
 0xd73   :  { %v9012_v61 = vld [vmem:[#allocation23 + $0x58] sm:$0xff] }
 0xdba   :  { %v5860_v39 = vpop.f32.mrf.mxu1 }
 0xdc2   :  { %v5862_v11 = vpop.f32.mrf.mxu1 }
 0xdc3   :  { %v9008_v11 = vld [vmem:[#allocation23 + $0x38] sm:$0xff] }
 0xdc5   :  { %v5780_v48 = vpop.f32.mrf.mxu2  ;;  %v5808_v40 = vpop.f32.mrf.mxu3 }
 0xdc6   :  { %v5809_v32 = vadd.f32 %v5808_v40, %v5780_v48  ;;  %v9007_v48 = vld [vmem:[#allocation23 + $0x30] sm:$0xff] }
 0xdc8   :  { %v5864_v41 = vadd.f32 %v5860_v39, %v5809_v32  ;;  %v9003_v39 = vld [vmem:[#allocation23 + $0x10] sm:$0xff] }
 0xdc9   :  { %6311 = vmatpush.bf16.msrb.mxu1 %v9003_v39 }
 0xdca   :  { %v5966_v23 = vpop.f32.mrf.mxu1 }
 0xdcd   :  { %v5782_v31 = vpop.f32.mrf.mxu2  ;;  %v5810_v63 = vpop.f32.mrf.mxu3  ;;  %6312 = vmatpush.bf16.msrb.mxu1 %v9002_v49 }
 0xdce   :  { %v8512_v63 = vld [vmem:[%s11460_s13 + $0x3] sm:$0x1] }
 0xdd1   :  { %6313 = vmatpush.bf16.msrb.mxu1 %v9001_v42 }
 0xdd2   :  { %v5968_v10 = vpop.f32.mrf.mxu1 }
 0xdd5   :  { %v5879_v19 = vpop.f32.mrf.mxu2  ;;  %6432 = vmatpush.bf16.msra.mxu1 %v9012_v61 }
 0xdd6   :  { %v5883_v0 = vpack.c.bf16 %v5879_v19, %v5879_v19 }
 0xdd8   :  { %8417 = vmatmul.msk.bf16.vlgmr.msra.gmra.mxu3 %vm5710_vm4, %v5883_v0  ;;  %v9015_v0 = vld [vmem:[#allocation23 + $0x70] sm:$0xff] }
 0xdd9   :  { %6122 = vmatpush.bf16.msra.mxu3 %v8998_v59  ;;  %v8542_v59 = vld [vmem:[%s11460_s13 + $0x5] sm:$0x1] }
 0xdda   :  { %v6072_v30 = vpop.f32.mrf.mxu1 }
 0xddd   :  { %v5881_v14 = vpop.f32.mrf.mxu2  ;;  %6123 = vmatpush.bf16.msra.mxu3 %v8997_v56 }
 0xde2   :  { %v6074_v33 = vpop.f32.mrf.mxu1 }
 0xde3   :  { %v9017_v33 = vld [vmem:[#allocation23 + $0x80] sm:$0xff] }
 0xde5   :  { %v5985_v43 = vpop.f32.mrf.mxu2 }
 0xde6   :  { %v5989_v15 = vpack.c.bf16 %v5985_v43, %v5985_v43  ;;  %v9011_v43 = vld [vmem:[#allocation23 + $0x50] sm:$0xff] }
 0xde7   :  { %6433 = vmatpush.bf16.msra.mxu1 %v9011_v43 }
 0xde8   :  { %8437 = vmatmul.msk.bf16.vlgmr.msrb.gmra.mxu3 %vm5710_vm4, %v5989_v15  ;;  %v9021_v15 = vld [vmem:[#allocation23 + $0xa0] sm:$0xff] }
 0xdea   :  { %v6178_v17 = vpop.f32.mrf.mxu1 }
 0xded   :  { %v5987_v60 = vpop.f32.mrf.mxu2 }
 0xdf2   :  { %v6180_v34 = vpop.f32.mrf.mxu1 }
 0xdf5   :  { %v6091_v22 = vpop.f32.mrf.mxu2 }
 0xdf6   :  { %v6095_v29 = vpack.c.bf16 %v6091_v22, %v6091_v22  ;;  %v9010_v22 = vld [vmem:[#allocation23 + $0x48] sm:$0xff] }
 0xdf7   :  { %6434 = vmatpush.bf16.msra.mxu1 %v9010_v22  ;;  %v9035_v22 = vld [vmem:[%s11466_s19 + $0x18] sm:$0xff] }
 0xdf8   :  { %8457 = vmatmul.msk.bf16.vlgmr.msra.gmra.mxu3 %vm5710_vm4, %v6095_v29  ;;  %v9020_v29 = vld [vmem:[#allocation23 + $0x98] sm:$0xff] }
 0xdfd   :  { %v6093_v13 = vpop.f32.mrf.mxu2 }
 0xdfe   :  { %v9019_v13 = vld [vmem:[#allocation23 + $0x90] sm:$0xff] }
 0xe5b   :  { %v5913_v4 = vpop.f32.mrf.mxu3 }
 0xe5c   :  { %v5917_v51 = vadd.f32 %v5913_v4, %v5864_v41 }
 0xe5e   :  { %v5970_v6 = vadd.f32 %v5966_v23, %v5917_v51 }
 0xe63   :  { %v5915_v12 = vpop.f32.mrf.mxu3 }
 0xe64   :  { %v9026_v12 = vld [vmem:[#allocation23 + $0xc8] sm:$0xff] }
 0xe6b   :  { %v6019_v8 = vpop.f32.mrf.mxu3 }
 0xe6c   :  { %v6023_v38 = vadd.f32 %v6019_v8, %v5970_v6  ;;  %v9025_v8 = vld [vmem:[#allocation23 + $0xc0] sm:$0xff] }
 0xe6e   :  { %v6076_v35 = vadd.f32 %v6072_v30, %v6023_v38  ;;  %v9018_v30 = vld [vmem:[#allocation23 + $0x88] sm:$0xff] }
 0xe73   :  { %v6021_v24 = vpop.f32.mrf.mxu3 }
 0xe7b   :  { %v6125_v45 = vpop.f32.mrf.mxu3 }
 0xe7c   :  { %v6129_v62 = vadd.f32 %v6125_v45, %v6076_v35 }
 0xe7e   :  { %v6182_v27 = vadd.f32 %v6178_v17, %v6129_v62  ;;  %v9027_v17 = vld [vmem:[#allocation23 + $0xd0] sm:$0xff]  ;;  %v9024_v62 = vld [vmem:[#allocation23 + $0xb8] sm:$0xff] }
 0xe80   :  { %v6187_v28 = vmul.f32 %v9066_v46, %v6182_v27  ;;  %v9023_v27 = vld [vmem:[#allocation23 + $0xb0] sm:$0xff] }
 0xe82   :  { %v6192_v52 = vadd.f32 %v9067_v16, %v6187_v28 }
 0xe83   :  { %v6127_v20 = vpop.f32.mrf.mxu3 }
 0xe84   :  { %v6193_v1 = vmax.f32 %v6192_v52, 0.0  ;;  %v9022_v20 = vld [vmem:[#allocation23 + $0xa8] sm:$0xff] }
 0xe86   :  { %v6194_v2 = vpack.c.bf16 %v6193_v1, %v6193_v1 }
 0xe88   :  { %v6202_v25 = vsel %vm6200_vm5, %v6194_v2, 0 }
 0xe89   :  { %6211 = vmatpush.bf16.msrb.mxu2 %v6202_v25  ;;  %6236 = vmatpush.bf16.msrb.mxu3 %v6202_v25 }
 0xe8a   :  { %6392 = vmatpush.bf16.msrb.mxu0 %v6202_v25 }
 0xe8c   :  { %8468 = vmatmul.msk.bf16.vlgmr.msrb.gmra.mxu2 %vm6196_vm6, %v6195_v18  ;;  %8470 = vmatmul.msk.bf16.vlgmr.msrb.gmra.mxu3 %vm6196_vm6, %v8469_v55 }
 0xe8d   :  { %6331 = vmatpush.bf16.msra.mxu2 %v6202_v25  ;;  %6371 = vmatpush.bf16.msra.mxu3 %v9009_v36 }
 0xe91   :  { %6453 = vmatpush.bf16.msrb.mxu2 %v6202_v25  ;;  %6372 = vmatpush.bf16.msra.mxu3 %v9008_v11  ;;  %v9031_v11 = vld [vmem:[%s11464_s17 + $0x18] sm:$0xff] }
 0xe95   :  { %6373 = vmatpush.bf16.msra.mxu3 %v9007_v48 }
 0xe99   :  { %6493 = vmatpush.bf16.msrb.mxu3 %v9015_v0  ;;  %v9068_v0 = vld [vmem:[#allocation24] ss:$0 sm:$0xff] }
 0xe9c   :  { %8498 = vmatmul.msk.bf16.vlgmr.msra.gmra.mxu2 %vm6196_vm6, %v8497_v9 }
 0xe9d   :  { %6575 = vmatpush.bf16.msra.mxu2 %v6202_v25  ;;  %6494 = vmatpush.bf16.msrb.mxu3 %v9014_v7 }
 0xea1   :  { %6495 = vmatpush.bf16.msrb.mxu3 %v9013_v53  ;;  %v9069_v53 = vld [vmem:[#allocation26] ss:$0 sm:$0xff] }
 0xeac   :  { %8528 = vmatmul.msk.bf16.vlgmr.msrb.gmra.mxu2 %vm6196_vm6, %v8527_v47 }
 0xead   :  { %6697 = vmatpush.bf16.msrb.mxu2 %v6202_v25 }
 0xebc   :  { %8558 = vmatmul.msk.bf16.vlgmr.msra.gmra.mxu2 %vm6196_vm6, %v8557_v5 }
 0xecc   :  { %8588 = vmatmul.msk.bf16.vlgmr.msrb.gmra.mxu2 %vm6196_vm6, %v8587_v26  ;;  %v9028_v26 = vld [vmem:[%s11464_s17] sm:$0xff] }
 0xf0f   :  { %v6238_v50 = vpop.f32.mrf.mxu3  ;;  %v6213_v40 = vpop.f32.mrf.mxu2 }
 0xf10   :  { %v6242_v32 = vpack.c.bf16 %v6238_v50, %v6238_v50  ;;  %v6217_v44 = vpack.c.bf16 %v6213_v40, %v6213_v40  ;;  %v9030_v50 = vld [vmem:[%s11464_s17 + $0x10] sm:$0xff] }
 0xf12   :  { %8483 = vmatmul.msk.bf16.vlgmr.msra.gmra.mxu0 %vm6268_vm7, %v6242_v32  ;;  %8496 = vmatmul.msk.bf16.vlgmr.msrb.gmra.mxu1 %vm6268_vm7, %v6217_v44  ;;  %v9029_v32 = vld [vmem:[%s11464_s17 + $0x8] sm:$0xff] }
 0xf13   :  { %6514 = vmatpush.bf16.msra.mxu0 %v6202_v25  ;;  %6554 = vmatpush.bf16.msrb.mxu1 %v9018_v30 }
 0xf17   :  { %v6215_v41 = vpop.f32.mrf.mxu2  ;;  %v6240_v31 = vpop.f32.mrf.mxu3  ;;  %6555 = vmatpush.bf16.msrb.mxu1 %v9017_v33 }
 0xf1b   :  { %6556 = vmatpush.bf16.msrb.mxu1 %v9016_v37 }
 0xf1f   :  { %v6333_v57 = vpop.f32.mrf.mxu2 }
 0xf20   :  { %v6337_v3 = vpack.c.bf16 %v6333_v57, %v6333_v57 }
 0xf22   :  { %8513 = vmatmul.msk.bf16.vlgmr.msrb.gmra.mxu0 %vm6196_vm6, %v8512_v63  ;;  %8511 = vmatmul.msk.bf16.vlgmr.msra.gmra.mxu3 %vm6268_vm7, %v6337_v3 }
 0xf23   :  { %6636 = vmatpush.bf16.msrb.mxu0 %v6202_v25  ;;  %6615 = vmatpush.bf16.msra.mxu3 %v9021_v15 }
 0xf27   :  { %v6335_v19 = vpop.f32.mrf.mxu2  ;;  %6616 = vmatpush.bf16.msra.mxu3 %v9020_v29  ;;  %v9034_v29 = vld [vmem:[%s11466_s19 + $0x10] sm:$0xff] }
 0xf2b   :  { %6617 = vmatpush.bf16.msra.mxu3 %v9019_v13  ;;  %v9033_v13 = vld [vmem:[%s11466_s19 + $0x8] sm:$0xff] }
 0xf2f   :  { %v6455_v56 = vpop.f32.mrf.mxu2 }
 0xf30   :  { %v6459_v14 = vpack.c.bf16 %v6455_v56, %v6455_v56 }
 0xf32   :  { %8543 = vmatmul.msk.bf16.vlgmr.msra.gmra.mxu0 %vm6196_vm6, %v8542_v59  ;;  %8541 = vmatmul.msk.bf16.vlgmr.msrb.gmra.mxu3 %vm6268_vm7, %v6459_v14 }
 0xf33   :  { %6737 = vmatpush.bf16.msrb.mxu3 %v9027_v17  ;;  %6800 = vmatpush.bf16.msra.mxu0 %v9031_v11 }
 0xf37   :  { %v6457_v60 = vpop.f32.mrf.mxu2  ;;  %6738 = vmatpush.bf16.msrb.mxu3 %v9026_v12  ;;  %6801 = vmatpush.bf16.msra.mxu0 %v9030_v50 }
 0xf38   :  { %v9622_v60 = vmov 0  }
 0xf39   :  { %9061 = vset.pattern.permute.xlu0 %v9622_v60 }
 0xf3b   :  { %6739 = vmatpush.bf16.msrb.mxu3 %v9025_v8  ;;  %6802 = vmatpush.bf16.msra.mxu0 %v9029_v32 }
 0xf3f   :  { %v6577_v23 = vpop.f32.mrf.mxu2  ;;  %6803 = vmatpush.bf16.msra.mxu0 %v9028_v26 }
 0xf40   :  { %v6581_v10 = vpack.c.bf16 %v6577_v23, %v6577_v23  ;;  %v6767_v23 = vstv %s11537_s26 }
 0xf42   :  { %8573 = vmatmul.msk.bf16.vlgmr.msrb.gmra.mxu0 %vm6196_vm6, %v8572_v58  ;;  %8571 = vmatmul.msk.bf16.vlgmr.msra.gmra.mxu3 %vm6268_vm7, %v6581_v10 }
 0xf47   :  { %v6579_v4 = vpop.f32.mrf.mxu2 }
 0xf4f   :  { %v6699_v51 = vpop.f32.mrf.mxu2 }
 0xf50   :  { %v6703_v24 = vpack.c.bf16 %v6699_v51, %v6699_v51 }
 0xf52   :  { %8601 = vmatmul.msk.bf16.vlgmr.msrb.gmra.mxu3 %vm6268_vm7, %v6703_v24  ;;  %v9070_v24 = vld [vmem:[#allocation27] ss:$0 sm:$0xff] }
 0xf57   :  { %v6701_v35 = vpop.f32.mrf.mxu2 }
 0xf8f   :  { %v6281_v34 = vpop.f32.mrf.mxu0  ;;  %v6315_v54 = vpop.f32.mrf.mxu1 }
 0xf90   :  { %v6316_v21 = vadd.f32 %v6315_v54, %v6281_v34  ;;  %v9032_v54 = vld [vmem:[%s11466_s19] sm:$0xff] }
 0xf97   :  { %v6283_v6 = vpop.f32.mrf.mxu0  ;;  %v6317_v38 = vpop.f32.mrf.mxu1 }
 0xf9f   :  { %v6394_v45 = vpop.f32.mrf.mxu0 }
 0xfa0   :  { %v6398_v46 = vpack.c.bf16 %v6394_v45, %v6394_v45 }
 0xfa2   :  { %8526 = vmatmul.msk.bf16.vlgmr.msra.gmra.mxu1 %vm6268_vm7, %v6398_v46 }
 0xfa3   :  { %6676 = vmatpush.bf16.msra.mxu1 %v9024_v62 }
 0xfa5   :  { %v6375_v16 = vpop.f32.mrf.mxu3 }
 0xfa6   :  { %v6379_v28 = vadd.f32 %v6375_v16, %v6316_v21 }
 0xfa7   :  { %v6396_v52 = vpop.f32.mrf.mxu0  ;;  %6677 = vmatpush.bf16.msra.mxu1 %v9023_v27 }
 0xfab   :  { %6678 = vmatpush.bf16.msra.mxu1 %v9022_v20 }
 0xfad   :  { %v6377_v1 = vpop.f32.mrf.mxu3 }
 0xfaf   :  { %v6516_v2 = vpop.f32.mrf.mxu0 }
 0xfb0   :  { %v6520_v25 = vpack.c.bf16 %v6516_v2, %v6516_v2 }
 0xfb2   :  { %8556 = vmatmul.msk.bf16.vlgmr.msrb.gmra.mxu1 %vm6268_vm7, %v6520_v25 }
 0xfb3   :  { %6864 = vmatpush.bf16.msrb.mxu1 %v9035_v22 }
 0xfb5   :  { %v6497_v39 = vpop.f32.mrf.mxu3 }
 0xfb7   :  { %v6518_v18 = vpop.f32.mrf.mxu0  ;;  %6865 = vmatpush.bf16.msrb.mxu1 %v9034_v29 }
 0xfbb   :  { %6866 = vmatpush.bf16.msrb.mxu1 %v9033_v13 }
 0xfbd   :  { %v6499_v49 = vpop.f32.mrf.mxu3 }
 0xfbf   :  { %v6638_v55 = vpop.f32.mrf.mxu0  ;;  %6867 = vmatpush.bf16.msrb.mxu1 %v9032_v54 }
 0xfc0   :  { %v6642_v9 = vpack.c.bf16 %v6638_v55, %v6638_v55 }
 0xfc2   :  { %8586 = vmatmul.msk.bf16.vlgmr.msra.gmra.mxu1 %vm6268_vm7, %v6642_v9 }
 0xfc5   :  { %v6619_v42 = vpop.f32.mrf.mxu3 }
 0xfc7   :  { %v6640_v47 = vpop.f32.mrf.mxu0 }
 0xfcd   :  { %v6621_v36 = vpop.f32.mrf.mxu3 }
 0xfd5   :  { %v6741_v48 = vpop.f32.mrf.mxu3 }
 0xfdd   :  { %v6743_v40 = vpop.f32.mrf.mxu3 }
0x101f   :  { %v6436_v5 = vpop.f32.mrf.mxu1 }
0x1020   :  { %v6440_v31 = vadd.f32 %v6436_v5, %v6379_v28 }
0x1022   :  { %v6501_v57 = vadd.f32 %v6497_v39, %v6440_v31 }
0x1027   :  { %v6438_v44 = vpop.f32.mrf.mxu1 }
0x102f   :  { %v6558_v41 = vpop.f32.mrf.mxu1 }
0x1030   :  { %v6562_v3 = vadd.f32 %v6558_v41, %v6501_v57 }
0x1032   :  { %v6623_v19 = vadd.f32 %v6619_v42, %v6562_v3 }
0x1037   :  { %v6560_v63 = vpop.f32.mrf.mxu1 }
0x103f   :  { %v6680_v59 = vpop.f32.mrf.mxu1 }
0x1040   :  { %v6684_v58 = vadd.f32 %v6680_v59, %v6623_v19 }
0x1042   :  { %v6745_v7 = vadd.f32 %v6741_v48, %v6684_v58 }
0x1044   :  { %v6750_v56 = vmul.f32 %v9068_v0, %v6745_v7 }
0x1046   :  { %v6755_v14 = vadd.f32 %v9069_v53, %v6750_v56 }
0x1047   :  { %v6682_v61 = vpop.f32.mrf.mxu1 }
0x1048   :  { %v6756_v43 = vmax.f32 %v6755_v14, 0.0 }
0x104a   :  { %v6757_v15 = vpack.c.bf16 %v6756_v43, %v6756_v43 }
0x104c   :  { %8618 = vmatmul.msk.bf16.vlgmr.msra.gmra.mxu0 %vm6792_vm8, %v6757_v15 }
0x10c9   :  { %v6805_v10 = vpop.f32.mrf.mxu0 }
0x10ca   :  { %v6806_v30 = vadd.f32 %v6805_v10, %v6767_v23 }
0x10cc   :  { %v6809_v33 = vsub.f32 0.0, %v6806_v30 }
0x10ce   :  { %v6810_v17 = vmul.f32 1.442695, %v6809_v33 }
0x10d0   :  { %9071 = vpow2.f32 %v6810_v17 }
0x10d1   :  { %v6807_v4 = vpop.f32.mrf.mxu0 }
0x10d6   :  { %v9072_v34 = vpop.eup %9071 }
0x10d7   :  { %v6812_v37 = vadd.f32 1.0, %v9072_v34 }
0x10d9   :  { %9073 = vrcp.f32 %v6812_v37 }
0x10df   :  { %v9074_v12 = vpop.eup %9073 }
0x10e0   :  { %6816 = vperm.xlu0 %9061, %v9074_v12  }
0x1152   :  { %v6817_v21 = vpop.permute.xlu0 %6816 }
0x1153   :  { %v6819_v8 = vmul.f32 %v6817_v21, %v6756_v43 }
0x1155   :  { %v6820_v51 = vpack.c.bf16 %v6819_v8, %v6819_v8 }
0x1157   :  { %8635 = vmatmul.msk.bf16.vlgmr.msrb.gmra.mxu1 %vm6792_vm8, %v6820_v51 }
0x11d4   :  { %v6869_v6 = vpop.f32.mrf.mxu1 }
0x11d5   :  { %v6870_v38 = vadd.f32 %v9070_v24, %v6869_v6 }
0x11d7   :  { %6874 = vst.msk [vmem:[#allocation29] sm:$0x3] %vm6873_vm9, %v6870_v38 }
0x11d8   :  { %6885 = dma.vmem_to_hbm [thread:$0]  %s6881_s12, 32, %s6883_s28, [#allocation5]  }
0x11dc   :  { %v6871_v35 = vpop.f32.mrf.mxu1 }
0x11dd   :  { %9597 = dma.done.wait [#allocation5], 32  }
0x11de   :  { %9598 = vsyncadd [#allocation5], 4294967264 }
0x11df   :  { %6890 = vsyncpa [#allocation4], 1 }
0x11e0   :  { %6891 = vsyncpa [#allocation7], 1 }
0x11e1   :  { %6892 = vsyncpa [#allocation10], 1 }
0x11e2   :  { %6893 = vsyncpa [#allocation13], 1 }
0x11e3   :  { %6894 = vsyncpa [#allocation16], 1 }
0x11e4   :  { %6895 = vsyncpa [#allocation19], 1 }
0x11e5   :  { %6896 = vsyncpa [#allocation22], 1 }
0x11e6   :  { %6897 = vsyncpa [#allocation25], 1 }
0x11e7   :  { %6898 = vsyncpa [#allocation28], 1 }
0x11e8   :  { %6899 = vsyncpa [#allocation5], 1 }

</bundles_post_ra>
